<compile_context>
chip_gen: v7x
topology: tpu7x:2x2x1
jax: 0.10.0
libtpu: 0.0.40
codegen_flags: <defaults>
</compile_context>

<pallas_src>
import math

import jax
import jax.numpy as jnp
from jax import lax
from jax.experimental import pallas as pl
from jax.experimental.pallas import tpu as pltpu

D = 512      # input_dim (module hard-codes dim=512 for TailFusion / LayerNorm)
C = 4        # n_classes
CPAD = 128   # lane-dense padding of the class dimension
N = 32       # number of patch tokens per modality (small synthetic size)
APAD = 128   # lane-dense padding of the attention-score output
K = 4        # top-k / bottom-k (only used by the training-time contrastive path)
EPS = 1e-5   # LayerNorm eps (PyTorch default)


# ----------------------------- in-kernel helpers -----------------------------

def _gelu(x):
    # TODO(synk): tanh-approx GELU; PyTorch nn.GELU default is exact erf.
    c = math.sqrt(2.0 / math.pi)
    return 0.5 * x * (1.0 + jnp.tanh(c * (x + 0.044715 * x * x * x)))


def _layer_norm(x, g, b):
    mu = jnp.mean(x, axis=-1, keepdims=True)
    var = jnp.mean((x - mu) ** 2, axis=-1, keepdims=True)
    return (x - mu) * lax.rsqrt(var + EPS) * g + b


# ------------------------- fully fused WSMCL kernel --------------------------
# grid=(2,) over modality.  Per step: modality FC + GELU, TransLayer self-attn
# (+residual), model-level LayerNorm, mean pooling, modality classifier.
# At m == 1, TailFusion runs on the carried HE slide token + current IHC token.

def _wsmcl_kernel(x_ref, wfc_ref, bfc_ref,
                  ln1g_ref, ln1b_ref,
                  wqkv_ref, bqkv_ref, wo_ref, bo_ref,
                  lng_ref, lnb_ref,
                  wcls_ref, bcls_ref,
                  mm_wfc_ref, mm_bfc_ref, mm_w1_ref, mm_b1_ref,
                  mm_w2_ref, mm_b2_ref,
                  a_ref, logit_ref, mm_ref,
                  tok_sc):
    m = pl.program_id(0)

    x = x_ref[0]                                                 # (N, D) bf16

    # modality FC + GELU (bf16 weights, f32 accumulation)
    h = jnp.dot(x, wfc_ref[0], preferred_element_type=jnp.float32) + bfc_ref[0]
    h = _gelu(h)                                                 # (N, D) f32

    # TransLayer: pre-norm single-head self-attention with residual
    hn = _layer_norm(h, ln1g_ref[0], ln1b_ref[0])
    # cast qkv to bf16 once (before slicing) to halve its vreg/VMEM footprint
    qkv = (jnp.dot(hn.astype(jnp.bfloat16), wqkv_ref[0],
                   preferred_element_type=jnp.float32)
           + bqkv_ref[0]).astype(jnp.bfloat16)                   # (N, 3D) bf16
    q = qkv[:, 0:D]          # 1/sqrt(D) scale pre-folded into wq/bq at init
    k = qkv[:, D:2 * D]
    v = qkv[:, 2 * D:3 * D]

    # QK^T (contracting dim 1 of both operands -> transposed-B matmul)
    s = lax.dot_general(q, k, (((1,), (1,)), ((), ())),
                        preferred_element_type=jnp.float32)      # (N, N)
    s = s - jnp.max(s, axis=-1, keepdims=True)
    e = jnp.exp(s)
    attn = e * pl.reciprocal(jnp.sum(e, axis=-1, keepdims=True), approx=True)

    ctx = jnp.dot(attn.astype(jnp.bfloat16), v,
                  preferred_element_type=jnp.float32)
    o = (jnp.dot(ctx.astype(jnp.bfloat16), wo_ref[0],
                 preferred_element_type=jnp.float32) + bo_ref[0])
    feats = h + o

    # per-token mean received attention A, written lane-dense (padded to 128)
    mean_a = jnp.mean(attn, axis=0, keepdims=True)               # (1, N)
    a_ref[...] = jnp.zeros((1, 1, APAD), jnp.float32)
    a_ref[0, :, 0:N] = mean_a

    # model-level LayerNorm (shared self.norm), mean-pool slide token, classifier
    fn = _layer_norm(feats, lng_ref[...], lnb_ref[...])
    tok = jnp.mean(fn, axis=0, keepdims=True)                    # (1, D) f32
    logit_ref[0] = (jnp.dot(tok.astype(jnp.bfloat16), wcls_ref[0],
                            preferred_element_type=jnp.float32) + bcls_ref[0])

    @pl.when(m == 0)
    def _():
        tok_sc[...] = tok                # carry HE slide token to next step
        mm_ref[...] = jnp.zeros_like(mm_ref)

    @pl.when(m == 1)
    def _():
        he = tok_sc[...]                 # (1, D) f32
        ihc = tok
        add_t = he + ihc
        mul_t = he * ihc

        # fc(concat([he, ihc], -1)) as a split matmul (avoids in-kernel concat)
        cf = (jnp.dot(he.astype(jnp.bfloat16), mm_wfc_ref[0:D, :],
                      preferred_element_type=jnp.float32)
              + jnp.dot(ihc.astype(jnp.bfloat16), mm_wfc_ref[D:2 * D, :],
                        preferred_element_type=jnp.float32)
              + mm_bfc_ref[...])

        # classifier(concat([add, mul, cf], -1))
        hd = (jnp.dot(add_t.astype(jnp.bfloat16), mm_w1_ref[0:D, :],
                      preferred_element_type=jnp.float32)
              + jnp.dot(mul_t.astype(jnp.bfloat16), mm_w1_ref[D:2 * D, :],
                        preferred_element_type=jnp.float32)
              + jnp.dot(cf.astype(jnp.bfloat16), mm_w1_ref[2 * D:3 * D, :],
                        preferred_element_type=jnp.float32)
              + mm_b1_ref[...])
        hd = _gelu(hd)
        mm_ref[...] = (jnp.dot(hd.astype(jnp.bfloat16), mm_w2_ref[...],
                               preferred_element_type=jnp.float32)
                       + mm_b2_ref[...])


def _run_wsmcl(x2, bp, mm):
    ce = pl.CostEstimate(flops=180_000_000, transcendentals=40_000,
                         bytes_accessed=9_000_000)
    return pl.pallas_call(
        _wsmcl_kernel,
        out_shape=(
            jax.ShapeDtypeStruct((2, 1, APAD), jnp.float32),   # attention A (padded)
            jax.ShapeDtypeStruct((2, 1, CPAD), jnp.float32),   # modality logit (padded)
            jax.ShapeDtypeStruct((1, CPAD), jnp.float32),      # MM logit (padded)
        ),
        grid_spec=pltpu.PrefetchScalarGridSpec(
            num_scalar_prefetch=0,
            grid=(2,),
            in_specs=[
                pl.BlockSpec((1, N, D), lambda m: (m, 0, 0)),        # x
                pl.BlockSpec((1, D, D), lambda m: (m, 0, 0)),        # wfc
                pl.BlockSpec((1, 1, D), lambda m: (m, 0, 0)),        # bfc
                pl.BlockSpec((1, 1, D), lambda m: (m, 0, 0)),        # ln1 gamma
                pl.BlockSpec((1, 1, D), lambda m: (m, 0, 0)),        # ln1 beta
                pl.BlockSpec((1, D, 3 * D), lambda m: (m, 0, 0)),    # wqkv
                pl.BlockSpec((1, 1, 3 * D), lambda m: (m, 0, 0)),    # bqkv
                pl.BlockSpec((1, D, D), lambda m: (m, 0, 0)),        # wo
                pl.BlockSpec((1, 1, D), lambda m: (m, 0, 0)),        # bo
                pl.BlockSpec((1, D), lambda m: (0, 0)),              # shared norm gamma
                pl.BlockSpec((1, D), lambda m: (0, 0)),              # shared norm beta
                pl.BlockSpec((1, D, CPAD), lambda m: (m, 0, 0)),     # wcls (padded)
                pl.BlockSpec((1, 1, CPAD), lambda m: (m, 0, 0)),     # bcls (padded)
                # TailFusion weights: constant index_map -> DMA'd once, reused
                pl.BlockSpec((2 * D, D), lambda m: (0, 0)),          # mm wfc
                pl.BlockSpec((1, D), lambda m: (0, 0)),              # mm bfc
                pl.BlockSpec((3 * D, D), lambda m: (0, 0)),          # mm w1
                pl.BlockSpec((1, D), lambda m: (0, 0)),              # mm b1
                pl.BlockSpec((D, CPAD), lambda m: (0, 0)),           # mm w2 (padded)
                pl.BlockSpec((1, CPAD), lambda m: (0, 0)),           # mm b2 (padded)
            ],
            out_specs=(
                pl.BlockSpec((1, 1, APAD), lambda m: (m, 0, 0)),
                pl.BlockSpec((1, 1, CPAD), lambda m: (m, 0, 0)),
                pl.BlockSpec((1, CPAD), lambda m: (0, 0)),
            ),
            scratch_shapes=[pltpu.VMEM((1, D), jnp.float32)],        # HE slide token
        ),
        compiler_params=pltpu.CompilerParams(
            dimension_semantics=("arbitrary",),      # cross-step carry (tok scratch)
            vmem_limit_bytes=32 * 1024 * 1024),
        cost_estimate=ce,
    )(x2, bp['wfc'], bp['bfc'], bp['ln1g'], bp['ln1b'],
      bp['wqkv'], bp['bqkv'], bp['wo'], bp['bo'],
      bp['lng'], bp['lnb'], bp['wcls'], bp['bcls'],
      mm['wfc'], mm['bfc'], mm['w1'], mm['b1'], mm['w2'], mm['b2'])


# ------------------------------ parameter setup ------------------------------

def _linear(key, din, dout):
    k1, k2 = jax.random.split(key)
    s = 1.0 / math.sqrt(din)
    w = jax.random.uniform(k1, (din, dout), jnp.float32, -s, s)
    b = jax.random.uniform(k2, (1, dout), jnp.float32, -s, s)
    return w, b


def init_params(key):
    keys = jax.random.split(key, 16)

    def branch(ks, kcls):
        wfc, bfc = _linear(ks[0], D, D)
        wq, bq = _linear(ks[1], D, D)
        wk, bk = _linear(ks[2], D, D)
        wv, bv = _linear(ks[3], D, D)
        wo, bo = _linear(ks[4], D, D)
        wcls, bcls = _linear(kcls, D, C)
        scale = 1.0 / math.sqrt(D)   # attention scale folded into the Q projection
        wqkv = jnp.concatenate([wq * scale, wk, wv], axis=1)   # (D, 3D)
        bqkv = jnp.concatenate([bq * scale, bk, bv], axis=1)   # (1, 3D)
        wcls_p = jnp.zeros((D, CPAD), jnp.float32).at[:, :C].set(wcls)
        bcls_p = jnp.zeros((1, CPAD), jnp.float32).at[:, :C].set(bcls)
        return dict(wfc=wfc, bfc=bfc, wqkv=wqkv, bqkv=bqkv, wo=wo, bo=bo,
                    wcls=wcls_p, bcls=bcls_p)

    he = branch(keys[0:5], keys[10])
    ihc = branch(keys[5:10], keys[11])

    def stack(name, dtype=None):
        v = jnp.stack([he[name], ihc[name]], axis=0)
        return v.astype(dtype) if dtype is not None else v

    branches = dict(
        wfc=stack('wfc', jnp.bfloat16), bfc=stack('bfc'),
        ln1g=jnp.ones((2, 1, D), jnp.float32),
        ln1b=jnp.zeros((2, 1, D), jnp.float32),
        wqkv=stack('wqkv', jnp.bfloat16), bqkv=stack('bqkv'),
        wo=stack('wo', jnp.bfloat16), bo=stack('bo'),
        lng=jnp.ones((1, D), jnp.float32),    # shared self.norm
        lnb=jnp.zeros((1, D), jnp.float32),
        wcls=stack('wcls', jnp.bfloat16), bcls=stack('bcls'),
    )

    mm_wfc, mm_bfc = _linear(keys[12], 2 * D, D)
    mm_w1, mm_b1 = _linear(keys[13], 3 * D, D)
    mm_w2, mm_b2 = _linear(keys[14], D, C)
    mm = dict(
        wfc=mm_wfc.astype(jnp.bfloat16), bfc=mm_bfc,
        w1=mm_w1.astype(jnp.bfloat16), b1=mm_b1,
        w2=jnp.zeros((D, CPAD), jnp.float32).at[:, :C].set(mm_w2).astype(jnp.bfloat16),
        b2=jnp.zeros((1, CPAD), jnp.float32).at[:, :C].set(mm_b2),
    )

    logit_scale = jnp.array(math.log(1.0 / 0.07), jnp.float32)  # training-only
    return dict(BR=branches, MM=mm, logit_scale=logit_scale)


# --------------------------------- forward -----------------------------------

@jax.jit
def wsmcl_forward(params, he_features, ihc_features):
    x2 = jnp.stack([he_features, ihc_features], axis=0).astype(jnp.bfloat16)
    a2, logit2, mm_logit = _run_wsmcl(x2, params['BR'], params['MM'])
    # TODO(synk): training-only contrastive loss (and its top-/bottom-k feature
    # gather) is not computed in this eval-mode forward.
    return {
        'HE_logit': logit2[0, :, :C],
        'IHC_logit': logit2[1, :, :C],
        'HE_A': a2[0, :, :N],
        'IHC_A': a2[1, :, :N],
        'MM_logit': mm_logit[:, :C],
    }


# ----------------------------------- main ------------------------------------

if __name__ == "__main__":
    key = jax.random.PRNGKey(0)
    kp, kh, ki = jax.random.split(key, 3)

    params = init_params(kp)
    he_features = jax.random.normal(kh, (N, D), jnp.float32)
    ihc_features = jax.random.normal(ki, (N, D), jnp.float32)

    out = wsmcl_forward(params, he_features, ihc_features)
    out = jax.block_until_ready(out)

    assert out['HE_logit'].shape == (1, C)
    assert out['IHC_logit'].shape == (1, C)
    assert out['MM_logit'].shape == (1, C)
    assert out['HE_A'].shape == (1, N)
    assert out['IHC_A'].shape == (1, N)
    assert all(bool(jnp.all(jnp.isfinite(v))) for v in out.values())
    print("KERNEL_OK")
</pallas_src>

<mosaic_0001>
module attributes {stable_mosaic.version = 11 : i64} {
  func.func @_wsmcl_kernel(%arg0: i32, %arg1: memref<1x32x512xbf16, #tpu.memory_space<vmem>>, %arg2: memref<1x512x512xbf16, #tpu.memory_space<vmem>>, %arg3: memref<1x1x512xf32, #tpu.memory_space<vmem>>, %arg4: memref<1x1x512xf32, #tpu.memory_space<vmem>>, %arg5: memref<1x1x512xf32, #tpu.memory_space<vmem>>, %arg6: memref<1x512x1536xbf16, #tpu.memory_space<vmem>>, %arg7: memref<1x1x1536xf32, #tpu.memory_space<vmem>>, %arg8: memref<1x512x512xbf16, #tpu.memory_space<vmem>>, %arg9: memref<1x1x512xf32, #tpu.memory_space<vmem>>, %arg10: memref<1x512xf32, #tpu.memory_space<vmem>>, %arg11: memref<1x512xf32, #tpu.memory_space<vmem>>, %arg12: memref<1x512x128xbf16, #tpu.memory_space<vmem>>, %arg13: memref<1x1x128xf32, #tpu.memory_space<vmem>>, %arg14: memref<1024x512xbf16, #tpu.memory_space<vmem>>, %arg15: memref<1x512xf32, #tpu.memory_space<vmem>>, %arg16: memref<1536x512xbf16, #tpu.memory_space<vmem>>, %arg17: memref<1x512xf32, #tpu.memory_space<vmem>>, %arg18: memref<512x128xbf16, #tpu.memory_space<vmem>>, %arg19: memref<1x128xf32, #tpu.memory_space<vmem>>, %arg20: memref<1x1x128xf32, #tpu.memory_space<vmem>>, %arg21: memref<1x1x128xf32, #tpu.memory_space<vmem>>, %arg22: memref<1x128xf32, #tpu.memory_space<vmem>>, %arg23: memref<1x512xf32, #tpu.memory_space<vmem>>) attributes {dimension_semantics = [#tpu.dimension_semantics<arbitrary>], iteration_bounds = array<i64: 2>, scalar_prefetch = 0 : i64, scratch_operands = 1 : i64, tpu.core_type = #tpu.core_type<tc>, window_params = [{transform_indices = @transform_0, window_bounds = array<i64: 1, 32, 512>}, {transform_indices = @transform_1, window_bounds = array<i64: 1, 512, 512>}, {transform_indices = @transform_2, window_bounds = array<i64: 1, 1, 512>}, {transform_indices = @transform_3, window_bounds = array<i64: 1, 1, 512>}, {transform_indices = @transform_4, window_bounds = array<i64: 1, 1, 512>}, {transform_indices = @transform_5, window_bounds = array<i64: 1, 512, 1536>}, {transform_indices = @transform_6, window_bounds = array<i64: 1, 1, 1536>}, {transform_indices = @transform_7, window_bounds = array<i64: 1, 512, 512>}, {transform_indices = @transform_8, window_bounds = array<i64: 1, 1, 512>}, {pipeline_mode = #tpu.pipeline_mode<synchronous>, transform_indices = @transform_9, window_bounds = array<i64: 1, 512>}, {pipeline_mode = #tpu.pipeline_mode<synchronous>, transform_indices = @transform_10, window_bounds = array<i64: 1, 512>}, {transform_indices = @transform_11, window_bounds = array<i64: 1, 512, 128>}, {transform_indices = @transform_12, window_bounds = array<i64: 1, 1, 128>}, {pipeline_mode = #tpu.pipeline_mode<synchronous>, transform_indices = @transform_13, window_bounds = array<i64: 1024, 512>}, {pipeline_mode = #tpu.pipeline_mode<synchronous>, transform_indices = @transform_14, window_bounds = array<i64: 1, 512>}, {pipeline_mode = #tpu.pipeline_mode<synchronous>, transform_indices = @transform_15, window_bounds = array<i64: 1536, 512>}, {pipeline_mode = #tpu.pipeline_mode<synchronous>, transform_indices = @transform_16, window_bounds = array<i64: 1, 512>}, {pipeline_mode = #tpu.pipeline_mode<synchronous>, transform_indices = @transform_17, window_bounds = array<i64: 512, 128>}, {pipeline_mode = #tpu.pipeline_mode<synchronous>, transform_indices = @transform_18, window_bounds = array<i64: 1, 128>}, {transform_indices = @transform_19, window_bounds = array<i64: 1, 1, 128>}, {transform_indices = @transform_20, window_bounds = array<i64: 1, 1, 128>}, {pipeline_mode = #tpu.pipeline_mode<synchronous>, transform_indices = @transform_21, window_bounds = array<i64: 1, 128>}]} {
    %c0 = arith.constant 0 : index
    %c0_0 = arith.constant 0 : index
    %c0_1 = arith.constant 0 : index
    %0 = vector.load %arg1[%c0, %c0_0, %c0_1] : memref<1x32x512xbf16, #tpu.memory_space<vmem>>, vector<1x32x512xbf16>
    %1 = vector.shape_cast %0 : vector<1x32x512xbf16> to vector<32x512xbf16>
    %c0_2 = arith.constant 0 : index
    %c0_3 = arith.constant 0 : index
    %c0_4 = arith.constant 0 : index
    %2 = vector.load %arg2[%c0_2, %c0_3, %c0_4] : memref<1x512x512xbf16, #tpu.memory_space<vmem>>, vector<1x512x512xbf16>
    %3 = vector.shape_cast %2 : vector<1x512x512xbf16> to vector<512x512xbf16>
    %cst = arith.constant dense<0.000000e+00> : vector<32x512xf32>
    %4 = tpu.matmul %1, %3, %cst {dimension_numbers = #tpu.dot_dimension_numbers<[1], [0], [0], [1], [0, 0, 1, 1], [], []>} : vector<32x512xbf16>, vector<512x512xbf16>, vector<32x512xf32> -> vector<32x512xf32>
    %c0_5 = arith.constant 0 : index
    %c0_6 = arith.constant 0 : index
    %c0_7 = arith.constant 0 : index
    %5 = vector.load %arg3[%c0_5, %c0_6, %c0_7] : memref<1x1x512xf32, #tpu.memory_space<vmem>>, vector<1x1x512xf32>
    %6 = vector.shape_cast %5 : vector<1x1x512xf32> to vector<1x512xf32>
    %7 = vector.broadcast %6 : vector<1x512xf32> to vector<32x512xf32>
    %8 = arith.addf %4, %7 : vector<32x512xf32>
    %cst_8 = arith.constant 5.000000e-01 : f32
    %9 = vector.broadcast %cst_8 : f32 to vector<32x512xf32>
    %10 = arith.mulf %9, %8 : vector<32x512xf32>
    %cst_9 = arith.constant 4.471500e-02 : f32
    %11 = vector.broadcast %cst_9 : f32 to vector<32x512xf32>
    %12 = arith.mulf %11, %8 : vector<32x512xf32>
    %13 = arith.mulf %12, %8 : vector<32x512xf32>
    %14 = arith.mulf %13, %8 : vector<32x512xf32>
    %15 = arith.addf %8, %14 : vector<32x512xf32>
    %cst_10 = arith.constant 0.797884583 : f32
    %16 = vector.broadcast %cst_10 : f32 to vector<32x512xf32>
    %17 = arith.mulf %16, %15 : vector<32x512xf32>
    %18 = math.tanh %17 : vector<32x512xf32>
    %cst_11 = arith.constant 1.000000e+00 : f32
    %19 = vector.broadcast %cst_11 : f32 to vector<32x512xf32>
    %20 = arith.addf %19, %18 : vector<32x512xf32>
    %21 = arith.mulf %10, %20 : vector<32x512xf32>
    %c0_12 = arith.constant 0 : index
    %c0_13 = arith.constant 0 : index
    %c0_14 = arith.constant 0 : index
    %22 = vector.load %arg4[%c0_12, %c0_13, %c0_14] : memref<1x1x512xf32, #tpu.memory_space<vmem>>, vector<1x1x512xf32>
    %23 = vector.shape_cast %22 : vector<1x1x512xf32> to vector<1x512xf32>
    %c0_15 = arith.constant 0 : index
    %c0_16 = arith.constant 0 : index
    %c0_17 = arith.constant 0 : index
    %24 = vector.load %arg5[%c0_15, %c0_16, %c0_17] : memref<1x1x512xf32, #tpu.memory_space<vmem>>, vector<1x1x512xf32>
    %25 = vector.shape_cast %24 : vector<1x1x512xf32> to vector<1x512xf32>
    %cst_18 = arith.constant dense<0.000000e+00> : vector<32xf32>
    %26 = vector.multi_reduction <add>, %21, %cst_18 [1] : vector<32x512xf32> to vector<32xf32>
    %27 = vector.shape_cast %26 : vector<32xf32> to vector<32x1xf32>
    %cst_19 = arith.constant 5.120000e+02 : f32
    %28 = vector.broadcast %cst_19 : f32 to vector<32x1xf32>
    %29 = arith.divf %27, %28 : vector<32x1xf32>
    %30 = vector.broadcast %29 : vector<32x1xf32> to vector<32x512xf32>
    %31 = arith.subf %21, %30 : vector<32x512xf32>
    %32 = arith.mulf %31, %31 : vector<32x512xf32>
    %cst_20 = arith.constant dense<0.000000e+00> : vector<32xf32>
    %33 = vector.multi_reduction <add>, %32, %cst_20 [1] : vector<32x512xf32> to vector<32xf32>
    %34 = vector.shape_cast %33 : vector<32xf32> to vector<32x1xf32>
    %cst_21 = arith.constant 5.120000e+02 : f32
    %35 = vector.broadcast %cst_21 : f32 to vector<32x1xf32>
    %36 = arith.divf %34, %35 : vector<32x1xf32>
    %37 = vector.broadcast %29 : vector<32x1xf32> to vector<32x512xf32>
    %38 = arith.subf %21, %37 : vector<32x512xf32>
    %cst_22 = arith.constant 9.99999974E-6 : f32
    %39 = vector.broadcast %cst_22 : f32 to vector<32x1xf32>
    %40 = arith.addf %36, %39 : vector<32x1xf32>
    %41 = math.rsqrt %40 : vector<32x1xf32>
    %42 = vector.broadcast %41 : vector<32x1xf32> to vector<32x512xf32>
    %43 = arith.mulf %38, %42 : vector<32x512xf32>
    %44 = vector.broadcast %23 : vector<1x512xf32> to vector<32x512xf32>
    %45 = arith.mulf %43, %44 : vector<32x512xf32>
    %46 = vector.broadcast %25 : vector<1x512xf32> to vector<32x512xf32>
    %47 = arith.addf %45, %46 : vector<32x512xf32>
    %48 = arith.truncf %47 : vector<32x512xf32> to vector<32x512xbf16>
    %c0_23 = arith.constant 0 : index
    %c0_24 = arith.constant 0 : index
    %c0_25 = arith.constant 0 : index
    %49 = vector.load %arg6[%c0_23, %c0_24, %c0_25] : memref<1x512x1536xbf16, #tpu.memory_space<vmem>>, vector<1x512x1536xbf16>
    %50 = vector.shape_cast %49 : vector<1x512x1536xbf16> to vector<512x1536xbf16>
    %cst_26 = arith.constant dense<0.000000e+00> : vector<32x1536xf32>
    %51 = tpu.matmul %48, %50, %cst_26 {dimension_numbers = #tpu.dot_dimension_numbers<[1], [0], [0], [1], [0, 0, 1, 1], [], []>} : vector<32x512xbf16>, vector<512x1536xbf16>, vector<32x1536xf32> -> vector<32x1536xf32>
    %c0_27 = arith.constant 0 : index
    %c0_28 = arith.constant 0 : index
    %c0_29 = arith.constant 0 : index
    %52 = vector.load %arg7[%c0_27, %c0_28, %c0_29] : memref<1x1x1536xf32, #tpu.memory_space<vmem>>, vector<1x1x1536xf32>
    %53 = vector.shape_cast %52 : vector<1x1x1536xf32> to vector<1x1536xf32>
    %54 = vector.broadcast %53 : vector<1x1536xf32> to vector<32x1536xf32>
    %55 = arith.addf %51, %54 : vector<32x1536xf32>
    %56 = arith.truncf %55 : vector<32x1536xf32> to vector<32x1536xbf16>
    %57 = vector.extract_strided_slice %56 {offsets = [0, 0], sizes = [32, 512], strides = [1, 1]} : vector<32x1536xbf16> to vector<32x512xbf16>
    %58 = vector.extract_strided_slice %56 {offsets = [0, 512], sizes = [32, 512], strides = [1, 1]} : vector<32x1536xbf16> to vector<32x512xbf16>
    %59 = vector.extract_strided_slice %56 {offsets = [0, 1024], sizes = [32, 512], strides = [1, 1]} : vector<32x1536xbf16> to vector<32x512xbf16>
    %cst_30 = arith.constant dense<0.000000e+00> : vector<32x32xf32>
    %60 = tpu.matmul %57, %58, %cst_30 {dimension_numbers = #tpu.dot_dimension_numbers<[1], [1], [0], [0], [0, 0, 1, 0], [], []>} : vector<32x512xbf16>, vector<32x512xbf16>, vector<32x32xf32> -> vector<32x32xf32>
    %cst_31 = arith.constant dense<0xFF800000> : vector<32xf32>
    %61 = vector.multi_reduction <maximumf>, %60, %cst_31 [1] : vector<32x32xf32> to vector<32xf32>
    %62 = vector.shape_cast %61 : vector<32xf32> to vector<32x1xf32>
    %63 = vector.broadcast %62 : vector<32x1xf32> to vector<32x32xf32>
    %64 = arith.subf %60, %63 : vector<32x32xf32>
    %65 = math.exp %64 : vector<32x32xf32>
    %cst_32 = arith.constant dense<0.000000e+00> : vector<32xf32>
    %66 = vector.multi_reduction <add>, %65, %cst_32 [1] : vector<32x32xf32> to vector<32xf32>
    %67 = vector.shape_cast %66 : vector<32xf32> to vector<32x1xf32>
    %68 = tpu.reciprocal %67 {approx = true} : vector<32x1xf32> -> vector<32x1xf32>
    %69 = vector.broadcast %68 : vector<32x1xf32> to vector<32x32xf32>
    %70 = arith.mulf %65, %69 : vector<32x32xf32>
    %71 = arith.truncf %70 : vector<32x32xf32> to vector<32x32xbf16>
    %cst_33 = arith.constant dense<0.000000e+00> : vector<32x512xf32>
    %72 = tpu.matmul %71, %59, %cst_33 {dimension_numbers = #tpu.dot_dimension_numbers<[1], [0], [0], [1], [0, 0, 1, 1], [], []>} : vector<32x32xbf16>, vector<32x512xbf16>, vector<32x512xf32> -> vector<32x512xf32>
    %73 = arith.truncf %72 : vector<32x512xf32> to vector<32x512xbf16>
    %c0_34 = arith.constant 0 : index
    %c0_35 = arith.constant 0 : index
    %c0_36 = arith.constant 0 : index
    %74 = vector.load %arg8[%c0_34, %c0_35, %c0_36] : memref<1x512x512xbf16, #tpu.memory_space<vmem>>, vector<1x512x512xbf16>
    %75 = vector.shape_cast %74 : vector<1x512x512xbf16> to vector<512x512xbf16>
    %cst_37 = arith.constant dense<0.000000e+00> : vector<32x512xf32>
    %76 = tpu.matmul %73, %75, %cst_37 {dimension_numbers = #tpu.dot_dimension_numbers<[1], [0], [0], [1], [0, 0, 1, 1], [], []>} : vector<32x512xbf16>, vector<512x512xbf16>, vector<32x512xf32> -> vector<32x512xf32>
    %c0_38 = arith.constant 0 : index
    %c0_39 = arith.constant 0 : index
    %c0_40 = arith.constant 0 : index
    %77 = vector.load %arg9[%c0_38, %c0_39, %c0_40] : memref<1x1x512xf32, #tpu.memory_space<vmem>>, vector<1x1x512xf32>
    %78 = vector.shape_cast %77 : vector<1x1x512xf32> to vector<1x512xf32>
    %79 = vector.broadcast %78 : vector<1x512xf32> to vector<32x512xf32>
    %80 = arith.addf %76, %79 : vector<32x512xf32>
    %81 = arith.addf %21, %80 : vector<32x512xf32>
    %cst_41 = arith.constant dense<0.000000e+00> : vector<32xf32>
    %82 = vector.multi_reduction <add>, %70, %cst_41 [0] : vector<32x32xf32> to vector<32xf32>
    %83 = vector.shape_cast %82 : vector<32xf32> to vector<1x32xf32>
    %cst_42 = arith.constant 3.200000e+01 : f32
    %84 = vector.broadcast %cst_42 : f32 to vector<1x32xf32>
    %85 = arith.divf %83, %84 : vector<1x32xf32>
    %cst_43 = arith.constant 0.000000e+00 : f32
    %86 = vector.broadcast %cst_43 : f32 to vector<1x1x128xf32>
    %c0_44 = arith.constant 0 : index
    %c0_45 = arith.constant 0 : index
    %c0_46 = arith.constant 0 : index
    %87 = vector.load %arg20[%c0_44, %c0_45, %c0_46] : memref<1x1x128xf32, #tpu.memory_space<vmem>>, vector<1x1x128xf32>
    tpu.vector_store %arg20[%c0_44, %c0_45, %c0_46], %86 {strides = array<i32>} : memref<1x1x128xf32, #tpu.memory_space<vmem>>, vector<1x1x128xf32>,
    %c0_47 = arith.constant 0 : index
    %c0_48 = arith.constant 0 : index
    %c0_49 = arith.constant 0 : index
    %88 = vector.load %arg20[%c0_47, %c0_48, %c0_49] : memref<1x1x128xf32, #tpu.memory_space<vmem>>, vector<1x1x32xf32>
    %89 = vector.shape_cast %88 : vector<1x1x32xf32> to vector<1x32xf32>
    %90 = vector.shape_cast %85 : vector<1x32xf32> to vector<1x1x32xf32>
    tpu.vector_store %arg20[%c0_47, %c0_48, %c0_49], %90 {strides = array<i32>} : memref<1x1x128xf32, #tpu.memory_space<vmem>>, vector<1x1x32xf32>,
    %c0_50 = arith.constant 0 : index
    %c0_51 = arith.constant 0 : index
    %91 = vector.load %arg10[%c0_50, %c0_51] : memref<1x512xf32, #tpu.memory_space<vmem>>, vector<1x512xf32>
    %c0_52 = arith.constant 0 : index
    %c0_53 = arith.constant 0 : index
    %92 = vector.load %arg11[%c0_52, %c0_53] : memref<1x512xf32, #tpu.memory_space<vmem>>, vector<1x512xf32>
    %cst_54 = arith.constant dense<0.000000e+00> : vector<32xf32>
    %93 = vector.multi_reduction <add>, %81, %cst_54 [1] : vector<32x512xf32> to vector<32xf32>
    %94 = vector.shape_cast %93 : vector<32xf32> to vector<32x1xf32>
    %cst_55 = arith.constant 5.120000e+02 : f32
    %95 = vector.broadcast %cst_55 : f32 to vector<32x1xf32>
    %96 = arith.divf %94, %95 : vector<32x1xf32>
    %97 = vector.broadcast %96 : vector<32x1xf32> to vector<32x512xf32>
    %98 = arith.subf %81, %97 : vector<32x512xf32>
    %99 = arith.mulf %98, %98 : vector<32x512xf32>
    %cst_56 = arith.constant dense<0.000000e+00> : vector<32xf32>
    %100 = vector.multi_reduction <add>, %99, %cst_56 [1] : vector<32x512xf32> to vector<32xf32>
    %101 = vector.shape_cast %100 : vector<32xf32> to vector<32x1xf32>
    %cst_57 = arith.constant 5.120000e+02 : f32
    %102 = vector.broadcast %cst_57 : f32 to vector<32x1xf32>
    %103 = arith.divf %101, %102 : vector<32x1xf32>
    %104 = vector.broadcast %96 : vector<32x1xf32> to vector<32x512xf32>
    %105 = arith.subf %81, %104 : vector<32x512xf32>
    %cst_58 = arith.constant 9.99999974E-6 : f32
    %106 = vector.broadcast %cst_58 : f32 to vector<32x1xf32>
    %107 = arith.addf %103, %106 : vector<32x1xf32>
    %108 = math.rsqrt %107 : vector<32x1xf32>
    %109 = vector.broadcast %108 : vector<32x1xf32> to vector<32x512xf32>
    %110 = arith.mulf %105, %109 : vector<32x512xf32>
    %111 = vector.broadcast %91 : vector<1x512xf32> to vector<32x512xf32>
    %112 = arith.mulf %110, %111 : vector<32x512xf32>
    %113 = vector.broadcast %92 : vector<1x512xf32> to vector<32x512xf32>
    %114 = arith.addf %112, %113 : vector<32x512xf32>
    %cst_59 = arith.constant dense<0.000000e+00> : vector<512xf32>
    %115 = vector.multi_reduction <add>, %114, %cst_59 [0] : vector<32x512xf32> to vector<512xf32>
    %116 = vector.shape_cast %115 : vector<512xf32> to vector<1x512xf32>
    %cst_60 = arith.constant 3.200000e+01 : f32
    %117 = vector.broadcast %cst_60 : f32 to vector<1x512xf32>
    %118 = arith.divf %116, %117 : vector<1x512xf32>
    %119 = arith.truncf %118 : vector<1x512xf32> to vector<1x512xbf16>
    %c0_61 = arith.constant 0 : index
    %c0_62 = arith.constant 0 : index
    %c0_63 = arith.constant 0 : index
    %120 = vector.load %arg12[%c0_61, %c0_62, %c0_63] : memref<1x512x128xbf16, #tpu.memory_space<vmem>>, vector<1x512x128xbf16>
    %121 = vector.shape_cast %120 : vector<1x512x128xbf16> to vector<512x128xbf16>
    %cst_64 = arith.constant dense<0.000000e+00> : vector<1x128xf32>
    %122 = tpu.matmul %119, %121, %cst_64 {dimension_numbers = #tpu.dot_dimension_numbers<[1], [0], [0], [1], [0, 0, 1, 1], [], []>} : vector<1x512xbf16>, vector<512x128xbf16>, vector<1x128xf32> -> vector<1x128xf32>
    %c0_65 = arith.constant 0 : index
    %c0_66 = arith.constant 0 : index
    %c0_67 = arith.constant 0 : index
    %123 = vector.load %arg13[%c0_65, %c0_66, %c0_67] : memref<1x1x128xf32, #tpu.memory_space<vmem>>, vector<1x1x128xf32>
    %124 = vector.shape_cast %123 : vector<1x1x128xf32> to vector<1x128xf32>
    %125 = arith.addf %122, %124 : vector<1x128xf32>
    %c0_68 = arith.constant 0 : index
    %c0_69 = arith.constant 0 : index
    %c0_70 = arith.constant 0 : index
    %126 = vector.load %arg21[%c0_68, %c0_69, %c0_70] : memref<1x1x128xf32, #tpu.memory_space<vmem>>, vector<1x1x128xf32>
    %127 = vector.shape_cast %126 : vector<1x1x128xf32> to vector<1x128xf32>
    %128 = vector.shape_cast %125 : vector<1x128xf32> to vector<1x1x128xf32>
    tpu.vector_store %arg21[%c0_68, %c0_69, %c0_70], %128 {strides = array<i32>} : memref<1x1x128xf32, #tpu.memory_space<vmem>>, vector<1x1x128xf32>,
    %c0_i32 = arith.constant 0 : i32
    %129 = arith.cmpi eq, %arg0, %c0_i32 : i32
    %130 = arith.extui %129 : i1 to i32
    %c0_i32_71 = arith.constant 0 : i32
    %131 = arith.cmpi ne, %130, %c0_i32_71 : i32
    scf.if %131 {
      %c0_73 = arith.constant 0 : index
      %c0_74 = arith.constant 0 : index
      %135 = vector.load %arg23[%c0_73, %c0_74] : memref<1x512xf32, #tpu.memory_space<vmem>>, vector<1x512xf32>
      tpu.vector_store %arg23[%c0_73, %c0_74], %118 {strides = array<i32>} : memref<1x512xf32, #tpu.memory_space<vmem>>, vector<1x512xf32>,
      %cst_75 = arith.constant 0.000000e+00 : f32
      %136 = vector.broadcast %cst_75 : f32 to vector<1x128xf32>
      %c0_76 = arith.constant 0 : index
      %c0_77 = arith.constant 0 : index
      %137 = vector.load %arg22[%c0_76, %c0_77] : memref<1x128xf32, #tpu.memory_space<vmem>>, vector<1x128xf32>
      tpu.vector_store %arg22[%c0_76, %c0_77], %136 {strides = array<i32>} : memref<1x128xf32, #tpu.memory_space<vmem>>, vector<1x128xf32>,
    } else {
    }
    %c1_i32 = arith.constant 1 : i32
    %132 = arith.cmpi eq, %arg0, %c1_i32 : i32
    %133 = arith.extui %132 : i1 to i32
    %c0_i32_72 = arith.constant 0 : i32
    %134 = arith.cmpi ne, %133, %c0_i32_72 : i32
    scf.if %134 {
      %c0_73 = arith.constant 0 : index
      %c0_74 = arith.constant 0 : index
      %135 = vector.load %arg23[%c0_73, %c0_74] : memref<1x512xf32, #tpu.memory_space<vmem>>, vector<1x512xf32>
      %136 = arith.addf %135, %118 : vector<1x512xf32>
      %137 = arith.mulf %135, %118 : vector<1x512xf32>
      %138 = arith.truncf %135 : vector<1x512xf32> to vector<1x512xbf16>
      %c0_75 = arith.constant 0 : index
      %c0_76 = arith.constant 0 : index
      %139 = vector.load %arg14[%c0_75, %c0_76] : memref<1024x512xbf16, #tpu.memory_space<vmem>>, vector<512x512xbf16>
      %cst_77 = arith.constant dense<0.000000e+00> : vector<1x512xf32>
      %140 = tpu.matmul %138, %139, %cst_77 {dimension_numbers = #tpu.dot_dimension_numbers<[1], [0], [0], [1], [0, 0, 1, 1], [], []>} : vector<1x512xbf16>, vector<512x512xbf16>, vector<1x512xf32> -> vector<1x512xf32>
      %141 = arith.truncf %118 : vector<1x512xf32> to vector<1x512xbf16>
      %c512 = arith.constant 512 : index
      %c0_78 = arith.constant 0 : index
      %142 = vector.load %arg14[%c512, %c0_78] : memref<1024x512xbf16, #tpu.memory_space<vmem>>, vector<512x512xbf16>
      %cst_79 = arith.constant dense<0.000000e+00> : vector<1x512xf32>
      %143 = tpu.matmul %141, %142, %cst_79 {dimension_numbers = #tpu.dot_dimension_numbers<[1], [0], [0], [1], [0, 0, 1, 1], [], []>} : vector<1x512xbf16>, vector<512x512xbf16>, vector<1x512xf32> -> vector<1x512xf32>
      %144 = arith.addf %140, %143 : vector<1x512xf32>
      %c0_80 = arith.constant 0 : index
      %c0_81 = arith.constant 0 : index
      %145 = vector.load %arg15[%c0_80, %c0_81] : memref<1x512xf32, #tpu.memory_space<vmem>>, vector<1x512xf32>
      %146 = arith.addf %144, %145 : vector<1x512xf32>
      %147 = arith.truncf %136 : vector<1x512xf32> to vector<1x512xbf16>
      %c0_82 = arith.constant 0 : index
      %c0_83 = arith.constant 0 : index
      %148 = vector.load %arg16[%c0_82, %c0_83] : memref<1536x512xbf16, #tpu.memory_space<vmem>>, vector<512x512xbf16>
      %cst_84 = arith.constant dense<0.000000e+00> : vector<1x512xf32>
      %149 = tpu.matmul %147, %148, %cst_84 {dimension_numbers = #tpu.dot_dimension_numbers<[1], [0], [0], [1], [0, 0, 1, 1], [], []>} : vector<1x512xbf16>, vector<512x512xbf16>, vector<1x512xf32> -> vector<1x512xf32>
      %150 = arith.truncf %137 : vector<1x512xf32> to vector<1x512xbf16>
      %c512_85 = arith.constant 512 : index
      %c0_86 = arith.constant 0 : index
      %151 = vector.load %arg16[%c512_85, %c0_86] : memref<1536x512xbf16, #tpu.memory_space<vmem>>, vector<512x512xbf16>
      %cst_87 = arith.constant dense<0.000000e+00> : vector<1x512xf32>
      %152 = tpu.matmul %150, %151, %cst_87 {dimension_numbers = #tpu.dot_dimension_numbers<[1], [0], [0], [1], [0, 0, 1, 1], [], []>} : vector<1x512xbf16>, vector<512x512xbf16>, vector<1x512xf32> -> vector<1x512xf32>
      %153 = arith.addf %149, %152 : vector<1x512xf32>
      %154 = arith.truncf %146 : vector<1x512xf32> to vector<1x512xbf16>
      %c1024 = arith.constant 1024 : index
      %c0_88 = arith.constant 0 : index
      %155 = vector.load %arg16[%c1024, %c0_88] : memref<1536x512xbf16, #tpu.memory_space<vmem>>, vector<512x512xbf16>
      %cst_89 = arith.constant dense<0.000000e+00> : vector<1x512xf32>
      %156 = tpu.matmul %154, %155, %cst_89 {dimension_numbers = #tpu.dot_dimension_numbers<[1], [0], [0], [1], [0, 0, 1, 1], [], []>} : vector<1x512xbf16>, vector<512x512xbf16>, vector<1x512xf32> -> vector<1x512xf32>
      %157 = arith.addf %153, %156 : vector<1x512xf32>
      %c0_90 = arith.constant 0 : index
      %c0_91 = arith.constant 0 : index
      %158 = vector.load %arg17[%c0_90, %c0_91] : memref<1x512xf32, #tpu.memory_space<vmem>>, vector<1x512xf32>
      %159 = arith.addf %157, %158 : vector<1x512xf32>
      %cst_92 = arith.constant 5.000000e-01 : f32
      %160 = vector.broadcast %cst_92 : f32 to vector<1x512xf32>
      %161 = arith.mulf %160, %159 : vector<1x512xf32>
      %cst_93 = arith.constant 4.471500e-02 : f32
      %162 = vector.broadcast %cst_93 : f32 to vector<1x512xf32>
      %163 = arith.mulf %162, %159 : vector<1x512xf32>
      %164 = arith.mulf %163, %159 : vector<1x512xf32>
      %165 = arith.mulf %164, %159 : vector<1x512xf32>
      %166 = arith.addf %159, %165 : vector<1x512xf32>
      %cst_94 = arith.constant 0.797884583 : f32
      %167 = vector.broadcast %cst_94 : f32 to vector<1x512xf32>
      %168 = arith.mulf %167, %166 : vector<1x512xf32>
      %169 = math.tanh %168 : vector<1x512xf32>
      %cst_95 = arith.constant 1.000000e+00 : f32
      %170 = vector.broadcast %cst_95 : f32 to vector<1x512xf32>
      %171 = arith.addf %170, %169 : vector<1x512xf32>
      %172 = arith.mulf %161, %171 : vector<1x512xf32>
      %173 = arith.truncf %172 : vector<1x512xf32> to vector<1x512xbf16>
      %c0_96 = arith.constant 0 : index
      %c0_97 = arith.constant 0 : index
      %174 = vector.load %arg18[%c0_96, %c0_97] : memref<512x128xbf16, #tpu.memory_space<vmem>>, vector<512x128xbf16>
      %cst_98 = arith.constant dense<0.000000e+00> : vector<1x128xf32>
      %175 = tpu.matmul %173, %174, %cst_98 {dimension_numbers = #tpu.dot_dimension_numbers<[1], [0], [0], [1], [0, 0, 1, 1], [], []>} : vector<1x512xbf16>, vector<512x128xbf16>, vector<1x128xf32> -> vector<1x128xf32>
      %c0_99 = arith.constant 0 : index
      %c0_100 = arith.constant 0 : index
      %176 = vector.load %arg19[%c0_99, %c0_100] : memref<1x128xf32, #tpu.memory_space<vmem>>, vector<1x128xf32>
      %177 = arith.addf %175, %176 : vector<1x128xf32>
      %c0_101 = arith.constant 0 : index
      %c0_102 = arith.constant 0 : index
      %178 = vector.load %arg22[%c0_101, %c0_102] : memref<1x128xf32, #tpu.memory_space<vmem>>, vector<1x128xf32>
      tpu.vector_store %arg22[%c0_101, %c0_102], %177 {strides = array<i32>} : memref<1x128xf32, #tpu.memory_space<vmem>>, vector<1x128xf32>,
    } else {
    }
    return
  }
  func.func @transform_0(%arg0: i32) -> (i32, i32, i32) {
    %c0_i32 = arith.constant 0 : i32
    %c0_i32_0 = arith.constant 0 : i32
    %c0_i32_1 = arith.constant 0 : i32
    return %arg0, %c0_i32, %c0_i32_0 : i32, i32, i32
  }
  func.func @transform_1(%arg0: i32) -> (i32, i32, i32) {
    %c0_i32 = arith.constant 0 : i32
    %c0_i32_0 = arith.constant 0 : i32
    %c0_i32_1 = arith.constant 0 : i32
    return %arg0, %c0_i32, %c0_i32_0 : i32, i32, i32
  }
  func.func @transform_2(%arg0: i32) -> (i32, i32, i32) {
    %c0_i32 = arith.constant 0 : i32
    %c0_i32_0 = arith.constant 0 : i32
    %c0_i32_1 = arith.constant 0 : i32
    return %arg0, %c0_i32, %c0_i32_0 : i32, i32, i32
  }
  func.func @transform_3(%arg0: i32) -> (i32, i32, i32) {
    %c0_i32 = arith.constant 0 : i32
    %c0_i32_0 = arith.constant 0 : i32
    %c0_i32_1 = arith.constant 0 : i32
    return %arg0, %c0_i32, %c0_i32_0 : i32, i32, i32
  }
  func.func @transform_4(%arg0: i32) -> (i32, i32, i32) {
    %c0_i32 = arith.constant 0 : i32
    %c0_i32_0 = arith.constant 0 : i32
    %c0_i32_1 = arith.constant 0 : i32
    return %arg0, %c0_i32, %c0_i32_0 : i32, i32, i32
  }
  func.func @transform_5(%arg0: i32) -> (i32, i32, i32) {
    %c0_i32 = arith.constant 0 : i32
    %c0_i32_0 = arith.constant 0 : i32
    %c0_i32_1 = arith.constant 0 : i32
    return %arg0, %c0_i32, %c0_i32_0 : i32, i32, i32
  }
  func.func @transform_6(%arg0: i32) -> (i32, i32, i32) {
    %c0_i32 = arith.constant 0 : i32
    %c0_i32_0 = arith.constant 0 : i32
    %c0_i32_1 = arith.constant 0 : i32
    return %arg0, %c0_i32, %c0_i32_0 : i32, i32, i32
  }
  func.func @transform_7(%arg0: i32) -> (i32, i32, i32) {
    %c0_i32 = arith.constant 0 : i32
    %c0_i32_0 = arith.constant 0 : i32
    %c0_i32_1 = arith.constant 0 : i32
    return %arg0, %c0_i32, %c0_i32_0 : i32, i32, i32
  }
  func.func @transform_8(%arg0: i32) -> (i32, i32, i32) {
    %c0_i32 = arith.constant 0 : i32
    %c0_i32_0 = arith.constant 0 : i32
    %c0_i32_1 = arith.constant 0 : i32
    return %arg0, %c0_i32, %c0_i32_0 : i32, i32, i32
  }
  func.func @transform_9(%arg0: i32) -> (i32, i32) {
    %c0_i32 = arith.constant 0 : i32
    %c0_i32_0 = arith.constant 0 : i32
    %c0_i32_1 = arith.constant 0 : i32
    return %c0_i32, %c0_i32_0 : i32, i32
  }
  func.func @transform_10(%arg0: i32) -> (i32, i32) {
    %c0_i32 = arith.constant 0 : i32
    %c0_i32_0 = arith.constant 0 : i32
    %c0_i32_1 = arith.constant 0 : i32
    return %c0_i32, %c0_i32_0 : i32, i32
  }
  func.func @transform_11(%arg0: i32) -> (i32, i32, i32) {
    %c0_i32 = arith.constant 0 : i32
    %c0_i32_0 = arith.constant 0 : i32
    %c0_i32_1 = arith.constant 0 : i32
    return %arg0, %c0_i32, %c0_i32_0 : i32, i32, i32
  }
  func.func @transform_12(%arg0: i32) -> (i32, i32, i32) {
    %c0_i32 = arith.constant 0 : i32
    %c0_i32_0 = arith.constant 0 : i32
    %c0_i32_1 = arith.constant 0 : i32
    return %arg0, %c0_i32, %c0_i32_0 : i32, i32, i32
  }
  func.func @transform_13(%arg0: i32) -> (i32, i32) {
    %c0_i32 = arith.constant 0 : i32
    %c0_i32_0 = arith.constant 0 : i32
    %c0_i32_1 = arith.constant 0 : i32
    return %c0_i32, %c0_i32_0 : i32, i32
  }
  func.func @transform_14(%arg0: i32) -> (i32, i32) {
    %c0_i32 = arith.constant 0 : i32
    %c0_i32_0 = arith.constant 0 : i32
    %c0_i32_1 = arith.constant 0 : i32
    return %c0_i32, %c0_i32_0 : i32, i32
  }
  func.func @transform_15(%arg0: i32) -> (i32, i32) {
    %c0_i32 = arith.constant 0 : i32
    %c0_i32_0 = arith.constant 0 : i32
    %c0_i32_1 = arith.constant 0 : i32
    return %c0_i32, %c0_i32_0 : i32, i32
  }
  func.func @transform_16(%arg0: i32) -> (i32, i32) {
    %c0_i32 = arith.constant 0 : i32
    %c0_i32_0 = arith.constant 0 : i32
    %c0_i32_1 = arith.constant 0 : i32
    return %c0_i32, %c0_i32_0 : i32, i32
  }
  func.func @transform_17(%arg0: i32) -> (i32, i32) {
    %c0_i32 = arith.constant 0 : i32
    %c0_i32_0 = arith.constant 0 : i32
    %c0_i32_1 = arith.constant 0 : i32
    return %c0_i32, %c0_i32_0 : i32, i32
  }
  func.func @transform_18(%arg0: i32) -> (i32, i32) {
    %c0_i32 = arith.constant 0 : i32
    %c0_i32_0 = arith.constant 0 : i32
    %c0_i32_1 = arith.constant 0 : i32
    return %c0_i32, %c0_i32_0 : i32, i32
  }
  func.func @transform_19(%arg0: i32) -> (i32, i32, i32) {
    %c0_i32 = arith.constant 0 : i32
    %c0_i32_0 = arith.constant 0 : i32
    %c0_i32_1 = arith.constant 0 : i32
    return %arg0, %c0_i32, %c0_i32_0 : i32, i32, i32
  }
  func.func @transform_20(%arg0: i32) -> (i32, i32, i32) {
    %c0_i32 = arith.constant 0 : i32
    %c0_i32_0 = arith.constant 0 : i32
    %c0_i32_1 = arith.constant 0 : i32
    return %arg0, %c0_i32, %c0_i32_0 : i32, i32, i32
  }
  func.func @transform_21(%arg0: i32) -> (i32, i32) {
    %c0_i32 = arith.constant 0 : i32
    %c0_i32_0 = arith.constant 0 : i32
    %c0_i32_1 = arith.constant 0 : i32
    return %c0_i32, %c0_i32_0 : i32, i32
  }
}

</mosaic_0001>

<bundles_post_ra>
// kernel: wsmcl_forward.1
= control target key start
LH: loop header
LB: loop body
LE: loop exit
PB: predicated region body
PF: predicated region fallthrough
CT: control target
= control target key end

     0   :  { %s20033_s0 = inlined_call_operand.vmem [shape: bf16[2,32,512], index: 0, kind: input, shape index: {}]   ;;  %s20034_s1 = inlined_call_operand.hbm [shape: bf16[2,512,512], index: 1, kind: input, shape index: {}]   ;;  %s20035_s2 = inlined_call_operand.hbm [shape: f32[2,1,512], index: 2, kind: input, shape index: {}]   ;;  %s20036_s3 = inlined_call_operand.hbm [shape: f32[2,1,512], index: 3, kind: input, shape index: {}]   ;;  %s20037_s4 = inlined_call_operand.hbm [shape: f32[2,1,512], index: 4, kind: input, shape index: {}]   ;;  %s20038_s5 = inlined_call_operand.hbm [shape: bf16[2,512,1536], index: 5, kind: input, shape index: {}]   ;;  %s20039_s6 = inlined_call_operand.hbm [shape: f32[2,1,1536], index: 6, kind: input, shape index: {}]   ;;  %s20040_s7 = inlined_call_operand.hbm [shape: bf16[2,512,512], index: 7, kind: input, shape index: {}]   ;;  %s20041_s8 = inlined_call_operand.hbm [shape: f32[2,1,512], index: 8, kind: input, shape index: {}]   ;;  %s20042_s9 = inlined_call_operand.hbm [shape: f32[1,512], index: 9, kind: input, shape index: {}]   ;;  %s20043_s10 = inlined_call_operand.hbm [shape: f32[1,512], index: 10, kind: input, shape index: {}]   ;;  %s20044_s11 = inlined_call_operand.hbm [shape: bf16[2,512,128], index: 11, kind: input, shape index: {}]   ;;  %s20045_s12 = inlined_call_operand.hbm [shape: f32[2,1,128], index: 12, kind: input, shape index: {}]   ;;  %s20046_s13 = inlined_call_operand.hbm [shape: bf16[1024,512], index: 13, kind: input, shape index: {}]   ;;  %s20047_s14 = inlined_call_operand.hbm [shape: f32[1,512], index: 14, kind: input, shape index: {}]   ;;  %s20048_s15 = inlined_call_operand.hbm [shape: bf16[1536,512], index: 15, kind: input, shape index: {}]   ;;  %s20049_s16 = inlined_call_operand.hbm [shape: f32[1,512], index: 16, kind: input, shape index: {}]   ;;  %s20050_s17 = inlined_call_operand.hbm [shape: bf16[512,128], index: 17, kind: input, shape index: {}]   ;;  %s20051_s18 = inlined_call_operand.hbm [shape: f32[1,128], index: 18, kind: input, shape index: {}]   ;;  %s20052_s19 = inlined_call_operand.vmem [shape: f32[2,1,128], index: 19, kind: output, shape index: {0}]   ;;  %s20053_s20 = inlined_call_operand.vmem [shape: f32[2,1,128], index: 20, kind: output, shape index: {1}]   ;;  %s20054_s21 = inlined_call_operand.hbm [shape: f32[1,128], index: 21, kind: output, shape index: {2}]  }
   0x1   :  { %20104 = sst [smem:[#allocation53_spill]] %s20033_s0 }
   0x2   :  { %20105 = sst [smem:[#allocation54_spill]] %s20034_s1 }
   0x3   :  { %20106 = sst [smem:[#allocation55_spill]] %s20035_s2 }
   0x4   :  { %20107 = sst [smem:[#allocation56_spill]] %s20036_s3 }
   0x5   :  { %20108 = sst [smem:[#allocation57_spill]] %s20037_s4 }
   0x6   :  { %20109 = sst [smem:[#allocation58_spill]] %s20038_s5 }
   0x7   :  { %20110 = sst [smem:[#allocation59_spill]] %s20041_s8 }
   0x8   :  { %20111 = sst [smem:[#allocation60_spill]] %s20042_s9 }
   0x9   :  { %20112 = sst [smem:[#allocation61_spill]] %s20043_s10 }
   0xa   :  { %20113 = sst [smem:[#allocation62_spill]] %s20044_s11 }
   0xb   :  { %20114 = sst [smem:[#allocation63_spill]] %s20045_s12 }
   0xc   :  { %20115 = sst [smem:[#allocation64_spill]] %s20046_s13 }
   0xd   :  { %20116 = sst [smem:[#allocation65_spill]] %s20047_s14 }
   0xe   :  { %20117 = sst [smem:[#allocation66_spill]] %s20048_s15 }
   0xf   :  { %20118 = sst [smem:[#allocation67_spill]] %s20050_s17 }
  0x10   :  { %20119 = sst [smem:[#allocation68_spill]] %s20051_s18 }
  0x11   :  { %20120 = sst [smem:[#allocation69_spill]] %s20052_s19 }
  0x12   :  { %20121 = sst [smem:[#allocation70_spill]] %s20053_s20 }
  0x13   :  { %20122 = sst [smem:[#allocation71_spill]] %s20054_s21 }
  0x14   :  { %27 = vsyncpa [#allocation4], 0 }
  0x15   :  { %29 = vsyncpa [#allocation4 + $0x1], 0 }
  0x16   :  { %30 = vsyncpa [#allocation7], 0 }
  0x17   :  { %32 = vsyncpa [#allocation7 + $0x1], 0 }
  0x18   :  { %33 = vsyncpa [#allocation10], 0 }
  0x19   :  { %35 = vsyncpa [#allocation10 + $0x1], 0 }
  0x1a   :  { %36 = vsyncpa [#allocation13], 0 }
  0x1b   :  { %38 = vsyncpa [#allocation13 + $0x1], 0 }
  0x1c   :  { %39 = vsyncpa [#allocation16], 0 }
  0x1d   :  { %41 = vsyncpa [#allocation16 + $0x1], 0 }
  0x1e   :  { %42 = vsyncpa [#allocation19], 0 }
  0x1f   :  { %43 = vsyncpa [#allocation27], 0 }
  0x20   :  { %44 = vsyncpa [#allocation5], 0  ;;  %s17758_s2 = smov 0   ;;  %s17760_s25 = smov 0  }
  0x21   :  { %s17762_s26 = smov 0   ;;  %s17764_s27 = smov 0  }
  0x22 LB: > { %20123 = sst [smem:[#allocation45_spill]] %s17608_s25  ;;  %s17618_s3 = smov [#allocation17]   ;;  %s17616_s27 = sphi %s17764_s27, %s20213_s27   ;;  %s17612_s26 = sphi %s17762_s26, %s20216_s26   ;;  %s17608_s25 = sphi %s17760_s25, %s20215_s25   ;;  %s17604_s2 = sphi %s17758_s2, %s20214_s2  }
  0x23   : > { %20124 = sst [smem:[#allocation46_spill]] %s17612_s26  ;;  %s595_s28 = sshll.u32 %s17618_s3, 4  ;;  %s596_s28 = int_to_ptr.vmem [resolvable:$true] %s595_s28 }
  0x24   : > { %s17779_s29 = sadd.s32 4294967295, %s17616_s27   ;;  %p13040_p0 = scmp.ge.s32.totalorder %s17616_s27, 1 }
  0x25   : > { %20125 = sst [smem:[#allocation47_spill]] %s17779_s29  ;;  %p20061_p1 = scmp.eq.s32.totalorder %s17779_s29, 0 }
  0x26   : > { %p582_p2 = scmp.lt.s32.totalorder %s17616_s27, 3  ;;  %s17619_s4 = smov [#allocation22]  }
  0x27   : > { %s616_s30 = sshll.u32 %s17619_s4, 4  ;;  %s17620_s22 = smov [#allocation23]   ;;  %s17791_s30 = int_to_ptr.vmem [resolvable:$true] %s616_s30 }
  0x28   : > { %p17785_p4 = pnand %p13040_p0, %p582_p2  ;;  %s630_s23 = sshll.u32 %s17620_s22, 4  ;;  %s17799_s23 = int_to_ptr.vmem [resolvable:$true] %s630_s23 }
  0x29   : > { %s20129_s9 = sld [smem:[#allocation60_spill]] }
  0x2a   : > { %s20126_s0 = scalar_select %p17785_p4, 1, 0 }
  0x2b   : > { %p14780_p5 = pneg %p17785_p4 }
  0x2c   : > { %20127 = sst [smem:[#allocation48_spill]] %s20126_s0 }
  0x2d   : > { %p17795_p6 = pnand %p14780_p5, %p20061_p1 }
  0x2f   : > { %s20128_s5 = scalar_select %p17795_p6, 1, 0 }
  0x30   : > { %s16976_s3 = scalar_lea.hbm %s20129_s9, 64  ;;  %p17809_p8 = pneg %p17795_p6 }
  0x31   : > { %p16977_p7 = scmp.ne.s32.totalorder %s20129_s9, %s16976_s3  ;;  %p16983_p11 = scmp.lt.u32.totalorder %s16976_s3, %s20129_s9 }
  0x32   : > { %s20130_s4 = scalar_select %p17809_p8, 1, 0 }
  0x33   : > { %p16979_p9 = pnand %p17809_p8, %p16977_p7 }
  0x35   : > { %p16980_p10 = pneg %p16979_p9 }
  0x37   : > { %p16985_p12 = pnand %p16983_p11, %p16980_p10 }
  0x39   : > { %16988 = shalt.err (!%p16985_p12)
}
  0x3a   : > { %s16989_s1 = scalar_lea.vmem %s596_s28, 64  ;;  %p16997_p5 = scmp.lt.s32.totalorder %s596_s28, %s596_s28 }
  0x3b   : > { %p16990_p13 = scmp.ne.s32.totalorder %s596_s28, %s16989_s1  ;;  %p16998_p3 = scmp.lt.s32.totalorder %s16989_s1, %s16989_s1 }
  0x3d   : > { %p16992_p0 = pnand %p16990_p13, %p17809_p8  ;;  %p16999_p1 = por %p16998_p3, %p16997_p5 }
  0x3f   : > { %p16993_p2 = pneg %p16992_p0 }
  0x41   : > { %p17000_p4 = pnand %p16999_p1, %p16993_p2 }
  0x43   : > { %17003 = shalt.err (!%p17000_p4)
}
  0x44   : > { %14783 = dma.hbm_to_vmem [thread:$0]  (!%p17795_p6), %s20129_s9, 64, %s596_s28, [#allocation16]  }
  0x45   : > { %s20131_s13 = sld [smem:[#allocation64_spill]] }
  0x4b   : > { %s17004_s3 = scalar_lea.hbm %s20131_s13, 32768 }
  0x4c   : > { %p17005_p7 = scmp.ne.s32.totalorder %s20131_s13, %s17004_s3  ;;  %p17011_p1 = scmp.lt.u32.totalorder %s17004_s3, %s20131_s13 }
  0x4e   : > { %p17007_p9 = pnand %p17005_p7, %p17809_p8 }
  0x50   : > { %p17008_p3 = pneg %p17007_p9 }
  0x52   : > { %p17013_p4 = pnand %p17011_p1, %p17008_p3 }
  0x54   : > { %17016 = shalt.err (!%p17013_p4)
}
  0x55   : > { %s17017_s28 = scalar_lea.vmem %s17791_s30, 32768  ;;  %p17025_p13 = scmp.lt.s32.totalorder %s17791_s30, %s17791_s30 }
  0x56   : > { %p17018_p10 = scmp.ne.s32.totalorder %s17791_s30, %s17017_s28  ;;  %p17026_p0 = scmp.lt.s32.totalorder %s17017_s28, %s17017_s28 }
  0x58   : > { %p17020_p11 = pnand %p17018_p10, %p17809_p8  ;;  %p17027_p2 = por %p17026_p0, %p17025_p13 }
  0x5a   : > { %p17021_p12 = pneg %p17020_p11 }
  0x5c   : > { %p17028_p5 = pnand %p17027_p2, %p17021_p12 }
  0x5e   : > { %17031 = shalt.err (!%p17028_p5)
}
  0x5f   : > { %s20065_s0 = smov 256   ;;  %s20067_s12 = smov 16  }
  0x60   : > { %14789 = dma.hbm_to_vmem [thread:$0]  (!%p17795_p6), %s20131_s13, 32768, %s17791_s30, [#allocation10], %s20065_s0, %s20065_s0, %s20067_s12  }
  0x61   : > { %s20132_s14 = sld [smem:[#allocation65_spill]] }
  0x67   : > { %s17032_s3 = scalar_lea.hbm %s20132_s14, 64 }
  0x68   : > { %p17033_p7 = scmp.ne.s32.totalorder %s20132_s14, %s17032_s3  ;;  %p17039_p1 = scmp.lt.u32.totalorder %s17032_s3, %s20132_s14 }
  0x6a   : > { %p17035_p9 = pnand %p17033_p7, %p17809_p8 }
  0x6c   : > { %p17036_p3 = pneg %p17035_p9 }
  0x6e   : > { %p17041_p4 = pnand %p17039_p1, %p17036_p3 }
  0x70   : > { %17044 = shalt.err (!%p17041_p4)
}
  0x71   : > { %s17045_s30 = scalar_lea.vmem %s17799_s23, 64  ;;  %p17053_p13 = scmp.lt.s32.totalorder %s17799_s23, %s17799_s23 }
  0x72   : > { %p17046_p10 = scmp.ne.s32.totalorder %s17799_s23, %s17045_s30  ;;  %p17054_p0 = scmp.lt.s32.totalorder %s17045_s30, %s17045_s30 }
  0x74   : > { %p17048_p11 = pnand %p17046_p10, %p17809_p8  ;;  %p17055_p2 = por %p17054_p0, %p17053_p13 }
  0x76   : > { %p17049_p12 = pneg %p17048_p11 }
  0x78   : > { %p17056_p5 = pnand %p17055_p2, %p17049_p12 }
  0x7a   : > { %17059 = shalt.err (!%p17056_p5)
}
  0x7b   : > { %14792 = dma.hbm_to_vmem [thread:$0]  (!%p17795_p6), %s20132_s14, 64, %s17799_s23, [#allocation13]  }
  0x7c   : > { %s17875_s21 = sadd.s32 1, %s17616_s27   ;;  %s83_s24 = sadd.s32 1, %s17612_s26 }
  0x7d   : > { %20133 = sst [smem:[#allocation49_spill]] %s17875_s21  ;;  %s80_s19 = ssub.s32 %s17616_s27, %s17875_s21 }
  0x7e   : > { %p81_p7 = scmp.eq.s32.totalorder %s80_s19, 0  ;;  %p90_p9 = scmp.ne.s32.totalorder %s17612_s26, %s17608_s25 }
  0x7f   : > { %p91_p3 = scmp.eq.s32.totalorder %s17616_s27, 0  ;;  %p96_p1 = scmp.ne.s32.totalorder %s17608_s25, %s17604_s2 }
  0x80   : > { %s17886_s3 = scalar_select %p81_p7, %s17612_s26, %s83_s24  }
  0x81   : > { %p92_p4 = por %p91_p3, %p90_p9  ;;  %p20135_p10 = scmp.eq.s32.totalorder %s17779_s29, 0 }
  0x82   : > { %20134 = sst [smem:[#allocation50_spill]] %s17886_s3  ;;  %p14844_p12 = scmp.lt.s32.totalorder %s17616_s27, 2 }
  0x83   : > { %p17890_p11 = por %p20135_p10, %p96_p1  ;;  %s17896_s23 = sand.u32 1, %s17616_s27  }
  0x84   : > { %s17899_s1 = sand.u32 1, %s17612_s26   ;;  %p17901_p13 = pnand %p14844_p12, %p92_p4 }
  0x85   : > { %s20136_s22 = scalar_select %p17890_p11, 1, 0 }
  0x86   : > { %s20138_s28 = scalar_select %p17901_p13, 1, 0 }
  0x87   : > { %20137 = sst [smem:[#allocation51_spill]] %s20136_s22  ;;  %s17906_s2 = sshll.u32 %s17899_s1, 2 }
  0x88   : > { %s17909_s30 = sshll.u32 %s17616_s27, 6  ;;  %s20139_s19 = sld [smem:[#allocation55_spill]] }
  0x89   : > { %s722_s0 = scalar_lea.vmem [#allocation6], %s17906_s2  ;;  %s17623_s13 = smov [#allocation18]  }
  0x8a   : > { %s730_s12 = sshll.u32 %s722_s0, 4  ;;  %s17920_s14 = sshll.u32 %s17623_s13, 4  ;;  %s17918_s12 = int_to_ptr.vmem [resolvable:$true] %s730_s12  ;;  %s607_s14 = int_to_ptr.vmem [resolvable:$true] %s17920_s14 }
  0x8b   : > { %s17923_s3 = scalar_lea.sflag [#allocation7], %s17896_s23  ;;  %p17929_p2 = pneg %p17901_p13 }
  0x8d   : > { %s20140_s9 = scalar_select %p17929_p2, 1, 0 }
  0x8e   : > { %s17915_s24 = scalar_lea.hbm %s20139_s19, %s17909_s30  ;;  %s17065_s21 = scalar_lea.hbm %s20139_s19, 128 }
  0x8f   : > { %s17060_s26 = scalar_lea.hbm %s17915_s24, 64  ;;  %p17066_p9 = scmp.lt.u32.totalorder %s17915_s24, %s20139_s19 }
  0x90   : > { %p17061_p0 = scmp.ne.s32.totalorder %s17915_s24, %s17060_s26  ;;  %p17067_p3 = scmp.lt.u32.totalorder %s17065_s21, %s17060_s26 }
  0x91   : > { %p17069_p4 = scmp.lt.u32.totalorder %s17060_s26, %s17915_s24 }
  0x92   : > { %p17063_p5 = pnand %p17929_p2, %p17061_p0  ;;  %p17068_p1 = por %p17067_p3, %p17066_p9 }
  0x94   : > { %p17064_p7 = pneg %p17063_p5  ;;  %p17070_p10 = por %p17069_p4, %p17068_p1 }
  0x96   : > { %p17071_p12 = pnand %p17070_p10, %p17064_p7 }
  0x98   : > { %17074 = shalt.err (!%p17071_p12)
}
  0x99   : > { %s17075_s25 = scalar_lea.vmem %s17918_s12, 64  ;;  %s17624_s20 = smov [#allocation6]  }
  0x9a   : > { %p17076_p0 = scmp.ne.s32.totalorder %s17918_s12, %s17075_s25  ;;  %s17080_s0 = sshll.u32 %s17624_s20, 4  ;;  %s17081_s0 = int_to_ptr.vmem [resolvable:$false] %s17080_s0 }
  0x9b   : > { %s17082_s22 = scalar_lea.vmem %s17081_s0, 128  ;;  %p17083_p6 = scmp.lt.s32.totalorder %s17918_s12, %s17081_s0 }
  0x9c   : > { %p17078_p5 = pnand %p17076_p0, %p17929_p2  ;;  %p17084_p8 = scmp.lt.s32.totalorder %s17082_s22, %s17075_s25 }
  0x9e   : > { %p17079_p11 = pneg %p17078_p5  ;;  %p17085_p9 = por %p17084_p8, %p17083_p6 }
  0xa0   : > { %p17086_p3 = pnand %p17085_p9, %p17079_p11 }
  0xa2   : > { %17089 = shalt.err (!%p17086_p3)
}
  0xa3   : > { %14811 = dma.hbm_to_vmem [thread:$0]  (!%p17901_p13), %s17915_s24, 64, %s17918_s12, %s17923_s3  }
  0xa4   : > { %s20141_s10 = sld [smem:[#allocation61_spill]]  ;;  %p20142_p6 = scmp.ne.s32.totalorder %s20130_s4, 0 }
  0xaa   : > { %s17090_s13 = scalar_lea.hbm %s20141_s10, 64 }
  0xab   : > { %p17091_p7 = scmp.ne.s32.totalorder %s20141_s10, %s17090_s13  ;;  %p17097_p1 = scmp.lt.u32.totalorder %s17090_s13, %s20141_s10 }
  0xad   : > { %p17093_p8 = pnand %p17091_p7, %p20142_p6 }
  0xaf   : > { %p17094_p11 = pneg %p17093_p8 }
  0xb1   : > { %p17099_p4 = pnand %p17097_p1, %p17094_p11 }
  0xb3   : > { %17102 = shalt.err (!%p17099_p4)
}
  0xb4   : > { %s17103_s22 = scalar_lea.vmem %s607_s14, 64  ;;  %p17111_p5 = scmp.lt.s32.totalorder %s607_s14, %s607_s14 }
  0xb5   : > { %p17104_p10 = scmp.ne.s32.totalorder %s607_s14, %s17103_s22  ;;  %p17112_p9 = scmp.lt.s32.totalorder %s17103_s22, %s17103_s22 }
  0xb7   : > { %p17106_p12 = pnand %p17104_p10, %p20142_p6  ;;  %p17113_p3 = por %p17112_p9, %p17111_p5 }
  0xb9   : > { %p17107_p0 = pneg %p17106_p12 }
  0xbb   : > { %p17114_p13 = pnand %p17113_p3, %p17107_p0 }
  0xbd   : > { %17117 = shalt.err (!%p17114_p13)
}
  0xbe   : > { %p20143_p7 = scmp.ne.s32.totalorder %s20128_s5, 0  ;;  %s17625_s24 = smov [#allocation24]  }
  0xbf   : > { %s640_s26 = sshll.u32 %s17625_s24, 4  ;;  %s17626_s21 = smov [#allocation26]   ;;  %s641_s26 = int_to_ptr.vmem [resolvable:$true] %s640_s26 }
  0xc0   : > { %14786 = dma.hbm_to_vmem [thread:$0]  (!%p20143_p7), %s20141_s10, 64, %s607_s14, [#allocation19]  }
  0xc1   : > { %s664_s13 = sshll.u32 %s17626_s21, 4  ;;  %s20144_s15 = sld [smem:[#allocation66_spill]]  ;;  %s665_s13 = int_to_ptr.vmem [resolvable:$true] %s664_s13 }
  0xc7   : > { %s17118_s0 = scalar_lea.hbm %s20144_s15, 49152 }
  0xc8   : > { %p17119_p13 = scmp.ne.s32.totalorder %s20144_s15, %s17118_s0  ;;  %p17125_p1 = scmp.lt.u32.totalorder %s17118_s0, %s20144_s15 }
  0xca   : > { %p17121_p8 = pnand %p17119_p13, %p20142_p6 }
  0xcc   : > { %p17122_p11 = pneg %p17121_p8 }
  0xce   : > { %p17127_p4 = pnand %p17125_p1, %p17122_p11 }
  0xd0   : > { %17130 = shalt.err (!%p17127_p4)
}
  0xd1   : > { %s17131_s14 = scalar_lea.vmem %s641_s26, 49152  ;;  %p17139_p5 = scmp.lt.s32.totalorder %s641_s26, %s641_s26 }
  0xd2   : > { %p17132_p10 = scmp.ne.s32.totalorder %s641_s26, %s17131_s14  ;;  %p17140_p9 = scmp.lt.s32.totalorder %s17131_s14, %s17131_s14 }
  0xd4   : > { %p17134_p12 = pnand %p17132_p10, %p20142_p6  ;;  %p17141_p3 = por %p17140_p9, %p17139_p5 }
  0xd6   : > { %p17135_p0 = pneg %p17134_p12 }
  0xd8   : > { %p17142_p2 = pnand %p17141_p3, %p17135_p0 }
  0xda   : > { %17145 = shalt.err (!%p17142_p2)
}
  0xdb   : > { %s20145_s29 = smov 16   ;;  %s20146_s19 = smov 256  }
  0xdc   : > { %14795 = dma.hbm_to_vmem [thread:$0]  (!%p20143_p7), %s20144_s15, 49152, %s641_s26, [#allocation16], %s20146_s19, %s20146_s19, %s20145_s29  }
  0xdd   : > { %s20147_s17 = sld [smem:[#allocation67_spill]] }
  0xe3   : > { %s17146_s25 = scalar_lea.hbm %s20147_s17, 4096 }
  0xe4   : > { %p17147_p13 = scmp.ne.s32.totalorder %s20147_s17, %s17146_s25  ;;  %p17153_p11 = scmp.lt.u32.totalorder %s17146_s25, %s20147_s17 }
  0xe6   : > { %p17149_p2 = pnand %p17147_p13, %p20142_p6 }
  0xe8   : > { %p17150_p8 = pneg %p17149_p2 }
  0xea   : > { %p17155_p1 = pnand %p17153_p11, %p17150_p8 }
  0xec   : > { %17158 = shalt.err (!%p17155_p1)
}
  0xed   : > { %s17159_s11 = scalar_lea.vmem %s665_s13, 4096  ;;  %p17167_p0 = scmp.lt.s32.totalorder %s665_s13, %s665_s13 }
  0xee   : > { %p17160_p4 = scmp.ne.s32.totalorder %s665_s13, %s17159_s11  ;;  %p17168_p5 = scmp.lt.s32.totalorder %s17159_s11, %s17159_s11 }
  0xf0   : > { %p17162_p10 = pnand %p17160_p4, %p20142_p6  ;;  %p17169_p9 = por %p17168_p5, %p17167_p0 }
  0xf2   : > { %p17163_p12 = pneg %p17162_p10 }
  0xf4   : > { %p17170_p3 = pnand %p17169_p9, %p17163_p12 }
  0xf6   : > { %17173 = shalt.err (!%p17170_p3)
}
  0xf7   : > { %s20091_s26 = smov 64   ;;  %s20092_s24 = smov 4  }
  0xf8   : > { %14801 = dma.hbm_to_vmem [thread:$0]  (!%p20143_p7), %s20147_s17, 4096, %s665_s13, [#allocation27], %s20091_s26, %s20091_s26, %s20092_s24  }
  0xf9   : > { %s20093_s25 = sshll.u32 %s17899_s1, 10  ;;  %s14454_s0 = sshll.u32 %s17616_s27, 14 }
  0xfa   : > { %s20148_s14 = sld [smem:[#allocation54_spill]]  ;;  %s701_s10 = scalar_lea.vmem [#allocation3], %s20093_s25 }
  0xfb   : > { %s708_s15 = sshll.u32 %s701_s10, 4  ;;  %s18028_s13 = scalar_lea.hbm %s20040_s7, %s14454_s0  ;;  %s18023_s15 = int_to_ptr.vmem [resolvable:$true] %s708_s15 }
  0xfc   : > { %s20095_s21 = scalar_lea.sflag [#allocation4], %s17896_s23  ;;  %p20149_p2 = scmp.ne.s32.totalorder %s20140_s9, 0 }
 0x100   : > { %s18019_s11 = scalar_lea.hbm %s20148_s14, %s14454_s0  ;;  %s17179_s26 = scalar_lea.hbm %s20148_s14, 32768 }
 0x101   : > { %s17174_s20 = scalar_lea.hbm %s18019_s11, 16384  ;;  %p17180_p1 = scmp.lt.u32.totalorder %s18019_s11, %s20148_s14 }
 0x102   : > { %p17175_p13 = scmp.ne.s32.totalorder %s18019_s11, %s17174_s20  ;;  %p17181_p4 = scmp.lt.u32.totalorder %s17179_s26, %s17174_s20 }
 0x103   : > { %p17183_p12 = scmp.lt.u32.totalorder %s17174_s20, %s18019_s11 }
 0x104   : > { %p17177_p8 = pnand %p17175_p13, %p20149_p2  ;;  %p17182_p10 = por %p17181_p4, %p17180_p1 }
 0x106   : > { %p17178_p11 = pneg %p17177_p8  ;;  %p17184_p0 = por %p17183_p12, %p17182_p10 }
 0x108   : > { %p17185_p5 = pnand %p17184_p0, %p17178_p11 }
 0x10a   : > { %17188 = shalt.err (!%p17185_p5)
}
 0x10b   : > { %s17189_s8 = scalar_lea.vmem %s18023_s15, 16384  ;;  %s17629_s10 = smov [#allocation3]  }
 0x10c   : > { %p17190_p9 = scmp.ne.s32.totalorder %s18023_s15, %s17189_s8  ;;  %s17194_s18 = sshll.u32 %s17629_s10, 4  ;;  %s17195_s18 = int_to_ptr.vmem [resolvable:$false] %s17194_s18 }
 0x10d   : > { %s17196_s24 = scalar_lea.vmem %s17195_s18, 32768  ;;  %p17197_p8 = scmp.lt.s32.totalorder %s18023_s15, %s17195_s18 }
 0x10e   : > { %p17192_p3 = pnand %p17190_p9, %p20149_p2  ;;  %p17198_p7 = scmp.lt.s32.totalorder %s17196_s24, %s17189_s8 }
 0x110   : > { %p17193_p13 = pneg %p17192_p3  ;;  %p17199_p1 = por %p17198_p7, %p17197_p8 }
 0x112   : > { %p17200_p4 = pnand %p17199_p1, %p17193_p13 }
 0x114   : > { %17203 = shalt.err (!%p17200_p4)
}
 0x115   : > { %p20150_p11 = scmp.ne.s32.totalorder %s20138_s28, 0  ;;  %s20151_s26 = sshll.u32 %s17899_s1, 10 }
 0x116   : > { %s819_s25 = scalar_lea.vmem [#allocation14], %s20151_s26  ;;  %s20152_s12 = sld [smem:[#allocation56_spill]] }
 0x117   : > { %14808 = dma.hbm_to_vmem [thread:$0]  (!%p20150_p11), %s18019_s11, 16384, %s18023_s15, %s20095_s21, %s20146_s19, %s20146_s19, %s20145_s29  }
 0x118   : > { %s826_s0 = sshll.u32 %s819_s25, 4  ;;  %s741_s10 = scalar_lea.vmem [#allocation8], %s17906_s2  ;;  %s18059_s0 = int_to_ptr.vmem [resolvable:$true] %s826_s0 }
 0x119   : > { %s749_s18 = sshll.u32 %s741_s10, 4  ;;  %s750_s18 = int_to_ptr.vmem [resolvable:$true] %s749_s18 }
 0x11c   : > { %s18065_s8 = scalar_lea.hbm %s20152_s12, %s17909_s30  ;;  %s17209_s26 = scalar_lea.hbm %s20152_s12, 128 }
 0x11d   : > { %s17204_s24 = scalar_lea.hbm %s18065_s8, 64  ;;  %p17210_p0 = scmp.lt.u32.totalorder %s18065_s8, %s20152_s12 }
 0x11e   : > { %p17205_p7 = scmp.ne.s32.totalorder %s18065_s8, %s17204_s24  ;;  %p17211_p5 = scmp.lt.u32.totalorder %s17209_s26, %s17204_s24 }
 0x11f   : > { %p17213_p3 = scmp.lt.u32.totalorder %s17204_s24, %s18065_s8 }
 0x120   : > { %p17207_p10 = pnand %p17205_p7, %p20149_p2  ;;  %p17212_p9 = por %p17211_p5, %p17210_p0 }
 0x122   : > { %p17208_p12 = pneg %p17207_p10  ;;  %p17214_p13 = por %p17213_p3, %p17212_p9 }
 0x124   : > { %p17215_p8 = pnand %p17214_p13, %p17208_p12 }
 0x126   : > { %17218 = shalt.err (!%p17215_p8)
}
 0x127   : > { %s17219_s22 = scalar_lea.vmem %s750_s18, 64  ;;  %s17630_s10 = smov [#allocation8]  }
 0x128   : > { %p17220_p1 = scmp.ne.s32.totalorder %s750_s18, %s17219_s22  ;;  %s17224_s21 = sshll.u32 %s17630_s10, 4  ;;  %s17225_s21 = int_to_ptr.vmem [resolvable:$false] %s17224_s21 }
 0x129   : > { %s17226_s15 = scalar_lea.vmem %s17225_s21, 128  ;;  %p17227_p10 = scmp.lt.s32.totalorder %s750_s18, %s17225_s21 }
 0x12a   : > { %p17222_p4 = pnand %p17220_p1, %p20149_p2  ;;  %p17228_p6 = scmp.lt.s32.totalorder %s17226_s15, %s17219_s22 }
 0x12c   : > { %p17223_p7 = pneg %p17222_p4  ;;  %p17229_p11 = por %p17228_p6, %p17227_p10 }
 0x12e   : > { %p17230_p0 = pnand %p17229_p11, %p17223_p7 }
 0x130   : > { %17233 = shalt.err (!%p17230_p0)
}
 0x131   : > { %p20153_p5 = scmp.ne.s32.totalorder %s20138_s28, 0  ;;  %s20154_s26 = sld [smem:[#allocation57_spill]] }
 0x132   : > { %s760_s21 = scalar_lea.vmem [#allocation9], %s17906_s2 }
 0x133   : > { %14814 = dma.hbm_to_vmem [thread:$0]  (!%p20153_p5), %s18065_s8, 64, %s750_s18, %s17923_s3  }
 0x134   : > { %s768_s22 = sshll.u32 %s760_s21, 4  ;;  %s769_s22 = int_to_ptr.vmem [resolvable:$true] %s768_s22 }
 0x137   : > { %s20155_s20 = smov %s20154_s26  ;;  %s18090_s25 = scalar_lea.hbm %s20154_s26, %s17909_s30 }
 0x138   : > { %s17234_s15 = scalar_lea.hbm %s18090_s25, 64  ;;  %s17239_s18 = scalar_lea.hbm %s20155_s20, 128 }
 0x139   : > { %p17235_p6 = scmp.ne.s32.totalorder %s18090_s25, %s17234_s15  ;;  %p17240_p9 = scmp.lt.u32.totalorder %s18090_s25, %s20155_s20 }
 0x13a   : > { %p17241_p3 = scmp.lt.u32.totalorder %s17239_s18, %s17234_s15  ;;  %p17243_p8 = scmp.lt.u32.totalorder %s17234_s15, %s18090_s25 }
 0x13b   : > { %p17237_p11 = pnand %p17235_p6, %p20149_p2 }
 0x13c   : > { %p17242_p13 = por %p17241_p3, %p17240_p9 }
 0x13d   : > { %p17238_p12 = pneg %p17237_p11 }
 0x13e   : > { %p17244_p1 = por %p17243_p8, %p17242_p13 }
 0x140   : > { %p17245_p4 = pnand %p17244_p1, %p17238_p12 }
 0x142   : > { %17248 = shalt.err (!%p17245_p4)
}
 0x143   : > { %s17249_s26 = scalar_lea.vmem %s769_s22, 64  ;;  %s17631_s21 = smov [#allocation9]  }
 0x144   : > { %p17250_p7 = scmp.ne.s32.totalorder %s769_s22, %s17249_s26  ;;  %s17254_s10 = sshll.u32 %s17631_s21, 4  ;;  %s17255_s10 = int_to_ptr.vmem [resolvable:$false] %s17254_s10 }
 0x145   : > { %s17256_s12 = scalar_lea.vmem %s17255_s10, 128  ;;  %p17257_p6 = scmp.lt.s32.totalorder %s769_s22, %s17255_s10 }
 0x146   : > { %p17252_p10 = pnand %p17250_p7, %p20149_p2  ;;  %p17258_p11 = scmp.lt.s32.totalorder %s17256_s12, %s17249_s26 }
 0x148   : > { %p17253_p0 = pneg %p17252_p10  ;;  %p17259_p5 = por %p17258_p11, %p17257_p6 }
 0x14a   : > { %p17260_p3 = pnand %p17259_p5, %p17253_p0 }
 0x14c   : > { %17263 = shalt.err (!%p17260_p3)
}
 0x14d   : > { %p20156_p9 = scmp.ne.s32.totalorder %s20138_s28, 0  ;;  %s20157_s15 = scalar_lea.sflag [#allocation10], %s17896_s23 }
 0x14e   : > { %s14720_s8 = smul.u32 12, %s17899_s1  ;;  %s17632_s24 = smov [#allocation25]  }
 0x14f   : > { %14817 = dma.hbm_to_vmem [thread:$0]  (!%p20156_p9), %s18090_s25, 64, %s769_s22, %s20157_s15  }
 0x150   : > { %s14721_s18 = smul.u32 192, %s17616_s27  ;;  %s654_s11 = sshll.u32 %s17632_s24, 4  ;;  %s18115_s11 = int_to_ptr.vmem [resolvable:$true] %s654_s11 }
 0x151   : > { %s800_s12 = scalar_lea.vmem [#allocation12], %s14720_s8  ;;  %s20099_s17 = scalar_lea.sflag [#allocation13], %s17896_s23 }
 0x152   : > { %s18120_s21 = scalar_lea.hbm %s20039_s6, %s14721_s18  ;;  %s808_s14 = sshll.u32 %s800_s12, 4  ;;  %s809_s14 = int_to_ptr.vmem [resolvable:$true] %s808_s14 }
 0x153   : > { %s17264_s25 = scalar_lea.hbm %s18120_s21, 192  ;;  %s17269_s24 = scalar_lea.hbm %s20039_s6, 384 }
 0x154   : > { %p17265_p5 = scmp.ne.s32.totalorder %s18120_s21, %s17264_s25  ;;  %p17270_p8 = scmp.lt.u32.totalorder %s18120_s21, %s20039_s6 }
 0x155   : > { %p17271_p1 = scmp.lt.u32.totalorder %s17269_s24, %s17264_s25  ;;  %p17273_p7 = scmp.lt.u32.totalorder %s17264_s25, %s18120_s21 }
 0x156   : > { %p17267_p12 = pnand %p17265_p5, %p20149_p2 }
 0x157   : > { %p17272_p4 = por %p17271_p1, %p17270_p8 }
 0x158   : > { %p17268_p13 = pneg %p17267_p12 }
 0x159   : > { %p17274_p10 = por %p17273_p7, %p17272_p4 }
 0x15b   : > { %p17275_p0 = pnand %p17274_p10, %p17268_p13 }
 0x15d   : > { %17278 = shalt.err (!%p17275_p0)
}
 0x15e   : > { %s17279_s8 = scalar_lea.vmem %s809_s14, 192  ;;  %s17633_s26 = smov [#allocation12]  }
 0x15f   : > { %p17280_p6 = scmp.ne.s32.totalorder %s809_s14, %s17279_s8  ;;  %s17284_s12 = sshll.u32 %s17633_s26, 4  ;;  %s17285_s12 = int_to_ptr.vmem [resolvable:$false] %s17284_s12 }
 0x160   : > { %s17286_s22 = scalar_lea.vmem %s17285_s12, 384  ;;  %p17287_p5 = scmp.lt.s32.totalorder %s809_s14, %s17285_s12 }
 0x161   : > { %p17282_p11 = pnand %p17280_p6, %p20149_p2  ;;  %p17288_p12 = scmp.lt.s32.totalorder %s17286_s22, %s17279_s8 }
 0x163   : > { %p17283_p3 = pneg %p17282_p11  ;;  %p17289_p9 = por %p17288_p12, %p17287_p5 }
 0x165   : > { %p17290_p1 = pnand %p17289_p9, %p17283_p3 }
 0x167   : > { %17293 = shalt.err (!%p17290_p1)
}
 0x168   : > { %p20158_p8 = scmp.ne.s32.totalorder %s20138_s28, 0  ;;  %s17294_s24 = scalar_lea.hbm %s20049_s16, 64 }
 0x169   : > { %p17295_p13 = scmp.ne.s32.totalorder %s20049_s16, %s17294_s24  ;;  %p20159_p4 = scmp.ne.s32.totalorder %s20130_s4, 0 }
 0x16a   : > { %14823 = dma.hbm_to_vmem [thread:$0]  (!%p20158_p8), %s18120_s21, 192, %s809_s14, %s20099_s17  }
 0x16b   : > { %p17297_p7 = pnand %p17295_p13, %p20159_p4  ;;  %p17301_p9 = scmp.lt.u32.totalorder %s17294_s24, %s20049_s16 }
 0x16d   : > { %p17298_p10 = pneg %p17297_p7 }
 0x16f   : > { %p17303_p0 = pnand %p17301_p9, %p17298_p10 }
 0x171   : > { %17306 = shalt.err (!%p17303_p0)
}
 0x172   : > { %s17307_s14 = scalar_lea.vmem %s18115_s11, 64  ;;  %p17315_p5 = scmp.lt.s32.totalorder %s18115_s11, %s18115_s11 }
 0x173   : > { %p17308_p6 = scmp.ne.s32.totalorder %s18115_s11, %s17307_s14  ;;  %p17316_p12 = scmp.lt.s32.totalorder %s17307_s14, %s17307_s14 }
 0x175   : > { %p17310_p11 = pnand %p17308_p6, %p20159_p4  ;;  %p17317_p1 = por %p17316_p12, %p17315_p5 }
 0x177   : > { %p17311_p3 = pneg %p17310_p11 }
 0x179   : > { %p17318_p13 = pnand %p17317_p1, %p17311_p3 }
 0x17b   : > { %17321 = shalt.err (!%p17318_p13)
}
 0x17c   : > { %p20160_p7 = scmp.ne.s32.totalorder %s20128_s5, 0  ;;  %s17634_s22 = smov [#allocation28]  }
 0x17d   : > { %s678_s25 = sshll.u32 %s17634_s22, 4  ;;  %s14718_s15 = smul.u32 3072, %s17899_s1  ;;  %s679_s25 = int_to_ptr.vmem [resolvable:$true] %s678_s25 }
 0x17e   : > { %14798 = dma.hbm_to_vmem [thread:$0]  (!%p20160_p7), %s20049_s16, 64, %s18115_s11, [#allocation19]  }
 0x17f   : > { %s14719_s24 = smul.u32 49152, %s17616_s27  ;;  %s20161_s8 = sld [smem:[#allocation68_spill]] }
 0x185   : > { %s17322_s26 = scalar_lea.hbm %s20161_s8, 16 }
 0x186   : > { %p17323_p10 = scmp.ne.s32.totalorder %s20161_s8, %s17322_s26  ;;  %p17329_p6 = scmp.lt.u32.totalorder %s17322_s26, %s20161_s8 }
 0x188   : > { %p17325_p9 = pnand %p17323_p10, %p20159_p4 }
 0x18a   : > { %p17326_p0 = pneg %p17325_p9 }
 0x18c   : > { %p17331_p11 = pnand %p17329_p6, %p17326_p0 }
 0x18e   : > { %17334 = shalt.err (!%p17331_p11)
}
 0x18f   : > { %s17335_s11 = scalar_lea.vmem %s679_s25, 16  ;;  %s17342_s22 = scalar_lea.vmem %s679_s25, 32 }
 0x190   : > { %p17336_p3 = scmp.ne.s32.totalorder %s679_s25, %s17335_s11  ;;  %p17343_p1 = scmp.lt.s32.totalorder %s679_s25, %s679_s25 }
 0x191   : > { %p17344_p13 = scmp.lt.s32.totalorder %s17342_s22, %s17335_s11 }
 0x192   : > { %p17338_p5 = pnand %p17336_p3, %p20159_p4 }
 0x193   : > { %p17345_p8 = por %p17344_p13, %p17343_p1 }
 0x194   : > { %p17339_p12 = pneg %p17338_p5 }
 0x196   : > { %p17346_p2 = pnand %p17345_p8, %p17339_p12 }
 0x198   : > { %17349 = shalt.err (!%p17346_p2)
}
 0x199   : > { %14804 = dma.hbm_to_vmem [thread:$0]  (!%p20160_p7), %s20161_s8, 16, %s679_s25, [#allocation27]  }
 0x19a   : > { %s20162_s14 = sld [smem:[#allocation58_spill]]  ;;  %s779_s4 = scalar_lea.vmem [#allocation11], %s14718_s15 }
 0x19b   : > { %s786_s12 = sshll.u32 %s779_s4, 4  ;;  %p20163_p8 = scmp.ne.s32.totalorder %s20140_s9, 0  ;;  %s18190_s12 = int_to_ptr.vmem [resolvable:$true] %s786_s12 }
 0x1a0   : > { %s18188_s21 = scalar_lea.hbm %s20162_s14, %s14719_s24  ;;  %s17355_s22 = scalar_lea.hbm %s20162_s14, 98304 }
 0x1a1   : > { %s17350_s11 = scalar_lea.hbm %s18188_s21, 49152  ;;  %p17356_p7 = scmp.lt.u32.totalorder %s18188_s21, %s20162_s14 }
 0x1a2   : > { %p17351_p2 = scmp.ne.s32.totalorder %s18188_s21, %s17350_s11  ;;  %p17357_p9 = scmp.lt.u32.totalorder %s17355_s22, %s17350_s11 }
 0x1a3   : > { %p17359_p6 = scmp.lt.u32.totalorder %s17350_s11, %s18188_s21 }
 0x1a4   : > { %p17353_p4 = pnand %p17351_p2, %p20163_p8  ;;  %p17358_p0 = por %p17357_p9, %p17356_p7 }
 0x1a6   : > { %p17354_p10 = pneg %p17353_p4  ;;  %p17360_p11 = por %p17359_p6, %p17358_p0 }
 0x1a8   : > { %p17361_p3 = pnand %p17360_p11, %p17354_p10 }
 0x1aa   : > { %17364 = shalt.err (!%p17361_p3)
}
 0x1ab   : > { %s17365_s15 = scalar_lea.vmem %s18190_s12, 49152  ;;  %s17635_s10 = smov [#allocation11]  }
 0x1ac   : > { %p17366_p5 = scmp.ne.s32.totalorder %s18190_s12, %s17365_s15  ;;  %s17370_s18 = sshll.u32 %s17635_s10, 4  ;;  %s17371_s18 = int_to_ptr.vmem [resolvable:$false] %s17370_s18 }
 0x1ad   : > { %s17372_s26 = scalar_lea.vmem %s17371_s18, 98304  ;;  %p17373_p13 = scmp.lt.s32.totalorder %s18190_s12, %s17371_s18 }
 0x1ae   : > { %p17368_p12 = pnand %p17366_p5, %p20163_p8  ;;  %p17374_p2 = scmp.lt.s32.totalorder %s17372_s26, %s17365_s15 }
 0x1b0   : > { %p17369_p1 = pneg %p17368_p12  ;;  %p17375_p4 = por %p17374_p2, %p17373_p13 }
 0x1b2   : > { %p17376_p7 = pnand %p17375_p4, %p17369_p1 }
 0x1b4   : > { %17379 = shalt.err (!%p17376_p7)
}
 0x1b5   : > { %s17636_s4 = smov 768   ;;  %s17637_s11 = smov 48  }
 0x1b6   : > { %p20164_p10 = scmp.ne.s32.totalorder %s20138_s28, 0  ;;  %s20165_s5 = scalar_lea.sflag [#allocation10], %s17896_s23 }
 0x1b7   : > { %s17380_s25 = scalar_lea.hbm %s18028_s13, 16384  ;;  %s17385_s24 = scalar_lea.hbm %s20040_s7, 32768 }
 0x1b8   : > { %14820 = dma.hbm_to_vmem [thread:$0]  (!%p20164_p10), %s18188_s21, 49152, %s18190_s12, %s20165_s5, %s17636_s4, %s17636_s4, %s17637_s11  }
 0x1b9   : > { %p17381_p9 = scmp.ne.s32.totalorder %s18028_s13, %s17380_s25  ;;  %p17386_p11 = scmp.lt.u32.totalorder %s18028_s13, %s20040_s7 }
 0x1ba   : > { %p17387_p3 = scmp.lt.u32.totalorder %s17385_s24, %s17380_s25  ;;  %p17389_p12 = scmp.lt.u32.totalorder %s17380_s25, %s18028_s13 }
 0x1bb   : > { %p17383_p0 = pnand %p17381_p9, %p20163_p8 }
 0x1bc   : > { %p17388_p5 = por %p17387_p3, %p17386_p11 }
 0x1bd   : > { %p17384_p6 = pneg %p17383_p0 }
 0x1be   : > { %p17390_p1 = por %p17389_p12, %p17388_p5 }
 0x1c0   : > { %p17391_p13 = pnand %p17390_p1, %p17384_p6 }
 0x1c2   : > { %17394 = shalt.err (!%p17391_p13)
}
 0x1c3   : > { %s17395_s21 = scalar_lea.vmem %s18059_s0, 16384  ;;  %s17638_s12 = smov [#allocation14]  }
 0x1c4   : > { %p17396_p2 = scmp.ne.s32.totalorder %s18059_s0, %s17395_s21  ;;  %s17400_s18 = sshll.u32 %s17638_s12, 4  ;;  %s17401_s18 = int_to_ptr.vmem [resolvable:$false] %s17400_s18 }
 0x1c5   : > { %s17402_s26 = scalar_lea.vmem %s17401_s18, 32768  ;;  %p17403_p9 = scmp.lt.s32.totalorder %s18059_s0, %s17401_s18 }
 0x1c6   : > { %p17398_p4 = pnand %p17396_p2, %p20163_p8  ;;  %p17404_p0 = scmp.lt.s32.totalorder %s17402_s26, %s17395_s21 }
 0x1c8   : > { %p17399_p7 = pneg %p17398_p4  ;;  %p17405_p11 = por %p17404_p0, %p17403_p9 }
 0x1ca   : > { %p17406_p3 = pnand %p17405_p11, %p17399_p7 }
 0x1cc   : > { %17409 = shalt.err (!%p17406_p3)
}
 0x1cd   : > { %s20166_s4 = scalar_lea.sflag [#allocation13], %s17896_s23  ;;  %s20167_s25 = sld [smem:[#allocation59_spill]] }
 0x1ce   : > { %14826 = dma.hbm_to_vmem [thread:$0]  (!%p20164_p10), %s18028_s13, 16384, %s18059_s0, %s20166_s4, %s20146_s19, %s20146_s19, %s20145_s29  }
 0x1cf   : > { %s840_s24 = scalar_lea.vmem [#allocation15], %s17906_s2  ;;  %s13070_s10 = sshll.u32 %s17899_s1, 8 }
 0x1d0   : > { %s848_s15 = sshll.u32 %s840_s24, 4  ;;  %s837_s21 = scalar_lea.sflag [#allocation16], %s17896_s23  ;;  %s18248_s15 = int_to_ptr.vmem [resolvable:$true] %s848_s15 }
 0x1d3   : > { %s20168_s22 = smov %s20167_s25  ;;  %s18245_s17 = scalar_lea.hbm %s20167_s25, %s17909_s30 }
 0x1d4   : > { %s17410_s12 = scalar_lea.hbm %s18245_s17, 64  ;;  %s17415_s30 = scalar_lea.hbm %s20168_s22, 128 }
 0x1d5   : > { %p17411_p6 = scmp.ne.s32.totalorder %s18245_s17, %s17410_s12  ;;  %p17416_p1 = scmp.lt.u32.totalorder %s18245_s17, %s20168_s22 }
 0x1d6   : > { %p17417_p13 = scmp.lt.u32.totalorder %s17415_s30, %s17410_s12  ;;  %p17419_p4 = scmp.lt.u32.totalorder %s17410_s12, %s18245_s17 }
 0x1d7   : > { %p17413_p5 = pnand %p17411_p6, %p20163_p8 }
 0x1d8   : > { %p17418_p2 = por %p17417_p13, %p17416_p1 }
 0x1d9   : > { %p17414_p12 = pneg %p17413_p5 }
 0x1da   : > { %p17420_p7 = por %p17419_p4, %p17418_p2 }
 0x1dc   : > { %p17421_p9 = pnand %p17420_p7, %p17414_p12 }
 0x1de   : > { %17424 = shalt.err (!%p17421_p9)
}
 0x1df   : > { %s17425_s2 = scalar_lea.vmem %s18248_s15, 64  ;;  %s17639_s18 = smov [#allocation15]  }
 0x1e0   : > { %p17426_p0 = scmp.ne.s32.totalorder %s18248_s15, %s17425_s2  ;;  %s17430_s26 = sshll.u32 %s17639_s18, 4  ;;  %s17431_s26 = int_to_ptr.vmem [resolvable:$false] %s17430_s26 }
 0x1e1   : > { %s17432_s4 = scalar_lea.vmem %s17431_s26, 128  ;;  %p17433_p6 = scmp.lt.s32.totalorder %s18248_s15, %s17431_s26 }
 0x1e2   : > { %p17428_p11 = pnand %p17426_p0, %p20163_p8  ;;  %p17434_p5 = scmp.lt.s32.totalorder %s17432_s4, %s17425_s2 }
 0x1e4   : > { %p17429_p3 = pneg %p17428_p11  ;;  %p17435_p1 = por %p17434_p5, %p17433_p6 }
 0x1e6   : > { %p17436_p13 = pnand %p17435_p1, %p17429_p3 }
 0x1e8   : > { %17439 = shalt.err (!%p17436_p13)
}
 0x1e9   : > { %14829 = dma.hbm_to_vmem [thread:$0]  (!%p20164_p10), %s18245_s17, 64, %s18248_s15, %s837_s21  }
 0x1ea   : > { %s14460_s11 = sshll.u32 %s17616_s27, 12  ;;  %s20169_s24 = sld [smem:[#allocation62_spill]] }
 0x1eb   : > { %s859_s29 = scalar_lea.vmem [#allocation20], %s13070_s10 }
 0x1ec   : > { %s866_s19 = sshll.u32 %s859_s29, 4  ;;  %s18281_s19 = int_to_ptr.vmem [resolvable:$true] %s866_s19 }
 0x1f0   : > { %s18277_s12 = scalar_lea.hbm %s20169_s24, %s14460_s11  ;;  %s17445_s21 = scalar_lea.hbm %s20169_s24, 8192 }
 0x1f1   : > { %s17440_s30 = scalar_lea.hbm %s18277_s12, 4096  ;;  %p17446_p7 = scmp.lt.u32.totalorder %s18277_s12, %s20169_s24 }
 0x1f2   : > { %p17441_p12 = scmp.ne.s32.totalorder %s18277_s12, %s17440_s30  ;;  %p17447_p9 = scmp.lt.u32.totalorder %s17445_s21, %s17440_s30 }
 0x1f3   : > { %p17449_p11 = scmp.lt.u32.totalorder %s17440_s30, %s18277_s12 }
 0x1f4   : > { %p17443_p2 = pnand %p17441_p12, %p20163_p8  ;;  %p17448_p0 = por %p17447_p9, %p17446_p7 }
 0x1f6   : > { %p17444_p4 = pneg %p17443_p2  ;;  %p17450_p3 = por %p17449_p11, %p17448_p0 }
 0x1f8   : > { %p17451_p6 = pnand %p17450_p3, %p17444_p4 }
 0x1fa   : > { %17454 = shalt.err (!%p17451_p6)
}
 0x1fb   : > { %s17455_s10 = scalar_lea.vmem %s18281_s19, 4096  ;;  %s17640_s2 = smov [#allocation20]  }
 0x1fc   : > { %p17456_p5 = scmp.ne.s32.totalorder %s18281_s19, %s17455_s10  ;;  %s17460_s18 = sshll.u32 %s17640_s2, 4  ;;  %s17461_s18 = int_to_ptr.vmem [resolvable:$false] %s17460_s18 }
 0x1fd   : > { %s17462_s26 = scalar_lea.vmem %s17461_s18, 8192  ;;  %p17463_p12 = scmp.lt.s32.totalorder %s18281_s19, %s17461_s18 }
 0x1fe   : > { %p17458_p1 = pnand %p17456_p5, %p20163_p8  ;;  %p17464_p2 = scmp.lt.s32.totalorder %s17462_s26, %s17455_s10 }
 0x200   : > { %p17459_p13 = pneg %p17458_p1  ;;  %p17465_p7 = por %p17464_p2, %p17463_p12 }
 0x202   : > { %p17466_p9 = pnand %p17465_p7, %p17459_p13 }
 0x204   : > { %17469 = shalt.err (!%p17466_p9)
}
 0x205   : > { %s20170_s4 = smov 4   ;;  %s20171_s11 = smov 64  }
 0x206   : > { %s20172_s5 = scalar_lea.sflag [#allocation4], %s17896_s23  ;;  %s13073_s25 = sshll.u32 %s17616_s27, 4 }
 0x207   : > { %14832 = dma.hbm_to_vmem [thread:$0]  (!%p20164_p10), %s18277_s12, 4096, %s18281_s19, %s20172_s5, %s20171_s11, %s20171_s11, %s20170_s4  }
 0x208   : > { %s879_s29 = scalar_lea.vmem [#allocation21], %s17899_s1  ;;  %s20173_s21 = sld [smem:[#allocation63_spill]] }
 0x209   : > { %s886_s30 = sshll.u32 %s879_s29, 4  ;;  %s887_s30 = int_to_ptr.vmem [resolvable:$true] %s886_s30 }
 0x20e   : > { %s884_s13 = scalar_lea.hbm %s20173_s21, %s13073_s25  ;;  %s17475_s2 = scalar_lea.hbm %s20173_s21, 32 }
 0x20f   : > { %s17470_s0 = scalar_lea.hbm %s884_s13, 16  ;;  %p17476_p3 = scmp.lt.u32.totalorder %s884_s13, %s20173_s21 }
 0x210   : > { %p17471_p4 = scmp.ne.s32.totalorder %s884_s13, %s17470_s0  ;;  %p17477_p6 = scmp.lt.u32.totalorder %s17475_s2, %s17470_s0 }
 0x211   : > { %p17479_p1 = scmp.lt.u32.totalorder %s17470_s0, %s884_s13 }
 0x212   : > { %p17473_p0 = pnand %p17471_p4, %p20163_p8  ;;  %p17478_p5 = por %p17477_p6, %p17476_p3 }
 0x214   : > { %p17474_p11 = pneg %p17473_p0  ;;  %p17480_p13 = por %p17479_p1, %p17478_p5 }
 0x216   : > { %p17481_p12 = pnand %p17480_p13, %p17474_p11 }
 0x218   : > { %17484 = shalt.err (!%p17481_p12)
}
 0x219   : > { %s17485_s27 = scalar_lea.vmem %s887_s30, 16  ;;  %s17641_s1 = smov [#allocation21]  }
 0x21a   : > { %p17486_p2 = scmp.ne.s32.totalorder %s887_s30, %s17485_s27  ;;  %s17490_s12 = sshll.u32 %s17641_s1, 4  ;;  %s17491_s12 = int_to_ptr.vmem [resolvable:$false] %s17490_s12 }
 0x21b   : > { %s17492_s19 = scalar_lea.vmem %s17491_s12, 32  ;;  %p17493_p4 = scmp.lt.s32.totalorder %s887_s30, %s17491_s12 }
 0x21c   : > { %p17488_p7 = pnand %p17486_p2, %p20163_p8  ;;  %p17494_p0 = scmp.lt.s32.totalorder %s17492_s19, %s17485_s27 }
 0x21e   : > { %p17489_p9 = pneg %p17488_p7  ;;  %p17495_p10 = por %p17494_p0, %p17493_p4 }
 0x220   : > { %p17496_p3 = pnand %p17495_p10, %p17489_p9 }
 0x222   : > { %17499 = shalt.err (!%p17496_p3)
}
 0x223   : > { %p20174_p6 = scmp.ne.s32.totalorder %s20138_s28, 0  ;;  %s20175_s4 = sld [smem:[#allocation48_spill]] }
 0x225   : > { %14835 = dma.hbm_to_vmem [thread:$0]  (!%p20174_p6), %s884_s13, 16, %s887_s30, %s17923_s3  }
 0x229   : > { %p20176_p11 = scmp.ne.s32.totalorder %s20175_s4, 0 }
 0x22b   : > { %895 = sbr.rel (%p20176_p11) target bundleno = 4515 (0x11a3), region = 96 }
 0x232   : > { %s20177_s11 = sld [smem:[#allocation47_spill]]  ;;  %s20178_s9 = sld [smem:[#allocation45_spill]] }
 0x233   : > { %s20179_s5 = sld [smem:[#allocation51_spill]] }
 0x238   : > { %s897_s25 = sand.u32 1, %s20177_s11   ;;  %s18331_s29 = sand.u32 1, %s20178_s9  }
 0x239   : > { %s13075_s17 = sshll.u32 %s18331_s29, 10  ;;  %s18334_s15 = scalar_lea.sflag [#allocation4], %s897_s25 }
 0x23a   : > { %s18336_s0 = scalar_lea.vmem [#allocation3], %s13075_s17  ;;  %p20180_p8 = scmp.ne.s32.totalorder %s20179_s5, 0 }
 0x23c   : > { %17543 = dma.done.wait (%p20180_p8), %s18334_s15, 16384  }
 0x23d   : > { %17545 = vsyncadd (%p20180_p8), %s18334_s15, 4294950912  ;;  %s18345_s3 = sshll.u32 %s18331_s29, 2  ;;  %s18347_s28 = scalar_lea.sflag [#allocation7], %s897_s25 }
 0x23e   : > { %s910_s30 = scalar_lea.vmem [#allocation6], %s18345_s3 }
 0x23f   : > { %17547 = dma.done.wait (%p20180_p8), %s18347_s28, 128  }
 0x240   : > { %17549 = vsyncadd (%p20180_p8), %s18347_s28, 4294967168  ;;  %s919_s13 = scalar_lea.vmem [#allocation8], %s18345_s3  ;;  %s925_s23 = scalar_lea.sflag [#allocation10], %s897_s25 }
 0x241   : > { %s928_s10 = scalar_lea.vmem [#allocation9], %s18345_s3 }
 0x242   : > { %17551 = dma.done.wait (%p20180_p8), %s925_s23, 49216  }
 0x243   : > { %17553 = vsyncadd (%p20180_p8), %s925_s23, 4294918080  ;;  %s14722_s2 = smul.u32 3072, %s18331_s29  ;;  %s943_s27 = scalar_lea.sflag [#allocation13], %s897_s25 }
 0x244   : > { %s14723_s18 = smul.u32 12, %s18331_s29 }
 0x245   : > { %s18364_s26 = scalar_lea.vmem [#allocation11], %s14722_s2 }
 0x246   : > { %s18366_s1 = scalar_lea.vmem [#allocation12], %s14723_s18 }
 0x247   : > { %17555 = dma.done.wait (%p20180_p8), %s943_s27, 16576  }
 0x248   : > { %17557 = vsyncadd (%p20180_p8), %s943_s27, 4294950720  ;;  %s18372_s12 = scalar_lea.vmem [#allocation14], %s13075_s17  ;;  %s961_s19 = scalar_lea.sflag [#allocation16], %s897_s25 }
 0x249   : > { %s964_s4 = scalar_lea.vmem [#allocation15], %s18345_s3 }
 0x24a   : > { %17559 = dma.done.wait (%p20180_p8), %s961_s19, 64  }
 0x24b   : > { %17561 = vsyncadd (%p20180_p8), %s961_s19, 4294967232  ;;  %p20181_p10 = scmp.eq.s32.totalorder %s20177_s11, 0 }
 0x24d   : > { %17563 = dma.done.wait (%p20181_p10), [#allocation16], 64   ;;  %p20182_p5 = pmov %p20181_p10 }
 0x24f   : > { %17565 = vsyncadd (%p20182_p5), [#allocation16], 4294967232  ;;  %p20183_p1 = pmov %p20182_p5 }
 0x251   : > { %17567 = dma.done.wait (%p20183_p1), [#allocation19], 64   ;;  %p20184_p13 = pmov %p20183_p1 }
 0x252   : > { %s13083_s9 = sshll.u32 %s18331_s29, 8 }
 0x253   : > { %17569 = vsyncadd (%p20184_p13), [#allocation19], 4294967232  ;;  %s18388_s25 = scalar_lea.vmem [#allocation20], %s13083_s9 }
 0x254   : > { %17571 = dma.done.wait (%p20180_p8), %s18334_s15, 4096  }
 0x255   : > { %17573 = vsyncadd (%p20180_p8), %s18334_s15, 4294963200  ;;  %s989_s17 = scalar_lea.vmem [#allocation21], %s18331_s29 }
 0x256   : > { %17575 = dma.done.wait (%p20180_p8), %s18347_s28, 16  }
 0x257   : > { %17577 = vsyncadd (%p20180_p8), %s18347_s28, 4294967280  ;;  %p20185_p12 = pmov %p20183_p1 }
 0x258   : > { %p20186_p2 = pmov %p20183_p1 }
 0x259   : > { %17579 = dma.done.wait (%p20185_p12), [#allocation10], 32768  }
 0x25a   : > { %17581 = vsyncadd (%p20186_p2), [#allocation10], 4294934528  ;;  %p20187_p7 = pmov %p20183_p1 }
 0x25b   : > { %p20188_p9 = pmov %p20183_p1 }
 0x25c   : > { %17583 = dma.done.wait (%p20187_p7), [#allocation13], 64  }
 0x25d   : > { %17585 = vsyncadd (%p20188_p9), [#allocation13], 4294967232  ;;  %p20189_p4 = pmov %p20183_p1 }
 0x25e   : > { %p20190_p0 = pmov %p20183_p1 }
 0x25f   : > { %17587 = dma.done.wait (%p20189_p4), [#allocation16], 49152  }
 0x260   : > { %17589 = vsyncadd (%p20190_p0), [#allocation16], 4294918144  ;;  %p20191_p3 = pmov %p20190_p0 }
 0x261   : > { %p20192_p6 = pmov %p20190_p0 }
 0x262   : > { %17591 = dma.done.wait (%p20191_p3), [#allocation19], 64  }
 0x263   : > { %17593 = vsyncadd (%p20192_p6), [#allocation19], 4294967232  ;;  %p20193_p11 = pmov %p20190_p0 }
 0x264   : > { %p20194_p8 = pmov %p20190_p0 }
 0x265   : > { %17595 = dma.done.wait (%p20193_p11), [#allocation27], 4112  }
 0x266   : > { %17597 = vsyncadd (%p20194_p8), [#allocation27], 4294963184  ;;  %p1122_p10 = scmp.lt.s32.totalorder %s20177_s11, 1  ;;  %s20195_s23 = sld [smem:[#allocation69_spill]]  ;;  %v17642_v0 = vmov 0.0   ;;  %vm5643_vm0 = vcmask 261120  }
 0x267   : > { %v14907_v1 = vld [vmem:[%s18336_s0 + $0x4] ss:$16 sps:$4 sm:$0xff]   ;;  %v14909_v2 = vld [vmem:[%s18336_s0 + $0xc] ss:$16 sps:$4 sm:$0xff]   ;;  %v14911_v3 = vld [vmem:[%s18336_s0] ss:$16 sps:$4 sm:$0xff]  }
 0x268   : > { %s18425_s5 = scalar_select %p1122_p10, %s20177_s11, 1  ;;  %1972 = vmatprep.subr.bf16.mxu0 %v14907_v1  ;;  %v14912_v4 = vld [vmem:[%s18336_s0 + $0x8] ss:$16 sps:$4 sm:$0xff]   ;;  %2078 = vmatprep.subr.bf16.mxu1 %v14909_v2  ;;  %v14913_v5 = vld [vmem:[%s18336_s0 + $0x24] ss:$16 sps:$4 sm:$0xff]   ;;  %vm6844_vm1 = vcmask 253952  }
 0x269   : > { %1973 = vmatpush1.bf16.msra.mxu0 %v14911_v3  ;;  %2079 = vmatpush1.bf16.msra.mxu1 %v14912_v4  ;;  %v14915_v6 = vld [vmem:[%s18336_s0 + $0x2c] ss:$16 sps:$4 sm:$0xff]   ;;  %v14917_v7 = vld [vmem:[%s18336_s0 + $0x20] ss:$16 sps:$4 sm:$0xff]   ;;  %v14918_v8 = vld [vmem:[%s18336_s0 + $0x28] ss:$16 sps:$4 sm:$0xff]  }
 0x26a   : > { %1974 = vmatprep.subr.bf16.mxu0 %v14913_v5  ;;  %2080 = vmatprep.subr.bf16.mxu1 %v14915_v6  ;;  %v14919_v9 = vld [vmem:[%s18336_s0 + $0x44] ss:$16 sps:$4 sm:$0xff]   ;;  %v14921_v10 = vld [vmem:[%s18336_s0 + $0x4c] ss:$16 sps:$4 sm:$0xff]   ;;  %v14923_v11 = vld [vmem:[%s18336_s0 + $0x40] ss:$16 sps:$4 sm:$0xff]  }
 0x26b   : > { %v14924_v12 = vld [vmem:[%s18336_s0 + $0x48] ss:$16 sps:$4 sm:$0xff]   ;;  %v14925_v13 = vld [vmem:[%s18336_s0 + $0x64] ss:$16 sps:$4 sm:$0xff]   ;;  %v14927_v14 = vld [vmem:[%s18336_s0 + $0x6c] ss:$16 sps:$4 sm:$0xff]  }
 0x26c   : > { %s18431_s2 = scalar_lea.vmem %s20195_s23, %s18425_s5  ;;  %v14929_v15 = vld [vmem:[%s18336_s0 + $0x60] ss:$16 sps:$4 sm:$0xff]   ;;  %v14930_v16 = vld [vmem:[%s18336_s0 + $0x68] ss:$16 sps:$4 sm:$0xff]   ;;  %v14931_v17 = vld [vmem:[%s18336_s0 + $0x84] ss:$16 sps:$4 sm:$0xff]  }
 0x26d   : > { %6843 = vst [vmem:[%s18431_s2] sm:$0x1] %v17642_v0  ;;  %1975 = vmatpush1.bf16.msra.mxu0 %v14917_v7  ;;  %2081 = vmatpush1.bf16.msra.mxu1 %v14918_v8  ;;  %v14933_v18 = vld [vmem:[%s18336_s0 + $0x8c] ss:$16 sps:$4 sm:$0xff]   ;;  %v14935_v19 = vld [vmem:[%s18336_s0 + $0x80] ss:$16 sps:$4 sm:$0xff]   ;;  %s14461_s18 = sshll.u32 %s18425_s5, 6 }
 0x26e   : > { %1976 = vmatprep.subr.bf16.mxu0 %v14919_v9  ;;  %2082 = vmatprep.subr.bf16.mxu1 %v14921_v10  ;;  %v14936_v20 = vld [vmem:[%s18336_s0 + $0x88] ss:$16 sps:$4 sm:$0xff]   ;;  %v14937_v21 = vld [vmem:[%s18336_s0 + $0xa4] ss:$16 sps:$4 sm:$0xff]   ;;  %v14939_v22 = vld [vmem:[%s18336_s0 + $0xac] ss:$16 sps:$4 sm:$0xff]  }
 0x26f   : > { %v14941_v23 = vld [vmem:[%s18336_s0 + $0xa0] ss:$16 sps:$4 sm:$0xff]   ;;  %v14942_v24 = vld [vmem:[%s18336_s0 + $0xa8] ss:$16 sps:$4 sm:$0xff]   ;;  %v14943_v25 = vld [vmem:[%s18336_s0 + $0xc4] ss:$16 sps:$4 sm:$0xff]  }
 0x270   : > { %v14945_v26 = vld [vmem:[%s18336_s0 + $0xcc] ss:$16 sps:$4 sm:$0xff]   ;;  %v14947_v27 = vld [vmem:[%s18336_s0 + $0xc0] ss:$16 sps:$4 sm:$0xff]   ;;  %v14948_v28 = vld [vmem:[%s18336_s0 + $0xc8] ss:$16 sps:$4 sm:$0xff]  }
 0x271   : > { %1977 = vmatpush1.bf16.msra.mxu0 %v14923_v11  ;;  %2083 = vmatpush1.bf16.msra.mxu1 %v14924_v12  ;;  %v14949_v29 = vld [vmem:[%s18336_s0 + $0xe4] ss:$16 sps:$4 sm:$0xff]   ;;  %v14951_v30 = vld [vmem:[%s18336_s0 + $0xec] ss:$16 sps:$4 sm:$0xff]   ;;  %v14953_v31 = vld [vmem:[%s18336_s0 + $0xe0] ss:$16 sps:$4 sm:$0xff]  }
 0x272   : > { %1978 = vmatprep.subr.bf16.mxu0 %v14925_v13  ;;  %2084 = vmatprep.subr.bf16.mxu1 %v14927_v14  ;;  %v14954_v32 = vld [vmem:[%s18336_s0 + $0xe8] ss:$16 sps:$4 sm:$0xff]   ;;  %v14955_v33 = vld [vmem:[%s18336_s0 + $0x104] ss:$16 sps:$4 sm:$0xff]   ;;  %v14957_v34 = vld [vmem:[%s18336_s0 + $0x10c] ss:$16 sps:$4 sm:$0xff]  }
 0x273   : > { %v14959_v35 = vld [vmem:[%s18336_s0 + $0x100] ss:$16 sps:$4 sm:$0xff]   ;;  %v14960_v36 = vld [vmem:[%s18336_s0 + $0x108] ss:$16 sps:$4 sm:$0xff]   ;;  %v14961_v37 = vld [vmem:[%s18336_s0 + $0x124] ss:$16 sps:$4 sm:$0xff]  }
 0x274   : > { %v14963_v38 = vld [vmem:[%s18336_s0 + $0x12c] ss:$16 sps:$4 sm:$0xff]   ;;  %v14965_v39 = vld [vmem:[%s18336_s0 + $0x120] ss:$16 sps:$4 sm:$0xff]   ;;  %v14966_v40 = vld [vmem:[%s18336_s0 + $0x128] ss:$16 sps:$4 sm:$0xff]  }
 0x275   : > { %1979 = vmatpush1.bf16.msra.mxu0 %v14929_v15  ;;  %2085 = vmatpush1.bf16.msra.mxu1 %v14930_v16  ;;  %v14967_v41 = vld [vmem:[%s18336_s0 + $0x144] ss:$16 sps:$4 sm:$0xff]   ;;  %v14969_v42 = vld [vmem:[%s18336_s0 + $0x14c] ss:$16 sps:$4 sm:$0xff]   ;;  %v14971_v43 = vld [vmem:[%s18336_s0 + $0x140] ss:$16 sps:$4 sm:$0xff]  }
 0x276   : > { %1980 = vmatprep.subr.bf16.mxu0 %v14931_v17  ;;  %2086 = vmatprep.subr.bf16.mxu1 %v14933_v18  ;;  %v14972_v44 = vld [vmem:[%s18336_s0 + $0x148] ss:$16 sps:$4 sm:$0xff]   ;;  %v14973_v45 = vld [vmem:[%s18336_s0 + $0x164] ss:$16 sps:$4 sm:$0xff]   ;;  %s20196_s9 = sld [smem:[#allocation53_spill]]  ;;  %p20206_p5 = scmp.ne.s32.totalorder %s20177_s11, 0 }
 0x277   : > { %v14975_v46 = vld [vmem:[%s18336_s0 + $0x16c] ss:$16 sps:$4 sm:$0xff]   ;;  %v14977_v47 = vld [vmem:[%s18336_s0 + $0x160] ss:$16 sps:$4 sm:$0xff]   ;;  %v14978_v48 = vld [vmem:[%s18336_s0 + $0x168] ss:$16 sps:$4 sm:$0xff]  }
 0x278   : > { %v14979_v50 = vld [vmem:[%s18336_s0 + $0x184] ss:$16 sps:$4 sm:$0xff]   ;;  %v14981_v51 = vld [vmem:[%s18336_s0 + $0x18c] ss:$16 sps:$4 sm:$0xff]   ;;  %v14983_v52 = vld [vmem:[%s18336_s0 + $0x180] ss:$16 sps:$4 sm:$0xff]  }
 0x279   : > { %1981 = vmatpush1.bf16.msra.mxu0 %v14935_v19  ;;  %2087 = vmatpush1.bf16.msra.mxu1 %v14936_v20  ;;  %v14984_v53 = vld [vmem:[%s18336_s0 + $0x188] ss:$16 sps:$4 sm:$0xff]   ;;  %v14985_v54 = vld [vmem:[%s18336_s0 + $0x1a4] ss:$16 sps:$4 sm:$0xff]   ;;  %v14987_v55 = vld [vmem:[%s18336_s0 + $0x1ac] ss:$16 sps:$4 sm:$0xff]  }
 0x27a   : > { %1982 = vmatprep.subr.bf16.mxu0 %v14937_v21  ;;  %2088 = vmatprep.subr.bf16.mxu1 %v14939_v22  ;;  %v14989_v56 = vld [vmem:[%s18336_s0 + $0x1a0] ss:$16 sps:$4 sm:$0xff]   ;;  %v14990_v57 = vld [vmem:[%s18336_s0 + $0x1a8] ss:$16 sps:$4 sm:$0xff]   ;;  %v14991_v58 = vld [vmem:[%s18336_s0 + $0x1c4] ss:$16 sps:$4 sm:$0xff]  }
 0x27b   : > { %v14993_v59 = vld [vmem:[%s18336_s0 + $0x1cc] ss:$16 sps:$4 sm:$0xff]   ;;  %v14995_v60 = vld [vmem:[%s18336_s0 + $0x1c0] ss:$16 sps:$4 sm:$0xff]   ;;  %v14996_v61 = vld [vmem:[%s18336_s0 + $0x1c8] ss:$16 sps:$4 sm:$0xff]  }
 0x27c   : > { %s18483_s15 = scalar_lea.vmem %s20196_s9, %s14461_s18  ;;  %v14997_v62 = vld [vmem:[%s18336_s0 + $0x1e4] ss:$16 sps:$4 sm:$0xff]   ;;  %v14999_v63 = vld [vmem:[%s18336_s0 + $0x1ec] ss:$16 sps:$4 sm:$0xff]   ;;  %v15001_v0 = vld [vmem:[%s18336_s0 + $0x1e0] ss:$16 sps:$4 sm:$0xff]  }
 0x27d   : > { %1983 = vmatpush1.bf16.msra.mxu0 %v14941_v23  ;;  %2089 = vmatpush1.bf16.msra.mxu1 %v14942_v24  ;;  %v15005_v49 = vld [vmem:[%s18483_s15 + $0x4] ss:$16 sps:$4 sm:$0xff]   ;;  %v15002_v1 = vld [vmem:[%s18336_s0 + $0x1e8] ss:$16 sps:$4 sm:$0xff]   ;;  %v15008_v2 = vld [vmem:[%s18336_s0 + $0x204] ss:$16 sps:$4 sm:$0xff]  }
 0x27e   : > { %1984 = vmatprep.subr.bf16.mxu0 %v14943_v25  ;;  %2090 = vmatprep.subr.bf16.mxu1 %v14945_v26  ;;  %v15011_v3 = vld [vmem:[%s18336_s0 + $0x20c] ss:$16 sps:$4 sm:$0xff]   ;;  %v15006_v5 = vld [vmem:[%s18336_s0 + $0x200] ss:$16 sps:$4 sm:$0xff]   ;;  %v15009_v6 = vld [vmem:[%s18336_s0 + $0x208] ss:$16 sps:$4 sm:$0xff]  }
 0x27f   : > { %2004 = vmatprep.mubr.bf16.mxu0 %v15005_v49  ;;  %2110 = vmatprep.mubr.bf16.mxu1 %v15005_v49  ;;  %v15003_v4 = vld [vmem:[%s18483_s15] ss:$16 sps:$4 sm:$0xff]   ;;  %v15014_v7 = vld [vmem:[%s18336_s0 + $0x224] ss:$16 sps:$4 sm:$0xff]   ;;  %v15012_v9 = vld [vmem:[%s18336_s0 + $0x220] ss:$16 sps:$4 sm:$0xff]  }
 0x280   : > { %v15017_v8 = vld [vmem:[%s18336_s0 + $0x22c] ss:$16 sps:$4 sm:$0xff]   ;;  %v15015_v10 = vld [vmem:[%s18336_s0 + $0x228] ss:$16 sps:$4 sm:$0xff]   ;;  %v15020_v11 = vld [vmem:[%s18336_s0 + $0x244] ss:$16 sps:$4 sm:$0xff]  }
 0x281   : > { %1985 = vmatpush1.bf16.msra.mxu0 %v14947_v27  ;;  %2091 = vmatpush1.bf16.msra.mxu1 %v14948_v28  ;;  %v15023_v12 = vld [vmem:[%s18336_s0 + $0x24c] ss:$16 sps:$4 sm:$0xff]   ;;  %v15018_v13 = vld [vmem:[%s18336_s0 + $0x240] ss:$16 sps:$4 sm:$0xff]   ;;  %v15021_v14 = vld [vmem:[%s18336_s0 + $0x248] ss:$16 sps:$4 sm:$0xff]  }
 0x282   : > { %1986 = vmatprep.subr.bf16.mxu0 %v14949_v29  ;;  %2092 = vmatprep.subr.bf16.mxu1 %v14951_v30  ;;  %v15026_v15 = vld [vmem:[%s18336_s0 + $0x264] ss:$16 sps:$4 sm:$0xff]   ;;  %v15029_v16 = vld [vmem:[%s18336_s0 + $0x26c] ss:$16 sps:$4 sm:$0xff]   ;;  %v15024_v17 = vld [vmem:[%s18336_s0 + $0x260] ss:$16 sps:$4 sm:$0xff]  }
 0x283   : > { %v15027_v18 = vld [vmem:[%s18336_s0 + $0x268] ss:$16 sps:$4 sm:$0xff]   ;;  %v15032_v19 = vld [vmem:[%s18336_s0 + $0x284] ss:$16 sps:$4 sm:$0xff]   ;;  %v15035_v20 = vld [vmem:[%s18336_s0 + $0x28c] ss:$16 sps:$4 sm:$0xff]  }
 0x284   : > { %v15030_v21 = vld [vmem:[%s18336_s0 + $0x280] ss:$16 sps:$4 sm:$0xff]   ;;  %v15033_v22 = vld [vmem:[%s18336_s0 + $0x288] ss:$16 sps:$4 sm:$0xff]   ;;  %v15038_v23 = vld [vmem:[%s18336_s0 + $0x2a4] ss:$16 sps:$4 sm:$0xff]  }
 0x285   : > { %1987 = vmatpush1.bf16.msra.mxu0 %v14953_v31  ;;  %2093 = vmatpush1.bf16.msra.mxu1 %v14954_v32  ;;  %v15041_v24 = vld [vmem:[%s18336_s0 + $0x2ac] ss:$16 sps:$4 sm:$0xff]   ;;  %v15036_v25 = vld [vmem:[%s18336_s0 + $0x2a0] ss:$16 sps:$4 sm:$0xff]   ;;  %v15039_v27 = vld [vmem:[%s18336_s0 + $0x2a8] ss:$16 sps:$4 sm:$0xff]  }
 0x286   : > { %1988 = vmatprep.subr.bf16.mxu0 %v14955_v33  ;;  %2094 = vmatprep.subr.bf16.mxu1 %v14957_v34  ;;  %v15090_v26 = vld [vmem:[%s18483_s15 + $0x24] ss:$16 sps:$4 sm:$0xff]   ;;  %v15092_v28 = vld [vmem:[%s18483_s15 + $0x20] ss:$16 sps:$4 sm:$0xff]   ;;  %v15044_v29 = vld [vmem:[%s18336_s0 + $0x2c4] ss:$16 sps:$4 sm:$0xff]  }
 0x287   : > { %v15047_v30 = vld [vmem:[%s18336_s0 + $0x2cc] ss:$16 sps:$4 sm:$0xff]   ;;  %v15042_v31 = vld [vmem:[%s18336_s0 + $0x2c0] ss:$16 sps:$4 sm:$0xff]   ;;  %v15045_v32 = vld [vmem:[%s18336_s0 + $0x2c8] ss:$16 sps:$4 sm:$0xff]  }
 0x288   : > { %v15050_v33 = vld [vmem:[%s18336_s0 + $0x2e4] ss:$16 sps:$4 sm:$0xff]   ;;  %v15053_v34 = vld [vmem:[%s18336_s0 + $0x2ec] ss:$16 sps:$4 sm:$0xff]   ;;  %v15069_v49 = vld [vmem:[%s18336_s0 + $0x348] ss:$16 sps:$4 sm:$0xff]  }
 0x289   : > { %1989 = vmatpush1.bf16.msra.mxu0 %v14959_v35  ;;  %2095 = vmatpush1.bf16.msra.mxu1 %v14960_v36  ;;  %v15107_v35 = vld [vmem:[%s18483_s15 + $0xc] ss:$16 sps:$4 sm:$0xff]   ;;  %v15048_v36 = vld [vmem:[%s18336_s0 + $0x2e0] ss:$16 sps:$4 sm:$0xff]  }
 0x28a   : > { %1990 = vmatprep.subr.bf16.mxu0 %v14961_v37  ;;  %2096 = vmatprep.subr.bf16.mxu1 %v14963_v38  ;;  %v15051_v37 = vld [vmem:[%s18336_s0 + $0x2e8] ss:$16 sps:$4 sm:$0xff]   ;;  %v15056_v38 = vld [vmem:[%s18336_s0 + $0x304] ss:$16 sps:$4 sm:$0xff]  }
 0x28d   : > { %1991 = vmatpush1.bf16.msra.mxu0 %v14965_v39  ;;  %2097 = vmatpush1.bf16.msra.mxu1 %v14966_v40  ;;  %v15059_v39 = vld [vmem:[%s18336_s0 + $0x30c] ss:$16 sps:$4 sm:$0xff]   ;;  %v15054_v40 = vld [vmem:[%s18336_s0 + $0x300] ss:$16 sps:$4 sm:$0xff]  }
 0x28e   : > { %1992 = vmatprep.subr.bf16.mxu0 %v14967_v41  ;;  %2098 = vmatprep.subr.bf16.mxu1 %v14969_v42  ;;  %v15057_v41 = vld [vmem:[%s18336_s0 + $0x308] ss:$16 sps:$4 sm:$0xff]   ;;  %v15062_v42 = vld [vmem:[%s18336_s0 + $0x324] ss:$16 sps:$4 sm:$0xff]  }
 0x291   : > { %1993 = vmatpush1.bf16.msra.mxu0 %v14971_v43  ;;  %2099 = vmatpush1.bf16.msra.mxu1 %v14972_v44  ;;  %v15065_v43 = vld [vmem:[%s18336_s0 + $0x32c] ss:$16 sps:$4 sm:$0xff]   ;;  %v15060_v44 = vld [vmem:[%s18336_s0 + $0x320] ss:$16 sps:$4 sm:$0xff]  }
 0x292   : > { %1994 = vmatprep.subr.bf16.mxu0 %v14973_v45  ;;  %2100 = vmatprep.subr.bf16.mxu1 %v14975_v46  ;;  %v15063_v45 = vld [vmem:[%s18336_s0 + $0x328] ss:$16 sps:$4 sm:$0xff]   ;;  %v15068_v46 = vld [vmem:[%s18336_s0 + $0x344] ss:$16 sps:$4 sm:$0xff]  }
 0x295   : > { %1995 = vmatpush1.bf16.msra.mxu0 %v14977_v47  ;;  %2101 = vmatpush1.bf16.msra.mxu1 %v14978_v48  ;;  %v15071_v47 = vld [vmem:[%s18336_s0 + $0x34c] ss:$16 sps:$4 sm:$0xff]   ;;  %v15066_v48 = vld [vmem:[%s18336_s0 + $0x340] ss:$16 sps:$4 sm:$0xff]  }
 0x296   : > { %1996 = vmatprep.subr.bf16.mxu0 %v14979_v50  ;;  %2102 = vmatprep.subr.bf16.mxu1 %v14981_v51  ;;  %v15074_v50 = vld [vmem:[%s18336_s0 + $0x364] ss:$16 sps:$4 sm:$0xff]   ;;  %v15077_v51 = vld [vmem:[%s18336_s0 + $0x36c] ss:$16 sps:$4 sm:$0xff]  }
 0x299   : > { %1997 = vmatpush1.bf16.msra.mxu0 %v14983_v52  ;;  %2103 = vmatpush1.bf16.msra.mxu1 %v14984_v53  ;;  %v15072_v52 = vld [vmem:[%s18336_s0 + $0x360] ss:$16 sps:$4 sm:$0xff]   ;;  %v15075_v53 = vld [vmem:[%s18336_s0 + $0x368] ss:$16 sps:$4 sm:$0xff]  }
 0x29a   : > { %1998 = vmatprep.subr.bf16.mxu0 %v14985_v54  ;;  %2104 = vmatprep.subr.bf16.mxu1 %v14987_v55  ;;  %v15080_v54 = vld [vmem:[%s18336_s0 + $0x384] ss:$16 sps:$4 sm:$0xff]   ;;  %v15083_v55 = vld [vmem:[%s18336_s0 + $0x38c] ss:$16 sps:$4 sm:$0xff]  }
 0x29d   : > { %1999 = vmatpush1.bf16.msra.mxu0 %v14989_v56  ;;  %2105 = vmatpush1.bf16.msra.mxu1 %v14990_v57  ;;  %v15078_v56 = vld [vmem:[%s18336_s0 + $0x380] ss:$16 sps:$4 sm:$0xff]   ;;  %v15081_v57 = vld [vmem:[%s18336_s0 + $0x388] ss:$16 sps:$4 sm:$0xff]  }
 0x29e   : > { %2000 = vmatprep.subr.bf16.mxu0 %v14991_v58  ;;  %2106 = vmatprep.subr.bf16.mxu1 %v14993_v59  ;;  %v15086_v58 = vld [vmem:[%s18336_s0 + $0x3a4] ss:$16 sps:$4 sm:$0xff]   ;;  %v15089_v59 = vld [vmem:[%s18336_s0 + $0x3ac] ss:$16 sps:$4 sm:$0xff]  }
 0x2a1   : > { %2001 = vmatpush1.bf16.msra.mxu0 %v14995_v60  ;;  %2107 = vmatpush1.bf16.msra.mxu1 %v14996_v61  ;;  %v15084_v60 = vld [vmem:[%s18336_s0 + $0x3a0] ss:$16 sps:$4 sm:$0xff]   ;;  %v15087_v61 = vld [vmem:[%s18336_s0 + $0x3a8] ss:$16 sps:$4 sm:$0xff]  }
 0x2a2   : > { %2002 = vmatprep.subr.bf16.mxu0 %v14997_v62  ;;  %2108 = vmatprep.subr.bf16.mxu1 %v14999_v63  ;;  %v15095_v62 = vld [vmem:[%s18336_s0 + $0x3c4] ss:$16 sps:$4 sm:$0xff]   ;;  %v15098_v63 = vld [vmem:[%s18336_s0 + $0x3cc] ss:$16 sps:$4 sm:$0xff]  }
 0x2a5   : > { %2003 = vmatpush1.bf16.msra.mxu0 %v15001_v0  ;;  %2109 = vmatpush1.bf16.msra.mxu1 %v15002_v1  ;;  %v15093_v0 = vld [vmem:[%s18336_s0 + $0x3c0] ss:$16 sps:$4 sm:$0xff]   ;;  %v15096_v1 = vld [vmem:[%s18336_s0 + $0x3c8] ss:$16 sps:$4 sm:$0xff]  }
 0x2a6   : > { %2025 = vmatprep.subr.bf16.mxu0 %v15008_v2  ;;  %2131 = vmatprep.subr.bf16.mxu1 %v15011_v3  ;;  %v15101_v2 = vld [vmem:[%s18336_s0 + $0x3e4] ss:$16 sps:$4 sm:$0xff]   ;;  %v15104_v3 = vld [vmem:[%s18336_s0 + $0x3ec] ss:$16 sps:$4 sm:$0xff]  }
 0x2a8   : > { %2005 = vmatmul.mubr.bf16.vlgmr.msra.gmra.mrb[0].mxu0 %v15003_v4  ;;  %2111 = vmatmul.mubr.bf16.vlgmr.msra.gmra.mrb[0].mxu1 %v15003_v4  ;;  %v15099_v4 = vld [vmem:[%s18336_s0 + $0x3e0] ss:$16 sps:$4 sm:$0xff]  }
 0x2a9   : > { %2026 = vmatpush1.bf16.msra.mxu0 %v15006_v5  ;;  %2132 = vmatpush1.bf16.msra.mxu1 %v15009_v6  ;;  %v15102_v5 = vld [vmem:[%s18336_s0 + $0x3e8] ss:$16 sps:$4 sm:$0xff]   ;;  %v15105_v6 = vld [vmem:[%s18483_s15 + $0x8] ss:$16 sps:$4 sm:$0xff]  }
 0x2aa   : > { %2027 = vmatprep.subr.bf16.mxu0 %v15014_v7  ;;  %2133 = vmatprep.subr.bf16.mxu1 %v15017_v8  ;;  %v15108_v7 = vld [vmem:[%s18483_s15 + $0x2c] ss:$16 sps:$4 sm:$0xff]   ;;  %v15110_v8 = vld [vmem:[%s18483_s15 + $0x28] ss:$16 sps:$4 sm:$0xff]  }
 0x2ab   : > { %2014 = vmatprep.mubr.bf16.mxu0 %v15090_v26  ;;  %2120 = vmatprep.mubr.bf16.mxu1 %v15090_v26 }
 0x2ad   : > { %2028 = vmatpush1.bf16.msra.mxu0 %v15012_v9  ;;  %2134 = vmatpush1.bf16.msra.mxu1 %v15015_v10  ;;  %v20102_v9 = vlaneseq }
 0x2ae   : > { %2029 = vmatprep.subr.bf16.mxu0 %v15020_v11  ;;  %2135 = vmatprep.subr.bf16.mxu1 %v15023_v12  ;;  %v1270_v12 = vld [vmem:[%s910_s30] sm:$0xf]  ;;  %s20205_s30 = sld [smem:[#allocation70_spill]] }
 0x2af   : > { %v18577_v10 = vshrl.u32 %v20102_v9, 7 }
 0x2b0   : > { %2015 = vmatmul.mubr.bf16.gmra.mrb[4].mxu0 %v15092_v28  ;;  %2121 = vmatmul.mubr.bf16.gmra.mrb[4].mxu1 %v15092_v28 }
 0x2b1   : > { %2030 = vmatpush1.bf16.msra.mxu0 %v15018_v13  ;;  %2136 = vmatpush1.bf16.msra.mxu1 %v15021_v14  ;;  %20197 = vst [vmem:[#allocation52_spill] sm:$0xff] %v18577_v10  ;;  %v18580_v11 = vsub.s32 0, %v18577_v10  ;;  %v18585_v13 = vsub.s32 2, %v18577_v10  ;;  %v18588_v14 = vsub.s32 1, %v18577_v10 }
 0x2b2   : > { %2031 = vmatprep.subr.bf16.mxu0 %v15026_v15  ;;  %2137 = vmatprep.subr.bf16.mxu1 %v15029_v16  ;;  %v18591_v15 = vsub.s32 3, %v18577_v10 }
 0x2b3   : > { %2057 = vmatprep.mubr.bf16.mxu0 %v15107_v35  ;;  %2163 = vmatprep.mubr.bf16.mxu1 %v15107_v35  ;;  %v1275_v16 = vrot.slane %v1270_v12, %v18580_v11 }
 0x2b5   : > { %2032 = vmatpush1.bf16.msra.mxu0 %v15024_v17  ;;  %2138 = vmatpush1.bf16.msra.mxu1 %v15027_v18  ;;  %v1283_v17 = vrot.slane %v1270_v12, %v18585_v13  ;;  %v18596_v18 = vrot.slane %v1270_v12, %v18588_v14 }
 0x2b6   : > { %2033 = vmatprep.subr.bf16.mxu0 %v15032_v19  ;;  %2139 = vmatprep.subr.bf16.mxu1 %v15035_v20 }
 0x2b9   : > { %2034 = vmatpush1.bf16.msra.mxu0 %v15030_v21  ;;  %2140 = vmatpush1.bf16.msra.mxu1 %v15033_v22  ;;  %v18599_v21 = vrot.slane %v1270_v12, %v18591_v15 }
 0x2ba   : > { %2035 = vmatprep.subr.bf16.mxu0 %v15038_v23  ;;  %2141 = vmatprep.subr.bf16.mxu1 %v15041_v24 }
 0x2bd   : > { %2036 = vmatpush1.bf16.msra.mxu0 %v15036_v25  ;;  %2142 = vmatpush1.bf16.msra.mxu1 %v15039_v27 }
 0x2be   : > { %2037 = vmatprep.subr.bf16.mxu0 %v15044_v29  ;;  %2143 = vmatprep.subr.bf16.mxu1 %v15047_v30 }
 0x2c1   : > { %2038 = vmatpush1.bf16.msra.mxu0 %v15042_v31  ;;  %2144 = vmatpush1.bf16.msra.mxu1 %v15045_v32 }
 0x2c2   : > { %2039 = vmatprep.subr.bf16.mxu0 %v15050_v33  ;;  %2145 = vmatprep.subr.bf16.mxu1 %v15053_v34 }
 0x2c5   : > { %2040 = vmatpush1.bf16.msra.mxu0 %v15048_v36  ;;  %2146 = vmatpush1.bf16.msra.mxu1 %v15051_v37 }
 0x2c6   : > { %2041 = vmatprep.subr.bf16.mxu0 %v15056_v38  ;;  %2147 = vmatprep.subr.bf16.mxu1 %v15059_v39 }
 0x2c9   : > { %2042 = vmatpush1.bf16.msra.mxu0 %v15054_v40  ;;  %2148 = vmatpush1.bf16.msra.mxu1 %v15057_v41 }
 0x2ca   : > { %2043 = vmatprep.subr.bf16.mxu0 %v15062_v42  ;;  %2149 = vmatprep.subr.bf16.mxu1 %v15065_v43 }
 0x2cd   : > { %2044 = vmatpush1.bf16.msra.mxu0 %v15060_v44  ;;  %2150 = vmatpush1.bf16.msra.mxu1 %v15063_v45 }
 0x2ce   : > { %2045 = vmatprep.subr.bf16.mxu0 %v15068_v46  ;;  %2151 = vmatprep.subr.bf16.mxu1 %v15071_v47 }
 0x2d1   : > { %2046 = vmatpush1.bf16.msra.mxu0 %v15066_v48  ;;  %2152 = vmatpush1.bf16.msra.mxu1 %v15069_v49 }
 0x2d2   : > { %2047 = vmatprep.subr.bf16.mxu0 %v15074_v50  ;;  %2153 = vmatprep.subr.bf16.mxu1 %v15077_v51 }
 0x2d5   : > { %2048 = vmatpush1.bf16.msra.mxu0 %v15072_v52  ;;  %2154 = vmatpush1.bf16.msra.mxu1 %v15075_v53 }
 0x2d6   : > { %2049 = vmatprep.subr.bf16.mxu0 %v15080_v54  ;;  %2155 = vmatprep.subr.bf16.mxu1 %v15083_v55 }
 0x2d9   : > { %2050 = vmatpush1.bf16.msra.mxu0 %v15078_v56  ;;  %2156 = vmatpush1.bf16.msra.mxu1 %v15081_v57 }
 0x2da   : > { %2051 = vmatprep.subr.bf16.mxu0 %v15086_v58  ;;  %2157 = vmatprep.subr.bf16.mxu1 %v15089_v59 }
 0x2dd   : > { %2052 = vmatpush1.bf16.msra.mxu0 %v15084_v60  ;;  %2158 = vmatpush1.bf16.msra.mxu1 %v15087_v61 }
 0x2de   : > { %2053 = vmatprep.subr.bf16.mxu0 %v15095_v62  ;;  %2159 = vmatprep.subr.bf16.mxu1 %v15098_v63 }
 0x2e1   : > { %2054 = vmatpush1.bf16.msra.mxu0 %v15093_v0  ;;  %2160 = vmatpush1.bf16.msra.mxu1 %v15096_v1 }
 0x2e2   : > { %2055 = vmatprep.subr.bf16.mxu0 %v15101_v2  ;;  %2161 = vmatprep.subr.bf16.mxu1 %v15104_v3 }
 0x2e5   : > { %2056 = vmatpush1.bf16.msra.mxu0 %v15099_v4  ;;  %2162 = vmatpush1.bf16.msra.mxu1 %v15102_v5 }
 0x2e8   : > { %2058 = vmatmul.mubr.bf16.vlgmr.msra.gmra.mrb[0].mxu0 %v15105_v6  ;;  %2164 = vmatmul.mubr.bf16.vlgmr.msra.gmra.mrb[0].mxu1 %v15105_v6 }
 0x2e9   : > { %2067 = vmatprep.mubr.bf16.mxu0 %v15108_v7  ;;  %2173 = vmatprep.mubr.bf16.mxu1 %v15108_v7 }
 0x2f0   : > { %2068 = vmatmul.mubr.bf16.gmra.mrb[4].mxu0 %v15110_v8  ;;  %2174 = vmatmul.mubr.bf16.gmra.mrb[4].mxu1 %v15110_v8 }
 0x3bb   : > { %v2059_v19 = vpop.f32.mrb[0].mxu0  ;;  %v2165_v20 = vpop.f32.mrb[0].mxu1 }
 0x3bc   : > { %v18601_v22 = vadd.f32 %v2059_v19, %v1275_v16  ;;  %v2061_v23 = vpop.f32.mrb[1].mxu0  ;;  %v2167_v24 = vpop.f32.mrb[1].mxu1  ;;  %v18603_v25 = vadd.f32 %v2165_v20, %v1283_v17 }
 0x3bd   : > { %v18606_v26 = vadd.f32 %v2061_v23, %v18596_v18  ;;  %v2063_v27 = vpop.f32.mrb[2].mxu0  ;;  %v2169_v28 = vpop.f32.mrb[2].mxu1  ;;  %v18613_v34 = vadd.f32 %v2167_v24, %v18599_v21 }
 0x3be   : > { %v2200_v29 = vmul.f32 0.044715, %v18601_v22  ;;  %v18609_v30 = vadd.f32 %v2063_v27, %v1275_v16  ;;  %v2065_v31 = vpop.f32.mrb[3].mxu0  ;;  %v2171_v32 = vpop.f32.mrb[3].mxu1  ;;  %v18620_v38 = vadd.f32 %v2169_v28, %v1283_v17  ;;  %v2202_v39 = vmul.f32 0.044715, %v18603_v25 }
 0x3bf   : > { %v2201_v33 = vmul.f32 0.044715, %v18606_v26  ;;  %v18616_v35 = vadd.f32 %v2065_v31, %v18596_v18  ;;  %v18627_v43 = vadd.f32 %v2171_v32, %v18599_v21  ;;  %v2203_v44 = vmul.f32 0.044715, %v18613_v34 }
 0x3c0   : > { %v2216_v36 = vmul.f32 %v18601_v22, %v2200_v29  ;;  %v2204_v37 = vmul.f32 0.044715, %v18609_v30  ;;  %v2206_v50 = vmul.f32 0.044715, %v18620_v38  ;;  %v2218_v54 = vmul.f32 %v18603_v25, %v2202_v39 }
 0x3c1   : > { %v2205_v40 = vmul.f32 0.044715, %v18616_v35  ;;  %v2217_v41 = vmul.f32 %v18606_v26, %v2201_v33  ;;  %v2207_v60 = vmul.f32 0.044715, %v18627_v43  ;;  %v2219_v0 = vmul.f32 %v18613_v34, %v2203_v44 }
 0x3c2   : > { %v2220_v42 = vmul.f32 %v18609_v30, %v2204_v37  ;;  %v2232_v48 = vmul.f32 %v18601_v22, %v2216_v36  ;;  %v2222_v6 = vmul.f32 %v18620_v38, %v2206_v50  ;;  %v2234_v23 = vmul.f32 %v18603_v25, %v2218_v54 }
 0x3c3   : > { %v2221_v45 = vmul.f32 %v18616_v35, %v2205_v40  ;;  %v2069_v46 = vpop.f32.mrb[4].mxu0  ;;  %v2175_v47 = vpop.f32.mrb[4].mxu1  ;;  %v2233_v58 = vmul.f32 %v18606_v26, %v2217_v41  ;;  %v2223_v27 = vmul.f32 %v18627_v43, %v2207_v60  ;;  %v2235_v50 = vmul.f32 %v18613_v34, %v2219_v0 }
 0x3c4   : > { %v2236_v49 = vmul.f32 %v18609_v30, %v2220_v42  ;;  %v18634_v51 = vadd.f32 %v2069_v46, %v1275_v16  ;;  %v2071_v52 = vpop.f32.mrb[5].mxu0  ;;  %v2177_v53 = vpop.f32.mrb[5].mxu1  ;;  %v18644_v2 = vadd.f32 %v2175_v47, %v1283_v17  ;;  %v2248_v4 = vadd.f32 %v18601_v22, %v2232_v48 }
 0x3c5   : > { %v2237_v55 = vmul.f32 %v18616_v35, %v2221_v45  ;;  %v2073_v56 = vpop.f32.mrb[6].mxu0  ;;  %v2179_v57 = vpop.f32.mrb[6].mxu1  ;;  %v18647_v3 = vadd.f32 %v2071_v52, %v18596_v18  ;;  %v2249_v24 = vadd.f32 %v18606_v26, %v2233_v58  ;;  %v2238_v32 = vmul.f32 %v18620_v38, %v2222_v6 }
 0x3c6   : > { %v2252_v59 = vadd.f32 %v18609_v30, %v2236_v49  ;;  %v2208_v61 = vmul.f32 0.044715, %v18634_v51  ;;  %v2075_v62 = vpop.f32.mrb[7].mxu0  ;;  %v2181_v63 = vpop.f32.mrb[7].mxu1  ;;  %v18651_v7 = vadd.f32 %v2073_v56, %v1275_v16  ;;  %v18655_v20 = vadd.f32 %v2179_v57, %v1283_v17 }
 0x3c7   : > { %v2253_v1 = vadd.f32 %v18616_v35, %v2237_v55  ;;  %v2209_v19 = vmul.f32 0.044715, %v18647_v3  ;;  %v2210_v29 = vmul.f32 0.044715, %v18644_v2  ;;  %v18667_v33 = vadd.f32 %v2075_v62, %v18596_v18 }
 0x3c8   : > { %v2268_v5 = vmul.f32 0.7978846, %v2252_v59  ;;  %v2224_v12 = vmul.f32 %v18634_v51, %v2208_v61  ;;  %v2212_v28 = vmul.f32 0.044715, %v18651_v7  ;;  %v2214_v31 = vmul.f32 0.044715, %v18655_v20 }
 0x3c9   : > { %v2269_v8 = vmul.f32 0.7978846, %v2253_v1  ;;  %v2225_v16 = vmul.f32 %v18647_v3, %v2209_v19  ;;  %v2264_v36 = vmul.f32 0.7978846, %v2248_v4  ;;  %v18671_v39 = vadd.f32 %v2177_v53, %v18599_v21 }
 0x3ca   : > { %15911 = vtanh.f32 %v2268_v5  ;;  %v2228_v17 = vmul.f32 %v18651_v7, %v2212_v28  ;;  %v2240_v37 = vmul.f32 %v18634_v51, %v2224_v12  ;;  %v18674_v40 = vadd.f32 %v2181_v63, %v18599_v21 }
 0x3cb   : > { %15913 = vtanh.f32 %v2269_v8  ;;  %v2265_v41 = vmul.f32 0.7978846, %v2249_v24  ;;  %v2239_v42 = vmul.f32 %v18627_v43, %v2223_v27  ;;  %v2213_v45 = vmul.f32 0.044715, %v18667_v33 }
 0x3cc   : > { %v2244_v44 = vmul.f32 %v18651_v7, %v2228_v17  ;;  %v2226_v46 = vmul.f32 %v18644_v2, %v2210_v29  ;;  %v2241_v18 = vmul.f32 %v18647_v3, %v2225_v16  ;;  %v2230_v47 = vmul.f32 %v18655_v20, %v2214_v31 }
 0x3cd   : > { %v2215_v48 = vmul.f32 0.044715, %v18674_v40  ;;  %v2229_v21 = vmul.f32 %v18667_v33, %v2213_v45  ;;  %v2250_v52 = vadd.f32 %v18603_v25, %v2234_v23  ;;  %v2254_v53 = vadd.f32 %v18620_v38, %v2238_v32 }
 0x3ce   : > { %v2260_v49 = vadd.f32 %v18651_v7, %v2244_v44  ;;  %v2256_v54 = vadd.f32 %v18634_v51, %v2240_v37  ;;  %v2211_v55 = vmul.f32 0.044715, %v18671_v39  ;;  %15915 = vtanh.f32 %v2264_v36 }
 0x3cf   : > { %v2245_v57 = vmul.f32 %v18667_v33, %v2229_v21  ;;  %v2251_v58 = vadd.f32 %v18613_v34, %v2235_v50  ;;  %v2266_v59 = vmul.f32 0.7978846, %v2250_v52  ;;  %v2242_v60 = vmul.f32 %v18644_v2, %v2226_v46 }
 0x3d0   : > { %v2276_v56 = vmul.f32 0.7978846, %v2260_v49  ;;  %v2257_v61 = vadd.f32 %v18647_v3, %v2241_v18  ;;  %v2246_v62 = vmul.f32 %v18655_v20, %v2230_v47  ;;  %15917 = vtanh.f32 %v2265_v41 }
 0x3d1   : > { %v2261_v63 = vadd.f32 %v18667_v33, %v2245_v57  ;;  %v2231_v0 = vmul.f32 %v18674_v40, %v2215_v48  ;;  %v2267_v1 = vmul.f32 0.7978846, %v2251_v58  ;;  %v2227_v5 = vmul.f32 %v18671_v39, %v2211_v55 }
 0x3d2   : > { %15919 = vtanh.f32 %v2276_v56  ;;  %v2255_v6 = vadd.f32 %v18627_v43, %v2239_v42  ;;  %v2270_v8 = vmul.f32 0.7978846, %v2254_v53  ;;  %v2272_v19 = vmul.f32 0.7978846, %v2256_v54 }
 0x3d3   : > { %15921 = vtanh.f32 %v2266_v59  ;;  %v2277_v23 = vmul.f32 0.7978846, %v2261_v63  ;;  %v2273_v24 = vmul.f32 0.7978846, %v2257_v61  ;;  %v2262_v28 = vadd.f32 %v18655_v20, %v2246_v62 }
 0x3d4   : > { %v15912_v4 = vpop.eup %15911  ;;  %15923 = vtanh.f32 %v2267_v1  ;;  %v2271_v27 = vmul.f32 0.7978846, %v2255_v6  ;;  %v2247_v29 = vmul.f32 %v18674_v40, %v2231_v0  ;;  %v2243_v32 = vmul.f32 %v18671_v39, %v2227_v5 }
 0x3d5   : > { %v15914_v12 = vpop.eup %15913  ;;  %15925 = vtanh.f32 %v2270_v8  ;;  %v2300_v16 = vadd.f32 1.0, %v15912_v4  ;;  %v2258_v17 = vadd.f32 %v18644_v2, %v2242_v60  ;;  %v2184_v36 = vmul.f32 0.5, %v18601_v22 }
 0x3d6   : > { %15927 = vtanh.f32 %v2277_v23  ;;  %v2301_v31 = vadd.f32 1.0, %v15914_v12  ;;  %v2188_v37 = vmul.f32 0.5, %v18609_v30  ;;  %v2189_v42 = vmul.f32 0.5, %v18616_v35 }
 0x3d7   : > { %15929 = vtanh.f32 %v2271_v27  ;;  %v2259_v44 = vadd.f32 %v18671_v39, %v2243_v32  ;;  %v2274_v45 = vmul.f32 0.7978846, %v2258_v17  ;;  %v2185_v46 = vmul.f32 0.5, %v18606_v26 }
 0x3d8   : > { %15931 = vtanh.f32 %v2272_v19  ;;  %v15916_v41 = vpop.eup %15915  ;;  %v2263_v47 = vadd.f32 %v18674_v40, %v2247_v29  ;;  %v2278_v48 = vmul.f32 0.7978846, %v2262_v28  ;;  %v18709_v21 = vmul.f32 %v2300_v16, %v2188_v37 }
 0x3d9   : > { %15933 = vtanh.f32 %v2273_v24  ;;  %v2296_v18 = vadd.f32 1.0, %v15916_v41  ;;  %v18711_v22 = vmul.f32 %v2301_v31, %v2189_v42  ;;  %v2275_v30 = vmul.f32 0.7978846, %v2259_v44 }
 0x3da   : > { %v15918_v49 = vpop.eup %15917  ;;  %15935 = vtanh.f32 %v2274_v45  ;;  %v2279_v53 = vmul.f32 0.7978846, %v2263_v47  ;;  %v2186_v55 = vmul.f32 0.5, %v18603_v25  ;;  %v2187_v59 = vmul.f32 0.5, %v18613_v34 }
 0x3db   : > { %v2297_v52 = vadd.f32 1.0, %v15918_v49  ;;  %v18713_v35 = vmul.f32 %v2296_v18, %v2184_v36  ;;  %15937 = vtanh.f32 %v2278_v48  ;;  %v2190_v61 = vmul.f32 0.5, %v18620_v38 }
 0x3dc   : > { %v15920_v50 = vpop.eup %15919  ;;  %15939 = vtanh.f32 %v2275_v30  ;;  %v2335_v25 = vadd.f32 %v18711_v22, %v18709_v21  ;;  %v2191_v6 = vmul.f32 0.5, %v18627_v43  ;;  %v2196_v8 = vmul.f32 0.5, %v18651_v7 }
 0x3dd   : > { %v15922_v54 = vpop.eup %15921  ;;  %v18716_v57 = vmul.f32 %v2297_v52, %v2185_v46  ;;  %15941 = vtanh.f32 %v2279_v53  ;;  %v2308_v62 = vadd.f32 1.0, %v15920_v50  ;;  %v2197_v34 = vmul.f32 0.5, %v18667_v33 }
 0x3de   : > { %v15924_v26 = vpop.eup %15923  ;;  %v2298_v56 = vadd.f32 1.0, %v15922_v54  ;;  %v2192_v29 = vmul.f32 0.5, %v18634_v51  ;;  %v2193_v32 = vmul.f32 0.5, %v18647_v3  ;;  %v2194_v51 = vmul.f32 0.5, %v18644_v2 }
 0x3df   : > { %v15926_v58 = vpop.eup %15925  ;;  %v2299_v60 = vadd.f32 1.0, %v15924_v26  ;;  %v2330_v1 = vadd.f32 %v18716_v57, %v18713_v35  ;;  %v18735_v31 = vmul.f32 %v2308_v62, %v2196_v8  ;;  %v2195_v18 = vmul.f32 0.5, %v18671_v39  ;;  %v15114_v62 = vld [vmem:[%s18364_s26 + $0x8] ss:$48 sps:$4 sm:$0xff]   ;;  %v15123_v8 = vld [vmem:[%s18364_s26 + $0xc0] ss:$48 sps:$4 sm:$0xff]  }
 0x3e0   : > { %v15928_v63 = vpop.eup %15927  ;;  %v18720_v0 = vmul.f32 %v2298_v56, %v2186_v55  ;;  %v2302_v4 = vadd.f32 1.0, %v15926_v58  ;;  %v2198_v47 = vmul.f32 0.5, %v18655_v20  ;;  %v2199_v55 = vmul.f32 0.5, %v18674_v40  ;;  %v15122_v40 = vld [vmem:[%s18364_s26 + $0x6c] ss:$48 sps:$4 sm:$0xff]  }
 0x3e1   : > { %v15930_v5 = vpop.eup %15929  ;;  %v2309_v12 = vadd.f32 1.0, %v15928_v63  ;;  %v18729_v19 = vmul.f32 %v2299_v60, %v2187_v59  ;;  %v15111_v60 = vld [vmem:[%s18364_s26] ss:$48 sps:$4 sm:$0xff]   ;;  %v15116_v63 = vld [vmem:[%s18364_s26 + $0xc] ss:$48 sps:$4 sm:$0xff]  }
 0x3e2   : > { %v15932_v38 = vpop.eup %15931  ;;  %v2331_v23 = vadd.f32 %v2330_v1, %v18720_v0  ;;  %v2303_v24 = vadd.f32 1.0, %v15930_v5  ;;  %v18732_v27 = vmul.f32 %v2302_v4, %v2190_v61  ;;  %v15113_v61 = vld [vmem:[%s18364_s26 + $0x4] ss:$48 sps:$4 sm:$0xff]   ;;  %4991 = vmatprep.subr.bf16.mxu1 %v15116_v63  ;;  %v15117_v4 = vld [vmem:[%s18364_s26 + $0x60] ss:$48 sps:$4 sm:$0xff]  }
 0x3e3   : > { %v15934_v28 = vpop.eup %15933  ;;  %v2304_v16 = vadd.f32 1.0, %v15932_v38  ;;  %v18737_v43 = vmul.f32 %v2309_v12, %v2197_v34  ;;  %v15119_v1 = vld [vmem:[%s18364_s26 + $0x64] ss:$48 sps:$4 sm:$0xff]   ;;  %4885 = vmatprep.subr.bf16.mxu0 %v15113_v61  ;;  %4992 = vmatpush1.bf16.msra.mxu1 %v15114_v62  ;;  %v15126_v34 = vld [vmem:[%s18364_s26 + $0xc8] ss:$48 sps:$4 sm:$0xff]  }
 0x3e4   : > { %v2332_v7 = vadd.f32 %v2331_v23, %v18729_v19  ;;  %v2336_v33 = vadd.f32 %v2335_v25, %v18732_v27  ;;  %v2305_v17 = vadd.f32 1.0, %v15934_v28  ;;  %v15936_v36 = vpop.eup %15935  ;;  %v18744_v42 = vmul.f32 %v2303_v24, %v2191_v6  ;;  %4886 = vmatpush1.bf16.msra.mxu0 %v15111_v60  ;;  %v15120_v25 = vld [vmem:[%s18364_s26 + $0x68] ss:$48 sps:$4 sm:$0xff]   ;;  %v15125_v5 = vld [vmem:[%s18364_s26 + $0xc4] ss:$48 sps:$4 sm:$0xff]   ;;  %4993 = vmatprep.subr.bf16.mxu1 %v15122_v40 }
 0x3e5   : > { %v18742_v37 = vmul.f32 %v2304_v16, %v2192_v29  ;;  %v15938_v41 = vpop.eup %15937  ;;  %v2306_v44 = vadd.f32 1.0, %v15936_v36  ;;  %v2345_v3 = vadd.f32 %v18737_v43, %v18735_v31  ;;  %4887 = vmatprep.subr.bf16.mxu0 %v15119_v1  ;;  %v15128_v6 = vld [vmem:[%s18364_s26 + $0xcc] ss:$48 sps:$4 sm:$0xff]   ;;  %v15131_v12 = vld [vmem:[%s18364_s26 + $0x124] ss:$48 sps:$4 sm:$0xff]  }
 0x3e6   : > { %2333 = vadd.xlane.f32.xlu0 %v2332_v7  ;;  %v18747_v45 = vmul.f32 %v2305_v17, %v2193_v32  ;;  %v15940_v46 = vpop.eup %15939  ;;  %v2310_v48 = vadd.f32 1.0, %v15938_v41  ;;  %v2337_v30 = vadd.f32 %v2336_v33, %v18744_v42  ;;  %v15134_v38 = vld [vmem:[%s18364_s26 + $0x12c] ss:$48 sps:$4 sm:$0xff]   ;;  %v15129_v23 = vld [vmem:[%s18364_s26 + $0x120] ss:$48 sps:$4 sm:$0xff]  }
 0x3e7   : > { %v15942_v49 = vpop.eup %15941  ;;  %v2307_v50 = vadd.f32 1.0, %v15940_v46  ;;  %v18754_v52 = vmul.f32 %v2306_v44, %v2194_v51  ;;  %4994 = vmatpush1.bf16.msra.mxu1 %v15120_v25  ;;  %v15132_v24 = vld [vmem:[%s18364_s26 + $0x128] ss:$48 sps:$4 sm:$0xff]   ;;  %v15137_v28 = vld [vmem:[%s18364_s26 + $0x184] ss:$48 sps:$4 sm:$0xff]  }
 0x3e8   : > { %v2340_v2 = vadd.f32 %v18747_v45, %v18742_v37  ;;  %v2311_v53 = vadd.f32 1.0, %v15942_v49  ;;  %v18761_v54 = vmul.f32 %v2310_v48, %v2198_v47  ;;  %4888 = vmatpush1.bf16.msra.mxu0 %v15117_v4  ;;  %4995 = vmatprep.subr.bf16.mxu1 %v15128_v6  ;;  %v15140_v29 = vld [vmem:[%s18364_s26 + $0x18c] ss:$48 sps:$4 sm:$0xff]   ;;  %v15135_v16 = vld [vmem:[%s18364_s26 + $0x180] ss:$48 sps:$4 sm:$0xff]  }
 0x3e9   : > { %v18758_v20 = vmul.f32 %v2307_v50, %v2195_v18  ;;  %4889 = vmatprep.subr.bf16.mxu0 %v15125_v5  ;;  %v15138_v7 = vld [vmem:[%s18364_s26 + $0x188] ss:$48 sps:$4 sm:$0xff]   ;;  %v15143_v33 = vld [vmem:[%s18364_s26 + $0x1e4] ss:$48 sps:$4 sm:$0xff]   ;;  %v15146_v32 = vld [vmem:[%s18364_s26 + $0x1ec] ss:$48 sps:$4 sm:$0xff]  }
 0x3ea   : > { %2338 = vadd.xlane.f32.xlu0 %v2337_v30  ;;  %v2341_v39 = vadd.f32 %v2340_v2, %v18754_v52  ;;  %v2346_v56 = vadd.f32 %v2345_v3, %v18761_v54  ;;  %v18766_v58 = vmul.f32 %v2311_v53, %v2199_v55  ;;  %v15141_v17 = vld [vmem:[%s18364_s26 + $0x1e0] ss:$48 sps:$4 sm:$0xff]   ;;  %v15144_v36 = vld [vmem:[%s18364_s26 + $0x1e8] ss:$48 sps:$4 sm:$0xff]   ;;  %v15149_v41 = vld [vmem:[%s18364_s26 + $0x244] ss:$48 sps:$4 sm:$0xff]  }
 0x3eb   : > { %4996 = vmatpush1.bf16.msra.mxu1 %v15126_v34  ;;  %v15152_v51 = vld [vmem:[%s18364_s26 + $0x24c] ss:$48 sps:$4 sm:$0xff]   ;;  %v15147_v44 = vld [vmem:[%s18364_s26 + $0x240] ss:$48 sps:$4 sm:$0xff]   ;;  %v15150_v46 = vld [vmem:[%s18364_s26 + $0x248] ss:$48 sps:$4 sm:$0xff]  }
 0x3ec   : > { %v2342_v26 = vadd.f32 %v2341_v39, %v18758_v20  ;;  %v2347_v59 = vadd.f32 %v2346_v56, %v18766_v58  ;;  %4890 = vmatpush1.bf16.msra.mxu0 %v15123_v8  ;;  %4997 = vmatprep.subr.bf16.mxu1 %v15134_v38  ;;  %v15155_v18 = vld [vmem:[%s18364_s26 + $0x2a4] ss:$48 sps:$4 sm:$0xff]   ;;  %v15158_v47 = vld [vmem:[%s18364_s26 + $0x2ac] ss:$48 sps:$4 sm:$0xff]   ;;  %v15153_v48 = vld [vmem:[%s18364_s26 + $0x2a0] ss:$48 sps:$4 sm:$0xff]  }
 0x3ed   : > { %4891 = vmatprep.subr.bf16.mxu0 %v15131_v12  ;;  %v15156_v3 = vld [vmem:[%s18364_s26 + $0x2a8] ss:$48 sps:$4 sm:$0xff]   ;;  %v15161_v49 = vld [vmem:[%s18364_s26 + $0x304] ss:$48 sps:$4 sm:$0xff]   ;;  %v15164_v30 = vld [vmem:[%s18364_s26 + $0x30c] ss:$48 sps:$4 sm:$0xff]  }
 0x3ee   : > { %2343 = vadd.xlane.f32.xlu1 %v2342_v26  ;;  %v15159_v50 = vld [vmem:[%s18364_s26 + $0x300] ss:$48 sps:$4 sm:$0xff]   ;;  %v15162_v2 = vld [vmem:[%s18364_s26 + $0x308] ss:$48 sps:$4 sm:$0xff]   ;;  %v15167_v39 = vld [vmem:[%s18364_s26 + $0x364] ss:$48 sps:$4 sm:$0xff]  }
 0x3ef   : > { %4998 = vmatpush1.bf16.msra.mxu1 %v15132_v24  ;;  %v15170_v53 = vld [vmem:[%s18364_s26 + $0x36c] ss:$48 sps:$4 sm:$0xff]   ;;  %v15165_v26 = vld [vmem:[%s18364_s26 + $0x360] ss:$48 sps:$4 sm:$0xff]   ;;  %v15168_v55 = vld [vmem:[%s18364_s26 + $0x368] ss:$48 sps:$4 sm:$0xff]  }
 0x3f0   : > { %4892 = vmatpush1.bf16.msra.mxu0 %v15129_v23  ;;  %4999 = vmatprep.subr.bf16.mxu1 %v15140_v29 }
 0x3f1   : > { %4893 = vmatprep.subr.bf16.mxu0 %v15137_v28 }
 0x3f2   : > { %2348 = vadd.xlane.f32.xlu1 %v2347_v59 }
 0x3f3   : > { %5000 = vmatpush1.bf16.msra.mxu1 %v15138_v7 }
 0x3f4   : > { %4894 = vmatpush1.bf16.msra.mxu0 %v15135_v16  ;;  %5001 = vmatprep.subr.bf16.mxu1 %v15146_v32 }
 0x3f5   : > { %4895 = vmatprep.subr.bf16.mxu0 %v15143_v33 }
 0x3f7   : > { %5002 = vmatpush1.bf16.msra.mxu1 %v15144_v36 }
 0x3f8   : > { %4896 = vmatpush1.bf16.msra.mxu0 %v15141_v17  ;;  %5003 = vmatprep.subr.bf16.mxu1 %v15152_v51 }
 0x3f9   : > { %4897 = vmatprep.subr.bf16.mxu0 %v15149_v41 }
 0x3fb   : > { %5004 = vmatpush1.bf16.msra.mxu1 %v15150_v46 }
 0x3fc   : > { %4898 = vmatpush1.bf16.msra.mxu0 %v15147_v44  ;;  %5005 = vmatprep.subr.bf16.mxu1 %v15158_v47 }
 0x3fd   : > { %4899 = vmatprep.subr.bf16.mxu0 %v15155_v18 }
 0x3ff   : > { %5006 = vmatpush1.bf16.msra.mxu1 %v15156_v3 }
 0x400   : > { %4900 = vmatpush1.bf16.msra.mxu0 %v15153_v48  ;;  %5007 = vmatprep.subr.bf16.mxu1 %v15164_v30 }
 0x401   : > { %4901 = vmatprep.subr.bf16.mxu0 %v15161_v49 }
 0x403   : > { %5008 = vmatpush1.bf16.msra.mxu1 %v15162_v2 }
 0x404   : > { %4902 = vmatpush1.bf16.msra.mxu0 %v15159_v50  ;;  %5009 = vmatprep.subr.bf16.mxu1 %v15170_v53 }
 0x405   : > { %4903 = vmatprep.subr.bf16.mxu0 %v15167_v39 }
 0x407   : > { %5010 = vmatpush1.bf16.msra.mxu1 %v15168_v55 }
 0x408   : > { %4904 = vmatpush1.bf16.msra.mxu0 %v15165_v26 }
 0x473   : > { %v2334_v56 = vpop.xlane.xlu0 %2333 }
 0x474   : > { %v2351_v59 = vmul.f32 0.001953125, %v2334_v56 }
 0x476   : > { %v18810_v60 = vsub.f32 %v18713_v35, %v2351_v59  ;;  %v18813_v61 = vsub.f32 %v18716_v57, %v2351_v59  ;;  %v18816_v62 = vsub.f32 %v18720_v0, %v2351_v59  ;;  %v18819_v1 = vsub.f32 %v18729_v19, %v2351_v59 }
 0x477   : > { %v2339_v63 = vpop.xlane.xlu0 %2338 }
 0x478   : > { %v2352_v40 = vmul.f32 0.001953125, %v2339_v63  ;;  %v2371_v4 = vmul.f32 %v18810_v60, %v18810_v60  ;;  %v2372_v25 = vmul.f32 %v18813_v61, %v18813_v61  ;;  %v2373_v5 = vmul.f32 %v18816_v62, %v18816_v62 }
 0x479   : > { %v2374_v23 = vmul.f32 %v18819_v1, %v18819_v1 }
 0x47a   : > { %v18828_v6 = vsub.f32 %v18709_v21, %v2352_v40  ;;  %v18831_v8 = vsub.f32 %v18711_v22, %v2352_v40  ;;  %v2387_v34 = vadd.f32 %v2372_v25, %v2371_v4  ;;  %v18834_v12 = vsub.f32 %v18732_v27, %v2352_v40 }
 0x47b   : > { %v2344_v38 = vpop.xlane.xlu1 %2343  ;;  %v18839_v24 = vsub.f32 %v18744_v42, %v2352_v40 }
 0x47c   : > { %v2353_v28 = vmul.f32 0.001953125, %v2344_v38  ;;  %v2388_v29 = vadd.f32 %v2387_v34, %v2373_v5  ;;  %v2375_v16 = vmul.f32 %v18828_v6, %v18828_v6  ;;  %v2376_v7 = vmul.f32 %v18831_v8, %v18831_v8 }
 0x47d   : > { %v2377_v33 = vmul.f32 %v18834_v12, %v18834_v12  ;;  %v2378_v44 = vmul.f32 %v18839_v24, %v18839_v24 }
 0x47e   : > { %v18848_v32 = vsub.f32 %v18742_v37, %v2353_v28  ;;  %v18851_v17 = vsub.f32 %v18747_v45, %v2353_v28  ;;  %v2389_v36 = vadd.f32 %v2388_v29, %v2374_v23  ;;  %v2392_v41 = vadd.f32 %v2376_v7, %v2375_v16  ;;  %v15173_v29 = vld [vmem:[%s18364_s26 + $0x3c4] ss:$48 sps:$4 sm:$0xff]   ;;  %v15174_v16 = vld [vmem:[%s18364_s26 + $0x3c8] ss:$48 sps:$4 sm:$0xff]   ;;  %v15176_v7 = vld [vmem:[%s18364_s26 + $0x3cc] ss:$48 sps:$4 sm:$0xff]  }
 0x47f   : > { %v2349_v51 = vpop.xlane.xlu1 %2348  ;;  %v18856_v46 = vsub.f32 %v18754_v52, %v2353_v28  ;;  %v18859_v18 = vsub.f32 %v18758_v20, %v2353_v28  ;;  %v15171_v28 = vld [vmem:[%s18364_s26 + $0x3c0] ss:$48 sps:$4 sm:$0xff]   ;;  %4905 = vmatprep.subr.bf16.mxu0 %v15173_v29  ;;  %5011 = vmatprep.subr.bf16.mxu1 %v15176_v7 }
 0x480   : > { %v2354_v47 = vmul.f32 0.001953125, %v2349_v51  ;;  %2390 = vadd.xlane.f32.xlu0 %v2389_v36  ;;  %v2393_v48 = vadd.f32 %v2392_v41, %v2377_v33  ;;  %v2379_v3 = vmul.f32 %v18848_v32, %v18848_v32  ;;  %v2380_v49 = vmul.f32 %v18851_v17, %v18851_v17  ;;  %4906 = vmatpush1.bf16.msra.mxu0 %v15171_v28  ;;  %v15177_v33 = vld [vmem:[%s18364_s26 + $0x420] ss:$48 sps:$4 sm:$0xff]   ;;  %v15179_v36 = vld [vmem:[%s18364_s26 + $0x424] ss:$48 sps:$4 sm:$0xff]  }
 0x481   : > { %v2381_v30 = vmul.f32 %v18856_v46, %v18856_v46  ;;  %v2382_v26 = vmul.f32 %v18859_v18, %v18859_v18  ;;  %5012 = vmatpush1.bf16.msra.mxu1 %v15174_v16  ;;  %v15180_v41 = vld [vmem:[%s18364_s26 + $0x428] ss:$48 sps:$4 sm:$0xff]   ;;  %v15182_v51 = vld [vmem:[%s18364_s26 + $0x42c] ss:$48 sps:$4 sm:$0xff]   ;;  %4907 = vmatprep.subr.bf16.mxu0 %v15179_v36 }
 0x482   : > { %v18868_v50 = vsub.f32 %v18735_v31, %v2354_v47  ;;  %v18871_v2 = vsub.f32 %v18737_v43, %v2354_v47  ;;  %v2394_v39 = vadd.f32 %v2393_v48, %v2378_v44  ;;  %v2397_v53 = vadd.f32 %v2380_v49, %v2379_v3  ;;  %5013 = vmatprep.subr.bf16.mxu1 %v15182_v51  ;;  %v15183_v44 = vld [vmem:[%s18364_s26 + $0x480] ss:$48 sps:$4 sm:$0xff]   ;;  %v15186_v48 = vld [vmem:[%s18364_s26 + $0x488] ss:$48 sps:$4 sm:$0xff]   ;;  %v15188_v3 = vld [vmem:[%s18364_s26 + $0x48c] ss:$48 sps:$4 sm:$0xff]  }
 0x483   : > { %v18876_v55 = vsub.f32 %v18761_v54, %v2354_v47  ;;  %v18879_v59 = vsub.f32 %v18766_v58, %v2354_v47  ;;  %v15185_v47 = vld [vmem:[%s18364_s26 + $0x484] ss:$48 sps:$4 sm:$0xff]   ;;  %v15189_v49 = vld [vmem:[%s18364_s26 + $0x4e0] ss:$48 sps:$4 sm:$0xff]  }
 0x484   : > { %2395 = vadd.xlane.f32.xlu1 %v2394_v39  ;;  %v2398_v56 = vadd.f32 %v2397_v53, %v2381_v30  ;;  %v2383_v63 = vmul.f32 %v18868_v50, %v18868_v50  ;;  %v2384_v40 = vmul.f32 %v18871_v2, %v18871_v2  ;;  %4908 = vmatpush1.bf16.msra.mxu0 %v15177_v33  ;;  %v15191_v30 = vld [vmem:[%s18364_s26 + $0x4e4] ss:$48 sps:$4 sm:$0xff]   ;;  %v15192_v39 = vld [vmem:[%s18364_s26 + $0x4e8] ss:$48 sps:$4 sm:$0xff]   ;;  %v15194_v53 = vld [vmem:[%s18364_s26 + $0x4ec] ss:$48 sps:$4 sm:$0xff]  }
 0x485   : > { %v2385_v25 = vmul.f32 %v18876_v55, %v18876_v55  ;;  %v2386_v34 = vmul.f32 %v18879_v59, %v18879_v59  ;;  %5014 = vmatpush1.bf16.msra.mxu1 %v15180_v41  ;;  %4909 = vmatprep.subr.bf16.mxu0 %v15185_v47  ;;  %v2328_v47 = vld [vmem:[%s919_s13] sm:$0xf]  ;;  %s1132_s13 = scalar_lea.vmem %s20205_s30, %s18425_s5 }
 0x486   : > { %v2399_v4 = vadd.f32 %v2398_v56, %v2382_v26  ;;  %v2402_v5 = vadd.f32 %v2384_v40, %v2383_v63  ;;  %5015 = vmatprep.subr.bf16.mxu1 %v15188_v3  ;;  %v15197_v26 = vld [vmem:[%s18364_s26 + $0x544] ss:$48 sps:$4 sm:$0xff]   ;;  %v15200_v56 = vld [vmem:[%s18364_s26 + $0x54c] ss:$48 sps:$4 sm:$0xff]   ;;  %v15195_v63 = vld [vmem:[%s18364_s26 + $0x540] ss:$48 sps:$4 sm:$0xff]  }
 0x487   : > { %v15198_v40 = vld [vmem:[%s18364_s26 + $0x548] ss:$48 sps:$4 sm:$0xff]  }
 0x488   : > { %2400 = vadd.xlane.f32.xlu0 %v2399_v4  ;;  %v2403_v38 = vadd.f32 %v2402_v5, %v2385_v25  ;;  %4910 = vmatpush1.bf16.msra.mxu0 %v15183_v44  ;;  %v15203_v4 = vld [vmem:[%s18364_s26 + $0x5a4] ss:$48 sps:$4 sm:$0xff]   ;;  %v15206_v25 = vld [vmem:[%s18364_s26 + $0x5ac] ss:$48 sps:$4 sm:$0xff]   ;;  %v15201_v5 = vld [vmem:[%s18364_s26 + $0x5a0] ss:$48 sps:$4 sm:$0xff]  }
 0x489   : > { %5016 = vmatpush1.bf16.msra.mxu1 %v15186_v48  ;;  %4911 = vmatprep.subr.bf16.mxu0 %v15191_v30  ;;  %v18920_v30 = vrot.slane %v2328_v47, %v18585_v13 }
 0x48a   : > { %v2404_v23 = vadd.f32 %v2403_v38, %v2386_v34  ;;  %5017 = vmatprep.subr.bf16.mxu1 %v15194_v53  ;;  %v15204_v34 = vld [vmem:[%s18364_s26 + $0x5a8] ss:$48 sps:$4 sm:$0xff]   ;;  %v15209_v38 = vld [vmem:[%s18364_s26 + $0x604] ss:$48 sps:$4 sm:$0xff]  }
 0x48c   : > { %2405 = vadd.xlane.f32.xlu1 %v2404_v23  ;;  %4912 = vmatpush1.bf16.msra.mxu0 %v15189_v49  ;;  %v15212_v23 = vld [vmem:[%s18364_s26 + $0x60c] ss:$48 sps:$4 sm:$0xff]  }
 0x48d   : > { %5018 = vmatpush1.bf16.msra.mxu1 %v15192_v39  ;;  %4913 = vmatprep.subr.bf16.mxu0 %v15197_v26  ;;  %v2329_v49 = vld [vmem:[%s928_s10] sm:$0xf]  ;;  %v2443_v26 = vrot.slane %v2328_v47, %v18588_v14 }
 0x48e   : > { %5019 = vmatprep.subr.bf16.mxu1 %v15200_v56  ;;  %v2439_v56 = vrot.slane %v2328_v47, %v18580_v11 }
 0x490   : > { %4914 = vmatpush1.bf16.msra.mxu0 %v15195_v63 }
 0x491   : > { %5020 = vmatpush1.bf16.msra.mxu1 %v15198_v40  ;;  %4915 = vmatprep.subr.bf16.mxu0 %v15203_v4 }
 0x492   : > { %5021 = vmatprep.subr.bf16.mxu1 %v15206_v25  ;;  %v18928_v25 = vrot.slane %v2329_v49, %v18585_v13 }
 0x494   : > { %4916 = vmatpush1.bf16.msra.mxu0 %v15201_v5 }
 0x495   : > { %5022 = vmatpush1.bf16.msra.mxu1 %v15204_v34  ;;  %4938 = vmatprep.subr.bf16.mxu0 %v15209_v38 }
 0x496   : > { %5044 = vmatprep.subr.bf16.mxu1 %v15212_v23  ;;  %v2480_v23 = vrot.slane %v2329_v49, %v18588_v14 }
 0x50d   : > { %v2391_v28 = vpop.xlane.xlu0 %2390 }
 0x50e   : > { %v2407_v29 = vmul.f32 0.001953125, %v2391_v28 }
 0x510   : > { %v2411_v16 = vadd.f32 1e-05, %v2407_v29  ;;  %v2476_v29 = vrot.slane %v2329_v49, %v18580_v11 }
 0x511   : > { %v2396_v7 = vpop.xlane.xlu1 %2395 }
 0x512   : > { %15943 = vrsqrt.f32 %v2411_v16  ;;  %v2408_v33 = vmul.f32 0.001953125, %v2396_v7 }
 0x514   : > { %v2412_v36 = vadd.f32 1e-05, %v2408_v33 }
 0x515   : > { %v2401_v41 = vpop.xlane.xlu0 %2400 }
 0x516   : > { %15945 = vrsqrt.f32 %v2412_v36  ;;  %v2409_v51 = vmul.f32 0.001953125, %v2401_v41  ;;  %v2451_v36 = vrot.slane %v2328_v47, %v18591_v15 }
 0x518   : > { %v2413_v44 = vadd.f32 1e-05, %v2409_v51 }
 0x519   : > { %v2406_v48 = vpop.xlane.xlu1 %2405 }
 0x51a   : > { %15947 = vrsqrt.f32 %v2413_v44  ;;  %v2410_v3 = vmul.f32 0.001953125, %v2406_v48 }
 0x51c   : > { %v15944_v39 = vpop.eup %15943  ;;  %v2414_v53 = vadd.f32 1e-05, %v2410_v3 }
 0x51d   : > { %v2420_v63 = vmul.f32 %v15944_v39, %v18813_v61  ;;  %v2419_v40 = vmul.f32 %v15944_v39, %v18810_v60  ;;  %v2421_v4 = vmul.f32 %v15944_v39, %v18816_v62  ;;  %v2422_v48 = vmul.f32 %v15944_v39, %v18819_v1  ;;  %v15207_v1 = vld [vmem:[%s18364_s26 + $0x600] ss:$48 sps:$4 sm:$0xff]   ;;  %v15210_v39 = vld [vmem:[%s18364_s26 + $0x608] ss:$48 sps:$4 sm:$0xff]  }
 0x51e   : > { %15949 = vrsqrt.f32 %v2414_v53 }
 0x51f   : > { %v2458_v5 = vmul.f32 %v18920_v30, %v2421_v4  ;;  %v2457_v38 = vmul.f32 %v2443_v26, %v2420_v63  ;;  %v2456_v28 = vmul.f32 %v2439_v56, %v2419_v40 }
 0x520   : > { %v15946_v34 = vpop.eup %15945 }
 0x521   : > { %v2424_v16 = vmul.f32 %v15946_v34, %v18831_v8  ;;  %v2423_v61 = vmul.f32 %v15946_v34, %v18828_v6  ;;  %v2425_v60 = vmul.f32 %v15946_v34, %v18834_v12  ;;  %v2495_v62 = vadd.f32 %v18928_v25, %v2458_v5 }
 0x522   : > { %v2494_v51 = vadd.f32 %v2480_v23, %v2457_v38  ;;  %v2493_v44 = vadd.f32 %v2476_v29, %v2456_v28  ;;  %v2426_v63 = vmul.f32 %v15946_v34, %v18839_v24  ;;  %v2488_v28 = vrot.slane %v2329_v49, %v18591_v15 }
 0x523   : > { %v2461_v7 = vmul.f32 %v2443_v26, %v2424_v16  ;;  %v2460_v33 = vmul.f32 %v2439_v56, %v2423_v61  ;;  %v2462_v8 = vmul.f32 %v18920_v30, %v2425_v60  ;;  %v15218_v61 = vld [vmem:[%s18364_s26 + $0x66c] ss:$48 sps:$4 sm:$0xff]   ;;  %v2459_v24 = vmul.f32 %v2451_v36, %v2422_v48 }
 0x524   : > { %v15948_v41 = vpop.eup %15947 }
 0x525   : > { %v2498_v6 = vadd.f32 %v2480_v23, %v2461_v7  ;;  %v2497_v3 = vadd.f32 %v2476_v29, %v2460_v33  ;;  %v2428_v12 = vmul.f32 %v15948_v41, %v18851_v17  ;;  %v2427_v53 = vmul.f32 %v15948_v41, %v18848_v32  ;;  %v15215_v17 = vld [vmem:[%s18364_s26 + $0x664] ss:$48 sps:$4 sm:$0xff]  }
 0x526   : > { %v2499_v47 = vadd.f32 %v18928_v25, %v2462_v8  ;;  %v2430_v40 = vmul.f32 %v15948_v41, %v18859_v18  ;;  %v2429_v4 = vmul.f32 %v15948_v41, %v18856_v46  ;;  %v2463_v7 = vmul.f32 %v2451_v36, %v2426_v63  ;;  %v15213_v41 = vld [vmem:[%s18364_s26 + $0x660] ss:$48 sps:$4 sm:$0xff]   ;;  %v15221_v8 = vld [vmem:[%s18364_s26 + $0x6c4] ss:$48 sps:$4 sm:$0xff]  }
 0x527   : > { %v18946_v5 = vpack.c.bf16 %v2498_v6, %v2494_v51  ;;  %v18950_v38 = vpack.c.bf16 %v2497_v3, %v2493_v44  ;;  %v2465_v32 = vmul.f32 %v2443_v26, %v2428_v12  ;;  %v2464_v49 = vmul.f32 %v2439_v56, %v2427_v53  ;;  %v15216_v51 = vld [vmem:[%s18364_s26 + $0x668] ss:$48 sps:$4 sm:$0xff]   ;;  %v15224_v6 = vld [vmem:[%s18364_s26 + $0x6cc] ss:$48 sps:$4 sm:$0xff]  }
 0x528   : > { %v15950_v16 = vpop.eup %15949  ;;  %v18955_v34 = vpack.c.bf16 %v2499_v47, %v2495_v62  ;;  %v2466_v18 = vmul.f32 %v18920_v30, %v2429_v4  ;;  %v2467_v33 = vmul.f32 %v2451_v36, %v2430_v40  ;;  %v2500_v40 = vadd.f32 %v2488_v28, %v2463_v7  ;;  %v15219_v4 = vld [vmem:[%s18364_s26 + $0x6c0] ss:$48 sps:$4 sm:$0xff]  }
 0x529   : > { %4917 = vmatprep.mubr.bf16.mxu0 %v18946_v5  ;;  %5023 = vmatprep.mubr.bf16.mxu1 %v18946_v5  ;;  %v2432_v46 = vmul.f32 %v15950_v16, %v18871_v2  ;;  %v2431_v60 = vmul.f32 %v15950_v16, %v18868_v50  ;;  %v2434_v62 = vmul.f32 %v15950_v16, %v18879_v59  ;;  %v15237_v7 = vld [vmem:[%s18364_s26 + $0x7e0] ss:$48 sps:$4 sm:$0xff]  }
 0x52a   : > { %4918 = vmatmul.mubr.bf16.vlgmr.msra.gmra.mrb[8].mxu0 %v18950_v38  ;;  %5024 = vmatmul.mubr.bf16.vlgmr.msra.gmra.mrb[8].mxu1 %v18950_v38  ;;  %v2433_v2 = vmul.f32 %v15950_v16, %v18876_v55  ;;  %v2502_v50 = vadd.f32 %v2480_v23, %v2465_v32  ;;  %v2503_v12 = vadd.f32 %v18928_v25, %v2466_v18  ;;  %v15230_v16 = vld [vmem:[%s18364_s26 + $0x72c] ss:$48 sps:$4 sm:$0xff]   ;;  %v15233_v32 = vld [vmem:[%s18364_s26 + $0x784] ss:$48 sps:$4 sm:$0xff]   ;;  %v15231_v18 = vld [vmem:[%s18364_s26 + $0x780] ss:$48 sps:$4 sm:$0xff]  }
 0x52b   : > { %4939 = vmatpush1.bf16.msra.mxu0 %v15207_v1  ;;  %5045 = vmatpush1.bf16.msra.mxu1 %v15210_v39  ;;  %v2469_v44 = vmul.f32 %v2443_v26, %v2432_v46  ;;  %v2468_v48 = vmul.f32 %v2439_v56, %v2431_v60  ;;  %v2471_v3 = vmul.f32 %v2451_v36, %v2434_v62  ;;  %v15222_v1 = vld [vmem:[%s18364_s26 + $0x6c8] ss:$48 sps:$4 sm:$0xff]   ;;  %v15227_v36 = vld [vmem:[%s18364_s26 + $0x724] ss:$48 sps:$4 sm:$0xff]  }
 0x52c   : > { %4940 = vmatprep.subr.bf16.mxu0 %v15215_v17  ;;  %5046 = vmatprep.subr.bf16.mxu1 %v15218_v61  ;;  %v2501_v53 = vadd.f32 %v2476_v29, %v2464_v49  ;;  %v2470_v47 = vmul.f32 %v18920_v30, %v2433_v2  ;;  %v2504_v26 = vadd.f32 %v2488_v28, %v2467_v33  ;;  %v15228_v61 = vld [vmem:[%s18364_s26 + $0x728] ss:$48 sps:$4 sm:$0xff]   ;;  %v15239_v60 = vld [vmem:[%s18364_s26 + $0x7e4] ss:$48 sps:$4 sm:$0xff]   ;;  %v15242_v49 = vld [vmem:[%s18364_s26 + $0x7ec] ss:$48 sps:$4 sm:$0xff]  }
 0x52d   : > { %v2506_v59 = vadd.f32 %v2480_v23, %v2469_v44  ;;  %v2505_v63 = vadd.f32 %v2476_v29, %v2468_v48  ;;  %v2508_v55 = vadd.f32 %v2488_v28, %v2471_v3  ;;  %v2496_v30 = vadd.f32 %v2488_v28, %v2459_v24  ;;  %v15225_v28 = vld [vmem:[%s18364_s26 + $0x720] ss:$48 sps:$4 sm:$0xff]   ;;  %v15236_v24 = vld [vmem:[%s18364_s26 + $0x78c] ss:$48 sps:$4 sm:$0xff]   ;;  %v15234_v46 = vld [vmem:[%s18364_s26 + $0x788] ss:$48 sps:$4 sm:$0xff]  }
 0x52e   : > { %v2507_v23 = vadd.f32 %v18928_v25, %v2470_v47  ;;  %v15240_v62 = vld [vmem:[%s18364_s26 + $0x7e8] ss:$48 sps:$4 sm:$0xff]   ;;  %v15245_v33 = vld [vmem:[%s18364_s26 + $0x844] ss:$48 sps:$4 sm:$0xff]   ;;  %v15254_v2 = vld [vmem:[%s18364_s26 + $0x8ac] ss:$48 sps:$4 sm:$0xff]  }
 0x52f   : > { %4941 = vmatpush1.bf16.msra.mxu0 %v15213_v41  ;;  %5047 = vmatpush1.bf16.msra.mxu1 %v15216_v51  ;;  %v18972_v56 = vpack.c.bf16 %v2506_v59, %v2502_v50  ;;  %v18976_v39 = vpack.c.bf16 %v2505_v63, %v2501_v53  ;;  %v18979_v29 = vpack.c.bf16 %v2508_v55, %v2504_v26  ;;  %v15248_v41 = vld [vmem:[%s18364_s26 + $0x84c] ss:$48 sps:$4 sm:$0xff]   ;;  %v15243_v51 = vld [vmem:[%s18364_s26 + $0x840] ss:$48 sps:$4 sm:$0xff]   ;;  %v15246_v44 = vld [vmem:[%s18364_s26 + $0x848] ss:$48 sps:$4 sm:$0xff]  }
 0x530   : > { %4942 = vmatprep.subr.bf16.mxu0 %v15221_v8  ;;  %5048 = vmatprep.subr.bf16.mxu1 %v15224_v6  ;;  %v18985_v17 = vpack.c.bf16 %v2507_v23, %v2503_v12  ;;  %v18989_v25 = vpack.c.bf16 %v2500_v40, %v2496_v30  ;;  %v15251_v48 = vld [vmem:[%s18364_s26 + $0x8a4] ss:$48 sps:$4 sm:$0xff]   ;;  %v15249_v50 = vld [vmem:[%s18364_s26 + $0x8a0] ss:$48 sps:$4 sm:$0xff]   ;;  %v15252_v8 = vld [vmem:[%s18364_s26 + $0x8a8] ss:$48 sps:$4 sm:$0xff]  }
 0x531   : > { %4927 = vmatprep.mubr.bf16.mxu0 %v18972_v56  ;;  %5033 = vmatprep.mubr.bf16.mxu1 %v18972_v56  ;;  %v15257_v6 = vld [vmem:[%s18364_s26 + $0x904] ss:$48 sps:$4 sm:$0xff]   ;;  %v15260_v3 = vld [vmem:[%s18364_s26 + $0x90c] ss:$48 sps:$4 sm:$0xff]   ;;  %v15255_v12 = vld [vmem:[%s18364_s26 + $0x900] ss:$48 sps:$4 sm:$0xff]  }
 0x532   : > { %4928 = vmatmul.mubr.bf16.gmra.mrb[12].mxu0 %v18976_v39  ;;  %5034 = vmatmul.mubr.bf16.gmra.mrb[12].mxu1 %v18976_v39  ;;  %v15258_v59 = vld [vmem:[%s18364_s26 + $0x908] ss:$48 sps:$4 sm:$0xff]   ;;  %v15263_v53 = vld [vmem:[%s18364_s26 + $0x964] ss:$48 sps:$4 sm:$0xff]   ;;  %v15266_v63 = vld [vmem:[%s18364_s26 + $0x96c] ss:$48 sps:$4 sm:$0xff]  }
 0x533   : > { %4943 = vmatpush1.bf16.msra.mxu0 %v15219_v4  ;;  %5049 = vmatpush1.bf16.msra.mxu1 %v15222_v1  ;;  %v15261_v47 = vld [vmem:[%s18364_s26 + $0x960] ss:$48 sps:$4 sm:$0xff]   ;;  %v15264_v40 = vld [vmem:[%s18364_s26 + $0x968] ss:$48 sps:$4 sm:$0xff]   ;;  %v15269_v26 = vld [vmem:[%s18364_s26 + $0x9c4] ss:$48 sps:$4 sm:$0xff]  }
 0x534   : > { %4970 = vmatprep.mubr.bf16.mxu0 %v18989_v25  ;;  %5076 = vmatprep.mubr.bf16.mxu1 %v18989_v25  ;;  %v15272_v55 = vld [vmem:[%s18364_s26 + $0x9cc] ss:$48 sps:$4 sm:$0xff]   ;;  %v15267_v4 = vld [vmem:[%s18364_s26 + $0x9c0] ss:$48 sps:$4 sm:$0xff]   ;;  %v15270_v1 = vld [vmem:[%s18364_s26 + $0x9c8] ss:$48 sps:$4 sm:$0xff]  }
 0x535   : > { %4944 = vmatprep.subr.bf16.mxu0 %v15227_v36  ;;  %5050 = vmatprep.subr.bf16.mxu1 %v15230_v16  ;;  %v15275_v23 = vld [vmem:[%s18364_s26 + $0xa24] ss:$48 sps:$4 sm:$0xff]   ;;  %v15278_v30 = vld [vmem:[%s18364_s26 + $0xa2c] ss:$48 sps:$4 sm:$0xff]   ;;  %v15273_v36 = vld [vmem:[%s18364_s26 + $0xa20] ss:$48 sps:$4 sm:$0xff]  }
 0x536   : > { %v15276_v16 = vld [vmem:[%s18364_s26 + $0xa28] ss:$48 sps:$4 sm:$0xff]  }
 0x537   : > { %4945 = vmatpush1.bf16.msra.mxu0 %v15225_v28  ;;  %5051 = vmatpush1.bf16.msra.mxu1 %v15228_v61  ;;  %v15281_v28 = vld [vmem:[%s18364_s26 + $0xa84] ss:$48 sps:$4 sm:$0xff]   ;;  %v15284_v61 = vld [vmem:[%s18364_s26 + $0xa8c] ss:$48 sps:$4 sm:$0xff]  }
 0x538   : > { %4946 = vmatprep.subr.bf16.mxu0 %v15233_v32  ;;  %5052 = vmatprep.subr.bf16.mxu1 %v15236_v24  ;;  %v15279_v32 = vld [vmem:[%s18364_s26 + $0xa80] ss:$48 sps:$4 sm:$0xff]   ;;  %v15282_v24 = vld [vmem:[%s18364_s26 + $0xa88] ss:$48 sps:$4 sm:$0xff]  }
 0x53b   : > { %4947 = vmatpush1.bf16.msra.mxu0 %v15231_v18  ;;  %5053 = vmatpush1.bf16.msra.mxu1 %v15234_v46  ;;  %v15287_v18 = vld [vmem:[%s18364_s26 + $0xae4] ss:$48 sps:$4 sm:$0xff]   ;;  %v15290_v46 = vld [vmem:[%s18364_s26 + $0xaec] ss:$48 sps:$4 sm:$0xff]  }
 0x53c   : > { %4948 = vmatprep.subr.bf16.mxu0 %v15239_v60  ;;  %5054 = vmatprep.subr.bf16.mxu1 %v15242_v49  ;;  %v15285_v60 = vld [vmem:[%s18364_s26 + $0xae0] ss:$48 sps:$4 sm:$0xff]   ;;  %v15288_v49 = vld [vmem:[%s18364_s26 + $0xae8] ss:$48 sps:$4 sm:$0xff]  }
 0x53f   : > { %4949 = vmatpush1.bf16.msra.mxu0 %v15237_v7  ;;  %5055 = vmatpush1.bf16.msra.mxu1 %v15240_v62  ;;  %v15293_v7 = vld [vmem:[%s18364_s26 + $0xb44] ss:$48 sps:$4 sm:$0xff]   ;;  %v15296_v62 = vld [vmem:[%s18364_s26 + $0xb4c] ss:$48 sps:$4 sm:$0xff]  }
 0x540   : > { %4950 = vmatprep.subr.bf16.mxu0 %v15245_v33  ;;  %5056 = vmatprep.subr.bf16.mxu1 %v15248_v41  ;;  %v15291_v33 = vld [vmem:[%s18364_s26 + $0xb40] ss:$48 sps:$4 sm:$0xff]   ;;  %v15294_v41 = vld [vmem:[%s18364_s26 + $0xb48] ss:$48 sps:$4 sm:$0xff]  }
 0x543   : > { %4951 = vmatpush1.bf16.msra.mxu0 %v15243_v51  ;;  %5057 = vmatpush1.bf16.msra.mxu1 %v15246_v44  ;;  %v15299_v51 = vld [vmem:[%s18364_s26 + $0xba4] ss:$48 sps:$4 sm:$0xff]   ;;  %v15302_v44 = vld [vmem:[%s18364_s26 + $0xbac] ss:$48 sps:$4 sm:$0xff]  }
 0x544   : > { %4952 = vmatprep.subr.bf16.mxu0 %v15251_v48  ;;  %5058 = vmatprep.subr.bf16.mxu1 %v15254_v2  ;;  %v15297_v48 = vld [vmem:[%s18364_s26 + $0xba0] ss:$48 sps:$4 sm:$0xff]   ;;  %v15300_v2 = vld [vmem:[%s18364_s26 + $0xba8] ss:$48 sps:$4 sm:$0xff]  }
 0x547   : > { %4953 = vmatpush1.bf16.msra.mxu0 %v15249_v50  ;;  %5059 = vmatpush1.bf16.msra.mxu1 %v15252_v8  ;;  %v15305_v50 = vld [vmem:[%s18364_s26 + $0x14] ss:$48 sps:$4 sm:$0xff]   ;;  %v15308_v8 = vld [vmem:[%s18364_s26 + $0x1c] ss:$48 sps:$4 sm:$0xff]  }
 0x548   : > { %4954 = vmatprep.subr.bf16.mxu0 %v15257_v6  ;;  %5060 = vmatprep.subr.bf16.mxu1 %v15260_v3  ;;  %v15303_v6 = vld [vmem:[%s18364_s26 + $0x10] ss:$48 sps:$4 sm:$0xff]   ;;  %v15306_v3 = vld [vmem:[%s18364_s26 + $0x18] ss:$48 sps:$4 sm:$0xff]  }
 0x54b   : > { %4955 = vmatpush1.bf16.msra.mxu0 %v15255_v12  ;;  %5061 = vmatpush1.bf16.msra.mxu1 %v15258_v59  ;;  %v15311_v12 = vld [vmem:[%s18364_s26 + $0x74] ss:$48 sps:$4 sm:$0xff]   ;;  %v15314_v59 = vld [vmem:[%s18364_s26 + $0x7c] ss:$48 sps:$4 sm:$0xff]  }
 0x54c   : > { %4956 = vmatprep.subr.bf16.mxu0 %v15263_v53  ;;  %5062 = vmatprep.subr.bf16.mxu1 %v15266_v63  ;;  %v15309_v53 = vld [vmem:[%s18364_s26 + $0x70] ss:$48 sps:$4 sm:$0xff]   ;;  %v15312_v63 = vld [vmem:[%s18364_s26 + $0x78] ss:$48 sps:$4 sm:$0xff]  }
 0x54f   : > { %4957 = vmatpush1.bf16.msra.mxu0 %v15261_v47  ;;  %5063 = vmatpush1.bf16.msra.mxu1 %v15264_v40  ;;  %v15317_v47 = vld [vmem:[%s18364_s26 + $0xd4] ss:$48 sps:$4 sm:$0xff]   ;;  %v15320_v40 = vld [vmem:[%s18364_s26 + $0xdc] ss:$48 sps:$4 sm:$0xff]  }
 0x550   : > { %4958 = vmatprep.subr.bf16.mxu0 %v15269_v26  ;;  %5064 = vmatprep.subr.bf16.mxu1 %v15272_v55  ;;  %v15315_v26 = vld [vmem:[%s18364_s26 + $0xd0] ss:$48 sps:$4 sm:$0xff]   ;;  %v15318_v55 = vld [vmem:[%s18364_s26 + $0xd8] ss:$48 sps:$4 sm:$0xff]  }
 0x553   : > { %4959 = vmatpush1.bf16.msra.mxu0 %v15267_v4  ;;  %5065 = vmatpush1.bf16.msra.mxu1 %v15270_v1  ;;  %v15323_v4 = vld [vmem:[%s18364_s26 + $0x134] ss:$48 sps:$4 sm:$0xff]   ;;  %v15326_v1 = vld [vmem:[%s18364_s26 + $0x13c] ss:$48 sps:$4 sm:$0xff]  }
 0x554   : > { %4960 = vmatprep.subr.bf16.mxu0 %v15275_v23  ;;  %5066 = vmatprep.subr.bf16.mxu1 %v15278_v30  ;;  %v15321_v23 = vld [vmem:[%s18364_s26 + $0x130] ss:$48 sps:$4 sm:$0xff]   ;;  %v15324_v30 = vld [vmem:[%s18364_s26 + $0x138] ss:$48 sps:$4 sm:$0xff]  }
 0x557   : > { %4961 = vmatpush1.bf16.msra.mxu0 %v15273_v36  ;;  %5067 = vmatpush1.bf16.msra.mxu1 %v15276_v16  ;;  %v15329_v36 = vld [vmem:[%s18364_s26 + $0x194] ss:$48 sps:$4 sm:$0xff]   ;;  %v15332_v16 = vld [vmem:[%s18364_s26 + $0x19c] ss:$48 sps:$4 sm:$0xff]  }
 0x558   : > { %4962 = vmatprep.subr.bf16.mxu0 %v15281_v28  ;;  %5068 = vmatprep.subr.bf16.mxu1 %v15284_v61  ;;  %v15327_v28 = vld [vmem:[%s18364_s26 + $0x190] ss:$48 sps:$4 sm:$0xff]   ;;  %v15330_v61 = vld [vmem:[%s18364_s26 + $0x198] ss:$48 sps:$4 sm:$0xff]  }
 0x55b   : > { %4963 = vmatpush1.bf16.msra.mxu0 %v15279_v32  ;;  %5069 = vmatpush1.bf16.msra.mxu1 %v15282_v24  ;;  %v15335_v32 = vld [vmem:[%s18364_s26 + $0x1f4] ss:$48 sps:$4 sm:$0xff]   ;;  %v15338_v24 = vld [vmem:[%s18364_s26 + $0x1fc] ss:$48 sps:$4 sm:$0xff]  }
 0x55c   : > { %4964 = vmatprep.subr.bf16.mxu0 %v15287_v18  ;;  %5070 = vmatprep.subr.bf16.mxu1 %v15290_v46  ;;  %v15333_v18 = vld [vmem:[%s18364_s26 + $0x1f0] ss:$48 sps:$4 sm:$0xff]   ;;  %v15336_v46 = vld [vmem:[%s18364_s26 + $0x1f8] ss:$48 sps:$4 sm:$0xff]  }
 0x55f   : > { %4965 = vmatpush1.bf16.msra.mxu0 %v15285_v60  ;;  %5071 = vmatpush1.bf16.msra.mxu1 %v15288_v49  ;;  %v15341_v60 = vld [vmem:[%s18364_s26 + $0x254] ss:$48 sps:$4 sm:$0xff]   ;;  %v15344_v49 = vld [vmem:[%s18364_s26 + $0x25c] ss:$48 sps:$4 sm:$0xff]  }
 0x560   : > { %4966 = vmatprep.subr.bf16.mxu0 %v15293_v7  ;;  %5072 = vmatprep.subr.bf16.mxu1 %v15296_v62  ;;  %v15339_v7 = vld [vmem:[%s18364_s26 + $0x250] ss:$48 sps:$4 sm:$0xff]   ;;  %v15342_v62 = vld [vmem:[%s18364_s26 + $0x258] ss:$48 sps:$4 sm:$0xff]  }
 0x563   : > { %4967 = vmatpush1.bf16.msra.mxu0 %v15291_v33  ;;  %5073 = vmatpush1.bf16.msra.mxu1 %v15294_v41  ;;  %v15347_v33 = vld [vmem:[%s18364_s26 + $0x2b4] ss:$48 sps:$4 sm:$0xff]   ;;  %v15350_v41 = vld [vmem:[%s18364_s26 + $0x2bc] ss:$48 sps:$4 sm:$0xff]  }
 0x564   : > { %4968 = vmatprep.subr.bf16.mxu0 %v15299_v51  ;;  %5074 = vmatprep.subr.bf16.mxu1 %v15302_v44  ;;  %v15345_v51 = vld [vmem:[%s18364_s26 + $0x2b0] ss:$48 sps:$4 sm:$0xff]   ;;  %v15348_v44 = vld [vmem:[%s18364_s26 + $0x2b8] ss:$48 sps:$4 sm:$0xff]  }
 0x567   : > { %4969 = vmatpush1.bf16.msra.mxu0 %v15297_v48  ;;  %5075 = vmatpush1.bf16.msra.mxu1 %v15300_v2  ;;  %v15353_v48 = vld [vmem:[%s18364_s26 + $0x314] ss:$48 sps:$4 sm:$0xff]   ;;  %v15356_v2 = vld [vmem:[%s18364_s26 + $0x31c] ss:$48 sps:$4 sm:$0xff]  }
 0x568   : > { %5097 = vmatprep.subr.bf16.mxu0 %v15305_v50  ;;  %5203 = vmatprep.subr.bf16.mxu1 %v15308_v8  ;;  %v15351_v50 = vld [vmem:[%s18364_s26 + $0x310] ss:$48 sps:$4 sm:$0xff]   ;;  %v15354_v8 = vld [vmem:[%s18364_s26 + $0x318] ss:$48 sps:$4 sm:$0xff]  }
 0x56a   : > { %4971 = vmatmul.mubr.bf16.vlgmr.msra.gmra.mrb[8].mxu0 %v18955_v34  ;;  %5077 = vmatmul.mubr.bf16.vlgmr.msra.gmra.mrb[8].mxu1 %v18955_v34 }
 0x56b   : > { %4980 = vmatprep.mubr.bf16.mxu0 %v18979_v29  ;;  %5086 = vmatprep.mubr.bf16.mxu1 %v18979_v29 }
 0x56c   : > { %5098 = vmatpush1.bf16.msra.mxu0 %v15303_v6  ;;  %5204 = vmatpush1.bf16.msra.mxu1 %v15306_v3  ;;  %v15359_v6 = vld [vmem:[%s18364_s26 + $0x374] ss:$48 sps:$4 sm:$0xff]   ;;  %v15362_v3 = vld [vmem:[%s18364_s26 + $0x37c] ss:$48 sps:$4 sm:$0xff]  }
 0x56d   : > { %5099 = vmatprep.subr.bf16.mxu0 %v15311_v12  ;;  %5205 = vmatprep.subr.bf16.mxu1 %v15314_v59  ;;  %v15357_v12 = vld [vmem:[%s18364_s26 + $0x370] ss:$48 sps:$4 sm:$0xff]   ;;  %v15360_v59 = vld [vmem:[%s18364_s26 + $0x378] ss:$48 sps:$4 sm:$0xff]  }
 0x570   : > { %5100 = vmatpush1.bf16.msra.mxu0 %v15309_v53  ;;  %5206 = vmatpush1.bf16.msra.mxu1 %v15312_v63  ;;  %v15365_v53 = vld [vmem:[%s18364_s26 + $0x3d4] ss:$48 sps:$4 sm:$0xff]   ;;  %v15368_v63 = vld [vmem:[%s18364_s26 + $0x3dc] ss:$48 sps:$4 sm:$0xff]  }
 0x571   : > { %5101 = vmatprep.subr.bf16.mxu0 %v15317_v47  ;;  %5207 = vmatprep.subr.bf16.mxu1 %v15320_v40  ;;  %v15363_v47 = vld [vmem:[%s18364_s26 + $0x3d0] ss:$48 sps:$4 sm:$0xff]   ;;  %v15366_v40 = vld [vmem:[%s18364_s26 + $0x3d8] ss:$48 sps:$4 sm:$0xff]  }
 0x572   : > { %4981 = vmatmul.mubr.bf16.gmra.mrb[12].mxu0 %v18985_v17  ;;  %5087 = vmatmul.mubr.bf16.gmra.mrb[12].mxu1 %v18985_v17 }
 0x573   : > { %5129 = vmatprep.mubr.bf16.mxu0 %v18946_v5  ;;  %5235 = vmatprep.mubr.bf16.mxu1 %v18946_v5 }
 0x574   : > { %5102 = vmatpush1.bf16.msra.mxu0 %v15315_v26  ;;  %5208 = vmatpush1.bf16.msra.mxu1 %v15318_v55  ;;  %v15371_v26 = vld [vmem:[%s18364_s26 + $0x434] ss:$48 sps:$4 sm:$0xff]   ;;  %v15374_v55 = vld [vmem:[%s18364_s26 + $0x43c] ss:$48 sps:$4 sm:$0xff]  }
 0x575   : > { %5103 = vmatprep.subr.bf16.mxu0 %v15323_v4  ;;  %5209 = vmatprep.subr.bf16.mxu1 %v15326_v1  ;;  %v15369_v4 = vld [vmem:[%s18364_s26 + $0x430] ss:$48 sps:$4 sm:$0xff]   ;;  %v15372_v1 = vld [vmem:[%s18364_s26 + $0x438] ss:$48 sps:$4 sm:$0xff]  }
 0x578   : > { %5104 = vmatpush1.bf16.msra.mxu0 %v15321_v23  ;;  %5210 = vmatpush1.bf16.msra.mxu1 %v15324_v30  ;;  %v15377_v23 = vld [vmem:[%s18364_s26 + $0x494] ss:$48 sps:$4 sm:$0xff]   ;;  %v15380_v30 = vld [vmem:[%s18364_s26 + $0x49c] ss:$48 sps:$4 sm:$0xff]  }
 0x579   : > { %5105 = vmatprep.subr.bf16.mxu0 %v15329_v36  ;;  %5211 = vmatprep.subr.bf16.mxu1 %v15332_v16  ;;  %v15375_v36 = vld [vmem:[%s18364_s26 + $0x490] ss:$48 sps:$4 sm:$0xff]   ;;  %v15378_v16 = vld [vmem:[%s18364_s26 + $0x498] ss:$48 sps:$4 sm:$0xff]  }
 0x57c   : > { %5106 = vmatpush1.bf16.msra.mxu0 %v15327_v28  ;;  %5212 = vmatpush1.bf16.msra.mxu1 %v15330_v61  ;;  %v15383_v28 = vld [vmem:[%s18364_s26 + $0x4f4] ss:$48 sps:$4 sm:$0xff]   ;;  %v15386_v61 = vld [vmem:[%s18364_s26 + $0x4fc] ss:$48 sps:$4 sm:$0xff]  }
 0x57d   : > { %5107 = vmatprep.subr.bf16.mxu0 %v15335_v32  ;;  %5213 = vmatprep.subr.bf16.mxu1 %v15338_v24  ;;  %v15381_v32 = vld [vmem:[%s18364_s26 + $0x4f0] ss:$48 sps:$4 sm:$0xff]   ;;  %v15384_v24 = vld [vmem:[%s18364_s26 + $0x4f8] ss:$48 sps:$4 sm:$0xff]  }
 0x580   : > { %5108 = vmatpush1.bf16.msra.mxu0 %v15333_v18  ;;  %5214 = vmatpush1.bf16.msra.mxu1 %v15336_v46  ;;  %v15389_v18 = vld [vmem:[%s18364_s26 + $0x554] ss:$48 sps:$4 sm:$0xff]   ;;  %v15392_v46 = vld [vmem:[%s18364_s26 + $0x55c] ss:$48 sps:$4 sm:$0xff]  }
 0x581   : > { %5109 = vmatprep.subr.bf16.mxu0 %v15341_v60  ;;  %5215 = vmatprep.subr.bf16.mxu1 %v15344_v49  ;;  %v15387_v60 = vld [vmem:[%s18364_s26 + $0x550] ss:$48 sps:$4 sm:$0xff]   ;;  %v15390_v49 = vld [vmem:[%s18364_s26 + $0x558] ss:$48 sps:$4 sm:$0xff]  }
 0x584   : > { %5110 = vmatpush1.bf16.msra.mxu0 %v15339_v7  ;;  %5216 = vmatpush1.bf16.msra.mxu1 %v15342_v62  ;;  %v15395_v7 = vld [vmem:[%s18364_s26 + $0x5b4] ss:$48 sps:$4 sm:$0xff]   ;;  %v15398_v62 = vld [vmem:[%s18364_s26 + $0x5bc] ss:$48 sps:$4 sm:$0xff]  }
 0x585   : > { %5111 = vmatprep.subr.bf16.mxu0 %v15347_v33  ;;  %5217 = vmatprep.subr.bf16.mxu1 %v15350_v41  ;;  %v15393_v33 = vld [vmem:[%s18364_s26 + $0x5b0] ss:$48 sps:$4 sm:$0xff]   ;;  %v15396_v41 = vld [vmem:[%s18364_s26 + $0x5b8] ss:$48 sps:$4 sm:$0xff]  }
 0x588   : > { %5112 = vmatpush1.bf16.msra.mxu0 %v15345_v51  ;;  %5218 = vmatpush1.bf16.msra.mxu1 %v15348_v44  ;;  %v15401_v51 = vld [vmem:[%s18364_s26 + $0x614] ss:$48 sps:$4 sm:$0xff]   ;;  %v15404_v44 = vld [vmem:[%s18364_s26 + $0x61c] ss:$48 sps:$4 sm:$0xff]  }
 0x589   : > { %5113 = vmatprep.subr.bf16.mxu0 %v15353_v48  ;;  %5219 = vmatprep.subr.bf16.mxu1 %v15356_v2  ;;  %v15399_v48 = vld [vmem:[%s18364_s26 + $0x610] ss:$48 sps:$4 sm:$0xff]   ;;  %v15402_v2 = vld [vmem:[%s18364_s26 + $0x618] ss:$48 sps:$4 sm:$0xff]  }
 0x58c   : > { %5114 = vmatpush1.bf16.msra.mxu0 %v15351_v50  ;;  %5220 = vmatpush1.bf16.msra.mxu1 %v15354_v8  ;;  %v15407_v50 = vld [vmem:[%s18364_s26 + $0x674] ss:$48 sps:$4 sm:$0xff]   ;;  %v15410_v8 = vld [vmem:[%s18364_s26 + $0x67c] ss:$48 sps:$4 sm:$0xff]  }
 0x58d   : > { %5115 = vmatprep.subr.bf16.mxu0 %v15359_v6  ;;  %5221 = vmatprep.subr.bf16.mxu1 %v15362_v3  ;;  %v15405_v6 = vld [vmem:[%s18364_s26 + $0x670] ss:$48 sps:$4 sm:$0xff]   ;;  %v15408_v3 = vld [vmem:[%s18364_s26 + $0x678] ss:$48 sps:$4 sm:$0xff]  }
 0x590   : > { %5116 = vmatpush1.bf16.msra.mxu0 %v15357_v12  ;;  %5222 = vmatpush1.bf16.msra.mxu1 %v15360_v59  ;;  %v15413_v12 = vld [vmem:[%s18364_s26 + $0x6d4] ss:$48 sps:$4 sm:$0xff]   ;;  %v15416_v59 = vld [vmem:[%s18364_s26 + $0x6dc] ss:$48 sps:$4 sm:$0xff]  }
 0x591   : > { %5117 = vmatprep.subr.bf16.mxu0 %v15365_v53  ;;  %5223 = vmatprep.subr.bf16.mxu1 %v15368_v63  ;;  %v15411_v53 = vld [vmem:[%s18364_s26 + $0x6d0] ss:$48 sps:$4 sm:$0xff]   ;;  %v15414_v63 = vld [vmem:[%s18364_s26 + $0x6d8] ss:$48 sps:$4 sm:$0xff]  }
 0x594   : > { %5118 = vmatpush1.bf16.msra.mxu0 %v15363_v47  ;;  %5224 = vmatpush1.bf16.msra.mxu1 %v15366_v40  ;;  %v15419_v47 = vld [vmem:[%s18364_s26 + $0x734] ss:$48 sps:$4 sm:$0xff]   ;;  %v15422_v40 = vld [vmem:[%s18364_s26 + $0x73c] ss:$48 sps:$4 sm:$0xff]  }
 0x595   : > { %5119 = vmatprep.subr.bf16.mxu0 %v15371_v26  ;;  %5225 = vmatprep.subr.bf16.mxu1 %v15374_v55  ;;  %v15417_v26 = vld [vmem:[%s18364_s26 + $0x730] ss:$48 sps:$4 sm:$0xff]   ;;  %v15420_v55 = vld [vmem:[%s18364_s26 + $0x738] ss:$48 sps:$4 sm:$0xff]  }
 0x598   : > { %5120 = vmatpush1.bf16.msra.mxu0 %v15369_v4  ;;  %5226 = vmatpush1.bf16.msra.mxu1 %v15372_v1  ;;  %v15425_v4 = vld [vmem:[%s18364_s26 + $0x794] ss:$48 sps:$4 sm:$0xff]   ;;  %v15428_v1 = vld [vmem:[%s18364_s26 + $0x79c] ss:$48 sps:$4 sm:$0xff]  }
 0x599   : > { %5121 = vmatprep.subr.bf16.mxu0 %v15377_v23  ;;  %5227 = vmatprep.subr.bf16.mxu1 %v15380_v30  ;;  %v15423_v23 = vld [vmem:[%s18364_s26 + $0x790] ss:$48 sps:$4 sm:$0xff]   ;;  %v15426_v30 = vld [vmem:[%s18364_s26 + $0x798] ss:$48 sps:$4 sm:$0xff]  }
 0x59c   : > { %5122 = vmatpush1.bf16.msra.mxu0 %v15375_v36  ;;  %5228 = vmatpush1.bf16.msra.mxu1 %v15378_v16  ;;  %v15431_v36 = vld [vmem:[%s18364_s26 + $0x7f4] ss:$48 sps:$4 sm:$0xff]   ;;  %v15434_v16 = vld [vmem:[%s18364_s26 + $0x7fc] ss:$48 sps:$4 sm:$0xff]  }
 0x59d   : > { %5123 = vmatprep.subr.bf16.mxu0 %v15383_v28  ;;  %5229 = vmatprep.subr.bf16.mxu1 %v15386_v61  ;;  %v15429_v28 = vld [vmem:[%s18364_s26 + $0x7f0] ss:$48 sps:$4 sm:$0xff]   ;;  %v15432_v61 = vld [vmem:[%s18364_s26 + $0x7f8] ss:$48 sps:$4 sm:$0xff]  }
 0x5a0   : > { %5124 = vmatpush1.bf16.msra.mxu0 %v15381_v32  ;;  %5230 = vmatpush1.bf16.msra.mxu1 %v15384_v24  ;;  %v15437_v32 = vld [vmem:[%s18364_s26 + $0x854] ss:$48 sps:$4 sm:$0xff]   ;;  %v15440_v24 = vld [vmem:[%s18364_s26 + $0x85c] ss:$48 sps:$4 sm:$0xff]  }
 0x5a1   : > { %5125 = vmatprep.subr.bf16.mxu0 %v15389_v18  ;;  %5231 = vmatprep.subr.bf16.mxu1 %v15392_v46  ;;  %v15435_v18 = vld [vmem:[%s18364_s26 + $0x850] ss:$48 sps:$4 sm:$0xff]   ;;  %v15438_v46 = vld [vmem:[%s18364_s26 + $0x858] ss:$48 sps:$4 sm:$0xff]  }
 0x5a4   : > { %5126 = vmatpush1.bf16.msra.mxu0 %v15387_v60  ;;  %5232 = vmatpush1.bf16.msra.mxu1 %v15390_v49  ;;  %v15443_v60 = vld [vmem:[%s18364_s26 + $0x8b4] ss:$48 sps:$4 sm:$0xff]   ;;  %v15446_v49 = vld [vmem:[%s18364_s26 + $0x8bc] ss:$48 sps:$4 sm:$0xff]  }
 0x5a5   : > { %5127 = vmatprep.subr.bf16.mxu0 %v15395_v7  ;;  %5233 = vmatprep.subr.bf16.mxu1 %v15398_v62  ;;  %v15441_v7 = vld [vmem:[%s18364_s26 + $0x8b0] ss:$48 sps:$4 sm:$0xff]   ;;  %v15444_v62 = vld [vmem:[%s18364_s26 + $0x8b8] ss:$48 sps:$4 sm:$0xff]  }
 0x5a8   : > { %5128 = vmatpush1.bf16.msra.mxu0 %v15393_v33  ;;  %5234 = vmatpush1.bf16.msra.mxu1 %v15396_v41  ;;  %v15449_v33 = vld [vmem:[%s18364_s26 + $0x914] ss:$48 sps:$4 sm:$0xff]   ;;  %v15452_v41 = vld [vmem:[%s18364_s26 + $0x91c] ss:$48 sps:$4 sm:$0xff]  }
 0x5a9   : > { %5150 = vmatprep.subr.bf16.mxu0 %v15401_v51  ;;  %5256 = vmatprep.subr.bf16.mxu1 %v15404_v44  ;;  %v15447_v51 = vld [vmem:[%s18364_s26 + $0x910] ss:$48 sps:$4 sm:$0xff]   ;;  %v15450_v44 = vld [vmem:[%s18364_s26 + $0x918] ss:$48 sps:$4 sm:$0xff]  }
 0x5ab   : > { %5130 = vmatmul.mubr.bf16.vlgmr.msra.gmra.mrb[16].mxu0 %v18950_v38  ;;  %5236 = vmatmul.mubr.bf16.vlgmr.msra.gmra.mrb[16].mxu1 %v18950_v38 }
 0x5ac   : > { %5139 = vmatprep.mubr.bf16.mxu0 %v18972_v56  ;;  %5151 = vmatpush1.bf16.msra.mxu0 %v15399_v48  ;;  %v15455_v48 = vld [vmem:[%s18364_s26 + $0x974] ss:$48 sps:$4 sm:$0xff]  }
 0x5ad   : > { %5245 = vmatprep.mubr.bf16.mxu1 %v18972_v56  ;;  %5257 = vmatpush1.bf16.msra.mxu1 %v15402_v2  ;;  %v15458_v2 = vld [vmem:[%s18364_s26 + $0x97c] ss:$48 sps:$4 sm:$0xff]  }
 0x5ae   : > { %5152 = vmatprep.subr.bf16.mxu0 %v15407_v50  ;;  %5258 = vmatprep.subr.bf16.mxu1 %v15410_v8  ;;  %v15453_v50 = vld [vmem:[%s18364_s26 + $0x970] ss:$48 sps:$4 sm:$0xff]   ;;  %v15456_v8 = vld [vmem:[%s18364_s26 + $0x978] ss:$48 sps:$4 sm:$0xff]  }
 0x5b0   : > { %5153 = vmatpush1.bf16.msra.mxu0 %v15405_v6  ;;  %v15461_v6 = vld [vmem:[%s18364_s26 + $0x9d4] ss:$48 sps:$4 sm:$0xff]  }
 0x5b1   : > { %5259 = vmatpush1.bf16.msra.mxu1 %v15408_v3  ;;  %5154 = vmatprep.subr.bf16.mxu0 %v15413_v12  ;;  %v15464_v3 = vld [vmem:[%s18364_s26 + $0x9dc] ss:$48 sps:$4 sm:$0xff]   ;;  %v15459_v12 = vld [vmem:[%s18364_s26 + $0x9d0] ss:$48 sps:$4 sm:$0xff]  }
 0x5b2   : > { %5260 = vmatprep.subr.bf16.mxu1 %v15416_v59  ;;  %v15462_v59 = vld [vmem:[%s18364_s26 + $0x9d8] ss:$48 sps:$4 sm:$0xff]  }
 0x5b3   : > { %5140 = vmatmul.mubr.bf16.gmra.mrb[20].mxu0 %v18976_v39  ;;  %5246 = vmatmul.mubr.bf16.gmra.mrb[20].mxu1 %v18976_v39 }
 0x5b4   : > { %5155 = vmatpush1.bf16.msra.mxu0 %v15411_v53  ;;  %5182 = vmatprep.mubr.bf16.mxu0 %v18989_v25  ;;  %v15467_v53 = vld [vmem:[%s18364_s26 + $0xa34] ss:$48 sps:$4 sm:$0xff]  }
 0x5b5   : > { %5261 = vmatpush1.bf16.msra.mxu1 %v15414_v63  ;;  %5288 = vmatprep.mubr.bf16.mxu1 %v18989_v25  ;;  %v15470_v63 = vld [vmem:[%s18364_s26 + $0xa3c] ss:$48 sps:$4 sm:$0xff]  }
 0x5b6   : > { %5156 = vmatprep.subr.bf16.mxu0 %v15419_v47  ;;  %5262 = vmatprep.subr.bf16.mxu1 %v15422_v40  ;;  %v15465_v47 = vld [vmem:[%s18364_s26 + $0xa30] ss:$48 sps:$4 sm:$0xff]   ;;  %v15468_v40 = vld [vmem:[%s18364_s26 + $0xa38] ss:$48 sps:$4 sm:$0xff]  }
 0x5b8   : > { %5157 = vmatpush1.bf16.msra.mxu0 %v15417_v26  ;;  %v15473_v26 = vld [vmem:[%s18364_s26 + $0xa94] ss:$48 sps:$4 sm:$0xff]  }
 0x5b9   : > { %5263 = vmatpush1.bf16.msra.mxu1 %v15420_v55  ;;  %5158 = vmatprep.subr.bf16.mxu0 %v15425_v4  ;;  %v15476_v55 = vld [vmem:[%s18364_s26 + $0xa9c] ss:$48 sps:$4 sm:$0xff]   ;;  %v15471_v4 = vld [vmem:[%s18364_s26 + $0xa90] ss:$48 sps:$4 sm:$0xff]  }
 0x5ba   : > { %5264 = vmatprep.subr.bf16.mxu1 %v15428_v1  ;;  %v15474_v1 = vld [vmem:[%s18364_s26 + $0xa98] ss:$48 sps:$4 sm:$0xff]  }
 0x5bc   : > { %5159 = vmatpush1.bf16.msra.mxu0 %v15423_v23  ;;  %v15479_v23 = vld [vmem:[%s18364_s26 + $0xaf4] ss:$48 sps:$4 sm:$0xff]  }
 0x5bd   : > { %5265 = vmatpush1.bf16.msra.mxu1 %v15426_v30  ;;  %5160 = vmatprep.subr.bf16.mxu0 %v15431_v36  ;;  %v15482_v30 = vld [vmem:[%s18364_s26 + $0xafc] ss:$48 sps:$4 sm:$0xff]   ;;  %v15477_v36 = vld [vmem:[%s18364_s26 + $0xaf0] ss:$48 sps:$4 sm:$0xff]  }
 0x5be   : > { %5266 = vmatprep.subr.bf16.mxu1 %v15434_v16  ;;  %v15480_v16 = vld [vmem:[%s18364_s26 + $0xaf8] ss:$48 sps:$4 sm:$0xff]  }
 0x5c0   : > { %5161 = vmatpush1.bf16.msra.mxu0 %v15429_v28  ;;  %v15485_v28 = vld [vmem:[%s18364_s26 + $0xb54] ss:$48 sps:$4 sm:$0xff]  }
 0x5c1   : > { %5267 = vmatpush1.bf16.msra.mxu1 %v15432_v61  ;;  %5162 = vmatprep.subr.bf16.mxu0 %v15437_v32  ;;  %v15488_v61 = vld [vmem:[%s18364_s26 + $0xb5c] ss:$48 sps:$4 sm:$0xff]   ;;  %v15483_v32 = vld [vmem:[%s18364_s26 + $0xb50] ss:$48 sps:$4 sm:$0xff]  }
 0x5c2   : > { %5268 = vmatprep.subr.bf16.mxu1 %v15440_v24  ;;  %v15486_v24 = vld [vmem:[%s18364_s26 + $0xb58] ss:$48 sps:$4 sm:$0xff]  }
 0x5c4   : > { %5163 = vmatpush1.bf16.msra.mxu0 %v15435_v18  ;;  %v15491_v18 = vld [vmem:[%s18364_s26 + $0xbb4] ss:$48 sps:$4 sm:$0xff]  }
 0x5c5   : > { %5269 = vmatpush1.bf16.msra.mxu1 %v15438_v46  ;;  %5164 = vmatprep.subr.bf16.mxu0 %v15443_v60  ;;  %v15494_v46 = vld [vmem:[%s18364_s26 + $0xbbc] ss:$48 sps:$4 sm:$0xff]   ;;  %v15489_v60 = vld [vmem:[%s18364_s26 + $0xbb0] ss:$48 sps:$4 sm:$0xff]  }
 0x5c6   : > { %5270 = vmatprep.subr.bf16.mxu1 %v15446_v49  ;;  %v15492_v49 = vld [vmem:[%s18364_s26 + $0xbb8] ss:$48 sps:$4 sm:$0xff]  }
 0x5c8   : > { %5165 = vmatpush1.bf16.msra.mxu0 %v15441_v7  ;;  %v15497_v7 = vld [vmem:[%s18364_s26 + $0x24] ss:$48 sps:$4 sm:$0xff]  }
 0x5c9   : > { %5271 = vmatpush1.bf16.msra.mxu1 %v15444_v62  ;;  %5166 = vmatprep.subr.bf16.mxu0 %v15449_v33  ;;  %v15500_v62 = vld [vmem:[%s18364_s26 + $0x2c] ss:$48 sps:$4 sm:$0xff]   ;;  %v15495_v33 = vld [vmem:[%s18364_s26 + $0x20] ss:$48 sps:$4 sm:$0xff]  }
 0x5ca   : > { %5272 = vmatprep.subr.bf16.mxu1 %v15452_v41  ;;  %v15498_v41 = vld [vmem:[%s18364_s26 + $0x28] ss:$48 sps:$4 sm:$0xff]  }
 0x5cc   : > { %5167 = vmatpush1.bf16.msra.mxu0 %v15447_v51  ;;  %v15503_v51 = vld [vmem:[%s18364_s26 + $0x84] ss:$48 sps:$4 sm:$0xff]  }
 0x5cd   : > { %5273 = vmatpush1.bf16.msra.mxu1 %v15450_v44  ;;  %5168 = vmatprep.subr.bf16.mxu0 %v15455_v48  ;;  %v15506_v44 = vld [vmem:[%s18364_s26 + $0x8c] ss:$48 sps:$4 sm:$0xff]   ;;  %v15501_v48 = vld [vmem:[%s18364_s26 + $0x80] ss:$48 sps:$4 sm:$0xff]  }
 0x5ce   : > { %5274 = vmatprep.subr.bf16.mxu1 %v15458_v2  ;;  %v15504_v2 = vld [vmem:[%s18364_s26 + $0x88] ss:$48 sps:$4 sm:$0xff]  }
 0x5d0   : > { %5169 = vmatpush1.bf16.msra.mxu0 %v15453_v50  ;;  %v15509_v50 = vld [vmem:[%s18364_s26 + $0xe4] ss:$48 sps:$4 sm:$0xff]  }
 0x5d1   : > { %5275 = vmatpush1.bf16.msra.mxu1 %v15456_v8  ;;  %5170 = vmatprep.subr.bf16.mxu0 %v15461_v6  ;;  %v15512_v8 = vld [vmem:[%s18364_s26 + $0xec] ss:$48 sps:$4 sm:$0xff]   ;;  %v15507_v6 = vld [vmem:[%s18364_s26 + $0xe0] ss:$48 sps:$4 sm:$0xff]  }
 0x5d2   : > { %5276 = vmatprep.subr.bf16.mxu1 %v15464_v3  ;;  %v15510_v3 = vld [vmem:[%s18364_s26 + $0xe8] ss:$48 sps:$4 sm:$0xff]  }
 0x5d4   : > { %5171 = vmatpush1.bf16.msra.mxu0 %v15459_v12  ;;  %v15515_v12 = vld [vmem:[%s18364_s26 + $0x144] ss:$48 sps:$4 sm:$0xff]  }
 0x5d5   : > { %5277 = vmatpush1.bf16.msra.mxu1 %v15462_v59  ;;  %5172 = vmatprep.subr.bf16.mxu0 %v15467_v53  ;;  %v15518_v59 = vld [vmem:[%s18364_s26 + $0x14c] ss:$48 sps:$4 sm:$0xff]   ;;  %v15513_v53 = vld [vmem:[%s18364_s26 + $0x140] ss:$48 sps:$4 sm:$0xff]  }
 0x5d6   : > { %5278 = vmatprep.subr.bf16.mxu1 %v15470_v63  ;;  %v15516_v63 = vld [vmem:[%s18364_s26 + $0x148] ss:$48 sps:$4 sm:$0xff]  }
 0x5d8   : > { %5173 = vmatpush1.bf16.msra.mxu0 %v15465_v47  ;;  %v15521_v47 = vld [vmem:[%s18364_s26 + $0x1a4] ss:$48 sps:$4 sm:$0xff]  }
 0x5d9   : > { %5279 = vmatpush1.bf16.msra.mxu1 %v15468_v40  ;;  %5174 = vmatprep.subr.bf16.mxu0 %v15473_v26  ;;  %v15524_v40 = vld [vmem:[%s18364_s26 + $0x1ac] ss:$48 sps:$4 sm:$0xff]   ;;  %v15519_v26 = vld [vmem:[%s18364_s26 + $0x1a0] ss:$48 sps:$4 sm:$0xff]  }
 0x5da   : > { %5280 = vmatprep.subr.bf16.mxu1 %v15476_v55  ;;  %v15522_v55 = vld [vmem:[%s18364_s26 + $0x1a8] ss:$48 sps:$4 sm:$0xff]  }
 0x5dc   : > { %5175 = vmatpush1.bf16.msra.mxu0 %v15471_v4  ;;  %v15527_v4 = vld [vmem:[%s18364_s26 + $0x204] ss:$48 sps:$4 sm:$0xff]  }
 0x5dd   : > { %5281 = vmatpush1.bf16.msra.mxu1 %v15474_v1  ;;  %5176 = vmatprep.subr.bf16.mxu0 %v15479_v23  ;;  %v15525_v1 = vld [vmem:[%s18364_s26 + $0x200] ss:$48 sps:$4 sm:$0xff]   ;;  %v15528_v23 = vld [vmem:[%s18364_s26 + $0x208] ss:$48 sps:$4 sm:$0xff]  }
 0x5de   : > { %5282 = vmatprep.subr.bf16.mxu1 %v15482_v30  ;;  %v15533_v30 = vld [vmem:[%s18364_s26 + $0x264] ss:$48 sps:$4 sm:$0xff]  }
 0x5e0   : > { %5177 = vmatpush1.bf16.msra.mxu0 %v15477_v36  ;;  %v15536_v36 = vld [vmem:[%s18364_s26 + $0x26c] ss:$48 sps:$4 sm:$0xff]  }
 0x5e1   : > { %5283 = vmatpush1.bf16.msra.mxu1 %v15480_v16  ;;  %5178 = vmatprep.subr.bf16.mxu0 %v15485_v28  ;;  %v15531_v16 = vld [vmem:[%s18364_s26 + $0x260] ss:$48 sps:$4 sm:$0xff]   ;;  %v15534_v28 = vld [vmem:[%s18364_s26 + $0x268] ss:$48 sps:$4 sm:$0xff]  }
 0x5e2   : > { %5284 = vmatprep.subr.bf16.mxu1 %v15488_v61  ;;  %v15539_v61 = vld [vmem:[%s18364_s26 + $0x2c4] ss:$48 sps:$4 sm:$0xff]  }
 0x5e4   : > { %5179 = vmatpush1.bf16.msra.mxu0 %v15483_v32  ;;  %v15542_v32 = vld [vmem:[%s18364_s26 + $0x2cc] ss:$48 sps:$4 sm:$0xff]  }
 0x5e5   : > { %5285 = vmatpush1.bf16.msra.mxu1 %v15486_v24  ;;  %5180 = vmatprep.subr.bf16.mxu0 %v15491_v18  ;;  %v15537_v24 = vld [vmem:[%s18364_s26 + $0x2c0] ss:$48 sps:$4 sm:$0xff]   ;;  %v15540_v18 = vld [vmem:[%s18364_s26 + $0x2c8] ss:$48 sps:$4 sm:$0xff]  }
 0x5e6   : > { %5286 = vmatprep.subr.bf16.mxu1 %v15494_v46  ;;  %v15545_v46 = vld [vmem:[%s18364_s26 + $0x324] ss:$48 sps:$4 sm:$0xff]  }
 0x5e8   : > { %5181 = vmatpush1.bf16.msra.mxu0 %v15489_v60  ;;  %v15548_v60 = vld [vmem:[%s18364_s26 + $0x32c] ss:$48 sps:$4 sm:$0xff]  }
 0x5e9   : > { %5287 = vmatpush1.bf16.msra.mxu1 %v15492_v49  ;;  %5309 = vmatprep.subr.bf16.mxu0 %v15497_v7  ;;  %v15543_v49 = vld [vmem:[%s18364_s26 + $0x320] ss:$48 sps:$4 sm:$0xff]   ;;  %v15546_v7 = vld [vmem:[%s18364_s26 + $0x328] ss:$48 sps:$4 sm:$0xff]  }
 0x5ea   : > { %5415 = vmatprep.subr.bf16.mxu1 %v15500_v62  ;;  %v15551_v62 = vld [vmem:[%s18364_s26 + $0x384] ss:$48 sps:$4 sm:$0xff]  }
 0x5eb   : > { %5183 = vmatmul.mubr.bf16.vlgmr.msra.gmra.mrb[16].mxu0 %v18955_v34 }
 0x5ec   : > { %5289 = vmatmul.mubr.bf16.vlgmr.msra.gmra.mrb[16].mxu1 %v18955_v34  ;;  %5192 = vmatprep.mubr.bf16.mxu0 %v18979_v29 }
 0x5ed   : > { %5298 = vmatprep.mubr.bf16.mxu1 %v18979_v29  ;;  %5310 = vmatpush1.bf16.msra.mxu0 %v15495_v33  ;;  %v15554_v33 = vld [vmem:[%s18364_s26 + $0x38c] ss:$48 sps:$4 sm:$0xff]  }
 0x5ee   : > { %5416 = vmatpush1.bf16.msra.mxu1 %v15498_v41  ;;  %5311 = vmatprep.subr.bf16.mxu0 %v15503_v51  ;;  %v15549_v41 = vld [vmem:[%s18364_s26 + $0x380] ss:$48 sps:$4 sm:$0xff]   ;;  %v15552_v51 = vld [vmem:[%s18364_s26 + $0x388] ss:$48 sps:$4 sm:$0xff]  }
 0x5ef   : > { %5417 = vmatprep.subr.bf16.mxu1 %v15506_v44  ;;  %v15557_v44 = vld [vmem:[%s18364_s26 + $0x3e4] ss:$48 sps:$4 sm:$0xff]  }
 0x5f1   : > { %5312 = vmatpush1.bf16.msra.mxu0 %v15501_v48  ;;  %v15560_v48 = vld [vmem:[%s18364_s26 + $0x3ec] ss:$48 sps:$4 sm:$0xff]  }
 0x5f2   : > { %5418 = vmatpush1.bf16.msra.mxu1 %v15504_v2  ;;  %5313 = vmatprep.subr.bf16.mxu0 %v15509_v50  ;;  %v15555_v2 = vld [vmem:[%s18364_s26 + $0x3e0] ss:$48 sps:$4 sm:$0xff]   ;;  %v15558_v50 = vld [vmem:[%s18364_s26 + $0x3e8] ss:$48 sps:$4 sm:$0xff]  }
 0x5f3   : > { %5193 = vmatmul.mubr.bf16.gmra.mrb[20].mxu0 %v18985_v17  ;;  %5419 = vmatprep.subr.bf16.mxu1 %v15512_v8  ;;  %v15563_v8 = vld [vmem:[%s18364_s26 + $0x444] ss:$48 sps:$4 sm:$0xff]  }
 0x5f4   : > { %5299 = vmatmul.mubr.bf16.gmra.mrb[20].mxu1 %v18985_v17  ;;  %5341 = vmatprep.mubr.bf16.mxu0 %v18946_v5 }
 0x5f5   : > { %5314 = vmatpush1.bf16.msra.mxu0 %v15507_v6  ;;  %5447 = vmatprep.mubr.bf16.mxu1 %v18946_v5  ;;  %v15530_v5 = vld [vmem:[%s18364_s26 + $0x20c] ss:$48 sps:$4 sm:$0xff]  }
 0x5f6   : > { %5420 = vmatpush1.bf16.msra.mxu1 %v15510_v3  ;;  %5315 = vmatprep.subr.bf16.mxu0 %v15515_v12  ;;  %v15566_v6 = vld [vmem:[%s18364_s26 + $0x44c] ss:$48 sps:$4 sm:$0xff]   ;;  %v15561_v3 = vld [vmem:[%s18364_s26 + $0x440] ss:$48 sps:$4 sm:$0xff]   ;;  %v15564_v12 = vld [vmem:[%s18364_s26 + $0x448] ss:$48 sps:$4 sm:$0xff]  }
 0x5f7   : > { %5421 = vmatprep.subr.bf16.mxu1 %v15518_v59  ;;  %v15569_v59 = vld [vmem:[%s18364_s26 + $0x4a4] ss:$48 sps:$4 sm:$0xff]  }
 0x5f9   : > { %5316 = vmatpush1.bf16.msra.mxu0 %v15513_v53  ;;  %v15572_v53 = vld [vmem:[%s18364_s26 + $0x4ac] ss:$48 sps:$4 sm:$0xff]  }
 0x5fa   : > { %5422 = vmatpush1.bf16.msra.mxu1 %v15516_v63  ;;  %5317 = vmatprep.subr.bf16.mxu0 %v15521_v47  ;;  %v15567_v63 = vld [vmem:[%s18364_s26 + $0x4a0] ss:$48 sps:$4 sm:$0xff]   ;;  %v15570_v47 = vld [vmem:[%s18364_s26 + $0x4a8] ss:$48 sps:$4 sm:$0xff]  }
 0x5fb   : > { %5423 = vmatprep.subr.bf16.mxu1 %v15524_v40  ;;  %v15575_v40 = vld [vmem:[%s18364_s26 + $0x504] ss:$48 sps:$4 sm:$0xff]  }
 0x5fd   : > { %5318 = vmatpush1.bf16.msra.mxu0 %v15519_v26  ;;  %v15578_v26 = vld [vmem:[%s18364_s26 + $0x50c] ss:$48 sps:$4 sm:$0xff]  }
 0x5fe   : > { %5424 = vmatpush1.bf16.msra.mxu1 %v15522_v55  ;;  %5319 = vmatprep.subr.bf16.mxu0 %v15527_v4  ;;  %v15573_v55 = vld [vmem:[%s18364_s26 + $0x500] ss:$48 sps:$4 sm:$0xff]   ;;  %v15576_v4 = vld [vmem:[%s18364_s26 + $0x508] ss:$48 sps:$4 sm:$0xff]  }
 0x5ff   : > { %5425 = vmatprep.subr.bf16.mxu1 %v15530_v5  ;;  %v15581_v5 = vld [vmem:[%s18364_s26 + $0x564] ss:$48 sps:$4 sm:$0xff]  }
 0x601   : > { %5320 = vmatpush1.bf16.msra.mxu0 %v15525_v1  ;;  %v15584_v1 = vld [vmem:[%s18364_s26 + $0x56c] ss:$48 sps:$4 sm:$0xff]  }
 0x602   : > { %5426 = vmatpush1.bf16.msra.mxu1 %v15528_v23  ;;  %5321 = vmatprep.subr.bf16.mxu0 %v15533_v30  ;;  %v15579_v23 = vld [vmem:[%s18364_s26 + $0x560] ss:$48 sps:$4 sm:$0xff]   ;;  %v15582_v30 = vld [vmem:[%s18364_s26 + $0x568] ss:$48 sps:$4 sm:$0xff]  }
 0x603   : > { %5427 = vmatprep.subr.bf16.mxu1 %v15536_v36  ;;  %v15587_v36 = vld [vmem:[%s18364_s26 + $0x5c4] ss:$48 sps:$4 sm:$0xff]  }
 0x605   : > { %5322 = vmatpush1.bf16.msra.mxu0 %v15531_v16  ;;  %v15590_v16 = vld [vmem:[%s18364_s26 + $0x5cc] ss:$48 sps:$4 sm:$0xff]  }
 0x606   : > { %5428 = vmatpush1.bf16.msra.mxu1 %v15534_v28  ;;  %5323 = vmatprep.subr.bf16.mxu0 %v15539_v61  ;;  %v15585_v28 = vld [vmem:[%s18364_s26 + $0x5c0] ss:$48 sps:$4 sm:$0xff]   ;;  %v15588_v61 = vld [vmem:[%s18364_s26 + $0x5c8] ss:$48 sps:$4 sm:$0xff]  }
 0x607   : > { %5429 = vmatprep.subr.bf16.mxu1 %v15542_v32  ;;  %v15593_v32 = vld [vmem:[%s18364_s26 + $0x624] ss:$48 sps:$4 sm:$0xff]  }
 0x609   : > { %5324 = vmatpush1.bf16.msra.mxu0 %v15537_v24  ;;  %v15596_v24 = vld [vmem:[%s18364_s26 + $0x62c] ss:$48 sps:$4 sm:$0xff]  }
 0x60a   : > { %5430 = vmatpush1.bf16.msra.mxu1 %v15540_v18  ;;  %5325 = vmatprep.subr.bf16.mxu0 %v15545_v46  ;;  %v15591_v18 = vld [vmem:[%s18364_s26 + $0x620] ss:$48 sps:$4 sm:$0xff]   ;;  %v15594_v46 = vld [vmem:[%s18364_s26 + $0x628] ss:$48 sps:$4 sm:$0xff]  }
 0x60b   : > { %5431 = vmatprep.subr.bf16.mxu1 %v15548_v60  ;;  %v15599_v60 = vld [vmem:[%s18364_s26 + $0x684] ss:$48 sps:$4 sm:$0xff]  }
 0x60d   : > { %5326 = vmatpush1.bf16.msra.mxu0 %v15543_v49  ;;  %v15602_v49 = vld [vmem:[%s18364_s26 + $0x68c] ss:$48 sps:$4 sm:$0xff]  }
 0x60e   : > { %5432 = vmatpush1.bf16.msra.mxu1 %v15546_v7  ;;  %5327 = vmatprep.subr.bf16.mxu0 %v15551_v62  ;;  %v15597_v7 = vld [vmem:[%s18364_s26 + $0x680] ss:$48 sps:$4 sm:$0xff]   ;;  %v15600_v62 = vld [vmem:[%s18364_s26 + $0x688] ss:$48 sps:$4 sm:$0xff]  }
 0x60f   : > { %5433 = vmatprep.subr.bf16.mxu1 %v15554_v33  ;;  %v15605_v33 = vld [vmem:[%s18364_s26 + $0x6e4] ss:$48 sps:$4 sm:$0xff]  }
 0x611   : > { %5328 = vmatpush1.bf16.msra.mxu0 %v15549_v41  ;;  %v15608_v41 = vld [vmem:[%s18364_s26 + $0x6ec] ss:$48 sps:$4 sm:$0xff]  }
 0x612   : > { %5434 = vmatpush1.bf16.msra.mxu1 %v15552_v51  ;;  %5329 = vmatprep.subr.bf16.mxu0 %v15557_v44  ;;  %v15603_v51 = vld [vmem:[%s18364_s26 + $0x6e0] ss:$48 sps:$4 sm:$0xff]   ;;  %v15611_v44 = vld [vmem:[%s18364_s26 + $0x744] ss:$48 sps:$4 sm:$0xff]  }
 0x613   : > { %5435 = vmatprep.subr.bf16.mxu1 %v15560_v48  ;;  %v15609_v48 = vld [vmem:[%s18364_s26 + $0x740] ss:$48 sps:$4 sm:$0xff]  }
 0x615   : > { %5330 = vmatpush1.bf16.msra.mxu0 %v15555_v2  ;;  %v15612_v2 = vld [vmem:[%s18364_s26 + $0x748] ss:$48 sps:$4 sm:$0xff]  }
 0x616   : > { %5436 = vmatpush1.bf16.msra.mxu1 %v15558_v50  ;;  %5331 = vmatprep.subr.bf16.mxu0 %v15563_v8  ;;  %v15617_v50 = vld [vmem:[%s18364_s26 + $0x7a4] ss:$48 sps:$4 sm:$0xff]   ;;  %v15620_v8 = vld [vmem:[%s18364_s26 + $0x7ac] ss:$48 sps:$4 sm:$0xff]  }
 0x617   : > { %5437 = vmatprep.subr.bf16.mxu1 %v15566_v6  ;;  %v19286_v6 = vld [vmem:[%s18366_s1] sm:$0xff] }
 0x619   : > { %5332 = vmatpush1.bf16.msra.mxu0 %v15561_v3  ;;  %v15615_v3 = vld [vmem:[%s18364_s26 + $0x7a0] ss:$48 sps:$4 sm:$0xff]  }
 0x61a   : > { %5438 = vmatpush1.bf16.msra.mxu1 %v15564_v12  ;;  %5333 = vmatprep.subr.bf16.mxu0 %v15569_v59  ;;  %v15623_v12 = vld [vmem:[%s18364_s26 + $0x804] ss:$48 sps:$4 sm:$0xff]   ;;  %v2916_v59 = vrot.slane %v19286_v6, %v18585_v13 }
 0x61b   : > { %5439 = vmatprep.subr.bf16.mxu1 %v15572_v53  ;;  %v15626_v53 = vld [vmem:[%s18364_s26 + $0x80c] ss:$48 sps:$4 sm:$0xff]  }
 0x61d   : > { %5334 = vmatpush1.bf16.msra.mxu0 %v15567_v63 }
 0x61e   : > { %5440 = vmatpush1.bf16.msra.mxu1 %v15570_v47  ;;  %5335 = vmatprep.subr.bf16.mxu0 %v15575_v40  ;;  %v2912_v40 = vrot.slane %v19286_v6, %v18588_v14 }
 0x61f   : > { %5441 = vmatprep.subr.bf16.mxu1 %v15578_v26  ;;  %v2920_v26 = vrot.slane %v19286_v6, %v18591_v15 }
 0x621   : > { %5336 = vmatpush1.bf16.msra.mxu0 %v15573_v55 }
 0x622   : > { %5442 = vmatpush1.bf16.msra.mxu1 %v15576_v4  ;;  %5337 = vmatprep.subr.bf16.mxu0 %v15581_v5  ;;  %v15621_v5 = vld [vmem:[%s18364_s26 + $0x800] ss:$48 sps:$4 sm:$0xff]  }
 0x623   : > { %5443 = vmatprep.subr.bf16.mxu1 %v15584_v1  ;;  %v15624_v1 = vld [vmem:[%s18364_s26 + $0x808] ss:$48 sps:$4 sm:$0xff]  }
 0x625   : > { %5338 = vmatpush1.bf16.msra.mxu0 %v15579_v23 }
 0x626   : > { %5444 = vmatpush1.bf16.msra.mxu1 %v15582_v30  ;;  %5339 = vmatprep.subr.bf16.mxu0 %v15587_v36  ;;  %v15629_v36 = vld [vmem:[%s18364_s26 + $0x864] ss:$48 sps:$4 sm:$0xff]  }
 0x627   : > { %5445 = vmatprep.subr.bf16.mxu1 %v15590_v16 }
 0x629   : > { %5340 = vmatpush1.bf16.msra.mxu0 %v15585_v28 }
 0x62a   : > { %5446 = vmatpush1.bf16.msra.mxu1 %v15588_v61  ;;  %5362 = vmatprep.subr.bf16.mxu0 %v15593_v32 }
 0x62b   : > { %5468 = vmatprep.subr.bf16.mxu1 %v15596_v24 }
 0x62c   : > { %5342 = vmatmul.mubr.bf16.vlgmr.msra.gmra.mrb[24].mxu0 %v18950_v38 }
 0x62d   : > { %5448 = vmatmul.mubr.bf16.vlgmr.msra.gmra.mrb[24].mxu1 %v18950_v38  ;;  %5351 = vmatprep.mubr.bf16.mxu0 %v18972_v56  ;;  %v15606_v38 = vld [vmem:[%s18364_s26 + $0x6e8] ss:$48 sps:$4 sm:$0xff]  }
 0x62e   : > { %5363 = vmatpush1.bf16.msra.mxu0 %v15591_v18  ;;  %5457 = vmatprep.mubr.bf16.mxu1 %v18972_v56  ;;  %v15614_v56 = vld [vmem:[%s18364_s26 + $0x74c] ss:$48 sps:$4 sm:$0xff]  }
 0x62f   : > { %5469 = vmatpush1.bf16.msra.mxu1 %v15594_v46  ;;  %5364 = vmatprep.subr.bf16.mxu0 %v15599_v60  ;;  %v15632_v46 = vld [vmem:[%s18364_s26 + $0x86c] ss:$48 sps:$4 sm:$0xff]  }
 0x630   : > { %5470 = vmatprep.subr.bf16.mxu1 %v15602_v49 }
 0x632   : > { %5365 = vmatpush1.bf16.msra.mxu0 %v15597_v7 }
 0x633   : > { %5471 = vmatpush1.bf16.msra.mxu1 %v15600_v62  ;;  %5366 = vmatprep.subr.bf16.mxu0 %v15605_v33 }
 0x634   : > { %5352 = vmatmul.mubr.bf16.gmra.mrb[28].mxu0 %v18976_v39  ;;  %5472 = vmatprep.subr.bf16.mxu1 %v15608_v41 }
 0x635   : > { %5458 = vmatmul.mubr.bf16.gmra.mrb[28].mxu1 %v18976_v39  ;;  %5394 = vmatprep.mubr.bf16.mxu0 %v18989_v25  ;;  %v15618_v39 = vld [vmem:[%s18364_s26 + $0x7a8] ss:$48 sps:$4 sm:$0xff]  }
 0x636   : > { %5367 = vmatpush1.bf16.msra.mxu0 %v15603_v51  ;;  %5500 = vmatprep.mubr.bf16.mxu1 %v18989_v25  ;;  %v2908_v25 = vrot.slane %v19286_v6, %v18580_v11  ;;  %v15627_v51 = vld [vmem:[%s18364_s26 + $0x860] ss:$48 sps:$4 sm:$0xff]  }
 0x637   : > { %5473 = vmatpush1.bf16.msra.mxu1 %v15606_v38  ;;  %5368 = vmatprep.subr.bf16.mxu0 %v15611_v44 }
 0x638   : > { %5474 = vmatprep.subr.bf16.mxu1 %v15614_v56  ;;  %v15630_v56 = vld [vmem:[%s18364_s26 + $0x868] ss:$48 sps:$4 sm:$0xff]  }
 0x63a   : > { %5369 = vmatpush1.bf16.msra.mxu0 %v15609_v48  ;;  %v15635_v48 = vld [vmem:[%s18364_s26 + $0x8c4] ss:$48 sps:$4 sm:$0xff]  }
 0x63b   : > { %5475 = vmatpush1.bf16.msra.mxu1 %v15612_v2  ;;  %5370 = vmatprep.subr.bf16.mxu0 %v15617_v50  ;;  %v15638_v2 = vld [vmem:[%s18364_s26 + $0x8cc] ss:$48 sps:$4 sm:$0xff]  }
 0x63c   : > { %5476 = vmatprep.subr.bf16.mxu1 %v15620_v8 }
 0x63d   : > { %v4972_v63 = vpop.f32.mrb[8].mxu0  ;;  %v5078_v47 = vpop.f32.mrb[8].mxu1 }
 0x63e   : > { %5371 = vmatpush1.bf16.msra.mxu0 %v15615_v3  ;;  %v4974_v55 = vpop.f32.mrb[9].mxu0  ;;  %v5080_v4 = vpop.f32.mrb[9].mxu1  ;;  %v19303_v16 = vadd.f32 %v4972_v63, %v2908_v25  ;;  %v19305_v28 = vadd.f32 %v5078_v47, %v2916_v59  ;;  %v15636_v63 = vld [vmem:[%s18364_s26 + $0x8c8] ss:$48 sps:$4 sm:$0xff]  }
 0x63f   : > { %5477 = vmatpush1.bf16.msra.mxu1 %v15618_v39  ;;  %5372 = vmatprep.subr.bf16.mxu0 %v15623_v12  ;;  %v4976_v23 = vpop.f32.mrb[10].mxu0  ;;  %v5082_v30 = vpop.f32.mrb[10].mxu1  ;;  %v19312_v60 = vadd.f32 %v4974_v55, %v2912_v40  ;;  %v19314_v49 = vadd.f32 %v5080_v4, %v2920_v26  ;;  %v15633_v12 = vld [vmem:[%s18364_s26 + $0x8c0] ss:$48 sps:$4 sm:$0xff]   ;;  %v15641_v4 = vld [vmem:[%s18364_s26 + $0x924] ss:$48 sps:$4 sm:$0xff]  }
 0x640   : > { %5478 = vmatprep.subr.bf16.mxu1 %v15626_v53  ;;  %v19307_v61 = vadd.f32 %v4976_v23, %v2908_v25  ;;  %v19309_v32 = vadd.f32 %v5082_v30, %v2916_v59  ;;  %v4978_v24 = vpop.f32.mrb[11].mxu0  ;;  %v5084_v18 = vpop.f32.mrb[11].mxu1 }
 0x641   : > { %v19316_v7 = vadd.f32 %v4978_v24, %v2912_v40  ;;  %v19318_v62 = vadd.f32 %v5084_v18, %v2920_v26  ;;  %v15644_v18 = vld [vmem:[%s18364_s26 + $0x92c] ss:$48 sps:$4 sm:$0xff]  }
 0x642   : > { %5373 = vmatpush1.bf16.msra.mxu0 %v15621_v5 }
 0x643   : > { %5479 = vmatpush1.bf16.msra.mxu1 %v15624_v1  ;;  %v5522_v38 = vpack.c.bf16 %v19316_v7, %v19312_v60  ;;  %5374 = vmatprep.subr.bf16.mxu0 %v15629_v36 }
 0x644   : > { %5480 = vmatprep.subr.bf16.mxu1 %v15632_v46 }
 0x645   : > { %v4982_v50 = vpop.f32.mrb[12].mxu0  ;;  %v5088_v8 = vpop.f32.mrb[12].mxu1 }
 0x646   : > { %5375 = vmatpush1.bf16.msra.mxu0 %v15627_v51  ;;  %v4984_v3 = vpop.f32.mrb[13].mxu0  ;;  %v5090_v39 = vpop.f32.mrb[13].mxu1  ;;  %v19337_v5 = vadd.f32 %v4982_v50, %v2908_v25  ;;  %v19339_v1 = vadd.f32 %v5088_v8, %v2916_v59  ;;  %v15647_v50 = vld [vmem:[%s18364_s26 + $0x984] ss:$48 sps:$4 sm:$0xff]   ;;  %v15650_v8 = vld [vmem:[%s18364_s26 + $0x98c] ss:$48 sps:$4 sm:$0xff]  }
 0x647   : > { %5481 = vmatpush1.bf16.msra.mxu1 %v15630_v56  ;;  %v19333_v53 = vadd.f32 %v4984_v3, %v2912_v40  ;;  %5376 = vmatprep.subr.bf16.mxu0 %v15635_v48  ;;  %v4986_v47 = vpop.f32.mrb[14].mxu0  ;;  %v5092_v55 = vpop.f32.mrb[14].mxu1  ;;  %v19346_v46 = vadd.f32 %v5090_v39, %v2920_v26  ;;  %v15645_v3 = vld [vmem:[%s18364_s26 + $0x980] ss:$48 sps:$4 sm:$0xff]   ;;  %v15648_v39 = vld [vmem:[%s18364_s26 + $0x988] ss:$48 sps:$4 sm:$0xff]  }
 0x648   : > { %5482 = vmatprep.subr.bf16.mxu1 %v15638_v2  ;;  %v19341_v23 = vadd.f32 %v4986_v47, %v2908_v25  ;;  %v19343_v30 = vadd.f32 %v5092_v55, %v2916_v59  ;;  %v4988_v36 = vpop.f32.mrb[15].mxu0  ;;  %v5094_v24 = vpop.f32.mrb[15].mxu1  ;;  %v15639_v59 = vld [vmem:[%s18364_s26 + $0x920] ss:$48 sps:$4 sm:$0xff]   ;;  %v15654_v55 = vld [vmem:[%s18364_s26 + $0x9e8] ss:$48 sps:$4 sm:$0xff]  }
 0x649   : > { %v19348_v51 = vadd.f32 %v4988_v36, %v2912_v40  ;;  %v19350_v56 = vadd.f32 %v5094_v24, %v2920_v26  ;;  %v15642_v26 = vld [vmem:[%s18364_s26 + $0x928] ss:$48 sps:$4 sm:$0xff]   ;;  %v15651_v47 = vld [vmem:[%s18364_s26 + $0x9e0] ss:$48 sps:$4 sm:$0xff]   ;;  %v15662_v36 = vld [vmem:[%s18364_s26 + $0xa4c] ss:$48 sps:$4 sm:$0xff]  }
 0x64a   : > { %5377 = vmatpush1.bf16.msra.mxu0 %v15633_v12  ;;  %v15653_v12 = vld [vmem:[%s18364_s26 + $0x9e4] ss:$48 sps:$4 sm:$0xff]   ;;  %v15657_v24 = vld [vmem:[%s18364_s26 + $0xa40] ss:$48 sps:$4 sm:$0xff]  }
 0x64b   : > { %5483 = vmatpush1.bf16.msra.mxu1 %v15636_v63  ;;  %5378 = vmatprep.subr.bf16.mxu0 %v15641_v4  ;;  %v15656_v63 = vld [vmem:[%s18364_s26 + $0x9ec] ss:$48 sps:$4 sm:$0xff]   ;;  %v15659_v4 = vld [vmem:[%s18364_s26 + $0xa44] ss:$48 sps:$4 sm:$0xff]  }
 0x64c   : > { %5484 = vmatprep.subr.bf16.mxu1 %v15644_v18  ;;  %v15660_v18 = vld [vmem:[%s18364_s26 + $0xa48] ss:$48 sps:$4 sm:$0xff]  }
 0x64e   : > { %5379 = vmatpush1.bf16.msra.mxu0 %v15639_v59  ;;  %v15665_v59 = vld [vmem:[%s18364_s26 + $0xaa4] ss:$48 sps:$4 sm:$0xff]  }
 0x64f   : > { %5485 = vmatpush1.bf16.msra.mxu1 %v15642_v26  ;;  %5380 = vmatprep.subr.bf16.mxu0 %v15647_v50  ;;  %v15668_v26 = vld [vmem:[%s18364_s26 + $0xaac] ss:$48 sps:$4 sm:$0xff]   ;;  %v15663_v50 = vld [vmem:[%s18364_s26 + $0xaa0] ss:$48 sps:$4 sm:$0xff]  }
 0x650   : > { %5486 = vmatprep.subr.bf16.mxu1 %v15650_v8  ;;  %v15666_v8 = vld [vmem:[%s18364_s26 + $0xaa8] ss:$48 sps:$4 sm:$0xff]  }
 0x652   : > { %5381 = vmatpush1.bf16.msra.mxu0 %v15645_v3  ;;  %v15671_v3 = vld [vmem:[%s18364_s26 + $0xb04] ss:$48 sps:$4 sm:$0xff]  }
 0x653   : > { %5487 = vmatpush1.bf16.msra.mxu1 %v15648_v39  ;;  %5382 = vmatprep.subr.bf16.mxu0 %v15653_v12  ;;  %v15674_v39 = vld [vmem:[%s18364_s26 + $0xb0c] ss:$48 sps:$4 sm:$0xff]   ;;  %v15669_v12 = vld [vmem:[%s18364_s26 + $0xb00] ss:$48 sps:$4 sm:$0xff]  }
 0x654   : > { %5488 = vmatprep.subr.bf16.mxu1 %v15656_v63  ;;  %v15672_v63 = vld [vmem:[%s18364_s26 + $0xb08] ss:$48 sps:$4 sm:$0xff]  }
 0x656   : > { %5383 = vmatpush1.bf16.msra.mxu0 %v15651_v47  ;;  %v15677_v47 = vld [vmem:[%s18364_s26 + $0xb64] ss:$48 sps:$4 sm:$0xff]  }
 0x657   : > { %5489 = vmatpush1.bf16.msra.mxu1 %v15654_v55  ;;  %5384 = vmatprep.subr.bf16.mxu0 %v15659_v4  ;;  %v15680_v55 = vld [vmem:[%s18364_s26 + $0xb6c] ss:$48 sps:$4 sm:$0xff]   ;;  %v15675_v4 = vld [vmem:[%s18364_s26 + $0xb60] ss:$48 sps:$4 sm:$0xff]  }
 0x658   : > { %5490 = vmatprep.subr.bf16.mxu1 %v15662_v36  ;;  %v15678_v36 = vld [vmem:[%s18364_s26 + $0xb68] ss:$48 sps:$4 sm:$0xff]  }
 0x65a   : > { %5385 = vmatpush1.bf16.msra.mxu0 %v15657_v24  ;;  %v15683_v24 = vld [vmem:[%s18364_s26 + $0xbc4] ss:$48 sps:$4 sm:$0xff]  }
 0x65b   : > { %5491 = vmatpush1.bf16.msra.mxu1 %v15660_v18  ;;  %5386 = vmatprep.subr.bf16.mxu0 %v15665_v59  ;;  %v15686_v18 = vld [vmem:[%s18364_s26 + $0xbcc] ss:$48 sps:$4 sm:$0xff]   ;;  %v15681_v59 = vld [vmem:[%s18364_s26 + $0xbc0] ss:$48 sps:$4 sm:$0xff]  }
 0x65c   : > { %5492 = vmatprep.subr.bf16.mxu1 %v15668_v26  ;;  %v15684_v26 = vld [vmem:[%s18364_s26 + $0xbc8] ss:$48 sps:$4 sm:$0xff]  }
 0x65e   : > { %5387 = vmatpush1.bf16.msra.mxu0 %v15663_v50  ;;  %v2923_v50 = vsub.s32 4, %v18577_v10 }
 0x65f   : > { %5493 = vmatpush1.bf16.msra.mxu1 %v15666_v8  ;;  %5388 = vmatprep.subr.bf16.mxu0 %v15671_v3  ;;  %v2931_v8 = vsub.s32 6, %v18577_v10  ;;  %v2927_v3 = vsub.s32 5, %v18577_v10 }
 0x660   : > { %5494 = vmatprep.subr.bf16.mxu1 %v15674_v39  ;;  %v2924_v39 = vrot.slane %v19286_v6, %v2923_v50 }
 0x662   : > { %5389 = vmatpush1.bf16.msra.mxu0 %v15669_v12 }
 0x663   : > { %5495 = vmatpush1.bf16.msra.mxu1 %v15672_v63  ;;  %5390 = vmatprep.subr.bf16.mxu0 %v15677_v47  ;;  %v2928_v63 = vrot.slane %v19286_v6, %v2927_v3 }
 0x664   : > { %5496 = vmatprep.subr.bf16.mxu1 %v15680_v55 }
 0x666   : > { %5391 = vmatpush1.bf16.msra.mxu0 %v15675_v4 }
 0x667   : > { %5497 = vmatpush1.bf16.msra.mxu1 %v15678_v36  ;;  %5392 = vmatprep.subr.bf16.mxu0 %v15683_v24 }
 0x668   : > { %5498 = vmatprep.subr.bf16.mxu1 %v15686_v18 }
 0x66a   : > { %5393 = vmatpush1.bf16.msra.mxu0 %v15681_v59 }
 0x66b   : > { %5499 = vmatpush1.bf16.msra.mxu1 %v15684_v26 }
 0x66d   : > { %5395 = vmatmul.mubr.bf16.vlgmr.msra.gmra.mrb[24].mxu0 %v18955_v34 }
 0x66e   : > { %5501 = vmatmul.mubr.bf16.vlgmr.msra.gmra.mrb[24].mxu1 %v18955_v34  ;;  %5404 = vmatprep.mubr.bf16.mxu0 %v18979_v29  ;;  %v2935_v34 = vsub.s32 7, %v18577_v10 }
 0x66f   : > { %5510 = vmatprep.mubr.bf16.mxu1 %v18979_v29  ;;  %v2932_v29 = vrot.slane %v19286_v6, %v2931_v8 }
 0x670   : > { %v2936_v60 = vrot.slane %v19286_v6, %v2935_v34 }
 0x675   : > { %5405 = vmatmul.mubr.bf16.gmra.mrb[28].mxu0 %v18985_v17 }
 0x676   : > { %5511 = vmatmul.mubr.bf16.gmra.mrb[28].mxu1 %v18985_v17  ;;  %5577 = vmatprep.mubr.bf16.mxu0 %v5522_v38 }
 0x6be   : > { %v5184_v12 = vpop.f32.mrb[16].mxu0 }
 0x6bf   : > { %v5290_v17 = vpop.f32.mrb[16].mxu1  ;;  %v5186_v47 = vpop.f32.mrb[17].mxu0  ;;  %v14582_v55 = vadd.f32 %v5184_v12, %v2924_v39 }
 0x6c0   : > { %v5292_v7 = vpop.f32.mrb[17].mxu1  ;;  %v5188_v38 = vpop.f32.mrb[18].mxu0  ;;  %v14590_v18 = vadd.f32 %v5290_v17, %v2932_v29  ;;  %v14583_v59 = vadd.f32 %v5186_v47, %v2928_v63 }
 0x6c1   : > { %v14584_v4 = vadd.f32 %v5188_v38, %v2924_v39  ;;  %v5294_v36 = vpop.f32.mrb[18].mxu1  ;;  %v5190_v24 = vpop.f32.mrb[19].mxu0  ;;  %v14591_v25 = vadd.f32 %v5292_v7, %v2936_v60 }
 0x6c2   : > { %v14592_v26 = vadd.f32 %v5294_v36, %v2932_v29  ;;  %v14585_v9 = vadd.f32 %v5190_v24, %v2928_v63  ;;  %v5296_v50 = vpop.f32.mrb[19].mxu1 }
 0x6c3   : > { %v5525_v40 = vpack.c.bf16 %v14584_v4, %v14582_v55  ;;  %v14593_v8 = vadd.f32 %v5296_v50, %v2936_v60 }
 0x6c4   : > { %v5527_v41 = vpack.c.bf16 %v14592_v26, %v14590_v18  ;;  %v5526_v3 = vpack.c.bf16 %v14585_v9, %v14583_v59 }
 0x6c5   : > { %v5528_v44 = vpack.c.bf16 %v14593_v8, %v14591_v25 }
 0x6c6   : > { %v5194_v48 = vpop.f32.mrb[20].mxu0  ;;  %5545 = vmatprep.subr.bf16.mxu0 %v5526_v3 }
 0x6c7   : > { %v5300_v6 = vpop.f32.mrb[20].mxu1  ;;  %v5196_v34 = vpop.f32.mrb[21].mxu0  ;;  %5546 = vmatpush1.bf16.xpose.msra.mxu0 %v5525_v40  ;;  %v14586_v2 = vadd.f32 %v5194_v48, %v2924_v39  ;;  %v20198_v48 = vpack.c.bf16 %v19307_v61, %v19303_v16  ;;  %v20199_v40 = vpack.c.bf16 %v19348_v51, %v19333_v53  ;;  %v20203_v16 = vpack.c.bf16 %v19350_v56, %v19346_v46 }
 0x6c8   : > { %v5302_v12 = vpop.f32.mrb[21].mxu1  ;;  %v5198_v38 = vpop.f32.mrb[22].mxu0  ;;  %v14594_v36 = vadd.f32 %v5300_v6, %v2932_v29  ;;  %v14587_v24 = vadd.f32 %v5196_v34, %v2928_v63  ;;  %v20204_v61 = vpack.c.bf16 %v19343_v30, %v19339_v1 }
 0x6c9   : > { %v14588_v33 = vadd.f32 %v5198_v38, %v2924_v39  ;;  %v5304_v17 = vpop.f32.mrb[22].mxu1  ;;  %v5200_v47 = vpop.f32.mrb[23].mxu0  ;;  %v14595_v4 = vadd.f32 %v5302_v12, %v2936_v60 }
 0x6ca   : > { %v14596_v10 = vadd.f32 %v5304_v17, %v2932_v29  ;;  %v14589_v7 = vadd.f32 %v5200_v47, %v2928_v63  ;;  %v5306_v55 = vpop.f32.mrb[23].mxu1 }
 0x6cb   : > { %v5537_v18 = vpack.c.bf16 %v14588_v33, %v14586_v2  ;;  %v14597_v9 = vadd.f32 %v5306_v55, %v2936_v60  ;;  %v20200_v33 = vpack.c.bf16 %v19341_v23, %v19337_v5 }
 0x6cc   : > { %v5539_v25 = vpack.c.bf16 %v14596_v10, %v14594_v36  ;;  %v5538_v59 = vpack.c.bf16 %v14589_v7, %v14587_v24  ;;  %v20201_v10 = vpack.c.bf16 %v19318_v62, %v19314_v49 }
 0x6cd   : > { %v5540_v26 = vpack.c.bf16 %v14597_v9, %v14595_v4 }
 0x6ce   : > { %5547 = vmatprep.subr.bf16.mxu0 %v5538_v59 }
 0x6cf   : > { %5548 = vmatpush1.bf16.xpose.msra.mxu0 %v5537_v18 }
 0x6d0   : > { %5594 = vmatprep.subr.bf16.mxu0 %v5528_v44  ;;  %v20202_v44 = vpack.c.bf16 %v19309_v32, %v19305_v28 }
 0x6d6   : > { %5578 = vmatmul.mubr.bf16.vlgmr.msra.gmra.mrb[32].mxu0 %v20198_v48 }
 0x6d7   : > { %5585 = vmatprep.mubr.bf16.mxu0 %v20199_v40  ;;  %5595 = vmatpush1.bf16.xpose.msra.mxu0 %v5527_v41  ;;  %v2902_v41 = vld [vmem:[%s18366_s1 + $0x8] sm:$0xf] }
 0x6d8   : > { %5596 = vmatprep.subr.bf16.mxu0 %v5540_v26  ;;  %v2940_v53 = vrot.slane %v2902_v41, %v18580_v11  ;;  %v2948_v23 = vrot.slane %v2902_v41, %v18585_v13  ;;  %v2944_v49 = vrot.slane %v2902_v41, %v18588_v14  ;;  %v2952_v28 = vrot.slane %v2902_v41, %v18591_v15 }
 0x6de   : > { %5586 = vmatmul.mubr.bf16.gmra.mrb[36].mxu0 %v20200_v33 }
 0x6df   : > { %5597 = vmatpush1.bf16.xpose.msra.mxu0 %v5539_v25  ;;  %5626 = vmatprep.mubr.bf16.mxu0 %v20201_v10 }
 0x6e6   : > { %5627 = vmatmul.mubr.bf16.vlgmr.msra.gmra.mrb[32].mxu0 %v20202_v44 }
 0x6e7   : > { %5634 = vmatprep.mubr.bf16.mxu0 %v20203_v16 }
 0x6ee   : > { %5635 = vmatmul.mubr.bf16.gmra.mrb[36].mxu0 %v20204_v61 }
 0x740   : > { %v5396_v5 = vpop.f32.mrb[24].mxu0 }
 0x741   : > { %v5502_v62 = vpop.f32.mrb[24].mxu1  ;;  %v5398_v51 = vpop.f32.mrb[25].mxu0  ;;  %v14598_v46 = vadd.f32 %v5396_v5, %v2940_v53 }
 0x742   : > { %v5504_v32 = vpop.f32.mrb[25].mxu1  ;;  %v5400_v2 = vpop.f32.mrb[26].mxu0  ;;  %v19433_v1 = vadd.f32 %v5502_v62, %v2948_v23  ;;  %v14599_v30 = vadd.f32 %v5398_v51, %v2944_v49 }
 0x743   : > { %v14600_v56 = vadd.f32 %v5400_v2, %v2940_v53  ;;  %v5506_v39 = vpop.f32.mrb[26].mxu1  ;;  %v5402_v29 = vpop.f32.mrb[27].mxu0  ;;  %v14607_v8 = vadd.f32 %v5504_v32, %v2952_v28 }
 0x744   : > { %v19435_v63 = vadd.f32 %v5506_v39, %v2948_v23  ;;  %v14601_v60 = vadd.f32 %v5402_v29, %v2944_v49  ;;  %v5508_v50 = vpop.f32.mrb[27].mxu1 }
 0x745   : > { %v5529_v3 = vpack.c.bf16 %v14600_v56, %v14598_v46  ;;  %v14609_v6 = vadd.f32 %v5508_v50, %v2952_v28 }
 0x746   : > { %v5531_v34 = vpack.c.bf16 %v19435_v63, %v19433_v1  ;;  %v5530_v12 = vpack.c.bf16 %v14601_v60, %v14599_v30 }
 0x747   : > { %v5532_v38 = vpack.c.bf16 %v14609_v6, %v14607_v8 }
 0x748   : > { %v5406_v17 = vpop.f32.mrb[28].mxu0  ;;  %5696 = vmatprep.subr.bf16.mxu1 %v5530_v12 }
 0x749   : > { %v5512_v47 = vpop.f32.mrb[28].mxu1  ;;  %v5408_v36 = vpop.f32.mrb[29].mxu0  ;;  %5697 = vmatpush1.bf16.msra.mxu1 %v5529_v3  ;;  %v14602_v55 = vadd.f32 %v5406_v17, %v2940_v53 }
 0x74a   : > { %v5514_v24 = vpop.f32.mrb[29].mxu1  ;;  %v5410_v7 = vpop.f32.mrb[30].mxu0  ;;  %v19441_v59 = vadd.f32 %v5512_v47, %v2948_v23  ;;  %v14603_v26 = vadd.f32 %v5408_v36, %v2944_v49 }
 0x74b   : > { %v19439_v4 = vadd.f32 %v5514_v24, %v2952_v28  ;;  %v14604_v18 = vadd.f32 %v5410_v7, %v2940_v53  ;;  %v5516_v9 = vpop.f32.mrb[30].mxu1  ;;  %v5412_v25 = vpop.f32.mrb[31].mxu0 }
 0x74c   : > { %v19443_v48 = vadd.f32 %v5516_v9, %v2948_v23  ;;  %v14605_v40 = vadd.f32 %v5412_v25, %v2944_v49  ;;  %v5518_v33 = vpop.f32.mrb[31].mxu1 }
 0x74d   : > { %v5541_v10 = vpack.c.bf16 %v14604_v18, %v14602_v55  ;;  %v19445_v44 = vadd.f32 %v5518_v33, %v2952_v28  ;;  %v17643_v33 = vmov 0  }
 0x74e   : > { %v5543_v16 = vpack.c.bf16 %v19443_v48, %v19441_v59  ;;  %v5542_v61 = vpack.c.bf16 %v14605_v40, %v14603_v26  ;;  %5728 = vmatprep.mubr.bf16.mxu1 %v17643_v33  ;;  %v15698_v59 = vld [vmem:[%s18372_s12 + $0x2c] ss:$16 sps:$4 sm:$0xff]  }
 0x74f   : > { %v5544_v41 = vpack.c.bf16 %v19445_v44, %v19439_v4 }
 0x750   : > { %5698 = vmatprep.subr.bf16.mxu1 %v5542_v61  ;;  %v15689_v61 = vld [vmem:[%s18372_s12 + $0x4] ss:$16 sps:$4 sm:$0xff]  }
 0x751   : > { %5699 = vmatpush1.bf16.msra.mxu1 %v5541_v10  ;;  %v15687_v10 = vld [vmem:[%s18372_s12] ss:$16 sps:$4 sm:$0xff]   ;;  %6600 = vmatprep.subr.bf16.mxu0 %v15689_v61 }
 0x752   : > { %5749 = vmatprep.subr.bf16.mxu1 %v5532_v38  ;;  %6601 = vmatpush1.bf16.msra.mxu0 %v15687_v10 }
 0x7b9   : > { %v5628_v53 = vpop.f32.mrb[32].mxu0 }
 0x7ba   : > { %v5630_v5 = vpop.f32.mrb[33].mxu0  ;;  %v5644_v23 = vsel %vm5643_vm0, %v5628_v53, -inf }
 0x7bb   : > { %5645 = vmax.xlane.f32.xlu0 %v5644_v23  ;;  %v5631_v49 = vpop.f32.mrb[34].mxu0  ;;  %v15693_v5 = vld [vmem:[%s18372_s12 + $0x20] ss:$16 sps:$4 sm:$0xff]   ;;  %v15701_v23 = vld [vmem:[%s18372_s12 + $0x44] ss:$16 sps:$4 sm:$0xff]  }
 0x7bc   : > { %v5633_v62 = vpop.f32.mrb[35].mxu0  ;;  %v5647_v51 = vsel %vm5643_vm0, %v5631_v49, -inf }
 0x7bd   : > { %5648 = vmax.xlane.f32.xlu1 %v5647_v51  ;;  %v15707_v62 = vld [vmem:[%s18372_s12 + $0x64] ss:$16 sps:$4 sm:$0xff]   ;;  %v15705_v51 = vld [vmem:[%s18372_s12 + $0x60] ss:$16 sps:$4 sm:$0xff]  }
 0x7c1   : > { %v5636_v28 = vpop.f32.mrb[36].mxu0 }
 0x7c2   : > { %v5638_v32 = vpop.f32.mrb[37].mxu0  ;;  %v5650_v2 = vsel %vm5643_vm0, %v5636_v28, -inf }
 0x7c3   : > { %5651 = vmax.xlane.f32.xlu0 %v5650_v2  ;;  %v5639_v46 = vpop.f32.mrb[38].mxu0  ;;  %v15711_v32 = vld [vmem:[%s18372_s12 + $0x80] ss:$16 sps:$4 sm:$0xff]   ;;  %v15719_v2 = vld [vmem:[%s18372_s12 + $0xa4] ss:$16 sps:$4 sm:$0xff]  }
 0x7c4   : > { %v5641_v56 = vpop.f32.mrb[39].mxu0  ;;  %v5653_v39 = vsel %vm5643_vm0, %v5639_v46, -inf }
 0x7c5   : > { %5654 = vmax.xlane.f32.xlu1 %v5653_v39  ;;  %v15725_v56 = vld [vmem:[%s18372_s12 + $0xc4] ss:$16 sps:$4 sm:$0xff]   ;;  %v15723_v39 = vld [vmem:[%s18372_s12 + $0xc0] ss:$16 sps:$4 sm:$0xff]  }
 0x848   : > { %v5646_v29 = vpop.xlane.xlu0 %5645 }
 0x849   : > { %v5656_v30 = vsub.f32 %v5628_v53, %v5646_v29  ;;  %v15695_v53 = vld [vmem:[%s18372_s12 + $0x24] ss:$16 sps:$4 sm:$0xff]  }
 0x84a   : > { %v5649_v60 = vpop.xlane.xlu1 %5648  ;;  %6602 = vmatprep.subr.bf16.mxu0 %v15695_v53  ;;  %v15731_v29 = vld [vmem:[%s18372_s12 + $0xe4] ss:$16 sps:$4 sm:$0xff]  }
 0x84b   : > { %v5660_v50 = vmul.f32 1.442695, %v5656_v30  ;;  %v5657_v8 = vsub.f32 %v5631_v49, %v5649_v60  ;;  %6603 = vmatpush1.bf16.msra.mxu0 %v15693_v5  ;;  %v15699_v49 = vld [vmem:[%s18372_s12 + $0x40] ss:$16 sps:$4 sm:$0xff]   ;;  %v15737_v60 = vld [vmem:[%s18372_s12 + $0x104] ss:$16 sps:$4 sm:$0xff]  }
 0x84c   : > { %6604 = vmatprep.subr.bf16.mxu0 %v15701_v23  ;;  %v15729_v30 = vld [vmem:[%s18372_s12 + $0xe0] ss:$16 sps:$4 sm:$0xff]  }
 0x84d   : > { %15951 = vpow2.f32 %v5660_v50  ;;  %v5662_v3 = vmul.f32 1.442695, %v5657_v8  ;;  %v15735_v50 = vld [vmem:[%s18372_s12 + $0x100] ss:$16 sps:$4 sm:$0xff]   ;;  %v15743_v8 = vld [vmem:[%s18372_s12 + $0x124] ss:$16 sps:$4 sm:$0xff]  }
 0x84f   : > { %15953 = vpow2.f32 %v5662_v3  ;;  %6605 = vmatpush1.bf16.msra.mxu0 %v15699_v49  ;;  %v15741_v3 = vld [vmem:[%s18372_s12 + $0x120] ss:$16 sps:$4 sm:$0xff]  }
 0x850   : > { %v5652_v6 = vpop.xlane.xlu0 %5651  ;;  %6606 = vmatprep.subr.bf16.mxu0 %v15707_v62 }
 0x851   : > { %v5658_v12 = vsub.f32 %v5636_v28, %v5652_v6  ;;  %v15713_v28 = vld [vmem:[%s18372_s12 + $0x84] ss:$16 sps:$4 sm:$0xff]  }
 0x852   : > { %v5655_v38 = vpop.xlane.xlu1 %5654  ;;  %v15749_v6 = vld [vmem:[%s18372_s12 + $0x144] ss:$16 sps:$4 sm:$0xff]  }
 0x853   : > { %v5664_v17 = vmul.f32 1.442695, %v5658_v12  ;;  %v5659_v47 = vsub.f32 %v5639_v46, %v5655_v38  ;;  %6607 = vmatpush1.bf16.msra.mxu0 %v15705_v51  ;;  %v15717_v46 = vld [vmem:[%s18372_s12 + $0xa0] ss:$16 sps:$4 sm:$0xff]   ;;  %v15755_v38 = vld [vmem:[%s18372_s12 + $0x164] ss:$16 sps:$4 sm:$0xff]  }
 0x854   : > { %6608 = vmatprep.subr.bf16.mxu0 %v15713_v28  ;;  %v15747_v12 = vld [vmem:[%s18372_s12 + $0x140] ss:$16 sps:$4 sm:$0xff]  }
 0x855   : > { %15955 = vpow2.f32 %v5664_v17  ;;  %v5666_v36 = vmul.f32 1.442695, %v5659_v47  ;;  %v15753_v17 = vld [vmem:[%s18372_s12 + $0x160] ss:$16 sps:$4 sm:$0xff]   ;;  %v15761_v47 = vld [vmem:[%s18372_s12 + $0x184] ss:$16 sps:$4 sm:$0xff]  }
 0x857   : > { %v19455_v24 = vpop.eup %15951  ;;  %15957 = vpow2.f32 %v5666_v36  ;;  %6609 = vmatpush1.bf16.msra.mxu0 %v15711_v32  ;;  %v15759_v36 = vld [vmem:[%s18372_s12 + $0x180] ss:$16 sps:$4 sm:$0xff]  }
 0x858   : > { %v5668_v7 = vsel %vm5643_vm0, %v19455_v24, 0.0  ;;  %6610 = vmatprep.subr.bf16.mxu0 %v15719_v2 }
 0x859   : > { %v19459_v55 = vpop.eup %15953  ;;  %5669 = vadd.xlane.f32.xlu0 %v5668_v7  ;;  %v15767_v7 = vld [vmem:[%s18372_s12 + $0x1a4] ss:$16 sps:$4 sm:$0xff]  }
 0x85a   : > { %v5671_v18 = vsel %vm5643_vm0, %v19459_v55, 0.0 }
 0x85b   : > { %5672 = vadd.xlane.f32.xlu1 %v5671_v18  ;;  %6611 = vmatpush1.bf16.msra.mxu0 %v15717_v46  ;;  %v15765_v18 = vld [vmem:[%s18372_s12 + $0x1a0] ss:$16 sps:$4 sm:$0xff]  }
 0x85c   : > { %6612 = vmatprep.subr.bf16.mxu0 %v15725_v56 }
 0x85f   : > { %v19463_v9 = vpop.eup %15955  ;;  %6613 = vmatpush1.bf16.msra.mxu0 %v15723_v39 }
 0x860   : > { %v5674_v25 = vsel %vm5643_vm0, %v19463_v9, 0.0  ;;  %6614 = vmatprep.subr.bf16.mxu0 %v15731_v29 }
 0x861   : > { %v19467_v26 = vpop.eup %15957  ;;  %5675 = vadd.xlane.f32.xlu0 %v5674_v25  ;;  %v15773_v25 = vld [vmem:[%s18372_s12 + $0x1c4] ss:$16 sps:$4 sm:$0xff]  }
 0x862   : > { %v5677_v40 = vsel %vm5643_vm0, %v19467_v26, 0.0 }
 0x863   : > { %5678 = vadd.xlane.f32.xlu1 %v5677_v40  ;;  %6615 = vmatpush1.bf16.msra.mxu0 %v15729_v30  ;;  %v15771_v40 = vld [vmem:[%s18372_s12 + $0x1c0] ss:$16 sps:$4 sm:$0xff]   ;;  %v15690_v30 = vld [vmem:[%s18372_s12 + $0x8] ss:$16 sps:$4 sm:$0xff]  }
 0x864   : > { %6616 = vmatprep.subr.bf16.mxu0 %v15737_v60  ;;  %v15696_v60 = vld [vmem:[%s18372_s12 + $0x28] ss:$16 sps:$4 sm:$0xff]  }
 0x867   : > { %6617 = vmatpush1.bf16.msra.mxu0 %v15735_v50  ;;  %v15704_v50 = vld [vmem:[%s18372_s12 + $0x4c] ss:$16 sps:$4 sm:$0xff]  }
 0x868   : > { %6618 = vmatprep.subr.bf16.mxu0 %v15743_v8 }
 0x86b   : > { %6619 = vmatpush1.bf16.msra.mxu0 %v15741_v3 }
 0x86c   : > { %6620 = vmatprep.subr.bf16.mxu0 %v15749_v6  ;;  %v15702_v6 = vld [vmem:[%s18372_s12 + $0x48] ss:$16 sps:$4 sm:$0xff]  }
 0x86f   : > { %6621 = vmatpush1.bf16.msra.mxu0 %v15747_v12  ;;  %v15710_v12 = vld [vmem:[%s18372_s12 + $0x6c] ss:$16 sps:$4 sm:$0xff]  }
 0x870   : > { %6622 = vmatprep.subr.bf16.mxu0 %v15755_v38  ;;  %v15716_v38 = vld [vmem:[%s18372_s12 + $0x8c] ss:$16 sps:$4 sm:$0xff]  }
 0x873   : > { %6623 = vmatpush1.bf16.msra.mxu0 %v15753_v17  ;;  %v15714_v17 = vld [vmem:[%s18372_s12 + $0x88] ss:$16 sps:$4 sm:$0xff]  }
 0x874   : > { %6624 = vmatprep.subr.bf16.mxu0 %v15761_v47  ;;  %v15722_v47 = vld [vmem:[%s18372_s12 + $0xac] ss:$16 sps:$4 sm:$0xff]  }
 0x877   : > { %6625 = vmatpush1.bf16.msra.mxu0 %v15759_v36  ;;  %v15720_v36 = vld [vmem:[%s18372_s12 + $0xa8] ss:$16 sps:$4 sm:$0xff]  }
 0x878   : > { %6626 = vmatprep.subr.bf16.mxu0 %v15767_v7  ;;  %v15728_v7 = vld [vmem:[%s18372_s12 + $0xcc] ss:$16 sps:$4 sm:$0xff]  }
 0x87b   : > { %6627 = vmatpush1.bf16.msra.mxu0 %v15765_v18  ;;  %v15726_v18 = vld [vmem:[%s18372_s12 + $0xc8] ss:$16 sps:$4 sm:$0xff]  }
 0x87c   : > { %6628 = vmatprep.subr.bf16.mxu0 %v15773_v25  ;;  %v15734_v25 = vld [vmem:[%s18372_s12 + $0xec] ss:$16 sps:$4 sm:$0xff]  }
 0x87f   : > { %6629 = vmatpush1.bf16.msra.mxu0 %v15771_v40  ;;  %v15732_v40 = vld [vmem:[%s18372_s12 + $0xe8] ss:$16 sps:$4 sm:$0xff]  }
 0x8e6   : > { %v5670_v10 = vpop.xlane.xlu0 %5669 }
 0x8e7   : > { %15959 = vrcp.f32 %v5670_v10  ;;  %v15740_v10 = vld [vmem:[%s18372_s12 + $0x10c] ss:$16 sps:$4 sm:$0xff]  }
 0x8e8   : > { %v5673_v61 = vpop.xlane.xlu1 %5672 }
 0x8e9   : > { %15961 = vrcp.f32 %v5673_v61  ;;  %v15738_v61 = vld [vmem:[%s18372_s12 + $0x108] ss:$16 sps:$4 sm:$0xff]  }
 0x8ee   : > { %v5676_v53 = vpop.xlane.xlu0 %5675 }
 0x8ef   : > { %15963 = vrcp.f32 %v5676_v53  ;;  %v15746_v53 = vld [vmem:[%s18372_s12 + $0x12c] ss:$16 sps:$4 sm:$0xff]  }
 0x8f0   : > { %v5679_v5 = vpop.xlane.xlu1 %5678 }
 0x8f1   : > { %v15960_v23 = vpop.eup %15959  ;;  %15965 = vrcp.f32 %v5679_v5  ;;  %v15744_v5 = vld [vmem:[%s18372_s12 + $0x128] ss:$16 sps:$4 sm:$0xff]  }
 0x8f2   : > { %v5684_v62 = vmul.f32 %v15960_v23, %v19455_v24  ;;  %v15752_v23 = vld [vmem:[%s18372_s12 + $0x14c] ss:$16 sps:$4 sm:$0xff]  }
 0x8f3   : > { %v15962_v49 = vpop.eup %15961 }
 0x8f4   : > { %v5685_v51 = vmul.f32 %v15962_v49, %v19459_v55  ;;  %v6828_v46 = vsel %vm5643_vm0, %v5684_v62, 0.0  ;;  %v15692_v55 = vld [vmem:[%s18372_s12 + $0xc] ss:$16 sps:$4 sm:$0xff]   ;;  %v15750_v49 = vld [vmem:[%s18372_s12 + $0x148] ss:$16 sps:$4 sm:$0xff]  }
 0x8f6   : > { %v5688_v28 = vpack.c.bf16 %v5685_v51, %v5684_v62  ;;  %v6829_v32 = vsel %vm5643_vm0, %v5685_v51, 0.0  ;;  %v15758_v62 = vld [vmem:[%s18372_s12 + $0x16c] ss:$16 sps:$4 sm:$0xff]   ;;  %v15756_v51 = vld [vmem:[%s18372_s12 + $0x168] ss:$16 sps:$4 sm:$0xff]  }
 0x8f7   : > { %v6830_v39 = vadd.f32 %v6829_v32, %v6828_v46  ;;  %v15762_v32 = vld [vmem:[%s18372_s12 + $0x188] ss:$16 sps:$4 sm:$0xff]  }
 0x8f8   : > { %13612 = vmatmul.mubr.msk.bf16.vlgmr.msra.gmra.mrb[32].mxu1 %vm5643_vm0, %v5688_v28  ;;  %v15768_v46 = vld [vmem:[%s18372_s12 + $0x1a8] ss:$16 sps:$4 sm:$0xff]  }
 0x8f9   : > { %v15964_v2 = vpop.eup %15963  ;;  %5750 = vmatpush1.bf16.msra.mxu1 %v5531_v34  ;;  %5738 = vmatprep.mubr.bf16.mxu1 %v17643_v33 }
 0x8fa   : > { %5751 = vmatprep.subr.bf16.mxu1 %v5544_v41  ;;  %v5686_v24 = vmul.f32 %v15964_v2, %v19463_v9  ;;  %v15770_v2 = vld [vmem:[%s18372_s12 + $0x1ac] ss:$16 sps:$4 sm:$0xff]  }
 0x8fb   : > { %v15966_v56 = vpop.eup %15965 }
 0x8fc   : > { %v5687_v29 = vmul.f32 %v15966_v56, %v19467_v26  ;;  %v6831_v1 = vsel %vm5643_vm0, %v5686_v24, 0.0  ;;  %v15777_v56 = vld [vmem:[%s18372_s12 + $0x1e0] ss:$16 sps:$4 sm:$0xff]  }
 0x8fd   : > { %5752 = vmatpush1.bf16.msra.mxu1 %v5543_v16  ;;  %v6832_v63 = vadd.f32 %v6831_v1, %v6830_v39  ;;  %v15779_v39 = vld [vmem:[%s18372_s12 + $0x1e4] ss:$16 sps:$4 sm:$0xff]   ;;  %v15782_v1 = vld [vmem:[%s18372_s12 + $0x1ec] ss:$16 sps:$4 sm:$0xff]  }
 0x8fe   : > { %v5689_v34 = vpack.c.bf16 %v5687_v29, %v5686_v24  ;;  %v6833_v4 = vsel %vm5643_vm0, %v5687_v29, 0.0  ;;  %6706 = vmatprep.subr.bf16.mxu1 %v15692_v55  ;;  %v15776_v24 = vld [vmem:[%s18372_s12 + $0x1cc] ss:$16 sps:$4 sm:$0xff]   ;;  %v15774_v55 = vld [vmem:[%s18372_s12 + $0x1c8] ss:$16 sps:$4 sm:$0xff]   ;;  %6630 = vmatprep.subr.bf16.mxu0 %v15779_v39 }
 0x8ff   : > { %v6834_v44 = vadd.f32 %v6833_v4, %v6832_v63  ;;  %v15780_v29 = vld [vmem:[%s18372_s12 + $0x1e8] ss:$16 sps:$4 sm:$0xff]   ;;  %6631 = vmatpush1.bf16.msra.mxu0 %v15777_v56  ;;  %v15785_v63 = vld [vmem:[%s18372_s12 + $0x204] ss:$16 sps:$4 sm:$0xff]   ;;  %v15813_v39 = vld [vmem:[%s18372_s12 + $0x2a0] ss:$16 sps:$4 sm:$0xff]  }
 0x900   : > { %13613 = vmatmul.mubr.msk.bf16.gmra.mrb[36].mxu1 %vm5643_vm0, %v5689_v34  ;;  %6653 = vmatprep.subr.bf16.mxu0 %v15785_v63  ;;  %v15821_v63 = vld [vmem:[%s18372_s12 + $0x2c4] ss:$16 sps:$4 sm:$0xff]  }
 0x901   : > { %v6835_v41 = vrot.slane %v6834_v44, 4  ;;  %5781 = vmatprep.mubr.bf16.mxu1 %v17643_v33 }
 0x903   : > { %v6836_v9 = vadd.f32 %v6835_v41, %v6834_v44 }
 0x905   : > { %v6837_v26 = vrot.slane %v6836_v9, 2 }
 0x907   : > { %v6838_v48 = vadd.f32 %v6837_v26, %v6836_v9 }
 0x908   : > { %13614 = vmatmul.mubr.msk.bf16.vlgmr.msra.gmra.mrb[40].mxu1 %vm5643_vm0, %v5688_v28  ;;  %v15764_v28 = vld [vmem:[%s18372_s12 + $0x18c] ss:$16 sps:$4 sm:$0xff]  }
 0x909   : > { %v6839_v16 = vrot.slane %v6838_v48, 1  ;;  %5791 = vmatprep.mubr.bf16.mxu1 %v17643_v33  ;;  %6707 = vmatpush1.bf16.msra.mxu1 %v15690_v30  ;;  %v15708_v33 = vld [vmem:[%s18372_s12 + $0x68] ss:$16 sps:$4 sm:$0xff]  }
 0x90a   : > { %6708 = vmatprep.subr.bf16.mxu1 %v15698_v59  ;;  %v15783_v59 = vld [vmem:[%s18372_s12 + $0x200] ss:$16 sps:$4 sm:$0xff]  }
 0x90b   : > { %v6840_v8 = vadd.f32 %v6839_v16, %v6838_v48  ;;  %v15786_v48 = vld [vmem:[%s18372_s12 + $0x208] ss:$16 sps:$4 sm:$0xff]   ;;  %v15791_v16 = vld [vmem:[%s18372_s12 + $0x224] ss:$16 sps:$4 sm:$0xff]  }
 0x90d   : > { %v6842_v3 = vmul.f32 0.03125, %v6840_v8  ;;  %6709 = vmatpush1.bf16.msra.mxu1 %v15696_v60  ;;  %v15794_v60 = vld [vmem:[%s18372_s12 + $0x22c] ss:$16 sps:$4 sm:$0xff]   ;;  %v15789_v8 = vld [vmem:[%s18372_s12 + $0x220] ss:$16 sps:$4 sm:$0xff]  }
 0x90e   : > { %6710 = vmatprep.subr.bf16.mxu1 %v15704_v50 }
 0x90f   : > { %6845 = vst.msk [vmem:[%s18431_s2] sm:$0x1] %vm6844_vm1, %v6842_v3  ;;  %v15792_v3 = vld [vmem:[%s18372_s12 + $0x228] ss:$16 sps:$4 sm:$0xff]  }
 0x910   : > { %13615 = vmatmul.mubr.msk.bf16.gmra.mrb[44].mxu1 %vm5643_vm0, %v5689_v34  ;;  %v15788_v34 = vld [vmem:[%s18372_s12 + $0x20c] ss:$16 sps:$4 sm:$0xff]  }
 0x911   : > { %6711 = vmatpush1.bf16.msra.mxu1 %v15702_v6 }
 0x912   : > { %6712 = vmatprep.subr.bf16.mxu1 %v15710_v12  ;;  %v15797_v12 = vld [vmem:[%s18372_s12 + $0x244] ss:$16 sps:$4 sm:$0xff]  }
 0x915   : > { %6713 = vmatpush1.bf16.msra.mxu1 %v15708_v33  ;;  %v15800_v33 = vld [vmem:[%s18372_s12 + $0x24c] ss:$16 sps:$4 sm:$0xff]  }
 0x916   : > { %6714 = vmatprep.subr.bf16.mxu1 %v15716_v38 }
 0x919   : > { %6715 = vmatpush1.bf16.msra.mxu1 %v15714_v17 }
 0x91a   : > { %6716 = vmatprep.subr.bf16.mxu1 %v15722_v47 }
 0x91d   : > { %6717 = vmatpush1.bf16.msra.mxu1 %v15720_v36 }
 0x91e   : > { %6718 = vmatprep.subr.bf16.mxu1 %v15728_v7  ;;  %v15795_v7 = vld [vmem:[%s18372_s12 + $0x240] ss:$16 sps:$4 sm:$0xff]  }
 0x921   : > { %6719 = vmatpush1.bf16.msra.mxu1 %v15726_v18  ;;  %v15798_v18 = vld [vmem:[%s18372_s12 + $0x248] ss:$16 sps:$4 sm:$0xff]  }
 0x922   : > { %6720 = vmatprep.subr.bf16.mxu1 %v15734_v25  ;;  %v15803_v25 = vld [vmem:[%s18372_s12 + $0x264] ss:$16 sps:$4 sm:$0xff]  }
 0x925   : > { %6721 = vmatpush1.bf16.msra.mxu1 %v15732_v40  ;;  %v15806_v40 = vld [vmem:[%s18372_s12 + $0x26c] ss:$16 sps:$4 sm:$0xff]  }
 0x926   : > { %6722 = vmatprep.subr.bf16.mxu1 %v15740_v10 }
 0x929   : > { %6723 = vmatpush1.bf16.msra.mxu1 %v15738_v61  ;;  %v15801_v61 = vld [vmem:[%s18372_s12 + $0x260] ss:$16 sps:$4 sm:$0xff]  }
 0x92a   : > { %6724 = vmatprep.subr.bf16.mxu1 %v15746_v53  ;;  %v15804_v53 = vld [vmem:[%s18372_s12 + $0x268] ss:$16 sps:$4 sm:$0xff]  }
 0x92d   : > { %6725 = vmatpush1.bf16.msra.mxu1 %v15744_v5 }
 0x92e   : > { %6726 = vmatprep.subr.bf16.mxu1 %v15752_v23  ;;  %v15809_v23 = vld [vmem:[%s18372_s12 + $0x284] ss:$16 sps:$4 sm:$0xff]  }
 0x931   : > { %6727 = vmatpush1.bf16.msra.mxu1 %v15750_v49  ;;  %v15812_v49 = vld [vmem:[%s18372_s12 + $0x28c] ss:$16 sps:$4 sm:$0xff]  }
 0x932   : > { %6728 = vmatprep.subr.bf16.mxu1 %v15758_v62 }
 0x935   : > { %6729 = vmatpush1.bf16.msra.mxu1 %v15756_v51 }
 0x936   : > { %6730 = vmatprep.subr.bf16.mxu1 %v15764_v28 }
 0x939   : > { %6731 = vmatpush1.bf16.msra.mxu1 %v15762_v32 }
 0x93a   : > { %6732 = vmatprep.subr.bf16.mxu1 %v15770_v2  ;;  %v15807_v2 = vld [vmem:[%s18372_s12 + $0x280] ss:$16 sps:$4 sm:$0xff]  }
 0x93d   : > { %6733 = vmatpush1.bf16.msra.mxu1 %v15768_v46  ;;  %v15810_v46 = vld [vmem:[%s18372_s12 + $0x288] ss:$16 sps:$4 sm:$0xff]  }
 0x93e   : > { %6734 = vmatprep.subr.bf16.mxu1 %v15776_v24  ;;  %v15815_v24 = vld [vmem:[%s18372_s12 + $0x2a4] ss:$16 sps:$4 sm:$0xff]  }
 0x941   : > { %6735 = vmatpush1.bf16.msra.mxu1 %v15774_v55  ;;  %v15818_v55 = vld [vmem:[%s18372_s12 + $0x2ac] ss:$16 sps:$4 sm:$0xff]  }
 0x942   : > { %6736 = vmatprep.subr.bf16.mxu1 %v15782_v1 }
 0x945   : > { %6737 = vmatpush1.bf16.msra.mxu1 %v15780_v29  ;;  %v15816_v29 = vld [vmem:[%s18372_s12 + $0x2a8] ss:$16 sps:$4 sm:$0xff]  }
 0x946   : > { %6759 = vmatprep.subr.bf16.mxu1 %v15788_v34  ;;  %v15824_v34 = vld [vmem:[%s18372_s12 + $0x2cc] ss:$16 sps:$4 sm:$0xff]  }
 0x9cb   : > { %v5730_v4 = vpop.f32.mrb[32].mxu1 }
 0x9cc   : > { %v5732_v44 = vpop.f32.mrb[33].mxu1 }
 0x9cd   : > { %v5734_v41 = vpop.f32.mrb[34].mxu1 }
 0x9ce   : > { %v5802_v9 = vpack.c.bf16 %v5734_v41, %v5730_v4  ;;  %v5736_v26 = vpop.f32.mrb[35].mxu1 }
 0x9cf   : > { %v5803_v30 = vpack.c.bf16 %v5736_v26, %v5732_v44  ;;  %v15819_v26 = vld [vmem:[%s18372_s12 + $0x2c0] ss:$16 sps:$4 sm:$0xff]  }
 0x9d1   : > { %6632 = vmatprep.mubr.bf16.mxu0 %v5803_v30  ;;  %6738 = vmatprep.mubr.bf16.mxu1 %v5803_v30  ;;  %v15822_v30 = vld [vmem:[%s18372_s12 + $0x2c8] ss:$16 sps:$4 sm:$0xff]  }
 0x9d2   : > { %6633 = vmatmul.mubr.bf16.vlgmr.msra.gmra.mrb[40].mxu0 %v5802_v9  ;;  %6739 = vmatmul.mubr.bf16.vlgmr.msra.gmra.mrb[48].mxu1 %v5802_v9 }
 0x9d3   : > { %6654 = vmatpush1.bf16.msra.mxu0 %v15783_v59  ;;  %6760 = vmatpush1.bf16.msra.mxu1 %v15786_v48  ;;  %v5740_v50 = vpop.f32.mrb[36].mxu1  ;;  %v15827_v59 = vld [vmem:[%s18372_s12 + $0x2e4] ss:$16 sps:$4 sm:$0xff]   ;;  %v15830_v48 = vld [vmem:[%s18372_s12 + $0x2ec] ss:$16 sps:$4 sm:$0xff]  }
 0x9d4   : > { %v5742_v6 = vpop.f32.mrb[37].mxu1  ;;  %6655 = vmatprep.subr.bf16.mxu0 %v15791_v16  ;;  %6761 = vmatprep.subr.bf16.mxu1 %v15794_v60  ;;  %v15825_v16 = vld [vmem:[%s18372_s12 + $0x2e0] ss:$16 sps:$4 sm:$0xff]   ;;  %v15828_v60 = vld [vmem:[%s18372_s12 + $0x2e8] ss:$16 sps:$4 sm:$0xff]  }
 0x9d5   : > { %v5744_v38 = vpop.f32.mrb[38].mxu1 }
 0x9d6   : > { %v5806_v17 = vpack.c.bf16 %v5744_v38, %v5740_v50  ;;  %v5746_v47 = vpop.f32.mrb[39].mxu1  ;;  %v15833_v50 = vld [vmem:[%s18372_s12 + $0x304] ss:$16 sps:$4 sm:$0xff]   ;;  %v15837_v38 = vld [vmem:[%s18372_s12 + $0x320] ss:$16 sps:$4 sm:$0xff]  }
 0x9d7   : > { %v5807_v36 = vpack.c.bf16 %v5746_v47, %v5742_v6  ;;  %6656 = vmatpush1.bf16.msra.mxu0 %v15789_v8  ;;  %6762 = vmatpush1.bf16.msra.mxu1 %v15792_v3  ;;  %v15836_v8 = vld [vmem:[%s18372_s12 + $0x30c] ss:$16 sps:$4 sm:$0xff]   ;;  %v15831_v3 = vld [vmem:[%s18372_s12 + $0x300] ss:$16 sps:$4 sm:$0xff]   ;;  %v15834_v6 = vld [vmem:[%s18372_s12 + $0x308] ss:$16 sps:$4 sm:$0xff]  }
 0x9d8   : > { %6657 = vmatprep.subr.bf16.mxu0 %v15797_v12  ;;  %6763 = vmatprep.subr.bf16.mxu1 %v15800_v33  ;;  %v15839_v12 = vld [vmem:[%s18372_s12 + $0x324] ss:$16 sps:$4 sm:$0xff]   ;;  %v15842_v33 = vld [vmem:[%s18372_s12 + $0x32c] ss:$16 sps:$4 sm:$0xff]  }
 0x9d9   : > { %6642 = vmatprep.mubr.bf16.mxu0 %v5807_v36  ;;  %6748 = vmatprep.mubr.bf16.mxu1 %v5807_v36  ;;  %v15845_v47 = vld [vmem:[%s18372_s12 + $0x344] ss:$16 sps:$4 sm:$0xff]   ;;  %v15848_v36 = vld [vmem:[%s18372_s12 + $0x34c] ss:$16 sps:$4 sm:$0xff]  }
 0x9da   : > { %6643 = vmatmul.mubr.bf16.gmra.mrb[44].mxu0 %v5806_v17  ;;  %6749 = vmatmul.mubr.bf16.gmra.mrb[52].mxu1 %v5806_v17  ;;  %v15840_v17 = vld [vmem:[%s18372_s12 + $0x328] ss:$16 sps:$4 sm:$0xff]  }
 0x9db   : > { %6658 = vmatpush1.bf16.msra.mxu0 %v15795_v7  ;;  %6764 = vmatpush1.bf16.msra.mxu1 %v15798_v18  ;;  %v5783_v10 = vpop.f32.mrb[40].mxu1  ;;  %v15843_v7 = vld [vmem:[%s18372_s12 + $0x340] ss:$16 sps:$4 sm:$0xff]   ;;  %v15846_v18 = vld [vmem:[%s18372_s12 + $0x348] ss:$16 sps:$4 sm:$0xff]  }
 0x9dc   : > { %v5785_v5 = vpop.f32.mrb[41].mxu1  ;;  %6659 = vmatprep.subr.bf16.mxu0 %v15803_v25  ;;  %6765 = vmatprep.subr.bf16.mxu1 %v15806_v40  ;;  %v15851_v25 = vld [vmem:[%s18372_s12 + $0x364] ss:$16 sps:$4 sm:$0xff]   ;;  %v15854_v40 = vld [vmem:[%s18372_s12 + $0x36c] ss:$16 sps:$4 sm:$0xff]  }
 0x9dd   : > { %v5787_v62 = vpop.f32.mrb[42].mxu1 }
 0x9de   : > { %v19579_v51 = vpack.c.bf16 %v5787_v62, %v5783_v10  ;;  %v5789_v28 = vpop.f32.mrb[43].mxu1  ;;  %v15849_v10 = vld [vmem:[%s18372_s12 + $0x360] ss:$16 sps:$4 sm:$0xff]   ;;  %v15863_v62 = vld [vmem:[%s18372_s12 + $0x3a4] ss:$16 sps:$4 sm:$0xff]  }
 0x9df   : > { %v5805_v32 = vpack.c.bf16 %v5789_v28, %v5785_v5  ;;  %6660 = vmatpush1.bf16.msra.mxu0 %v15801_v61  ;;  %6766 = vmatpush1.bf16.msra.mxu1 %v15804_v53  ;;  %v15852_v61 = vld [vmem:[%s18372_s12 + $0x368] ss:$16 sps:$4 sm:$0xff]   ;;  %v15857_v53 = vld [vmem:[%s18372_s12 + $0x384] ss:$16 sps:$4 sm:$0xff]   ;;  %v15860_v5 = vld [vmem:[%s18372_s12 + $0x38c] ss:$16 sps:$4 sm:$0xff]  }
 0x9e0   : > { %6661 = vmatprep.subr.bf16.mxu0 %v15809_v23  ;;  %6767 = vmatprep.subr.bf16.mxu1 %v15812_v49  ;;  %v15855_v23 = vld [vmem:[%s18372_s12 + $0x380] ss:$16 sps:$4 sm:$0xff]   ;;  %v15858_v49 = vld [vmem:[%s18372_s12 + $0x388] ss:$16 sps:$4 sm:$0xff]   ;;  %v15866_v28 = vld [vmem:[%s18372_s12 + $0x3ac] ss:$16 sps:$4 sm:$0xff]  }
 0x9e1   : > { %6685 = vmatprep.mubr.bf16.mxu0 %v5805_v32  ;;  %6791 = vmatprep.mubr.bf16.mxu1 %v5805_v32  ;;  %v15861_v32 = vld [vmem:[%s18372_s12 + $0x3a0] ss:$16 sps:$4 sm:$0xff]  }
 0x9e3   : > { %6662 = vmatpush1.bf16.msra.mxu0 %v15807_v2  ;;  %6768 = vmatpush1.bf16.msra.mxu1 %v15810_v46  ;;  %v5793_v56 = vpop.f32.mrb[44].mxu1  ;;  %v15864_v2 = vld [vmem:[%s18372_s12 + $0x3a8] ss:$16 sps:$4 sm:$0xff]   ;;  %v15869_v46 = vld [vmem:[%s18372_s12 + $0x3c4] ss:$16 sps:$4 sm:$0xff]  }
 0x9e4   : > { %v5795_v1 = vpop.f32.mrb[45].mxu1  ;;  %6663 = vmatprep.subr.bf16.mxu0 %v15815_v24  ;;  %6769 = vmatprep.subr.bf16.mxu1 %v15818_v55  ;;  %v15872_v24 = vld [vmem:[%s18372_s12 + $0x3cc] ss:$16 sps:$4 sm:$0xff]   ;;  %v15867_v55 = vld [vmem:[%s18372_s12 + $0x3c0] ss:$16 sps:$4 sm:$0xff]  }
 0x9e5   : > { %v5797_v4 = vpop.f32.mrb[46].mxu1 }
 0x9e6   : > { %v19589_v44 = vpack.c.bf16 %v5797_v4, %v5793_v56  ;;  %v5799_v41 = vpop.f32.mrb[47].mxu1  ;;  %v15870_v56 = vld [vmem:[%s18372_s12 + $0x3c8] ss:$16 sps:$4 sm:$0xff]  }
 0x9e7   : > { %v19591_v9 = vpack.c.bf16 %v5799_v41, %v5795_v1  ;;  %6664 = vmatpush1.bf16.msra.mxu0 %v15813_v39  ;;  %6770 = vmatpush1.bf16.msra.mxu1 %v15816_v29  ;;  %v15875_v39 = vld [vmem:[%s18372_s12 + $0x3e4] ss:$16 sps:$4 sm:$0xff]   ;;  %v15878_v29 = vld [vmem:[%s18372_s12 + $0x3ec] ss:$16 sps:$4 sm:$0xff]   ;;  %v15873_v1 = vld [vmem:[%s18372_s12 + $0x3e0] ss:$16 sps:$4 sm:$0xff]  }
 0x9e8   : > { %6665 = vmatprep.subr.bf16.mxu0 %v15821_v63  ;;  %6771 = vmatprep.subr.bf16.mxu1 %v15824_v34  ;;  %v15876_v63 = vld [vmem:[%s18372_s12 + $0x3e8] ss:$16 sps:$4 sm:$0xff]   ;;  %v5938_v34 = vld [vmem:[%s964_s4] sm:$0xf] }
 0x9e9   : > { %v5943_v4 = vrot.slane %v5938_v34, %v18580_v11  ;;  %v5951_v41 = vrot.slane %v5938_v34, %v18585_v13 }
 0x9eb   : > { %6666 = vmatpush1.bf16.msra.mxu0 %v15819_v26  ;;  %6772 = vmatpush1.bf16.msra.mxu1 %v15822_v30  ;;  %v5947_v26 = vrot.slane %v5938_v34, %v18588_v14 }
 0x9ec   : > { %6667 = vmatprep.subr.bf16.mxu0 %v15827_v59  ;;  %6773 = vmatprep.subr.bf16.mxu1 %v15830_v48 }
 0x9ef   : > { %6668 = vmatpush1.bf16.msra.mxu0 %v15825_v16  ;;  %6774 = vmatpush1.bf16.msra.mxu1 %v15828_v60 }
 0x9f0   : > { %6669 = vmatprep.subr.bf16.mxu0 %v15833_v50  ;;  %6775 = vmatprep.subr.bf16.mxu1 %v15836_v8 }
 0x9f3   : > { %6670 = vmatpush1.bf16.msra.mxu0 %v15831_v3  ;;  %6776 = vmatpush1.bf16.msra.mxu1 %v15834_v6 }
 0x9f4   : > { %6671 = vmatprep.subr.bf16.mxu0 %v15839_v12  ;;  %6777 = vmatprep.subr.bf16.mxu1 %v15842_v33 }
 0x9f7   : > { %6672 = vmatpush1.bf16.msra.mxu0 %v15837_v38  ;;  %6778 = vmatpush1.bf16.msra.mxu1 %v15840_v17 }
 0x9f8   : > { %6673 = vmatprep.subr.bf16.mxu0 %v15845_v47  ;;  %6779 = vmatprep.subr.bf16.mxu1 %v15848_v36 }
 0x9fb   : > { %6674 = vmatpush1.bf16.msra.mxu0 %v15843_v7  ;;  %6780 = vmatpush1.bf16.msra.mxu1 %v15846_v18 }
 0x9fc   : > { %6675 = vmatprep.subr.bf16.mxu0 %v15851_v25  ;;  %6781 = vmatprep.subr.bf16.mxu1 %v15854_v40 }
 0x9ff   : > { %6676 = vmatpush1.bf16.msra.mxu0 %v15849_v10  ;;  %6782 = vmatpush1.bf16.msra.mxu1 %v15852_v61 }
 0xa00   : > { %6677 = vmatprep.subr.bf16.mxu0 %v15857_v53  ;;  %6783 = vmatprep.subr.bf16.mxu1 %v15860_v5 }
 0xa03   : > { %6678 = vmatpush1.bf16.msra.mxu0 %v15855_v23  ;;  %6784 = vmatpush1.bf16.msra.mxu1 %v15858_v49 }
 0xa04   : > { %6679 = vmatprep.subr.bf16.mxu0 %v15863_v62  ;;  %6785 = vmatprep.subr.bf16.mxu1 %v15866_v28 }
 0xa07   : > { %6680 = vmatpush1.bf16.msra.mxu0 %v15861_v32  ;;  %6786 = vmatpush1.bf16.msra.mxu1 %v15864_v2 }
 0xa08   : > { %6681 = vmatprep.subr.bf16.mxu0 %v15869_v46  ;;  %6787 = vmatprep.subr.bf16.mxu1 %v15872_v24 }
 0xa0b   : > { %6682 = vmatpush1.bf16.msra.mxu0 %v15867_v55  ;;  %6788 = vmatpush1.bf16.msra.mxu1 %v15870_v56 }
 0xa0c   : > { %6683 = vmatprep.subr.bf16.mxu0 %v15875_v39  ;;  %6789 = vmatprep.subr.bf16.mxu1 %v15878_v29 }
 0xa0f   : > { %6684 = vmatpush1.bf16.msra.mxu0 %v15873_v1  ;;  %6790 = vmatpush1.bf16.msra.mxu1 %v15876_v63 }
 0xa12   : > { %6686 = vmatmul.mubr.bf16.vlgmr.msra.gmra.mrb[40].mxu0 %v19579_v51  ;;  %6792 = vmatmul.mubr.bf16.vlgmr.msra.gmra.mrb[48].mxu1 %v19579_v51  ;;  %v5955_v51 = vrot.slane %v5938_v34, %v18591_v15 }
 0xa13   : > { %6695 = vmatprep.mubr.bf16.mxu0 %v19591_v9  ;;  %6801 = vmatprep.mubr.bf16.mxu1 %v19591_v9 }
 0xa1a   : > { %6696 = vmatmul.mubr.bf16.gmra.mrb[44].mxu0 %v19589_v44  ;;  %6802 = vmatmul.mubr.bf16.gmra.mrb[52].mxu1 %v19589_v44 }
 0xae5   : > { %v6687_v30 = vpop.f32.mrb[40].mxu0  ;;  %v6793_v59 = vpop.f32.mrb[48].mxu1 }
 0xae6   : > { %v14614_v48 = vadd.f32 %v6687_v30, %v5943_v4  ;;  %v6689_v16 = vpop.f32.mrb[41].mxu0  ;;  %v6795_v60 = vpop.f32.mrb[49].mxu1  ;;  %v14622_v9 = vadd.f32 %v6793_v59, %v5951_v41 }
 0xae7   : > { %v14615_v50 = vadd.f32 %v6689_v16, %v5947_v26  ;;  %v6691_v8 = vpop.f32.mrb[42].mxu0  ;;  %v6797_v3 = vpop.f32.mrb[50].mxu1  ;;  %v14623_v17 = vadd.f32 %v6795_v60, %v5955_v51 }
 0xae8   : > { %v6812_v44 = vadd.f32 %v14614_v48, %v18713_v35  ;;  %v14616_v6 = vadd.f32 %v6691_v8, %v5943_v4  ;;  %v6693_v12 = vpop.f32.mrb[43].mxu0  ;;  %v6799_v33 = vpop.f32.mrb[51].mxu1  ;;  %v14624_v47 = vadd.f32 %v6797_v3, %v5951_v41  ;;  %v6814_v18 = vadd.f32 %v14622_v9, %v18720_v0 }
 0xae9   : > { %v6813_v38 = vadd.f32 %v14615_v50, %v18716_v57  ;;  %v14617_v36 = vadd.f32 %v6693_v12, %v5947_v26  ;;  %v14625_v10 = vadd.f32 %v6799_v33, %v5955_v51  ;;  %v6815_v61 = vadd.f32 %v14623_v17, %v18729_v19 }
 0xaea   : > { %v6816_v7 = vadd.f32 %v14616_v6, %v18709_v21  ;;  %v6818_v35 = vadd.f32 %v14624_v47, %v18732_v27 }
 0xaeb   : > { %v6848_v25 = vadd.f32 %v6813_v38, %v6812_v44  ;;  %v6817_v40 = vadd.f32 %v14617_v36, %v18711_v22  ;;  %v6819_v22 = vadd.f32 %v14625_v10, %v18744_v42 }
 0xaed   : > { %v6853_v53 = vadd.f32 %v6817_v40, %v6816_v7  ;;  %v6697_v5 = vpop.f32.mrb[44].mxu0  ;;  %v6803_v23 = vpop.f32.mrb[52].mxu1  ;;  %v6849_v49 = vadd.f32 %v6848_v25, %v6814_v18 }
 0xaee   : > { %v14618_v57 = vadd.f32 %v6697_v5, %v5943_v4  ;;  %v6699_v62 = vpop.f32.mrb[45].mxu0  ;;  %v6805_v28 = vpop.f32.mrb[53].mxu1  ;;  %v14626_v32 = vadd.f32 %v6803_v23, %v5951_v41 }
 0xaef   : > { %v14619_v2 = vadd.f32 %v6699_v62, %v5947_v26  ;;  %v6701_v21 = vpop.f32.mrb[46].mxu0  ;;  %v6807_v46 = vpop.f32.mrb[54].mxu1  ;;  %v6850_v0 = vadd.f32 %v6849_v49, %v6815_v61  ;;  %v6854_v24 = vadd.f32 %v6853_v53, %v6818_v35  ;;  %v14627_v29 = vadd.f32 %v6805_v28, %v5955_v51 }
 0xaf0   : > { %v6820_v55 = vadd.f32 %v14618_v57, %v18742_v37  ;;  %v14620_v19 = vadd.f32 %v6701_v21, %v5943_v4  ;;  %v6703_v56 = vpop.f32.mrb[47].mxu0  ;;  %v6809_v27 = vpop.f32.mrb[55].mxu1  ;;  %v14628_v1 = vadd.f32 %v6807_v46, %v5951_v41  ;;  %v6822_v59 = vadd.f32 %v14626_v32, %v18754_v52 }
 0xaf1   : > { %v6821_v39 = vadd.f32 %v14619_v2, %v18747_v45  ;;  %v14621_v63 = vadd.f32 %v6703_v56, %v5947_v26  ;;  %6851 = vadd.xlane.f32.xlu0 %v6850_v0  ;;  %v6855_v30 = vadd.f32 %v6854_v24, %v6819_v22  ;;  %v14629_v42 = vadd.f32 %v6809_v27, %v5955_v51 }
 0xaf2   : > { %v6824_v34 = vadd.f32 %v14620_v19, %v18735_v31  ;;  %v6823_v37 = vadd.f32 %v14627_v29, %v18758_v20  ;;  %v6826_v4 = vadd.f32 %v14628_v1, %v18761_v54 }
 0xaf3   : > { %v6858_v48 = vadd.f32 %v6821_v39, %v6820_v55  ;;  %v6825_v16 = vadd.f32 %v14621_v63, %v18737_v43  ;;  %6856 = vadd.xlane.f32.xlu1 %v6855_v30  ;;  %v6827_v41 = vadd.f32 %v14629_v42, %v18766_v58 }
 0xaf5   : > { %v6863_v60 = vadd.f32 %v6825_v16, %v6824_v34  ;;  %v6859_v45 = vadd.f32 %v6858_v48, %v6822_v59 }
 0xaf7   : > { %v6860_v26 = vadd.f32 %v6859_v45, %v6823_v37  ;;  %v6864_v9 = vadd.f32 %v6863_v60, %v6826_v4  ;;  %v15881_v60 = vld [vmem:[%s18388_s25] sm:$0xff]  }
 0xaf8   : > { %v15882_v45 = vld [vmem:[%s18388_s25 + $0x80] sm:$0xff]  }
 0xaf9   : > { %6861 = vadd.xlane.f32.xlu0 %v6860_v26  ;;  %v6865_v31 = vadd.f32 %v6864_v9, %v6827_v41  ;;  %v15884_v26 = vld [vmem:[%s18388_s25 + $0xc8] sm:$0xff]  }
 0xafa   : > { %v15885_v9 = vld [vmem:[%s18388_s25 + $0x8] sm:$0xff]  }
 0xafb   : > { %6866 = vadd.xlane.f32.xlu1 %v6865_v31  ;;  %v15886_v31 = vld [vmem:[%s18388_s25 + $0x88] sm:$0xff]  }
 0xb7e   : > { %v6852_v50 = vpop.xlane.xlu0 %6851 }
 0xb7f   : > { %v6868_v52 = vmul.f32 0.001953125, %v6852_v50  ;;  %v15887_v50 = vld [vmem:[%s18388_s25 + $0x50] sm:$0xff]  }
 0xb80   : > { %v6857_v51 = vpop.xlane.xlu1 %6856 }
 0xb81   : > { %v19659_v8 = vsub.f32 %v6812_v44, %v6868_v52  ;;  %v19661_v43 = vsub.f32 %v6813_v38, %v6868_v52  ;;  %v19663_v3 = vsub.f32 %v6814_v18, %v6868_v52  ;;  %v6869_v20 = vmul.f32 0.001953125, %v6857_v51  ;;  %v15889_v51 = vld [vmem:[%s18388_s25 + $0x10] sm:$0xff]  }
 0xb82   : > { %v19665_v54 = vsub.f32 %v6815_v61, %v6868_v52  ;;  %v15888_v52 = vld [vmem:[%s18388_s25 + $0xd0] sm:$0xff]  }
 0xb83   : > { %v6888_v58 = vmul.f32 %v19659_v8, %v19659_v8  ;;  %v6889_v6 = vmul.f32 %v19661_v43, %v19661_v43  ;;  %v19671_v12 = vsub.f32 %v6816_v7, %v6869_v20  ;;  %v19673_v33 = vsub.f32 %v6817_v40, %v6869_v20 }
 0xb84   : > { %v19675_v44 = vsub.f32 %v6818_v35, %v6869_v20  ;;  %v6890_v38 = vmul.f32 %v19663_v3, %v19663_v3  ;;  %v19679_v36 = vsub.f32 %v6819_v22, %v6869_v20  ;;  %v6891_v7 = vmul.f32 %v19665_v54, %v19665_v54  ;;  %v15890_v20 = vld [vmem:[%s18388_s25 + $0x90] sm:$0xff]  }
 0xb85   : > { %v6904_v17 = vadd.f32 %v6889_v6, %v6888_v58  ;;  %v6892_v18 = vmul.f32 %v19671_v12, %v19671_v12  ;;  %v6893_v25 = vmul.f32 %v19673_v33, %v19673_v33  ;;  %v15891_v58 = vld [vmem:[%s18388_s25 + $0x58] sm:$0xff]  }
 0xb86   : > { %v6862_v47 = vpop.xlane.xlu0 %6861  ;;  %v6894_v35 = vmul.f32 %v19675_v44, %v19675_v44  ;;  %v6895_v62 = vmul.f32 %v19679_v36, %v19679_v36  ;;  %v15892_v6 = vld [vmem:[%s18388_s25 + $0xd8] sm:$0xff]  }
 0xb87   : > { %v6870_v10 = vmul.f32 0.001953125, %v6862_v47  ;;  %v6905_v40 = vadd.f32 %v6904_v17, %v6890_v38  ;;  %v6909_v53 = vadd.f32 %v6893_v25, %v6892_v18  ;;  %v15893_v38 = vld [vmem:[%s18388_s25 + $0x18] sm:$0xff]   ;;  %v15895_v47 = vld [vmem:[%s18388_s25 + $0x60] sm:$0xff]  }
 0xb88   : > { %v6867_v61 = vpop.xlane.xlu1 %6866  ;;  %v15894_v17 = vld [vmem:[%s18388_s25 + $0x98] sm:$0xff]   ;;  %v15896_v18 = vld [vmem:[%s18388_s25 + $0xe0] sm:$0xff]  }
 0xb89   : > { %v19689_v5 = vsub.f32 %v6820_v55, %v6870_v10  ;;  %v19691_v23 = vsub.f32 %v6821_v39, %v6870_v10  ;;  %v6871_v49 = vmul.f32 0.001953125, %v6867_v61  ;;  %v6906_v57 = vadd.f32 %v6905_v40, %v6891_v7  ;;  %v15897_v25 = vld [vmem:[%s18388_s25 + $0x20] sm:$0xff]   ;;  %v15899_v7 = vld [vmem:[%s18388_s25 + $0x68] sm:$0xff]  }
 0xb8a   : > { %v6910_v28 = vadd.f32 %v6909_v53, %v6894_v35  ;;  %v19695_v32 = vsub.f32 %v6822_v59, %v6870_v10  ;;  %v19697_v2 = vsub.f32 %v6823_v37, %v6870_v10  ;;  %v15879_v37 = vld [vmem:[%s18388_s25 + $0x40] sm:$0xff]   ;;  %v15900_v40 = vld [vmem:[%s18388_s25 + $0xe8] sm:$0xff]   ;;  %v15903_v53 = vld [vmem:[%s18388_s25 + $0x70] sm:$0xff]  }
 0xb8b   : > { %v19699_v21 = vsub.f32 %v6824_v34, %v6871_v49  ;;  %v19701_v46 = vsub.f32 %v6825_v16, %v6871_v49  ;;  %6907 = vadd.xlane.f32.xlu0 %v6906_v57  ;;  %v6896_v0 = vmul.f32 %v19689_v5, %v19689_v5  ;;  %v6897_v24 = vmul.f32 %v19691_v23, %v19691_v23  ;;  %v15898_v10 = vld [vmem:[%s18388_s25 + $0xa0] sm:$0xff]   ;;  %v15901_v61 = vld [vmem:[%s18388_s25 + $0x28] sm:$0xff]   ;;  %v15905_v57 = vld [vmem:[%s18388_s25 + $0x30] sm:$0xff]  }
 0xb8c   : > { %v6911_v22 = vadd.f32 %v6910_v28, %v6895_v62  ;;  %v6898_v55 = vmul.f32 %v19695_v32, %v19695_v32  ;;  %v19709_v19 = vsub.f32 %v6826_v4, %v6871_v49  ;;  %v19711_v27 = vsub.f32 %v6827_v41, %v6871_v49  ;;  %v15880_v4 = vld [vmem:[%s18388_s25 + $0xc0] sm:$0xff]   ;;  %v15883_v41 = vld [vmem:[%s18388_s25 + $0x48] sm:$0xff]   ;;  %14462 = vmatprep.subr.bf16.mxu0 %v15879_v37  ;;  %v15904_v49 = vld [vmem:[%s18388_s25 + $0xf0] sm:$0xff]  }
 0xb8d   : > { %v6914_v56 = vadd.f32 %v6897_v24, %v6896_v0  ;;  %v6900_v39 = vmul.f32 %v19699_v21, %v19699_v21  ;;  %v6901_v29 = vmul.f32 %v19701_v46, %v19701_v46  ;;  %v6899_v1 = vmul.f32 %v19697_v2, %v19697_v2  ;;  %14484 = vmatprep.subr.bf16.mxu1 %v15880_v4  ;;  %v15902_v35 = vld [vmem:[%s18388_s25 + $0xa8] sm:$0xff]   ;;  %v15906_v62 = vld [vmem:[%s18388_s25 + $0xb0] sm:$0xff]   ;;  %v15907_v28 = vld [vmem:[%s18388_s25 + $0x78] sm:$0xff]  }
 0xb8e   : > { %6912 = vadd.xlane.f32.xlu1 %v6911_v22  ;;  %v6902_v34 = vmul.f32 %v19709_v19, %v19709_v19  ;;  %v6903_v48 = vmul.f32 %v19711_v27, %v19711_v27  ;;  %14463 = vmatpush3.bf16.msra.mxu0 %v15881_v60  ;;  %v15908_v0 = vld [vmem:[%s18388_s25 + $0xf8] sm:$0xff]  }
 0xb8f   : > { %v6915_v63 = vadd.f32 %v6914_v56, %v6898_v55  ;;  %v6919_v30 = vadd.f32 %v6901_v29, %v6900_v39  ;;  %14485 = vmatpush3.bf16.msra.mxu1 %v15882_v45  ;;  %14464 = vmatprep.subr.bf16.mxu0 %v15883_v41  ;;  %v15909_v24 = vld [vmem:[%s18388_s25 + $0x38] sm:$0xff]  }
 0xb90   : > { %14486 = vmatprep.subr.bf16.mxu1 %v15884_v26  ;;  %v15910_v22 = vld [vmem:[%s18388_s25 + $0xb8] sm:$0xff]  }
 0xb91   : > { %v6916_v59 = vadd.f32 %v6915_v63, %v6899_v1  ;;  %v6920_v16 = vadd.f32 %v6919_v30, %v6902_v34  ;;  %v6847_v4 = vld [vmem:[#allocation18] sm:$0xf] }
 0xb92   : > { %14465 = vmatpush3.bf16.msra.mxu0 %v15885_v9 }
 0xb93   : > { %6917 = vadd.xlane.f32.xlu0 %v6916_v59  ;;  %v6921_v42 = vadd.f32 %v6920_v16, %v6903_v48  ;;  %14487 = vmatpush3.bf16.msra.mxu1 %v15886_v31 }
 0xb94   : > { %14466 = vmatprep.subr.bf16.mxu0 %v15887_v50  ;;  %14488 = vmatprep.subr.bf16.mxu1 %v15888_v52 }
 0xb95   : > { %6922 = vadd.xlane.f32.xlu1 %v6921_v42  ;;  %v6846_v42 = vld [vmem:[#allocation17] sm:$0xf] }
 0xb96   : > { %14467 = vmatpush3.bf16.msra.mxu0 %v15889_v51  ;;  %v6960_v60 = vrot.slane %v6846_v42, %v18588_v14  ;;  %v6968_v45 = vrot.slane %v6846_v42, %v18591_v15  ;;  %v6956_v41 = vrot.slane %v6846_v42, %v18580_v11  ;;  %v6964_v26 = vrot.slane %v6846_v42, %v18585_v13 }
 0xb97   : > { %14489 = vmatpush3.bf16.msra.mxu1 %v15890_v20  ;;  %14468 = vmatprep.subr.bf16.mxu0 %v15891_v58  ;;  %v6997_v20 = vrot.slane %v6847_v4, %v18588_v14  ;;  %v7005_v58 = vrot.slane %v6847_v4, %v18591_v15 }
 0xb98   : > { %14490 = vmatprep.subr.bf16.mxu1 %v15892_v6  ;;  %v6993_v6 = vrot.slane %v6847_v4, %v18580_v11 }
 0xb9a   : > { %14469 = vmatpush3.bf16.msra.mxu0 %v15893_v38  ;;  %v7001_v38 = vrot.slane %v6847_v4, %v18585_v13 }
 0xb9b   : > { %14491 = vmatpush3.bf16.msra.mxu1 %v15894_v17  ;;  %14470 = vmatprep.subr.bf16.mxu0 %v15895_v47 }
 0xb9c   : > { %14492 = vmatprep.subr.bf16.mxu1 %v15896_v18 }
 0xb9e   : > { %14471 = vmatpush3.bf16.msra.mxu0 %v15897_v25 }
 0xb9f   : > { %14493 = vmatpush3.bf16.msra.mxu1 %v15898_v10  ;;  %14472 = vmatprep.subr.bf16.mxu0 %v15899_v7 }
 0xba0   : > { %14494 = vmatprep.subr.bf16.mxu1 %v15900_v40 }
 0xba2   : > { %14473 = vmatpush3.bf16.msra.mxu0 %v15901_v61 }
 0xba3   : > { %14495 = vmatpush3.bf16.msra.mxu1 %v15902_v35  ;;  %14474 = vmatprep.subr.bf16.mxu0 %v15903_v53 }
 0xba4   : > { %14496 = vmatprep.subr.bf16.mxu1 %v15904_v49 }
 0xba6   : > { %14475 = vmatpush3.bf16.msra.mxu0 %v15905_v57 }
 0xba7   : > { %14497 = vmatpush3.bf16.msra.mxu1 %v15906_v62  ;;  %14476 = vmatprep.subr.bf16.mxu0 %v15907_v28 }
 0xba8   : > { %14498 = vmatprep.subr.bf16.mxu1 %v15908_v0 }
 0xbaa   : > { %14477 = vmatpush3.bf16.msra.mxu0 %v15909_v24 }
 0xbab   : > { %14499 = vmatpush3.bf16.msra.mxu1 %v15910_v22 }
 0xc18   : > { %v6908_v55 = vpop.xlane.xlu0 %6907 }
 0xc19   : > { %v6924_v56 = vmul.f32 0.001953125, %v6908_v55 }
 0xc1b   : > { %v6928_v39 = vadd.f32 1e-05, %v6924_v56  ;;  %v6913_v29 = vpop.xlane.xlu1 %6912 }
 0xc1c   : > { %v6925_v1 = vmul.f32 0.001953125, %v6913_v29 }
 0xc1d   : > { %15967 = vrsqrt.f32 %v6928_v39 }
 0xc1e   : > { %v6929_v63 = vadd.f32 1e-05, %v6925_v1 }
 0xc20   : > { %15969 = vrsqrt.f32 %v6929_v63  ;;  %v6918_v34 = vpop.xlane.xlu0 %6917 }
 0xc21   : > { %v6926_v30 = vmul.f32 0.001953125, %v6918_v34 }
 0xc22   : > { %v6923_v59 = vpop.xlane.xlu1 %6922 }
 0xc23   : > { %v6930_v48 = vadd.f32 1e-05, %v6926_v30  ;;  %v6927_v16 = vmul.f32 0.001953125, %v6923_v59 }
 0xc25   : > { %15971 = vrsqrt.f32 %v6930_v48  ;;  %v6931_v37 = vadd.f32 1e-05, %v6927_v16 }
 0xc27   : > { %v15968_v9 = vpop.eup %15967  ;;  %15973 = vrsqrt.f32 %v6931_v37 }
 0xc28   : > { %v6937_v31 = vmul.f32 %v15968_v9, %v19661_v43  ;;  %v6939_v50 = vmul.f32 %v15968_v9, %v19665_v54  ;;  %v6936_v52 = vmul.f32 %v15968_v9, %v19659_v8  ;;  %v6938_v51 = vmul.f32 %v15968_v9, %v19663_v3 }
 0xc2a   : > { %v15970_v17 = vpop.eup %15969  ;;  %v6974_v47 = vmul.f32 %v6960_v60, %v6937_v31  ;;  %v6976_v18 = vmul.f32 %v6968_v45, %v6939_v50  ;;  %v6973_v25 = vmul.f32 %v6956_v41, %v6936_v52  ;;  %v6975_v10 = vmul.f32 %v6964_v26, %v6938_v51 }
 0xc2b   : > { %v6941_v43 = vmul.f32 %v15970_v17, %v19673_v33  ;;  %v6943_v54 = vmul.f32 %v15970_v17, %v19679_v36  ;;  %v6940_v8 = vmul.f32 %v15970_v17, %v19671_v12  ;;  %v6942_v3 = vmul.f32 %v15970_v17, %v19675_v44 }
 0xc2c   : > { %v7011_v53 = vadd.f32 %v6997_v20, %v6974_v47  ;;  %v7013_v49 = vadd.f32 %v7005_v58, %v6976_v18  ;;  %v7010_v57 = vadd.f32 %v6993_v6, %v6973_v25  ;;  %v7012_v62 = vadd.f32 %v7001_v38, %v6975_v10 }
 0xc2d   : > { %v6978_v7 = vmul.f32 %v6960_v60, %v6941_v43  ;;  %v6980_v40 = vmul.f32 %v6968_v45, %v6943_v54  ;;  %v6977_v61 = vmul.f32 %v6956_v41, %v6940_v8  ;;  %v6979_v35 = vmul.f32 %v6964_v26, %v6942_v3 }
 0xc2f   : > { %v15972_v28 = vpop.eup %15971  ;;  %v7015_v0 = vadd.f32 %v6997_v20, %v6978_v7  ;;  %v7017_v24 = vadd.f32 %v7005_v58, %v6980_v40  ;;  %v7014_v22 = vadd.f32 %v6993_v6, %v6977_v61  ;;  %v7016_v55 = vadd.f32 %v7001_v38, %v6979_v35 }
 0xc30   : > { %v6945_v33 = vmul.f32 %v15972_v28, %v19691_v23  ;;  %v6947_v36 = vmul.f32 %v15972_v28, %v19697_v2  ;;  %v6944_v12 = vmul.f32 %v15972_v28, %v19689_v5  ;;  %v6946_v44 = vmul.f32 %v15972_v28, %v19695_v32 }
 0xc31   : > { %v15974_v56 = vpop.eup %15973  ;;  %v7035_v39 = vadd.f32 %v7015_v0, %v7011_v53  ;;  %v7053_v29 = vadd.f32 %v7017_v24, %v7013_v49  ;;  %v7026_v1 = vadd.f32 %v7014_v22, %v7010_v57  ;;  %v7044_v63 = vadd.f32 %v7016_v55, %v7012_v62 }
 0xc32   : > { %v6949_v34 = vmul.f32 %v15974_v56, %v19701_v46  ;;  %v6982_v30 = vmul.f32 %v6960_v60, %v6945_v33  ;;  %v6951_v59 = vmul.f32 %v15974_v56, %v19711_v27  ;;  %v6984_v48 = vmul.f32 %v6968_v45, %v6947_v36 }
 0xc33   : > { %v6948_v16 = vmul.f32 %v15974_v56, %v19699_v21  ;;  %v6981_v23 = vmul.f32 %v6956_v41, %v6944_v12  ;;  %v6950_v2 = vmul.f32 %v15974_v56, %v19709_v19  ;;  %v6983_v42 = vmul.f32 %v6964_v26, %v6946_v44 }
 0xc34   : > { %v6986_v5 = vmul.f32 %v6960_v60, %v6949_v34  ;;  %v7019_v37 = vadd.f32 %v6997_v20, %v6982_v30  ;;  %v6988_v32 = vmul.f32 %v6968_v45, %v6951_v59  ;;  %v7021_v4 = vadd.f32 %v7005_v58, %v6984_v48  ;;  %v7134_v59 = vld [vmem:[%s989_s17] sm:$0x1] }
 0xc35   : > { %v6985_v9 = vmul.f32 %v6956_v41, %v6948_v16  ;;  %v7018_v31 = vadd.f32 %v6993_v6, %v6981_v23  ;;  %v6987_v50 = vmul.f32 %v6964_v26, %v6950_v2  ;;  %v7020_v52 = vadd.f32 %v7001_v38, %v6983_v42 }
 0xc36   : > { %v7023_v51 = vadd.f32 %v6997_v20, %v6986_v5  ;;  %v7036_v46 = vadd.f32 %v7035_v39, %v7019_v37  ;;  %v7025_v17 = vadd.f32 %v7005_v58, %v6988_v32  ;;  %v7054_v47 = vadd.f32 %v7053_v29, %v7021_v4 }
 0xc37   : > { %v7022_v27 = vadd.f32 %v6993_v6, %v6985_v9  ;;  %v7027_v18 = vadd.f32 %v7026_v1, %v7018_v31  ;;  %v7024_v25 = vadd.f32 %v7001_v38, %v6987_v50  ;;  %v7045_v21 = vadd.f32 %v7044_v63, %v7020_v52 }
 0xc38   : > { %v7037_v10 = vadd.f32 %v7036_v46, %v7023_v51  ;;  %v7055_v43 = vadd.f32 %v7054_v47, %v7025_v17  ;;  %v17644_v31 = vmov (!%p20206_p5), 1966171168   ;;  %v17645_v52 = vmov (!%p20206_p5), 0.0   ;;  %v20207_v47 = vld [vmem:[#allocation52_spill] sm:$0xff] (!%p20206_p5) }
 0xc39   : > { %v7028_v19 = vadd.f32 %v7027_v18, %v7022_v27  ;;  %v7046_v54 = vadd.f32 %v7045_v21, %v7024_v25  ;;  %v7419_v50 = vunpack.c.l.s4 (!%p20206_p5), %v17644_v31  ;;  %7446 = vst [vmem:[#allocation29] sm:$0x1] (!%p20206_p5), %v17645_v52 }
 0xc3a   : > { %v7038_v60 = vrot.slane %v7037_v10, 4  ;;  %v7056_v8 = vrot.slane %v7055_v43, 4 }
 0xc3b   : > { %v7029_v45 = vrot.slane %v7028_v19, 4  ;;  %v7047_v3 = vrot.slane %v7046_v54, 4  ;;  %v7420_v17 = vunpack.c.0.s8 (!%p20206_p5), %v7419_v50 }
 0xc3c   : > { %v7039_v41 = vadd.f32 %v7038_v60, %v7037_v10  ;;  %v7057_v7 = vadd.f32 %v7056_v8, %v7055_v43  ;;  %v20208_v10 = vlaneseq (!%p20206_p5) }
 0xc3d   : > { %v7030_v26 = vadd.f32 %v7029_v45, %v7028_v19  ;;  %v7048_v40 = vadd.f32 %v7047_v3, %v7046_v54  ;;  %v7423_v27 = vsub.s32 (!%p20206_p5), %v7420_v17, %v20207_v47 }
 0xc3e   : > { %v7040_v20 = vrot.slane %v7039_v41, 2  ;;  %v7058_v61 = vrot.slane %v7057_v7, 2  ;;  %vm7443_vm2 = vcmp.lt.s32.totalorder (!%p20206_p5), %v20208_v10, 512 }
 0xc3f   : > { %v7031_v58 = vrot.slane %v7030_v26, 2  ;;  %v7049_v35 = vrot.slane %v7048_v40, 2 }
 0xc40   : > { %v7041_v6 = vadd.f32 %v7040_v20, %v7039_v41  ;;  %v7059_v53 = vadd.f32 %v7058_v61, %v7057_v7 }
 0xc41   : > { %v7032_v38 = vadd.f32 %v7031_v58, %v7030_v26  ;;  %v7050_v49 = vadd.f32 %v7049_v35, %v7048_v40 }
 0xc42   : > { %v7042_v57 = vrot.slane %v7041_v6, 1  ;;  %v7060_v62 = vrot.slane %v7059_v53, 1 }
 0xc43   : > { %v7033_v28 = vrot.slane %v7032_v38, 1  ;;  %v7051_v0 = vrot.slane %v7050_v49, 1 }
 0xc44   : > { %v7043_v24 = vadd.f32 %v7042_v57, %v7041_v6  ;;  %v7061_v22 = vadd.f32 %v7060_v62, %v7059_v53 }
 0xc45   : > { %v7034_v55 = vadd.f32 %v7033_v28, %v7032_v38  ;;  %v7052_v33 = vadd.f32 %v7051_v0, %v7050_v49 }
 0xc46   : > { %v19779_v36 = vmul.f32 0.03125, %v7043_v24  ;;  %v19781_v12 = vmul.f32 0.03125, %v7061_v22 }
 0xc47   : > { %v19783_v44 = vmul.f32 0.03125, %v7034_v55  ;;  %v19785_v56 = vmul.f32 0.03125, %v7052_v33 }
 0xc48   : > { %v19789_v39 = vpack.c.bf16 %v19779_v36, %v19779_v36  ;;  %v19793_v29 = vpack.c.bf16 %v19781_v12, %v19781_v12 }
 0xc49   : > { %v19797_v1 = vpack.c.bf16 %v19783_v44, %v19783_v44  ;;  %v19801_v63 = vpack.c.bf16 %v19785_v56, %v19785_v56  ;;  %v7416_v51 = vcombine.low (!%p20206_p5), %v19783_v44, %v19779_v36  ;;  %v7417_v46 = vcombine.low (!%p20206_p5), %v19785_v56, %v19781_v12 }
 0xc4a   : > { %7359 = vmatprep.mubr.bf16.mxu0 %v19789_v39  ;;  %7399 = vmatprep.mubr.bf16.mxu1 %v19793_v29 }
 0xc4b   : > { %7360 = vmatmul.mubr.bf16.vlgmr.msra.gmra.mrb[48].mxu0 %v19797_v1  ;;  %7400 = vmatmul.mubr.bf16.vlgmr.msra.gmra.mrb[56].mxu1 %v19801_v63  ;;  %v7424_v18 = vrot.slane (!%p20206_p5), %v7416_v51, %v7423_v27  ;;  %v7431_v25 = vrot.slane (!%p20206_p5), %v7417_v46, %v7423_v27 }
 0xc4d   : > { %v7432_v21 = vcombine.low (!%p20206_p5), %v7424_v18, %v7431_v25 }
 0xc4f   : > { %v7439_v43 = vrot.slane (!%p20206_p5), %v7432_v21, %v7423_v27 }
 0xc51   : > { %7445 = vst.msk [vmem:[#allocation2] sm:$0xf] (!%p20206_p5), %vm7443_vm2, %v7439_v43 }
 0xd1e   : > { %v14478_v34 = vpop.f32.mrb[48].mxu0  ;;  %v14500_v30 = vpop.f32.mrb[56].mxu1 }
 0xd1f   : > { %v14479_v48 = vpop.f32.mrb[49].mxu0  ;;  %v14501_v16 = vpop.f32.mrb[57].mxu1 }
 0xd20   : > { %v14480_v23 = vadd.f32 %v14479_v48, %v14478_v34  ;;  %v14502_v2 = vadd.f32 %v14501_v16, %v14500_v30  ;;  %v14481_v42 = vpop.f32.mrb[50].mxu0  ;;  %v14503_v5 = vpop.f32.mrb[58].mxu1  ;;  %7411 = sbr.rel (%p20206_p5) target bundleno = 3367 (0xd27), region = 172 }
 0xd21   : > { %v14482_v37 = vpop.f32.mrb[51].mxu0  ;;  %v14504_v32 = vpop.f32.mrb[59].mxu1 }
 0xd22   : > { %v7362_v4 = vadd.f32 %v14480_v23, %v7134_v59 }
 0xd24   : > { %v7402_v9 = vadd.f32 %v14502_v2, %v7362_v4 }
 0xd26   : > { %7407 = vst [vmem:[%s1132_s13] sm:$0x1] %v7402_v9 }
 0xd27 PF: > { %s20209_s11 = sld [smem:[#allocation47_spill]] }
 0xd2d   : > { %p13777_p1 = scmp.ne.s32.totalorder %s20209_s11, 1 }
 0xd2e   : > { %v15975_v19 = vld [vmem:[#allocation22 + $0x404] ss:$16 sps:$4 sm:$0xff] (!%p13777_p1)   ;;  %8436 = vmatprep.mubr.bf16.mxu0 (!%p13777_p1), %v19789_v39  ;;  %8477 = vmatprep.mubr.bf16.mxu1 (!%p13777_p1), %v19793_v29  ;;  %v15979_v60 = vld [vmem:[#allocation22 + $0x400] ss:$16 sps:$4 sm:$0xff] (!%p13777_p1)  }
 0xd2f   : > { %7450 = sbr.rel (%p13777_p1) target bundleno = 4481 (0x1181), region = 176  ;;  %v15977_v54 = vld [vmem:[#allocation22 + $0x604] ss:$16 sps:$4 sm:$0xff] (!%p13777_p1)   ;;  %8404 = vmatprep.subr.bf16.mxu0 (!%p13777_p1), %v15975_v19  ;;  %v15980_v8 = vld [vmem:[#allocation22 + $0x600] ss:$16 sps:$4 sm:$0xff] (!%p13777_p1)  }
 0xd30   : > { %8445 = vmatprep.subr.bf16.mxu1 (!%p13777_p1), %v15977_v54  ;;  %v15981_v45 = vld [vmem:[#allocation22 + $0x424] ss:$16 sps:$4 sm:$0xff] (!%p13777_p1)   ;;  %8405 = vmatpush1.bf16.msra.mxu0 (!%p13777_p1), %v15979_v60  ;;  %v15985_v41 = vld [vmem:[#allocation22 + $0x420] ss:$16 sps:$4 sm:$0xff] (!%p13777_p1)  }
 0xd31   : > { %8446 = vmatpush1.bf16.msra.mxu1 (!%p13777_p1), %v15980_v8  ;;  %v15983_v3 = vld [vmem:[#allocation22 + $0x624] ss:$16 sps:$4 sm:$0xff] (!%p13777_p1)   ;;  %8406 = vmatprep.subr.bf16.mxu0 (!%p13777_p1), %v15981_v45  ;;  %v15986_v7 = vld [vmem:[#allocation22 + $0x620] ss:$16 sps:$4 sm:$0xff] (!%p13777_p1)  }
 0xd32   : > { %8447 = vmatprep.subr.bf16.mxu1 (!%p13777_p1), %v15983_v3  ;;  %v15987_v26 = vld [vmem:[#allocation22 + $0x444] ss:$16 sps:$4 sm:$0xff] (!%p13777_p1)   ;;  %v15991_v20 = vld [vmem:[#allocation22 + $0x440] ss:$16 sps:$4 sm:$0xff] (!%p13777_p1)  }
 0xd33   : > { %v15989_v40 = vld [vmem:[#allocation22 + $0x644] ss:$16 sps:$4 sm:$0xff] (!%p13777_p1)   ;;  %v15992_v61 = vld [vmem:[#allocation22 + $0x640] ss:$16 sps:$4 sm:$0xff] (!%p13777_p1)  }
 0xd34   : > { %8407 = vmatpush1.bf16.msra.mxu0 (!%p13777_p1), %v15985_v41  ;;  %v15993_v58 = vld [vmem:[#allocation22 + $0x464] ss:$16 sps:$4 sm:$0xff] (!%p13777_p1)   ;;  %v15997_v6 = vld [vmem:[#allocation22 + $0x460] ss:$16 sps:$4 sm:$0xff] (!%p13777_p1)  }
 0xd35   : > { %8448 = vmatpush1.bf16.msra.mxu1 (!%p13777_p1), %v15986_v7  ;;  %8408 = vmatprep.subr.bf16.mxu0 (!%p13777_p1), %v15987_v26  ;;  %v15995_v35 = vld [vmem:[#allocation22 + $0x664] ss:$16 sps:$4 sm:$0xff] (!%p13777_p1)   ;;  %v15998_v53 = vld [vmem:[#allocation22 + $0x660] ss:$16 sps:$4 sm:$0xff] (!%p13777_p1)  }
 0xd36   : > { %8449 = vmatprep.subr.bf16.mxu1 %v15989_v40  ;;  %v15999_v38 = vld [vmem:[#allocation22 + $0x484] ss:$16 sps:$4 sm:$0xff]   ;;  %v16003_v57 = vld [vmem:[#allocation22 + $0x480] ss:$16 sps:$4 sm:$0xff]  }
 0xd37   : > { %v16001_v49 = vld [vmem:[#allocation22 + $0x684] ss:$16 sps:$4 sm:$0xff]   ;;  %v16004_v62 = vld [vmem:[#allocation22 + $0x680] ss:$16 sps:$4 sm:$0xff]  }
 0xd38   : > { %8409 = vmatpush1.bf16.msra.mxu0 %v15991_v20  ;;  %v16005_v28 = vld [vmem:[#allocation22 + $0x4a4] ss:$16 sps:$4 sm:$0xff]   ;;  %v16009_v24 = vld [vmem:[#allocation22 + $0x4a0] ss:$16 sps:$4 sm:$0xff]  }
 0xd39   : > { %8450 = vmatpush1.bf16.msra.mxu1 %v15992_v61  ;;  %8410 = vmatprep.subr.bf16.mxu0 %v15993_v58  ;;  %v16007_v0 = vld [vmem:[#allocation22 + $0x6a4] ss:$16 sps:$4 sm:$0xff]   ;;  %v16010_v22 = vld [vmem:[#allocation22 + $0x6a0] ss:$16 sps:$4 sm:$0xff]   ;;  %v16073_v58 = vld [vmem:[#allocation22 + $0x40c] ss:$16 sps:$4 sm:$0xff]  }
 0xd3a   : > { %8451 = vmatprep.subr.bf16.mxu1 %v15995_v35  ;;  %v16011_v55 = vld [vmem:[#allocation22 + $0x4c4] ss:$16 sps:$4 sm:$0xff]   ;;  %v16015_v34 = vld [vmem:[#allocation22 + $0x4c0] ss:$16 sps:$4 sm:$0xff]   ;;  %v16076_v35 = vld [vmem:[#allocation22 + $0x60c] ss:$16 sps:$4 sm:$0xff]  }
 0xd3b   : > { %v16013_v33 = vld [vmem:[#allocation22 + $0x6c4] ss:$16 sps:$4 sm:$0xff]   ;;  %v16016_v30 = vld [vmem:[#allocation22 + $0x6c0] ss:$16 sps:$4 sm:$0xff]  }
 0xd3c   : > { %8411 = vmatpush1.bf16.msra.mxu0 %v15997_v6  ;;  %v16017_v59 = vld [vmem:[#allocation22 + $0x4e4] ss:$16 sps:$4 sm:$0xff]   ;;  %v16021_v16 = vld [vmem:[#allocation22 + $0x4e0] ss:$16 sps:$4 sm:$0xff]   ;;  %v16071_v6 = vld [vmem:[#allocation22 + $0x408] ss:$16 sps:$4 sm:$0xff]  }
 0xd3d   : > { %8452 = vmatpush1.bf16.msra.mxu1 %v15998_v53  ;;  %8412 = vmatprep.subr.bf16.mxu0 %v15999_v38  ;;  %v16019_v48 = vld [vmem:[#allocation22 + $0x6e4] ss:$16 sps:$4 sm:$0xff]   ;;  %v16022_v23 = vld [vmem:[#allocation22 + $0x6e0] ss:$16 sps:$4 sm:$0xff]   ;;  %v16074_v53 = vld [vmem:[#allocation22 + $0x608] ss:$16 sps:$4 sm:$0xff]  }
 0xd3e   : > { %8453 = vmatprep.subr.bf16.mxu1 %v16001_v49  ;;  %v16023_v2 = vld [vmem:[#allocation22 + $0x504] ss:$16 sps:$4 sm:$0xff]   ;;  %v16027_v5 = vld [vmem:[#allocation22 + $0x500] ss:$16 sps:$4 sm:$0xff]   ;;  %v16079_v38 = vld [vmem:[#allocation22 + $0x42c] ss:$16 sps:$4 sm:$0xff]  }
 0xd3f   : > { %v16025_v42 = vld [vmem:[#allocation22 + $0x704] ss:$16 sps:$4 sm:$0xff]   ;;  %v16028_v37 = vld [vmem:[#allocation22 + $0x700] ss:$16 sps:$4 sm:$0xff]   ;;  %v16082_v49 = vld [vmem:[#allocation22 + $0x62c] ss:$16 sps:$4 sm:$0xff]  }
 0xd40   : > { %8413 = vmatpush1.bf16.msra.mxu0 %v16003_v57  ;;  %v16029_v32 = vld [vmem:[#allocation22 + $0x524] ss:$16 sps:$4 sm:$0xff]   ;;  %v16033_v9 = vld [vmem:[#allocation22 + $0x520] ss:$16 sps:$4 sm:$0xff]   ;;  %v16077_v57 = vld [vmem:[#allocation22 + $0x428] ss:$16 sps:$4 sm:$0xff]  }
 0xd41   : > { %8454 = vmatpush1.bf16.msra.mxu1 %v16004_v62  ;;  %8414 = vmatprep.subr.bf16.mxu0 %v16005_v28  ;;  %v16031_v4 = vld [vmem:[#allocation22 + $0x724] ss:$16 sps:$4 sm:$0xff]   ;;  %v16034_v31 = vld [vmem:[#allocation22 + $0x720] ss:$16 sps:$4 sm:$0xff]   ;;  %v16080_v62 = vld [vmem:[#allocation22 + $0x628] ss:$16 sps:$4 sm:$0xff]  }
 0xd42   : > { %8455 = vmatprep.subr.bf16.mxu1 %v16007_v0  ;;  %v16035_v50 = vld [vmem:[#allocation22 + $0x544] ss:$16 sps:$4 sm:$0xff]   ;;  %v16039_v51 = vld [vmem:[#allocation22 + $0x540] ss:$16 sps:$4 sm:$0xff]   ;;  %v16085_v28 = vld [vmem:[#allocation22 + $0x44c] ss:$16 sps:$4 sm:$0xff]  }
 0xd43   : > { %v16037_v52 = vld [vmem:[#allocation22 + $0x744] ss:$16 sps:$4 sm:$0xff]   ;;  %v16040_v46 = vld [vmem:[#allocation22 + $0x740] ss:$16 sps:$4 sm:$0xff]   ;;  %v16088_v0 = vld [vmem:[#allocation22 + $0x64c] ss:$16 sps:$4 sm:$0xff]  }
 0xd44   : > { %8415 = vmatpush1.bf16.msra.mxu0 %v16009_v24  ;;  %v16041_v17 = vld [vmem:[#allocation22 + $0x564] ss:$16 sps:$4 sm:$0xff]   ;;  %v16045_v27 = vld [vmem:[#allocation22 + $0x560] ss:$16 sps:$4 sm:$0xff]   ;;  %v16083_v24 = vld [vmem:[#allocation22 + $0x448] ss:$16 sps:$4 sm:$0xff]  }
 0xd45   : > { %8456 = vmatpush1.bf16.msra.mxu1 %v16010_v22  ;;  %8416 = vmatprep.subr.bf16.mxu0 %v16011_v55  ;;  %v16043_v47 = vld [vmem:[#allocation22 + $0x764] ss:$16 sps:$4 sm:$0xff]   ;;  %v16046_v18 = vld [vmem:[#allocation22 + $0x760] ss:$16 sps:$4 sm:$0xff]   ;;  %v16086_v22 = vld [vmem:[#allocation22 + $0x648] ss:$16 sps:$4 sm:$0xff]  }
 0xd46   : > { %8457 = vmatprep.subr.bf16.mxu1 %v16013_v33  ;;  %v16047_v25 = vld [vmem:[#allocation22 + $0x584] ss:$16 sps:$4 sm:$0xff]   ;;  %v16051_v10 = vld [vmem:[#allocation22 + $0x580] ss:$16 sps:$4 sm:$0xff]   ;;  %v16091_v55 = vld [vmem:[#allocation22 + $0x46c] ss:$16 sps:$4 sm:$0xff]  }
 0xd47   : > { %v16049_v21 = vld [vmem:[#allocation22 + $0x784] ss:$16 sps:$4 sm:$0xff]   ;;  %v16052_v43 = vld [vmem:[#allocation22 + $0x780] ss:$16 sps:$4 sm:$0xff]   ;;  %v16094_v33 = vld [vmem:[#allocation22 + $0x66c] ss:$16 sps:$4 sm:$0xff]  }
 0xd48   : > { %8417 = vmatpush1.bf16.msra.mxu0 %v16015_v34  ;;  %v16053_v19 = vld [vmem:[#allocation22 + $0x5a4] ss:$16 sps:$4 sm:$0xff]   ;;  %v16057_v60 = vld [vmem:[#allocation22 + $0x5a0] ss:$16 sps:$4 sm:$0xff]   ;;  %v16089_v34 = vld [vmem:[#allocation22 + $0x468] ss:$16 sps:$4 sm:$0xff]  }
 0xd49   : > { %8458 = vmatpush1.bf16.msra.mxu1 %v16016_v30  ;;  %8418 = vmatprep.subr.bf16.mxu0 %v16017_v59  ;;  %v16055_v54 = vld [vmem:[#allocation22 + $0x7a4] ss:$16 sps:$4 sm:$0xff]   ;;  %v16058_v8 = vld [vmem:[#allocation22 + $0x7a0] ss:$16 sps:$4 sm:$0xff]   ;;  %v16092_v30 = vld [vmem:[#allocation22 + $0x668] ss:$16 sps:$4 sm:$0xff]  }
 0xd4a   : > { %8459 = vmatprep.subr.bf16.mxu1 %v16019_v48  ;;  %v16059_v45 = vld [vmem:[#allocation22 + $0x5c4] ss:$16 sps:$4 sm:$0xff]   ;;  %v16063_v41 = vld [vmem:[#allocation22 + $0x5c0] ss:$16 sps:$4 sm:$0xff]   ;;  %v16097_v59 = vld [vmem:[#allocation22 + $0x48c] ss:$16 sps:$4 sm:$0xff]  }
 0xd4b   : > { %v16061_v3 = vld [vmem:[#allocation22 + $0x7c4] ss:$16 sps:$4 sm:$0xff]   ;;  %v16064_v7 = vld [vmem:[#allocation22 + $0x7c0] ss:$16 sps:$4 sm:$0xff]   ;;  %v16100_v48 = vld [vmem:[#allocation22 + $0x68c] ss:$16 sps:$4 sm:$0xff]  }
 0xd4c   : > { %8419 = vmatpush1.bf16.msra.mxu0 %v16021_v16  ;;  %v16065_v26 = vld [vmem:[#allocation22 + $0x5e4] ss:$16 sps:$4 sm:$0xff]   ;;  %v16069_v20 = vld [vmem:[#allocation22 + $0x5e0] ss:$16 sps:$4 sm:$0xff]   ;;  %v16095_v16 = vld [vmem:[#allocation22 + $0x488] ss:$16 sps:$4 sm:$0xff]  }
 0xd4d   : > { %8460 = vmatpush1.bf16.msra.mxu1 %v16022_v23  ;;  %8420 = vmatprep.subr.bf16.mxu0 %v16023_v2  ;;  %v16067_v40 = vld [vmem:[#allocation22 + $0x7e4] ss:$16 sps:$4 sm:$0xff]   ;;  %v16070_v61 = vld [vmem:[#allocation22 + $0x7e0] ss:$16 sps:$4 sm:$0xff]   ;;  %v16106_v23 = vld [vmem:[#allocation22 + $0x6ac] ss:$16 sps:$4 sm:$0xff]  }
 0xd4e   : > { %8461 = vmatprep.subr.bf16.mxu1 %v16025_v42  ;;  %v16101_v2 = vld [vmem:[#allocation22 + $0x4a8] ss:$16 sps:$4 sm:$0xff]  }
 0xd4f   : > { %v16104_v42 = vld [vmem:[#allocation22 + $0x6a8] ss:$16 sps:$4 sm:$0xff]  }
 0xd50   : > { %8421 = vmatpush1.bf16.msra.mxu0 %v16027_v5  ;;  %v16109_v5 = vld [vmem:[#allocation22 + $0x4cc] ss:$16 sps:$4 sm:$0xff]  }
 0xd51   : > { %8462 = vmatpush1.bf16.msra.mxu1 %v16028_v37  ;;  %8422 = vmatprep.subr.bf16.mxu0 %v16029_v32  ;;  %v16112_v37 = vld [vmem:[#allocation22 + $0x6cc] ss:$16 sps:$4 sm:$0xff]   ;;  %v16107_v32 = vld [vmem:[#allocation22 + $0x4c8] ss:$16 sps:$4 sm:$0xff]  }
 0xd52   : > { %8463 = vmatprep.subr.bf16.mxu1 %v16031_v4  ;;  %v16110_v4 = vld [vmem:[#allocation22 + $0x6c8] ss:$16 sps:$4 sm:$0xff]  }
 0xd54   : > { %8423 = vmatpush1.bf16.msra.mxu0 %v16033_v9  ;;  %v16115_v9 = vld [vmem:[#allocation22 + $0x4ec] ss:$16 sps:$4 sm:$0xff]  }
 0xd55   : > { %8464 = vmatpush1.bf16.msra.mxu1 %v16034_v31  ;;  %8424 = vmatprep.subr.bf16.mxu0 %v16035_v50  ;;  %v16118_v31 = vld [vmem:[#allocation22 + $0x6ec] ss:$16 sps:$4 sm:$0xff]   ;;  %v16113_v50 = vld [vmem:[#allocation22 + $0x4e8] ss:$16 sps:$4 sm:$0xff]  }
 0xd56   : > { %8465 = vmatprep.subr.bf16.mxu1 %v16037_v52  ;;  %v16116_v52 = vld [vmem:[#allocation22 + $0x6e8] ss:$16 sps:$4 sm:$0xff]  }
 0xd58   : > { %8425 = vmatpush1.bf16.msra.mxu0 %v16039_v51  ;;  %v16121_v51 = vld [vmem:[#allocation22 + $0x50c] ss:$16 sps:$4 sm:$0xff]  }
 0xd59   : > { %8466 = vmatpush1.bf16.msra.mxu1 %v16040_v46  ;;  %8426 = vmatprep.subr.bf16.mxu0 %v16041_v17  ;;  %v16124_v46 = vld [vmem:[#allocation22 + $0x70c] ss:$16 sps:$4 sm:$0xff]   ;;  %v16119_v17 = vld [vmem:[#allocation22 + $0x508] ss:$16 sps:$4 sm:$0xff]  }
 0xd5a   : > { %8467 = vmatprep.subr.bf16.mxu1 %v16043_v47  ;;  %v16122_v47 = vld [vmem:[#allocation22 + $0x708] ss:$16 sps:$4 sm:$0xff]  }
 0xd5c   : > { %8427 = vmatpush1.bf16.msra.mxu0 %v16045_v27  ;;  %v16127_v27 = vld [vmem:[#allocation22 + $0x52c] ss:$16 sps:$4 sm:$0xff]  }
 0xd5d   : > { %8468 = vmatpush1.bf16.msra.mxu1 %v16046_v18  ;;  %8428 = vmatprep.subr.bf16.mxu0 %v16047_v25  ;;  %v16130_v18 = vld [vmem:[#allocation22 + $0x72c] ss:$16 sps:$4 sm:$0xff]   ;;  %v16125_v25 = vld [vmem:[#allocation22 + $0x528] ss:$16 sps:$4 sm:$0xff]  }
 0xd5e   : > { %8469 = vmatprep.subr.bf16.mxu1 %v16049_v21  ;;  %v16128_v21 = vld [vmem:[#allocation22 + $0x728] ss:$16 sps:$4 sm:$0xff]  }
 0xd60   : > { %8429 = vmatpush1.bf16.msra.mxu0 %v16051_v10  ;;  %v16133_v10 = vld [vmem:[#allocation22 + $0x54c] ss:$16 sps:$4 sm:$0xff]  }
 0xd61   : > { %8470 = vmatpush1.bf16.msra.mxu1 %v16052_v43  ;;  %8430 = vmatprep.subr.bf16.mxu0 %v16053_v19  ;;  %v16136_v43 = vld [vmem:[#allocation22 + $0x74c] ss:$16 sps:$4 sm:$0xff]   ;;  %v16131_v19 = vld [vmem:[#allocation22 + $0x548] ss:$16 sps:$4 sm:$0xff]  }
 0xd62   : > { %8471 = vmatprep.subr.bf16.mxu1 %v16055_v54  ;;  %v16134_v54 = vld [vmem:[#allocation22 + $0x748] ss:$16 sps:$4 sm:$0xff]  }
 0xd64   : > { %8431 = vmatpush1.bf16.msra.mxu0 %v16057_v60  ;;  %v16139_v60 = vld [vmem:[#allocation22 + $0x56c] ss:$16 sps:$4 sm:$0xff]  }
 0xd65   : > { %8472 = vmatpush1.bf16.msra.mxu1 %v16058_v8  ;;  %8432 = vmatprep.subr.bf16.mxu0 %v16059_v45  ;;  %v16142_v8 = vld [vmem:[#allocation22 + $0x76c] ss:$16 sps:$4 sm:$0xff]   ;;  %v16137_v45 = vld [vmem:[#allocation22 + $0x568] ss:$16 sps:$4 sm:$0xff]  }
 0xd66   : > { %8473 = vmatprep.subr.bf16.mxu1 %v16061_v3  ;;  %v16140_v3 = vld [vmem:[#allocation22 + $0x768] ss:$16 sps:$4 sm:$0xff]  }
 0xd68   : > { %8433 = vmatpush1.bf16.msra.mxu0 %v16063_v41  ;;  %v16145_v41 = vld [vmem:[#allocation22 + $0x58c] ss:$16 sps:$4 sm:$0xff]  }
 0xd69   : > { %8474 = vmatpush1.bf16.msra.mxu1 %v16064_v7  ;;  %8434 = vmatprep.subr.bf16.mxu0 %v16065_v26  ;;  %v16148_v7 = vld [vmem:[#allocation22 + $0x78c] ss:$16 sps:$4 sm:$0xff]   ;;  %v16143_v26 = vld [vmem:[#allocation22 + $0x588] ss:$16 sps:$4 sm:$0xff]  }
 0xd6a   : > { %8475 = vmatprep.subr.bf16.mxu1 %v16067_v40  ;;  %v16146_v40 = vld [vmem:[#allocation22 + $0x788] ss:$16 sps:$4 sm:$0xff]  }
 0xd6c   : > { %8435 = vmatpush1.bf16.msra.mxu0 %v16069_v20  ;;  %v16151_v20 = vld [vmem:[#allocation22 + $0x5ac] ss:$16 sps:$4 sm:$0xff]  }
 0xd6d   : > { %8476 = vmatpush1.bf16.msra.mxu1 %v16070_v61  ;;  %8486 = vmatprep.subr.bf16.mxu0 %v16073_v58  ;;  %v16154_v61 = vld [vmem:[#allocation22 + $0x7ac] ss:$16 sps:$4 sm:$0xff]   ;;  %v16149_v58 = vld [vmem:[#allocation22 + $0x5a8] ss:$16 sps:$4 sm:$0xff]  }
 0xd6e   : > { %8527 = vmatprep.subr.bf16.mxu1 %v16076_v35  ;;  %v16152_v35 = vld [vmem:[#allocation22 + $0x7a8] ss:$16 sps:$4 sm:$0xff]  }
 0xd6f   : > { %8437 = vmatmul.mubr.bf16.vlgmr.msra.gmra.mrb[0].mxu0 %v19797_v1 }
 0xd70   : > { %8478 = vmatmul.mubr.bf16.vlgmr.msra.gmra.mrb[0].mxu1 %v19801_v63  ;;  %8487 = vmatpush1.bf16.msra.mxu0 %v16071_v6  ;;  %v16157_v6 = vld [vmem:[#allocation22 + $0x5cc] ss:$16 sps:$4 sm:$0xff]  }
 0xd71   : > { %8528 = vmatpush1.bf16.msra.mxu1 %v16074_v53  ;;  %8488 = vmatprep.subr.bf16.mxu0 %v16079_v38  ;;  %v16160_v53 = vld [vmem:[#allocation22 + $0x7cc] ss:$16 sps:$4 sm:$0xff]   ;;  %v16155_v38 = vld [vmem:[#allocation22 + $0x5c8] ss:$16 sps:$4 sm:$0xff]  }
 0xd72   : > { %8529 = vmatprep.subr.bf16.mxu1 %v16082_v49  ;;  %8518 = vmatprep.mubr.bf16.mxu0 %v19789_v39  ;;  %v16098_v39 = vld [vmem:[#allocation22 + $0x688] ss:$16 sps:$4 sm:$0xff]  }
 0xd73   : > { %8559 = vmatprep.mubr.bf16.mxu1 %v19793_v29  ;;  %v16103_v29 = vld [vmem:[#allocation22 + $0x4ac] ss:$16 sps:$4 sm:$0xff]   ;;  %v16158_v49 = vld [vmem:[#allocation22 + $0x7c8] ss:$16 sps:$4 sm:$0xff]  }
 0xd74   : > { %8489 = vmatpush1.bf16.msra.mxu0 %v16077_v57  ;;  %v16163_v57 = vld [vmem:[#allocation22 + $0x5ec] ss:$16 sps:$4 sm:$0xff]  }
 0xd75   : > { %8530 = vmatpush1.bf16.msra.mxu1 %v16080_v62  ;;  %8490 = vmatprep.subr.bf16.mxu0 %v16085_v28  ;;  %v16166_v62 = vld [vmem:[#allocation22 + $0x7ec] ss:$16 sps:$4 sm:$0xff]   ;;  %v16161_v28 = vld [vmem:[#allocation22 + $0x5e8] ss:$16 sps:$4 sm:$0xff]  }
 0xd76   : > { %8531 = vmatprep.subr.bf16.mxu1 %v16088_v0  ;;  %v16164_v0 = vld [vmem:[#allocation22 + $0x7e8] ss:$16 sps:$4 sm:$0xff]  }
 0xd78   : > { %8491 = vmatpush1.bf16.msra.mxu0 %v16083_v24  ;;  %v16169_v24 = vld [vmem:[#allocation22 + $0x4] ss:$16 sps:$4 sm:$0xff]  }
 0xd79   : > { %8532 = vmatpush1.bf16.msra.mxu1 %v16086_v22  ;;  %8492 = vmatprep.subr.bf16.mxu0 %v16091_v55  ;;  %v16172_v22 = vld [vmem:[#allocation22 + $0x204] ss:$16 sps:$4 sm:$0xff]   ;;  %v16167_v55 = vld [vmem:[#allocation22] ss:$16 sps:$4 sm:$0xff]  }
 0xd7a   : > { %8533 = vmatprep.subr.bf16.mxu1 %v16094_v33  ;;  %v16170_v33 = vld [vmem:[#allocation22 + $0x200] ss:$16 sps:$4 sm:$0xff]  }
 0xd7c   : > { %8493 = vmatpush1.bf16.msra.mxu0 %v16089_v34  ;;  %v19828_v34 = vld [vmem:[#allocation2] sm:$0xf] }
 0xd7d   : > { %8534 = vmatpush1.bf16.msra.mxu1 %v16092_v30  ;;  %8494 = vmatprep.subr.bf16.mxu0 %v16097_v59  ;;  %v16175_v30 = vld [vmem:[#allocation22 + $0x24] ss:$16 sps:$4 sm:$0xff]  }
 0xd7e   : > { %8535 = vmatprep.subr.bf16.mxu1 %v16100_v48  ;;  %v16178_v59 = vld [vmem:[#allocation22 + $0x224] ss:$16 sps:$4 sm:$0xff]   ;;  %v7491_v48 = vrot.slane %v19828_v34, %v18588_v14 }
 0xd80   : > { %8495 = vmatpush1.bf16.msra.mxu0 %v16095_v16  ;;  %v7499_v16 = vrot.slane %v19828_v34, %v18591_v15 }
 0xd81   : > { %8536 = vmatpush1.bf16.msra.mxu1 %v16098_v39  ;;  %8496 = vmatprep.subr.bf16.mxu0 %v16103_v29  ;;  %v16173_v39 = vld [vmem:[#allocation22 + $0x20] ss:$16 sps:$4 sm:$0xff]   ;;  %v19836_v29 = vpack.c.bf16 %v7491_v48, %v7491_v48  ;;  %v16256_v48 = vld [vmem:[#allocation22 + $0x3c4] ss:$16 sps:$4 sm:$0xff]  }
 0xd82   : > { %8537 = vmatprep.subr.bf16.mxu1 %v16106_v23  ;;  %v19838_v23 = vpack.c.bf16 %v7499_v16, %v7499_v16  ;;  %v16251_v16 = vld [vmem:[#allocation22 + $0x1c0] ss:$16 sps:$4 sm:$0xff]  }
 0xd84   : > { %8497 = vmatpush1.bf16.msra.mxu0 %v16101_v2  ;;  %v16176_v2 = vld [vmem:[#allocation22 + $0x220] ss:$16 sps:$4 sm:$0xff]  }
 0xd85   : > { %8538 = vmatpush1.bf16.msra.mxu1 %v16104_v42  ;;  %8498 = vmatprep.subr.bf16.mxu0 %v16109_v5  ;;  %v16181_v42 = vld [vmem:[#allocation22 + $0x44] ss:$16 sps:$4 sm:$0xff]  }
 0xd86   : > { %8539 = vmatprep.subr.bf16.mxu1 %v16112_v37  ;;  %v16184_v5 = vld [vmem:[#allocation22 + $0x244] ss:$16 sps:$4 sm:$0xff]   ;;  %v16179_v37 = vld [vmem:[#allocation22 + $0x40] ss:$16 sps:$4 sm:$0xff]  }
 0xd88   : > { %8499 = vmatpush1.bf16.msra.mxu0 %v16107_v32  ;;  %v16190_v32 = vld [vmem:[#allocation22 + $0x264] ss:$16 sps:$4 sm:$0xff]  }
 0xd89   : > { %8540 = vmatpush1.bf16.msra.mxu1 %v16110_v4  ;;  %8500 = vmatprep.subr.bf16.mxu0 %v16115_v9  ;;  %v16185_v4 = vld [vmem:[#allocation22 + $0x60] ss:$16 sps:$4 sm:$0xff]  }
 0xd8a   : > { %8541 = vmatprep.subr.bf16.mxu1 %v16118_v31  ;;  %v16188_v9 = vld [vmem:[#allocation22 + $0x260] ss:$16 sps:$4 sm:$0xff]   ;;  %v16193_v31 = vld [vmem:[#allocation22 + $0x84] ss:$16 sps:$4 sm:$0xff]  }
 0xd8c   : > { %8501 = vmatpush1.bf16.msra.mxu0 %v16113_v50  ;;  %v16196_v50 = vld [vmem:[#allocation22 + $0x284] ss:$16 sps:$4 sm:$0xff]  }
 0xd8d   : > { %8542 = vmatpush1.bf16.msra.mxu1 %v16116_v52  ;;  %8502 = vmatprep.subr.bf16.mxu0 %v16121_v51  ;;  %v16191_v52 = vld [vmem:[#allocation22 + $0x80] ss:$16 sps:$4 sm:$0xff]  }
 0xd8e   : > { %8543 = vmatprep.subr.bf16.mxu1 %v16124_v46  ;;  %v16194_v51 = vld [vmem:[#allocation22 + $0x280] ss:$16 sps:$4 sm:$0xff]   ;;  %v16199_v46 = vld [vmem:[#allocation22 + $0xa4] ss:$16 sps:$4 sm:$0xff]  }
 0xd90   : > { %8503 = vmatpush1.bf16.msra.mxu0 %v16119_v17  ;;  %v16202_v17 = vld [vmem:[#allocation22 + $0x2a4] ss:$16 sps:$4 sm:$0xff]  }
 0xd91   : > { %8544 = vmatpush1.bf16.msra.mxu1 %v16122_v47  ;;  %8504 = vmatprep.subr.bf16.mxu0 %v16127_v27  ;;  %v16197_v47 = vld [vmem:[#allocation22 + $0xa0] ss:$16 sps:$4 sm:$0xff]  }
 0xd92   : > { %8545 = vmatprep.subr.bf16.mxu1 %v16130_v18  ;;  %v16200_v27 = vld [vmem:[#allocation22 + $0x2a0] ss:$16 sps:$4 sm:$0xff]   ;;  %v16205_v18 = vld [vmem:[#allocation22 + $0xc4] ss:$16 sps:$4 sm:$0xff]  }
 0xd94   : > { %8505 = vmatpush1.bf16.msra.mxu0 %v16125_v25  ;;  %v16208_v25 = vld [vmem:[#allocation22 + $0x2c4] ss:$16 sps:$4 sm:$0xff]  }
 0xd95   : > { %8546 = vmatpush1.bf16.msra.mxu1 %v16128_v21  ;;  %8506 = vmatprep.subr.bf16.mxu0 %v16133_v10  ;;  %v16203_v21 = vld [vmem:[#allocation22 + $0xc0] ss:$16 sps:$4 sm:$0xff]  }
 0xd96   : > { %8547 = vmatprep.subr.bf16.mxu1 %v16136_v43  ;;  %v16206_v10 = vld [vmem:[#allocation22 + $0x2c0] ss:$16 sps:$4 sm:$0xff]   ;;  %v16211_v43 = vld [vmem:[#allocation22 + $0xe4] ss:$16 sps:$4 sm:$0xff]  }
 0xd98   : > { %8507 = vmatpush1.bf16.msra.mxu0 %v16131_v19  ;;  %v16214_v19 = vld [vmem:[#allocation22 + $0x2e4] ss:$16 sps:$4 sm:$0xff]  }
 0xd99   : > { %8548 = vmatpush1.bf16.msra.mxu1 %v16134_v54  ;;  %8508 = vmatprep.subr.bf16.mxu0 %v16139_v60  ;;  %v16209_v54 = vld [vmem:[#allocation22 + $0xe0] ss:$16 sps:$4 sm:$0xff]  }
 0xd9a   : > { %8549 = vmatprep.subr.bf16.mxu1 %v16142_v8  ;;  %v16212_v60 = vld [vmem:[#allocation22 + $0x2e0] ss:$16 sps:$4 sm:$0xff]   ;;  %v16217_v8 = vld [vmem:[#allocation22 + $0x104] ss:$16 sps:$4 sm:$0xff]  }
 0xd9c   : > { %8509 = vmatpush1.bf16.msra.mxu0 %v16137_v45  ;;  %v16220_v45 = vld [vmem:[#allocation22 + $0x304] ss:$16 sps:$4 sm:$0xff]  }
 0xd9d   : > { %8550 = vmatpush1.bf16.msra.mxu1 %v16140_v3  ;;  %8510 = vmatprep.subr.bf16.mxu0 %v16145_v41  ;;  %v16215_v3 = vld [vmem:[#allocation22 + $0x100] ss:$16 sps:$4 sm:$0xff]  }
 0xd9e   : > { %8551 = vmatprep.subr.bf16.mxu1 %v16148_v7  ;;  %v16218_v41 = vld [vmem:[#allocation22 + $0x300] ss:$16 sps:$4 sm:$0xff]   ;;  %v16223_v7 = vld [vmem:[#allocation22 + $0x124] ss:$16 sps:$4 sm:$0xff]  }
 0xda0   : > { %8511 = vmatpush1.bf16.msra.mxu0 %v16143_v26  ;;  %v16226_v26 = vld [vmem:[#allocation22 + $0x324] ss:$16 sps:$4 sm:$0xff]  }
 0xda1   : > { %8552 = vmatpush1.bf16.msra.mxu1 %v16146_v40  ;;  %8512 = vmatprep.subr.bf16.mxu0 %v16151_v20  ;;  %v16221_v40 = vld [vmem:[#allocation22 + $0x120] ss:$16 sps:$4 sm:$0xff]  }
 0xda2   : > { %8553 = vmatprep.subr.bf16.mxu1 %v16154_v61  ;;  %v16224_v20 = vld [vmem:[#allocation22 + $0x320] ss:$16 sps:$4 sm:$0xff]   ;;  %v16229_v61 = vld [vmem:[#allocation22 + $0x144] ss:$16 sps:$4 sm:$0xff]  }
 0xda4   : > { %8513 = vmatpush1.bf16.msra.mxu0 %v16149_v58  ;;  %v16232_v58 = vld [vmem:[#allocation22 + $0x344] ss:$16 sps:$4 sm:$0xff]  }
 0xda5   : > { %8554 = vmatpush1.bf16.msra.mxu1 %v16152_v35  ;;  %8514 = vmatprep.subr.bf16.mxu0 %v16157_v6  ;;  %v16227_v35 = vld [vmem:[#allocation22 + $0x140] ss:$16 sps:$4 sm:$0xff]  }
 0xda6   : > { %8555 = vmatprep.subr.bf16.mxu1 %v16160_v53  ;;  %v16230_v6 = vld [vmem:[#allocation22 + $0x340] ss:$16 sps:$4 sm:$0xff]   ;;  %v16235_v53 = vld [vmem:[#allocation22 + $0x164] ss:$16 sps:$4 sm:$0xff]  }
 0xda8   : > { %8515 = vmatpush1.bf16.msra.mxu0 %v16155_v38  ;;  %v16238_v38 = vld [vmem:[#allocation22 + $0x364] ss:$16 sps:$4 sm:$0xff]  }
 0xda9   : > { %8556 = vmatpush1.bf16.msra.mxu1 %v16158_v49  ;;  %8516 = vmatprep.subr.bf16.mxu0 %v16163_v57  ;;  %v16233_v49 = vld [vmem:[#allocation22 + $0x160] ss:$16 sps:$4 sm:$0xff]  }
 0xdaa   : > { %8557 = vmatprep.subr.bf16.mxu1 %v16166_v62  ;;  %v16236_v57 = vld [vmem:[#allocation22 + $0x360] ss:$16 sps:$4 sm:$0xff]   ;;  %v16241_v62 = vld [vmem:[#allocation22 + $0x184] ss:$16 sps:$4 sm:$0xff]  }
 0xdac   : > { %8517 = vmatpush1.bf16.msra.mxu0 %v16161_v28  ;;  %v16244_v28 = vld [vmem:[#allocation22 + $0x384] ss:$16 sps:$4 sm:$0xff]  }
 0xdad   : > { %8558 = vmatpush1.bf16.msra.mxu1 %v16164_v0  ;;  %9208 = vmatprep.subr.bf16.mxu0 %v16169_v24  ;;  %v16239_v0 = vld [vmem:[#allocation22 + $0x180] ss:$16 sps:$4 sm:$0xff]  }
 0xdae   : > { %9249 = vmatprep.subr.bf16.mxu1 %v16172_v22  ;;  %v16242_v24 = vld [vmem:[#allocation22 + $0x380] ss:$16 sps:$4 sm:$0xff]   ;;  %v16247_v22 = vld [vmem:[#allocation22 + $0x1a4] ss:$16 sps:$4 sm:$0xff]  }
 0xdaf   : > { %8519 = vmatmul.mubr.bf16.vlgmr.msra.gmra.mrb[4].mxu0 %v19797_v1  ;;  %v16182_v1 = vld [vmem:[#allocation22 + $0x240] ss:$16 sps:$4 sm:$0xff]  }
 0xdb0   : > { %8560 = vmatmul.mubr.bf16.vlgmr.msra.gmra.mrb[4].mxu1 %v19801_v63  ;;  %9209 = vmatpush1.bf16.msra.mxu0 %v16167_v55  ;;  %v16187_v63 = vld [vmem:[#allocation22 + $0x64] ss:$16 sps:$4 sm:$0xff]  }
 0xdb1   : > { %9250 = vmatpush1.bf16.msra.mxu1 %v16170_v33  ;;  %9210 = vmatprep.subr.bf16.mxu0 %v16175_v30  ;;  %v16250_v55 = vld [vmem:[#allocation22 + $0x3a4] ss:$16 sps:$4 sm:$0xff]   ;;  %v16245_v33 = vld [vmem:[#allocation22 + $0x1a0] ss:$16 sps:$4 sm:$0xff]  }
 0xdb2   : > { %9251 = vmatprep.subr.bf16.mxu1 %v16178_v59  ;;  %9240 = vmatprep.mubr.bf16.mxu0 %v19836_v29  ;;  %v16248_v30 = vld [vmem:[#allocation22 + $0x3a0] ss:$16 sps:$4 sm:$0xff]   ;;  %v16253_v59 = vld [vmem:[#allocation22 + $0x1c4] ss:$16 sps:$4 sm:$0xff]  }
 0xdb3   : > { %9281 = vmatprep.mubr.bf16.mxu1 %v19838_v23 }
 0xdb4   : > { %9211 = vmatpush1.bf16.msra.mxu0 %v16173_v39  ;;  %v16254_v39 = vld [vmem:[#allocation22 + $0x3c0] ss:$16 sps:$4 sm:$0xff]  }
 0xdb5   : > { %9252 = vmatpush1.bf16.msra.mxu1 %v16176_v2  ;;  %9212 = vmatprep.subr.bf16.mxu0 %v16181_v42  ;;  %v16259_v2 = vld [vmem:[#allocation22 + $0x1e4] ss:$16 sps:$4 sm:$0xff]  }
 0xdb6   : > { %9253 = vmatprep.subr.bf16.mxu1 %v16184_v5  ;;  %v16262_v42 = vld [vmem:[#allocation22 + $0x3e4] ss:$16 sps:$4 sm:$0xff]   ;;  %v16257_v5 = vld [vmem:[#allocation22 + $0x1e0] ss:$16 sps:$4 sm:$0xff]  }
 0xdb8   : > { %9213 = vmatpush1.bf16.msra.mxu0 %v16179_v37  ;;  %v7487_v37 = vrot.slane %v19828_v34, %v18580_v11 }
 0xdb9   : > { %9254 = vmatpush1.bf16.msra.mxu1 %v16182_v1  ;;  %9214 = vmatprep.subr.bf16.mxu0 %v16187_v63  ;;  %v7495_v1 = vrot.slane %v19828_v34, %v18585_v13  ;;  %v16260_v63 = vld [vmem:[#allocation22 + $0x3e0] ss:$16 sps:$4 sm:$0xff]  }
 0xdba   : > { %9255 = vmatprep.subr.bf16.mxu1 %v16190_v32  ;;  %v16265_v32 = vld [vmem:[#allocation22 + $0xc] ss:$16 sps:$4 sm:$0xff]  }
 0xdbc   : > { %9215 = vmatpush1.bf16.msra.mxu0 %v16185_v4  ;;  %v16268_v4 = vld [vmem:[#allocation22 + $0x20c] ss:$16 sps:$4 sm:$0xff]  }
 0xdbd   : > { %9256 = vmatpush1.bf16.msra.mxu1 %v16188_v9  ;;  %9216 = vmatprep.subr.bf16.mxu0 %v16193_v31  ;;  %v19846_v9 = vpack.c.bf16 %v7487_v37, %v7487_v37  ;;  %v19848_v31 = vpack.c.bf16 %v7495_v1, %v7495_v1  ;;  %v7457_v37 = vcombine.low %v19785_v56, %v19781_v12  ;;  %v20210_v1 = vld [vmem:[#allocation52_spill] sm:$0xff]  ;;  %v16341_v56 = vld [vmem:[#allocation22 + $0x1a8] ss:$16 sps:$4 sm:$0xff]  }
 0xdbe   : > { %9257 = vmatprep.subr.bf16.mxu1 %v16196_v50  ;;  %v16263_v50 = vld [vmem:[#allocation22 + $0x8] ss:$16 sps:$4 sm:$0xff]   ;;  %v16346_v12 = vld [vmem:[#allocation22 + $0x3ac] ss:$16 sps:$4 sm:$0xff]  }
 0xdc0   : > { %9217 = vmatpush1.bf16.msra.mxu0 %v16191_v52  ;;  %v16266_v52 = vld [vmem:[#allocation22 + $0x208] ss:$16 sps:$4 sm:$0xff]  }
 0xdc1   : > { %9258 = vmatpush1.bf16.msra.mxu1 %v16194_v51  ;;  %9218 = vmatprep.subr.bf16.mxu0 %v16199_v46  ;;  %v16271_v51 = vld [vmem:[#allocation22 + $0x2c] ss:$16 sps:$4 sm:$0xff]  }
 0xdc2   : > { %9259 = vmatprep.subr.bf16.mxu1 %v16202_v17  ;;  %v16274_v46 = vld [vmem:[#allocation22 + $0x22c] ss:$16 sps:$4 sm:$0xff]   ;;  %v16269_v17 = vld [vmem:[#allocation22 + $0x28] ss:$16 sps:$4 sm:$0xff]  }
 0xdc4   : > { %9219 = vmatpush1.bf16.msra.mxu0 %v16197_v47  ;;  %v16272_v47 = vld [vmem:[#allocation22 + $0x228] ss:$16 sps:$4 sm:$0xff]  }
 0xdc5   : > { %9260 = vmatpush1.bf16.msra.mxu1 %v16200_v27  ;;  %9220 = vmatprep.subr.bf16.mxu0 %v16205_v18  ;;  %v16277_v27 = vld [vmem:[#allocation22 + $0x4c] ss:$16 sps:$4 sm:$0xff]  }
 0xdc6   : > { %9261 = vmatprep.subr.bf16.mxu1 %v16208_v25  ;;  %v16280_v18 = vld [vmem:[#allocation22 + $0x24c] ss:$16 sps:$4 sm:$0xff]   ;;  %v16275_v25 = vld [vmem:[#allocation22 + $0x48] ss:$16 sps:$4 sm:$0xff]  }
 0xdc8   : > { %9221 = vmatpush1.bf16.msra.mxu0 %v16203_v21  ;;  %v16278_v21 = vld [vmem:[#allocation22 + $0x248] ss:$16 sps:$4 sm:$0xff]  }
 0xdc9   : > { %9262 = vmatpush1.bf16.msra.mxu1 %v16206_v10  ;;  %9222 = vmatprep.subr.bf16.mxu0 %v16211_v43  ;;  %v16283_v10 = vld [vmem:[#allocation22 + $0x6c] ss:$16 sps:$4 sm:$0xff]  }
 0xdca   : > { %9263 = vmatprep.subr.bf16.mxu1 %v16214_v19  ;;  %v16286_v43 = vld [vmem:[#allocation22 + $0x26c] ss:$16 sps:$4 sm:$0xff]   ;;  %v16281_v19 = vld [vmem:[#allocation22 + $0x68] ss:$16 sps:$4 sm:$0xff]  }
 0xdcc   : > { %9223 = vmatpush1.bf16.msra.mxu0 %v16209_v54  ;;  %v16284_v54 = vld [vmem:[#allocation22 + $0x268] ss:$16 sps:$4 sm:$0xff]  }
 0xdcd   : > { %9264 = vmatpush1.bf16.msra.mxu1 %v16212_v60  ;;  %9224 = vmatprep.subr.bf16.mxu0 %v16217_v8  ;;  %v16289_v60 = vld [vmem:[#allocation22 + $0x8c] ss:$16 sps:$4 sm:$0xff]  }
 0xdce   : > { %9265 = vmatprep.subr.bf16.mxu1 %v16220_v45  ;;  %v16292_v8 = vld [vmem:[#allocation22 + $0x28c] ss:$16 sps:$4 sm:$0xff]   ;;  %v16287_v45 = vld [vmem:[#allocation22 + $0x88] ss:$16 sps:$4 sm:$0xff]  }
 0xdd0   : > { %9225 = vmatpush1.bf16.msra.mxu0 %v16215_v3  ;;  %v16298_v3 = vld [vmem:[#allocation22 + $0x2ac] ss:$16 sps:$4 sm:$0xff]  }
 0xdd1   : > { %9266 = vmatpush1.bf16.msra.mxu1 %v16218_v41  ;;  %9226 = vmatprep.subr.bf16.mxu0 %v16223_v7  ;;  %v16293_v41 = vld [vmem:[#allocation22 + $0xa8] ss:$16 sps:$4 sm:$0xff]  }
 0xdd2   : > { %9267 = vmatprep.subr.bf16.mxu1 %v16226_v26  ;;  %v16296_v7 = vld [vmem:[#allocation22 + $0x2a8] ss:$16 sps:$4 sm:$0xff]   ;;  %v16301_v26 = vld [vmem:[#allocation22 + $0xcc] ss:$16 sps:$4 sm:$0xff]  }
 0xdd4   : > { %9227 = vmatpush1.bf16.msra.mxu0 %v16221_v40  ;;  %v16304_v40 = vld [vmem:[#allocation22 + $0x2cc] ss:$16 sps:$4 sm:$0xff]  }
 0xdd5   : > { %9268 = vmatpush1.bf16.msra.mxu1 %v16224_v20  ;;  %9228 = vmatprep.subr.bf16.mxu0 %v16229_v61  ;;  %v16299_v20 = vld [vmem:[#allocation22 + $0xc8] ss:$16 sps:$4 sm:$0xff]  }
 0xdd6   : > { %9269 = vmatprep.subr.bf16.mxu1 %v16232_v58  ;;  %v16302_v61 = vld [vmem:[#allocation22 + $0x2c8] ss:$16 sps:$4 sm:$0xff]   ;;  %v16307_v58 = vld [vmem:[#allocation22 + $0xec] ss:$16 sps:$4 sm:$0xff]  }
 0xdd8   : > { %9229 = vmatpush1.bf16.msra.mxu0 %v16227_v35  ;;  %v16310_v35 = vld [vmem:[#allocation22 + $0x2ec] ss:$16 sps:$4 sm:$0xff]  }
 0xdd9   : > { %9270 = vmatpush1.bf16.msra.mxu1 %v16230_v6  ;;  %9230 = vmatprep.subr.bf16.mxu0 %v16235_v53  ;;  %v16305_v6 = vld [vmem:[#allocation22 + $0xe8] ss:$16 sps:$4 sm:$0xff]  }
 0xdda   : > { %9271 = vmatprep.subr.bf16.mxu1 %v16238_v38  ;;  %v16308_v53 = vld [vmem:[#allocation22 + $0x2e8] ss:$16 sps:$4 sm:$0xff]   ;;  %v16313_v38 = vld [vmem:[#allocation22 + $0x10c] ss:$16 sps:$4 sm:$0xff]  }
 0xddc   : > { %9231 = vmatpush1.bf16.msra.mxu0 %v16233_v49  ;;  %v16316_v49 = vld [vmem:[#allocation22 + $0x30c] ss:$16 sps:$4 sm:$0xff]  }
 0xddd   : > { %9272 = vmatpush1.bf16.msra.mxu1 %v16236_v57  ;;  %9232 = vmatprep.subr.bf16.mxu0 %v16241_v62  ;;  %v16311_v57 = vld [vmem:[#allocation22 + $0x108] ss:$16 sps:$4 sm:$0xff]  }
 0xdde   : > { %9273 = vmatprep.subr.bf16.mxu1 %v16244_v28  ;;  %v16314_v62 = vld [vmem:[#allocation22 + $0x308] ss:$16 sps:$4 sm:$0xff]   ;;  %v16319_v28 = vld [vmem:[#allocation22 + $0x12c] ss:$16 sps:$4 sm:$0xff]  }
 0xde0   : > { %9233 = vmatpush1.bf16.msra.mxu0 %v16239_v0  ;;  %v16322_v0 = vld [vmem:[#allocation22 + $0x32c] ss:$16 sps:$4 sm:$0xff]  }
 0xde1   : > { %9274 = vmatpush1.bf16.msra.mxu1 %v16242_v24  ;;  %9234 = vmatprep.subr.bf16.mxu0 %v16247_v22  ;;  %v17646_v24 = vmov 1966171168  }
 0xde2   : > { %9275 = vmatprep.subr.bf16.mxu1 %v16250_v55  ;;  %v7459_v22 = vunpack.c.l.s4 %v17646_v24  ;;  %v16317_v55 = vld [vmem:[#allocation22 + $0x128] ss:$16 sps:$4 sm:$0xff]   ;;  %v16383_v24 = vld [vmem:[#allocation24 + $0x480] ss:$16 sps:$4 sm:$0xff]  }
 0xde4   : > { %9235 = vmatpush1.bf16.msra.mxu0 %v16245_v33  ;;  %v16320_v33 = vld [vmem:[#allocation22 + $0x328] ss:$16 sps:$4 sm:$0xff]  }
 0xde5   : > { %9276 = vmatpush1.bf16.msra.mxu1 %v16248_v30  ;;  %9236 = vmatprep.subr.bf16.mxu0 %v16253_v59  ;;  %v16325_v30 = vld [vmem:[#allocation22 + $0x14c] ss:$16 sps:$4 sm:$0xff]  }
 0xde6   : > { %9277 = vmatprep.subr.bf16.mxu1 %v16256_v48  ;;  %v16328_v59 = vld [vmem:[#allocation22 + $0x34c] ss:$16 sps:$4 sm:$0xff]   ;;  %v7460_v48 = vunpack.c.0.s8 %v7459_v22  ;;  %v16386_v22 = vld [vmem:[#allocation24 + $0x680] ss:$16 sps:$4 sm:$0xff]  }
 0xde8   : > { %9237 = vmatpush1.bf16.msra.mxu0 %v16251_v16  ;;  %v16323_v16 = vld [vmem:[#allocation22 + $0x148] ss:$16 sps:$4 sm:$0xff]  }
 0xde9   : > { %9278 = vmatpush1.bf16.msra.mxu1 %v16254_v39  ;;  %9238 = vmatprep.subr.bf16.mxu0 %v16259_v2  ;;  %v16326_v39 = vld [vmem:[#allocation22 + $0x348] ss:$16 sps:$4 sm:$0xff]   ;;  %v16331_v2 = vld [vmem:[#allocation22 + $0x16c] ss:$16 sps:$4 sm:$0xff]  }
 0xdea   : > { %9279 = vmatprep.subr.bf16.mxu1 %v16262_v42  ;;  %v16334_v42 = vld [vmem:[#allocation22 + $0x36c] ss:$16 sps:$4 sm:$0xff]  }
 0xdec   : > { %9239 = vmatpush1.bf16.msra.mxu0 %v16257_v5  ;;  %v7456_v5 = vcombine.low %v19783_v44, %v19779_v36  ;;  %v16343_v36 = vld [vmem:[#allocation22 + $0x1ac] ss:$16 sps:$4 sm:$0xff]  }
 0xded   : > { %9280 = vmatpush1.bf16.msra.mxu1 %v16260_v63  ;;  %9290 = vmatprep.subr.bf16.mxu0 %v16265_v32  ;;  %v7463_v63 = vsub.s32 %v7460_v48, %v20210_v1  ;;  %v16329_v32 = vld [vmem:[#allocation22 + $0x168] ss:$16 sps:$4 sm:$0xff]  }
 0xdee   : > { %9331 = vmatprep.subr.bf16.mxu1 %v16268_v4  ;;  %v16332_v4 = vld [vmem:[#allocation22 + $0x368] ss:$16 sps:$4 sm:$0xff]  }
 0xdef   : > { %9241 = vmatmul.mubr.bf16.vlgmr.msra.gmra.mrb[8].mxu0 %v19846_v9  ;;  %v16397_v48 = vld [vmem:[#allocation24 + $0x4c4] ss:$16 sps:$4 sm:$0xff]  }
 0xdf0   : > { %9282 = vmatmul.mubr.bf16.vlgmr.msra.gmra.mrb[8].mxu1 %v19848_v31  ;;  %9291 = vmatpush1.bf16.msra.mxu0 %v16263_v50  ;;  %v16337_v50 = vld [vmem:[#allocation22 + $0x18c] ss:$16 sps:$4 sm:$0xff]  }
 0xdf1   : > { %9332 = vmatpush1.bf16.msra.mxu1 %v16266_v52  ;;  %9292 = vmatprep.subr.bf16.mxu0 %v16271_v51  ;;  %v16340_v52 = vld [vmem:[#allocation22 + $0x38c] ss:$16 sps:$4 sm:$0xff]   ;;  %v7464_v51 = vrot.slane %v7456_v5, %v7463_v63 }
 0xdf2   : > { %9333 = vmatprep.subr.bf16.mxu1 %v16274_v46  ;;  %9322 = vmatprep.mubr.bf16.mxu0 %v19836_v29  ;;  %v16290_v29 = vld [vmem:[#allocation22 + $0x288] ss:$16 sps:$4 sm:$0xff]   ;;  %v7471_v46 = vrot.slane %v7457_v37, %v7463_v63 }
 0xdf3   : > { %9363 = vmatprep.mubr.bf16.mxu1 %v19838_v23  ;;  %v16295_v23 = vld [vmem:[#allocation22 + $0xac] ss:$16 sps:$4 sm:$0xff]  }
 0xdf4   : > { %9293 = vmatpush1.bf16.msra.mxu0 %v16269_v17  ;;  %v16335_v17 = vld [vmem:[#allocation22 + $0x188] ss:$16 sps:$4 sm:$0xff]   ;;  %v7472_v44 = vcombine.low %v7464_v51, %v7471_v46 }
 0xdf5   : > { %9334 = vmatpush1.bf16.msra.mxu1 %v16272_v47  ;;  %9294 = vmatprep.subr.bf16.mxu0 %v16277_v27  ;;  %v16338_v47 = vld [vmem:[#allocation22 + $0x388] ss:$16 sps:$4 sm:$0xff]  }
 0xdf6   : > { %9335 = vmatprep.subr.bf16.mxu1 %v16280_v18  ;;  %v16344_v27 = vld [vmem:[#allocation22 + $0x3a8] ss:$16 sps:$4 sm:$0xff]   ;;  %v16349_v18 = vld [vmem:[#allocation22 + $0x1cc] ss:$16 sps:$4 sm:$0xff]  }
 0xdf7   : > { %v16403_v46 = vld [vmem:[#allocation24 + $0x4e4] ss:$16 sps:$4 sm:$0xff]  }
 0xdf8   : > { %9295 = vmatpush1.bf16.msra.mxu0 %v16275_v25  ;;  %v16352_v25 = vld [vmem:[#allocation22 + $0x3cc] ss:$16 sps:$4 sm:$0xff]  }
 0xdf9   : > { %9336 = vmatpush1.bf16.msra.mxu1 %v16278_v21  ;;  %9296 = vmatprep.subr.bf16.mxu0 %v16283_v10  ;;  %v19859_v21 = vrot.slane %v7472_v44, %v7463_v63  ;;  %v16347_v10 = vld [vmem:[#allocation22 + $0x1c8] ss:$16 sps:$4 sm:$0xff]  }
 0xdfa   : > { %9337 = vmatprep.subr.bf16.mxu1 %v16286_v43  ;;  %v16350_v43 = vld [vmem:[#allocation22 + $0x3c8] ss:$16 sps:$4 sm:$0xff]  }
 0xdfb   : > { %v16412_v44 = vld [vmem:[#allocation24 + $0x704] ss:$16 sps:$4 sm:$0xff]  }
 0xdfc   : > { %9297 = vmatpush1.bf16.msra.mxu0 %v16281_v19  ;;  %v16355_v19 = vld [vmem:[#allocation22 + $0x1ec] ss:$16 sps:$4 sm:$0xff]  }
 0xdfd   : > { %9338 = vmatpush1.bf16.msra.mxu1 %v16284_v54  ;;  %9298 = vmatprep.subr.bf16.mxu0 %v16289_v60  ;;  %v16358_v54 = vld [vmem:[#allocation22 + $0x3ec] ss:$16 sps:$4 sm:$0xff]   ;;  %v19863_v60 = vmul.f32 %v19859_v21, %v19828_v34  ;;  %v16367_v34 = vld [vmem:[#allocation24 + $0x424] ss:$16 sps:$4 sm:$0xff]  }
 0xdfe   : > { %9339 = vmatprep.subr.bf16.mxu1 %v16292_v8  ;;  %v16353_v8 = vld [vmem:[#allocation22 + $0x1e8] ss:$16 sps:$4 sm:$0xff]  }
 0xe00   : > { %9299 = vmatpush1.bf16.msra.mxu0 %v16287_v45  ;;  %v16356_v45 = vld [vmem:[#allocation22 + $0x3e8] ss:$16 sps:$4 sm:$0xff]  }
 0xe01   : > { %9340 = vmatpush1.bf16.msra.mxu1 %v16290_v29  ;;  %9300 = vmatprep.subr.bf16.mxu0 %v16295_v23  ;;  %v16361_v29 = vld [vmem:[#allocation24 + $0x404] ss:$16 sps:$4 sm:$0xff]  }
 0xe02   : > { %9341 = vmatprep.subr.bf16.mxu1 %v16298_v3  ;;  %v16364_v23 = vld [vmem:[#allocation24 + $0x604] ss:$16 sps:$4 sm:$0xff]   ;;  %v16359_v3 = vld [vmem:[#allocation24 + $0x400] ss:$16 sps:$4 sm:$0xff]  }
 0xe04   : > { %9301 = vmatpush1.bf16.msra.mxu0 %v16293_v41  ;;  %v9559_v41 = vrot.slane %v19863_v60, %v18588_v14 }
 0xe05   : > { %9342 = vmatpush1.bf16.msra.mxu1 %v16296_v7  ;;  %9302 = vmatprep.subr.bf16.mxu0 %v16301_v26  ;;  %v9567_v7 = vrot.slane %v19863_v60, %v18591_v15  ;;  %v16362_v26 = vld [vmem:[#allocation24 + $0x600] ss:$16 sps:$4 sm:$0xff]  }
 0xe06   : > { %9343 = vmatprep.subr.bf16.mxu1 %v16304_v40  ;;  %v16370_v40 = vld [vmem:[#allocation24 + $0x624] ss:$16 sps:$4 sm:$0xff]  }
 0xe08   : > { %9303 = vmatpush1.bf16.msra.mxu0 %v16299_v20  ;;  %v19869_v20 = vpack.c.bf16 %v9559_v41, %v9559_v41  ;;  %v16428_v41 = vld [vmem:[#allocation24 + $0x760] ss:$16 sps:$4 sm:$0xff]  }
 0xe09   : > { %9344 = vmatpush1.bf16.msra.mxu1 %v16302_v61  ;;  %9304 = vmatprep.subr.bf16.mxu0 %v16307_v58  ;;  %v19871_v61 = vpack.c.bf16 %v9567_v7, %v9567_v7  ;;  %v16365_v58 = vld [vmem:[#allocation24 + $0x420] ss:$16 sps:$4 sm:$0xff]   ;;  %v16433_v7 = vld [vmem:[#allocation24 + $0x584] ss:$16 sps:$4 sm:$0xff]  }
 0xe0a   : > { %9345 = vmatprep.subr.bf16.mxu1 %v16310_v35  ;;  %v16368_v35 = vld [vmem:[#allocation24 + $0x620] ss:$16 sps:$4 sm:$0xff]  }
 0xe0c   : > { %9305 = vmatpush1.bf16.msra.mxu0 %v16305_v6  ;;  %v16373_v6 = vld [vmem:[#allocation24 + $0x444] ss:$16 sps:$4 sm:$0xff]  }
 0xe0d   : > { %9346 = vmatpush1.bf16.msra.mxu1 %v16308_v53  ;;  %9306 = vmatprep.subr.bf16.mxu0 %v16313_v38  ;;  %v16376_v53 = vld [vmem:[#allocation24 + $0x644] ss:$16 sps:$4 sm:$0xff]   ;;  %v16371_v38 = vld [vmem:[#allocation24 + $0x440] ss:$16 sps:$4 sm:$0xff]  }
 0xe0e   : > { %9347 = vmatprep.subr.bf16.mxu1 %v16316_v49  ;;  %v16374_v49 = vld [vmem:[#allocation24 + $0x640] ss:$16 sps:$4 sm:$0xff]  }
 0xe10   : > { %9307 = vmatpush1.bf16.msra.mxu0 %v16311_v57  ;;  %v16377_v57 = vld [vmem:[#allocation24 + $0x460] ss:$16 sps:$4 sm:$0xff]  }
 0xe11   : > { %9348 = vmatpush1.bf16.msra.mxu1 %v16314_v62  ;;  %9308 = vmatprep.subr.bf16.mxu0 %v16319_v28  ;;  %v16380_v62 = vld [vmem:[#allocation24 + $0x660] ss:$16 sps:$4 sm:$0xff]   ;;  %v16385_v28 = vld [vmem:[#allocation24 + $0x484] ss:$16 sps:$4 sm:$0xff]  }
 0xe12   : > { %9349 = vmatprep.subr.bf16.mxu1 %v16322_v0  ;;  %v16388_v0 = vld [vmem:[#allocation24 + $0x684] ss:$16 sps:$4 sm:$0xff]  }
 0xe14   : > { %9309 = vmatpush1.bf16.msra.mxu0 %v16317_v55  ;;  %v16391_v55 = vld [vmem:[#allocation24 + $0x4a4] ss:$16 sps:$4 sm:$0xff]  }
 0xe15   : > { %9350 = vmatpush1.bf16.msra.mxu1 %v16320_v33  ;;  %9310 = vmatprep.subr.bf16.mxu0 %v16325_v30  ;;  %v16394_v33 = vld [vmem:[#allocation24 + $0x6a4] ss:$16 sps:$4 sm:$0xff]   ;;  %v16389_v30 = vld [vmem:[#allocation24 + $0x4a0] ss:$16 sps:$4 sm:$0xff]  }
 0xe16   : > { %9351 = vmatprep.subr.bf16.mxu1 %v16328_v59  ;;  %v16392_v59 = vld [vmem:[#allocation24 + $0x6a0] ss:$16 sps:$4 sm:$0xff]  }
 0xe18   : > { %9311 = vmatpush1.bf16.msra.mxu0 %v16323_v16  ;;  %v16400_v16 = vld [vmem:[#allocation24 + $0x6c4] ss:$16 sps:$4 sm:$0xff]  }
 0xe19   : > { %9352 = vmatpush1.bf16.msra.mxu1 %v16326_v39  ;;  %9312 = vmatprep.subr.bf16.mxu0 %v16331_v2 }
 0xe1a   : > { %9353 = vmatprep.subr.bf16.mxu1 %v16334_v42  ;;  %v16395_v42 = vld [vmem:[#allocation24 + $0x4c0] ss:$16 sps:$4 sm:$0xff]  }
 0xe1c   : > { %9313 = vmatpush1.bf16.msra.mxu0 %v16329_v32 }
 0xe1d   : > { %9354 = vmatpush1.bf16.msra.mxu1 %v16332_v4  ;;  %9314 = vmatprep.subr.bf16.mxu0 %v16337_v50  ;;  %v16398_v50 = vld [vmem:[#allocation24 + $0x6c0] ss:$16 sps:$4 sm:$0xff]  }
 0xe1e   : > { %9355 = vmatprep.subr.bf16.mxu1 %v16340_v52 }
 0xe20   : > { %9315 = vmatpush1.bf16.msra.mxu0 %v16335_v17  ;;  %v16406_v17 = vld [vmem:[#allocation24 + $0x6e4] ss:$16 sps:$4 sm:$0xff]  }
 0xe21   : > { %9356 = vmatpush1.bf16.msra.mxu1 %v16338_v47  ;;  %9316 = vmatprep.subr.bf16.mxu0 %v16343_v36  ;;  %v16401_v47 = vld [vmem:[#allocation24 + $0x4e0] ss:$16 sps:$4 sm:$0xff]  }
 0xe22   : > { %9357 = vmatprep.subr.bf16.mxu1 %v16346_v12  ;;  %v16404_v36 = vld [vmem:[#allocation24 + $0x6e0] ss:$16 sps:$4 sm:$0xff]   ;;  %v16409_v12 = vld [vmem:[#allocation24 + $0x504] ss:$16 sps:$4 sm:$0xff]  }
 0xe24   : > { %9317 = vmatpush1.bf16.msra.mxu0 %v16341_v56  ;;  %v16407_v56 = vld [vmem:[#allocation24 + $0x500] ss:$16 sps:$4 sm:$0xff]  }
 0xe25   : > { %9358 = vmatpush1.bf16.msra.mxu1 %v16344_v27  ;;  %9318 = vmatprep.subr.bf16.mxu0 %v16349_v18  ;;  %v16410_v27 = vld [vmem:[#allocation24 + $0x700] ss:$16 sps:$4 sm:$0xff]   ;;  %v16415_v18 = vld [vmem:[#allocation24 + $0x524] ss:$16 sps:$4 sm:$0xff]  }
 0xe26   : > { %9359 = vmatprep.subr.bf16.mxu1 %v16352_v25  ;;  %v16418_v25 = vld [vmem:[#allocation24 + $0x724] ss:$16 sps:$4 sm:$0xff]  }
 0xe28   : > { %9319 = vmatpush1.bf16.msra.mxu0 %v16347_v10  ;;  %v16413_v10 = vld [vmem:[#allocation24 + $0x520] ss:$16 sps:$4 sm:$0xff]  }
 0xe29   : > { %9360 = vmatpush1.bf16.msra.mxu1 %v16350_v43  ;;  %9320 = vmatprep.subr.bf16.mxu0 %v16355_v19  ;;  %v16416_v43 = vld [vmem:[#allocation24 + $0x720] ss:$16 sps:$4 sm:$0xff]   ;;  %v16421_v19 = vld [vmem:[#allocation24 + $0x544] ss:$16 sps:$4 sm:$0xff]  }
 0xe2a   : > { %9361 = vmatprep.subr.bf16.mxu1 %v16358_v54  ;;  %v16424_v54 = vld [vmem:[#allocation24 + $0x744] ss:$16 sps:$4 sm:$0xff]  }
 0xe2c   : > { %9321 = vmatpush1.bf16.msra.mxu0 %v16353_v8  ;;  %v16419_v8 = vld [vmem:[#allocation24 + $0x540] ss:$16 sps:$4 sm:$0xff]  }
 0xe2d   : > { %9362 = vmatpush1.bf16.msra.mxu1 %v16356_v45  ;;  %10344 = vmatprep.subr.bf16.mxu0 %v16361_v29  ;;  %v16422_v45 = vld [vmem:[#allocation24 + $0x740] ss:$16 sps:$4 sm:$0xff]   ;;  %v16427_v29 = vld [vmem:[#allocation24 + $0x564] ss:$16 sps:$4 sm:$0xff]  }
 0xe2e   : > { %10385 = vmatprep.subr.bf16.mxu1 %v16364_v23  ;;  %v16430_v23 = vld [vmem:[#allocation24 + $0x764] ss:$16 sps:$4 sm:$0xff]  }
 0xe2f   : > { %9323 = vmatmul.mubr.bf16.vlgmr.msra.gmra.mrb[12].mxu0 %v19846_v9  ;;  %v16379_v9 = vld [vmem:[#allocation24 + $0x464] ss:$16 sps:$4 sm:$0xff]  }
 0xe30   : > { %9364 = vmatmul.mubr.bf16.vlgmr.msra.gmra.mrb[12].mxu1 %v19848_v31  ;;  %10345 = vmatpush1.bf16.msra.mxu0 %v16359_v3  ;;  %v16382_v31 = vld [vmem:[#allocation24 + $0x664] ss:$16 sps:$4 sm:$0xff]   ;;  %v16425_v3 = vld [vmem:[#allocation24 + $0x560] ss:$16 sps:$4 sm:$0xff]  }
 0xe31   : > { %10386 = vmatpush1.bf16.msra.mxu1 %v16362_v26  ;;  %10346 = vmatprep.subr.bf16.mxu0 %v16367_v34  ;;  %v16436_v26 = vld [vmem:[#allocation24 + $0x784] ss:$16 sps:$4 sm:$0xff]   ;;  %v16431_v34 = vld [vmem:[#allocation24 + $0x580] ss:$16 sps:$4 sm:$0xff]  }
 0xe32   : > { %10387 = vmatprep.subr.bf16.mxu1 %v16370_v40  ;;  %10376 = vmatprep.mubr.bf16.mxu0 %v19869_v20  ;;  %v16434_v40 = vld [vmem:[#allocation24 + $0x780] ss:$16 sps:$4 sm:$0xff]  }
 0xe33   : > { %10417 = vmatprep.mubr.bf16.mxu1 %v19871_v61 }
 0xe34   : > { %10347 = vmatpush1.bf16.msra.mxu0 %v16365_v58  ;;  %v16439_v58 = vld [vmem:[#allocation24 + $0x5a4] ss:$16 sps:$4 sm:$0xff]  }
 0xe35   : > { %10388 = vmatpush1.bf16.msra.mxu1 %v16368_v35  ;;  %10348 = vmatprep.subr.bf16.mxu0 %v16373_v6  ;;  %v16442_v35 = vld [vmem:[#allocation24 + $0x7a4] ss:$16 sps:$4 sm:$0xff]   ;;  %v16437_v6 = vld [vmem:[#allocation24 + $0x5a0] ss:$16 sps:$4 sm:$0xff]  }
 0xe36   : > { %10389 = vmatprep.subr.bf16.mxu1 %v16376_v53  ;;  %v16440_v53 = vld [vmem:[#allocation24 + $0x7a0] ss:$16 sps:$4 sm:$0xff]  }
 0xe38   : > { %10349 = vmatpush1.bf16.msra.mxu0 %v16371_v38  ;;  %v16445_v38 = vld [vmem:[#allocation24 + $0x5c4] ss:$16 sps:$4 sm:$0xff]  }
 0xe39   : > { %10390 = vmatpush1.bf16.msra.mxu1 %v16374_v49  ;;  %10350 = vmatprep.subr.bf16.mxu0 %v16379_v9  ;;  %v16448_v49 = vld [vmem:[#allocation24 + $0x7c4] ss:$16 sps:$4 sm:$0xff]   ;;  %v16443_v9 = vld [vmem:[#allocation24 + $0x5c0] ss:$16 sps:$4 sm:$0xff]  }
 0xe3a   : > { %10391 = vmatprep.subr.bf16.mxu1 %v16382_v31  ;;  %v16446_v31 = vld [vmem:[#allocation24 + $0x7c0] ss:$16 sps:$4 sm:$0xff]  }
 0xe3c   : > { %10351 = vmatpush1.bf16.msra.mxu0 %v16377_v57  ;;  %v16451_v57 = vld [vmem:[#allocation24 + $0x5e4] ss:$16 sps:$4 sm:$0xff]  }
 0xe3d   : > { %10392 = vmatpush1.bf16.msra.mxu1 %v16380_v62  ;;  %10352 = vmatprep.subr.bf16.mxu0 %v16385_v28  ;;  %v16454_v62 = vld [vmem:[#allocation24 + $0x7e4] ss:$16 sps:$4 sm:$0xff]   ;;  %v9555_v28 = vrot.slane %v19863_v60, %v18580_v11 }
 0xe3e   : > { %10393 = vmatprep.subr.bf16.mxu1 %v16388_v0  ;;  %v9563_v0 = vrot.slane %v19863_v60, %v18585_v13  ;;  %v16466_v60 = vld [vmem:[#allocation24 + $0x62c] ss:$16 sps:$4 sm:$0xff]  }
 0xe40   : > { %10353 = vmatpush1.bf16.msra.mxu0 %v16383_v24  ;;  %v16449_v24 = vld [vmem:[#allocation24 + $0x5e0] ss:$16 sps:$4 sm:$0xff]  }
 0xe41   : > { %10394 = vmatpush1.bf16.msra.mxu1 %v16386_v22  ;;  %10354 = vmatprep.subr.bf16.mxu0 %v16391_v55  ;;  %v16452_v22 = vld [vmem:[#allocation24 + $0x7e0] ss:$16 sps:$4 sm:$0xff]   ;;  %v16457_v55 = vld [vmem:[#allocation24 + $0x40c] ss:$16 sps:$4 sm:$0xff]  }
 0xe42   : > { %10395 = vmatprep.subr.bf16.mxu1 %v16394_v33  ;;  %v8438_v39 = vpop.f32.mrb[0].mxu0  ;;  %v16460_v33 = vld [vmem:[#allocation24 + $0x60c] ss:$16 sps:$4 sm:$0xff]  }
 0xe43   : > { %v8479_v2 = vpop.f32.mrb[0].mxu1  ;;  %v8440_v37 = vpop.f32.mrb[1].mxu0 }
 0xe44   : > { %v19877_v5 = vadd.f32 %v8479_v2, %v8438_v39  ;;  %v8481_v1 = vpop.f32.mrb[1].mxu1  ;;  %v8442_v32 = vpop.f32.mrb[2].mxu0  ;;  %10355 = vmatpush1.bf16.msra.mxu0 %v16389_v30  ;;  %v16455_v30 = vld [vmem:[#allocation24 + $0x408] ss:$16 sps:$4 sm:$0xff]   ;;  %v16463_v39 = vld [vmem:[#allocation24 + $0x42c] ss:$16 sps:$4 sm:$0xff]  }
 0xe45   : > { %v19879_v63 = vadd.f32 %v8481_v1, %v8440_v37  ;;  %v8483_v4 = vpop.f32.mrb[2].mxu1  ;;  %10396 = vmatpush1.bf16.msra.mxu1 %v16392_v59  ;;  %v8443_v52 = vpop.f32.mrb[3].mxu0  ;;  %10356 = vmatprep.subr.bf16.mxu0 %v16397_v48  ;;  %v16458_v59 = vld [vmem:[#allocation24 + $0x608] ss:$16 sps:$4 sm:$0xff]   ;;  %v19885_v48 = vpack.c.bf16 %v9555_v28, %v9555_v28  ;;  %v16469_v37 = vld [vmem:[#allocation24 + $0x44c] ss:$16 sps:$4 sm:$0xff]  }
 0xe46   : > { %v8484_v51 = vpop.f32.mrb[3].mxu1  ;;  %10397 = vmatprep.subr.bf16.mxu1 %v16400_v16  ;;  %v19887_v16 = vpack.c.bf16 %v9563_v0, %v9563_v0  ;;  %v16461_v2 = vld [vmem:[#allocation24 + $0x428] ss:$16 sps:$4 sm:$0xff]   ;;  %v16472_v1 = vld [vmem:[#allocation24 + $0x64c] ss:$16 sps:$4 sm:$0xff]  }
 0xe47   : > { %v16467_v32 = vld [vmem:[#allocation24 + $0x448] ss:$16 sps:$4 sm:$0xff]   ;;  %v16478_v52 = vld [vmem:[#allocation24 + $0x66c] ss:$16 sps:$4 sm:$0xff]  }
 0xe48   : > { %10357 = vmatpush1.bf16.msra.mxu0 %v16395_v42  ;;  %v16464_v42 = vld [vmem:[#allocation24 + $0x628] ss:$16 sps:$4 sm:$0xff]   ;;  %v16520_v28 = vld [vmem:[#allocation24 + $0x74c] ss:$16 sps:$4 sm:$0xff]  }
 0xe49   : > { %10398 = vmatpush1.bf16.msra.mxu1 %v16398_v50  ;;  %10358 = vmatprep.subr.bf16.mxu0 %v16403_v46  ;;  %v16470_v4 = vld [vmem:[#allocation24 + $0x648] ss:$16 sps:$4 sm:$0xff]   ;;  %v16475_v50 = vld [vmem:[#allocation24 + $0x46c] ss:$16 sps:$4 sm:$0xff]  }
 0xe4a   : > { %10399 = vmatprep.subr.bf16.mxu1 %v16406_v17  ;;  %v16473_v51 = vld [vmem:[#allocation24 + $0x468] ss:$16 sps:$4 sm:$0xff]   ;;  %v16481_v17 = vld [vmem:[#allocation24 + $0x48c] ss:$16 sps:$4 sm:$0xff]  }
 0xe4b   : > { %v16476_v46 = vld [vmem:[#allocation24 + $0x668] ss:$16 sps:$4 sm:$0xff]  }
 0xe4c   : > { %10359 = vmatpush1.bf16.msra.mxu0 %v16401_v47  ;;  %v16484_v47 = vld [vmem:[#allocation24 + $0x68c] ss:$16 sps:$4 sm:$0xff]   ;;  %v16515_v0 = vld [vmem:[#allocation24 + $0x548] ss:$16 sps:$4 sm:$0xff]  }
 0xe4d   : > { %10400 = vmatpush1.bf16.msra.mxu1 %v16404_v36  ;;  %10360 = vmatprep.subr.bf16.mxu0 %v16409_v12  ;;  %v16487_v36 = vld [vmem:[#allocation24 + $0x4ac] ss:$16 sps:$4 sm:$0xff]  }
 0xe4e   : > { %10401 = vmatprep.subr.bf16.mxu1 %v16412_v44  ;;  %v16490_v12 = vld [vmem:[#allocation24 + $0x6ac] ss:$16 sps:$4 sm:$0xff]   ;;  %v16485_v44 = vld [vmem:[#allocation24 + $0x4a8] ss:$16 sps:$4 sm:$0xff]  }
 0xe50   : > { %10361 = vmatpush1.bf16.msra.mxu0 %v16407_v56  ;;  %v16488_v56 = vld [vmem:[#allocation24 + $0x6a8] ss:$16 sps:$4 sm:$0xff]  }
 0xe51   : > { %10402 = vmatpush1.bf16.msra.mxu1 %v16410_v27  ;;  %10362 = vmatprep.subr.bf16.mxu0 %v16415_v18  ;;  %v16493_v27 = vld [vmem:[#allocation24 + $0x4cc] ss:$16 sps:$4 sm:$0xff]  }
 0xe52   : > { %10403 = vmatprep.subr.bf16.mxu1 %v16418_v25  ;;  %v16496_v18 = vld [vmem:[#allocation24 + $0x6cc] ss:$16 sps:$4 sm:$0xff]  }
 0xe54   : > { %10363 = vmatpush1.bf16.msra.mxu0 %v16413_v10 }
 0xe55   : > { %10404 = vmatpush1.bf16.msra.mxu1 %v16416_v43  ;;  %10364 = vmatprep.subr.bf16.mxu0 %v16421_v19  ;;  %v16491_v43 = vld [vmem:[#allocation24 + $0x4c8] ss:$16 sps:$4 sm:$0xff]  }
 0xe56   : > { %10405 = vmatprep.subr.bf16.mxu1 %v16424_v54  ;;  %v16494_v19 = vld [vmem:[#allocation24 + $0x6c8] ss:$16 sps:$4 sm:$0xff]  }
 0xe58   : > { %10365 = vmatpush1.bf16.msra.mxu0 %v16419_v8 }
 0xe59   : > { %10406 = vmatpush1.bf16.msra.mxu1 %v16422_v45  ;;  %10366 = vmatprep.subr.bf16.mxu0 %v16427_v29 }
 0xe5a   : > { %10407 = vmatprep.subr.bf16.mxu1 %v16430_v23 }
 0xe5c   : > { %10367 = vmatpush1.bf16.msra.mxu0 %v16425_v3 }
 0xe5d   : > { %10408 = vmatpush1.bf16.msra.mxu1 %v16428_v41  ;;  %10368 = vmatprep.subr.bf16.mxu0 %v16433_v7 }
 0xe5e   : > { %10409 = vmatprep.subr.bf16.mxu1 %v16436_v26  ;;  %v16499_v26 = vld [vmem:[#allocation24 + $0x4ec] ss:$16 sps:$4 sm:$0xff]  }
 0xe60   : > { %10369 = vmatpush1.bf16.msra.mxu0 %v16431_v34  ;;  %v16502_v34 = vld [vmem:[#allocation24 + $0x6ec] ss:$16 sps:$4 sm:$0xff]  }
 0xe61   : > { %10410 = vmatpush1.bf16.msra.mxu1 %v16434_v40  ;;  %10370 = vmatprep.subr.bf16.mxu0 %v16439_v58  ;;  %v16497_v40 = vld [vmem:[#allocation24 + $0x4e8] ss:$16 sps:$4 sm:$0xff]  }
 0xe62   : > { %10411 = vmatprep.subr.bf16.mxu1 %v16442_v35  ;;  %v16500_v58 = vld [vmem:[#allocation24 + $0x6e8] ss:$16 sps:$4 sm:$0xff]   ;;  %v16505_v35 = vld [vmem:[#allocation24 + $0x50c] ss:$16 sps:$4 sm:$0xff]  }
 0xe64   : > { %10371 = vmatpush1.bf16.msra.mxu0 %v16437_v6  ;;  %v16508_v6 = vld [vmem:[#allocation24 + $0x70c] ss:$16 sps:$4 sm:$0xff]  }
 0xe65   : > { %10412 = vmatpush1.bf16.msra.mxu1 %v16440_v53  ;;  %10372 = vmatprep.subr.bf16.mxu0 %v16445_v38  ;;  %v16503_v53 = vld [vmem:[#allocation24 + $0x508] ss:$16 sps:$4 sm:$0xff]  }
 0xe66   : > { %10413 = vmatprep.subr.bf16.mxu1 %v16448_v49  ;;  %v16506_v38 = vld [vmem:[#allocation24 + $0x708] ss:$16 sps:$4 sm:$0xff]   ;;  %v16511_v49 = vld [vmem:[#allocation24 + $0x52c] ss:$16 sps:$4 sm:$0xff]  }
 0xe68   : > { %10373 = vmatpush1.bf16.msra.mxu0 %v16443_v9  ;;  %v16514_v9 = vld [vmem:[#allocation24 + $0x72c] ss:$16 sps:$4 sm:$0xff]  }
 0xe69   : > { %10414 = vmatpush1.bf16.msra.mxu1 %v16446_v31  ;;  %10374 = vmatprep.subr.bf16.mxu0 %v16451_v57  ;;  %v16509_v31 = vld [vmem:[#allocation24 + $0x528] ss:$16 sps:$4 sm:$0xff]  }
 0xe6a   : > { %10415 = vmatprep.subr.bf16.mxu1 %v16454_v62  ;;  %v16512_v57 = vld [vmem:[#allocation24 + $0x728] ss:$16 sps:$4 sm:$0xff]   ;;  %v16517_v62 = vld [vmem:[#allocation24 + $0x54c] ss:$16 sps:$4 sm:$0xff]  }
 0xe6c   : > { %10375 = vmatpush1.bf16.msra.mxu0 %v16449_v24  ;;  %v16518_v24 = vld [vmem:[#allocation24 + $0x748] ss:$16 sps:$4 sm:$0xff]  }
 0xe6d   : > { %10416 = vmatpush1.bf16.msra.mxu1 %v16452_v22  ;;  %10426 = vmatprep.subr.bf16.mxu0 %v16457_v55  ;;  %v16523_v22 = vld [vmem:[#allocation24 + $0x56c] ss:$16 sps:$4 sm:$0xff]  }
 0xe6e   : > { %10467 = vmatprep.subr.bf16.mxu1 %v16460_v33  ;;  %v16526_v55 = vld [vmem:[#allocation24 + $0x76c] ss:$16 sps:$4 sm:$0xff]   ;;  %v16521_v33 = vld [vmem:[#allocation24 + $0x568] ss:$16 sps:$4 sm:$0xff]  }
 0xe6f   : > { %10377 = vmatmul.mubr.bf16.vlgmr.msra.gmra.mrb[16].mxu0 %v19885_v48 }
 0xe70   : > { %10418 = vmatmul.mubr.bf16.vlgmr.msra.gmra.mrb[16].mxu1 %v19887_v16  ;;  %10427 = vmatpush1.bf16.msra.mxu0 %v16455_v30  ;;  %v16524_v30 = vld [vmem:[#allocation24 + $0x768] ss:$16 sps:$4 sm:$0xff]  }
 0xe71   : > { %10468 = vmatpush1.bf16.msra.mxu1 %v16458_v59  ;;  %10428 = vmatprep.subr.bf16.mxu0 %v16463_v39  ;;  %v16529_v59 = vld [vmem:[#allocation24 + $0x58c] ss:$16 sps:$4 sm:$0xff]  }
 0xe72   : > { %10469 = vmatprep.subr.bf16.mxu1 %v16466_v60  ;;  %10458 = vmatprep.mubr.bf16.mxu0 %v19869_v20  ;;  %v16479_v20 = vld [vmem:[#allocation24 + $0x488] ss:$16 sps:$4 sm:$0xff]   ;;  %v16532_v39 = vld [vmem:[#allocation24 + $0x78c] ss:$16 sps:$4 sm:$0xff]  }
 0xe73   : > { %10499 = vmatprep.mubr.bf16.mxu1 %v19871_v61  ;;  %v16482_v61 = vld [vmem:[#allocation24 + $0x688] ss:$16 sps:$4 sm:$0xff]  }
 0xe74   : > { %10429 = vmatpush1.bf16.msra.mxu0 %v16461_v2  ;;  %v16527_v60 = vld [vmem:[#allocation24 + $0x588] ss:$16 sps:$4 sm:$0xff]  }
 0xe75   : > { %10470 = vmatpush1.bf16.msra.mxu1 %v16464_v42  ;;  %10430 = vmatprep.subr.bf16.mxu0 %v16469_v37  ;;  %v16530_v2 = vld [vmem:[#allocation24 + $0x788] ss:$16 sps:$4 sm:$0xff]   ;;  %v16535_v42 = vld [vmem:[#allocation24 + $0x5ac] ss:$16 sps:$4 sm:$0xff]  }
 0xe76   : > { %10471 = vmatprep.subr.bf16.mxu1 %v16472_v1  ;;  %v16538_v37 = vld [vmem:[#allocation24 + $0x7ac] ss:$16 sps:$4 sm:$0xff]   ;;  %v16533_v1 = vld [vmem:[#allocation24 + $0x5a8] ss:$16 sps:$4 sm:$0xff]  }
 0xe78   : > { %10431 = vmatpush1.bf16.msra.mxu0 %v16467_v32  ;;  %v16536_v32 = vld [vmem:[#allocation24 + $0x7a8] ss:$16 sps:$4 sm:$0xff]  }
 0xe79   : > { %10472 = vmatpush1.bf16.msra.mxu1 %v16470_v4  ;;  %10432 = vmatprep.subr.bf16.mxu0 %v16475_v50  ;;  %v16541_v4 = vld [vmem:[#allocation24 + $0x5cc] ss:$16 sps:$4 sm:$0xff]  }
 0xe7a   : > { %10473 = vmatprep.subr.bf16.mxu1 %v16478_v52  ;;  %v16544_v50 = vld [vmem:[#allocation24 + $0x7cc] ss:$16 sps:$4 sm:$0xff]   ;;  %v16539_v52 = vld [vmem:[#allocation24 + $0x5c8] ss:$16 sps:$4 sm:$0xff]  }
 0xe7c   : > { %10433 = vmatpush1.bf16.msra.mxu0 %v16473_v51  ;;  %v16542_v51 = vld [vmem:[#allocation24 + $0x7c8] ss:$16 sps:$4 sm:$0xff]  }
 0xe7d   : > { %10474 = vmatpush1.bf16.msra.mxu1 %v16476_v46  ;;  %10434 = vmatprep.subr.bf16.mxu0 %v16481_v17  ;;  %v16547_v46 = vld [vmem:[#allocation24 + $0x5ec] ss:$16 sps:$4 sm:$0xff]  }
 0xe7e   : > { %10475 = vmatprep.subr.bf16.mxu1 %v16484_v47  ;;  %v16550_v17 = vld [vmem:[#allocation24 + $0x7ec] ss:$16 sps:$4 sm:$0xff]   ;;  %v16975_v47 = vld [vmem:[#allocation2] sm:$0xf] }
 0xe80   : > { %10435 = vmatpush1.bf16.msra.mxu0 %v16479_v20  ;;  %v19898_v20 = vadd.f32 %v16975_v47, %v19859_v21  ;;  %v16559_v21 = vld [vmem:[#allocation24 + $0x24] ss:$16 sps:$4 sm:$0xff]   ;;  %v16605_v47 = vld [vmem:[#allocation24 + $0x120] ss:$16 sps:$4 sm:$0xff]  }
 0xe81   : > { %10476 = vmatpush1.bf16.msra.mxu1 %v16482_v61  ;;  %10436 = vmatprep.subr.bf16.mxu0 %v16487_v36  ;;  %v16545_v61 = vld [vmem:[#allocation24 + $0x5e8] ss:$16 sps:$4 sm:$0xff]  }
 0xe82   : > { %10477 = vmatprep.subr.bf16.mxu1 %v16490_v12  ;;  %v8520_v25 = vpop.f32.mrb[4].mxu0  ;;  %v16548_v36 = vld [vmem:[#allocation24 + $0x7e8] ss:$16 sps:$4 sm:$0xff]   ;;  %v16553_v12 = vld [vmem:[#allocation24 + $0x4] ss:$16 sps:$4 sm:$0xff]  }
 0xe83   : > { %v8561_v10 = vpop.f32.mrb[4].mxu1  ;;  %v8522_v8 = vpop.f32.mrb[5].mxu0 }
 0xe84   : > { %v19893_v54 = vadd.f32 %v8561_v10, %v8520_v25  ;;  %v8563_v45 = vpop.f32.mrb[5].mxu1  ;;  %v8524_v23 = vpop.f32.mrb[6].mxu0  ;;  %10437 = vmatpush1.bf16.msra.mxu0 %v16485_v44  ;;  %v16556_v44 = vld [vmem:[#allocation24 + $0x204] ss:$16 sps:$4 sm:$0xff]   ;;  %v9414_v25 = vrot.slane %v19898_v20, %v18591_v15 }
 0xe85   : > { %v19895_v29 = vadd.f32 %v8563_v45, %v8522_v8  ;;  %v8565_v3 = vpop.f32.mrb[6].mxu1  ;;  %10478 = vmatpush1.bf16.msra.mxu1 %v16488_v56  ;;  %v8525_v41 = vpop.f32.mrb[7].mxu0  ;;  %10438 = vmatprep.subr.bf16.mxu0 %v16493_v27  ;;  %v16551_v56 = vld [vmem:[#allocation24] ss:$16 sps:$4 sm:$0xff]   ;;  %v16562_v10 = vld [vmem:[#allocation24 + $0x224] ss:$16 sps:$4 sm:$0xff]  }
 0xe86   : > { %v8566_v7 = vpop.f32.mrb[7].mxu1  ;;  %10479 = vmatprep.subr.bf16.mxu1 %v16496_v18  ;;  %v16554_v27 = vld [vmem:[#allocation24 + $0x200] ss:$16 sps:$4 sm:$0xff]   ;;  %v9406_v18 = vrot.slane %v19898_v20, %v18588_v14  ;;  %v19906_v45 = vpack.c.bf16 %v9414_v25, %v9414_v25  ;;  %v16565_v23 = vld [vmem:[#allocation24 + $0x44] ss:$16 sps:$4 sm:$0xff]  }
 0xe87   : > { %v16568_v3 = vld [vmem:[#allocation24 + $0x244] ss:$16 sps:$4 sm:$0xff]   ;;  %v16563_v41 = vld [vmem:[#allocation24 + $0x40] ss:$16 sps:$4 sm:$0xff]  }
 0xe88   : > { %10439 = vmatpush1.bf16.msra.mxu0 %v16491_v43  ;;  %v16557_v43 = vld [vmem:[#allocation24 + $0x20] ss:$16 sps:$4 sm:$0xff]   ;;  %v19904_v8 = vpack.c.bf16 %v9406_v18, %v9406_v18  ;;  %v16622_v18 = vld [vmem:[#allocation24 + $0x364] ss:$16 sps:$4 sm:$0xff]  }
 0xe89   : > { %10480 = vmatpush1.bf16.msra.mxu1 %v16494_v19  ;;  %10440 = vmatprep.subr.bf16.mxu0 %v16499_v26  ;;  %v16560_v19 = vld [vmem:[#allocation24 + $0x220] ss:$16 sps:$4 sm:$0xff]   ;;  %v16571_v26 = vld [vmem:[#allocation24 + $0x64] ss:$16 sps:$4 sm:$0xff]  }
 0xe8a   : > { %10481 = vmatprep.subr.bf16.mxu1 %v16502_v34  ;;  %v16566_v7 = vld [vmem:[#allocation24 + $0x240] ss:$16 sps:$4 sm:$0xff]  }
 0xe8b   : > { %v16569_v34 = vld [vmem:[#allocation24 + $0x60] ss:$16 sps:$4 sm:$0xff]  }
 0xe8c   : > { %10441 = vmatpush1.bf16.msra.mxu0 %v16497_v40  ;;  %v16577_v40 = vld [vmem:[#allocation24 + $0x84] ss:$16 sps:$4 sm:$0xff]   ;;  %v16617_v25 = vld [vmem:[#allocation24 + $0x160] ss:$16 sps:$4 sm:$0xff]  }
 0xe8d   : > { %10482 = vmatpush1.bf16.msra.mxu1 %v16500_v58  ;;  %10442 = vmatprep.subr.bf16.mxu0 %v16505_v35  ;;  %v16580_v58 = vld [vmem:[#allocation24 + $0x284] ss:$16 sps:$4 sm:$0xff]   ;;  %v16575_v35 = vld [vmem:[#allocation24 + $0x80] ss:$16 sps:$4 sm:$0xff]  }
 0xe8e   : > { %10483 = vmatprep.subr.bf16.mxu1 %v16508_v6  ;;  %v16578_v6 = vld [vmem:[#allocation24 + $0x280] ss:$16 sps:$4 sm:$0xff]  }
 0xe90   : > { %10443 = vmatpush1.bf16.msra.mxu0 %v16503_v53  ;;  %v16583_v53 = vld [vmem:[#allocation24 + $0xa4] ss:$16 sps:$4 sm:$0xff]  }
 0xe91   : > { %10484 = vmatpush1.bf16.msra.mxu1 %v16506_v38  ;;  %10444 = vmatprep.subr.bf16.mxu0 %v16511_v49  ;;  %v16586_v38 = vld [vmem:[#allocation24 + $0x2a4] ss:$16 sps:$4 sm:$0xff]   ;;  %v16581_v49 = vld [vmem:[#allocation24 + $0xa0] ss:$16 sps:$4 sm:$0xff]  }
 0xe92   : > { %10485 = vmatprep.subr.bf16.mxu1 %v16514_v9  ;;  %v16584_v9 = vld [vmem:[#allocation24 + $0x2a0] ss:$16 sps:$4 sm:$0xff]  }
 0xe94   : > { %10445 = vmatpush1.bf16.msra.mxu0 %v16509_v31  ;;  %v16589_v31 = vld [vmem:[#allocation24 + $0xc4] ss:$16 sps:$4 sm:$0xff]  }
 0xe95   : > { %10486 = vmatpush1.bf16.msra.mxu1 %v16512_v57  ;;  %10446 = vmatprep.subr.bf16.mxu0 %v16517_v62  ;;  %v16592_v57 = vld [vmem:[#allocation24 + $0x2c4] ss:$16 sps:$4 sm:$0xff]  }
 0xe96   : > { %10487 = vmatprep.subr.bf16.mxu1 %v16520_v28 }
 0xe98   : > { %10447 = vmatpush1.bf16.msra.mxu0 %v16515_v0 }
 0xe99   : > { %10488 = vmatpush1.bf16.msra.mxu1 %v16518_v24  ;;  %10448 = vmatprep.subr.bf16.mxu0 %v16523_v22 }
 0xe9a   : > { %10489 = vmatprep.subr.bf16.mxu1 %v16526_v55  ;;  %v16587_v55 = vld [vmem:[#allocation24 + $0xc0] ss:$16 sps:$4 sm:$0xff]  }
 0xe9c   : > { %10449 = vmatpush1.bf16.msra.mxu0 %v16521_v33  ;;  %v16590_v33 = vld [vmem:[#allocation24 + $0x2c0] ss:$16 sps:$4 sm:$0xff]  }
 0xe9d   : > { %10490 = vmatpush1.bf16.msra.mxu1 %v16524_v30  ;;  %10450 = vmatprep.subr.bf16.mxu0 %v16529_v59 }
 0xe9e   : > { %10491 = vmatprep.subr.bf16.mxu1 %v16532_v39 }
 0xea0   : > { %10451 = vmatpush1.bf16.msra.mxu0 %v16527_v60 }
 0xea1   : > { %10492 = vmatpush1.bf16.msra.mxu1 %v16530_v2  ;;  %10452 = vmatprep.subr.bf16.mxu0 %v16535_v42 }
 0xea2   : > { %10493 = vmatprep.subr.bf16.mxu1 %v16538_v37  ;;  %v16595_v37 = vld [vmem:[#allocation24 + $0xe4] ss:$16 sps:$4 sm:$0xff]  }
 0xea4   : > { %10453 = vmatpush1.bf16.msra.mxu0 %v16533_v1  ;;  %v16598_v1 = vld [vmem:[#allocation24 + $0x2e4] ss:$16 sps:$4 sm:$0xff]  }
 0xea5   : > { %10494 = vmatpush1.bf16.msra.mxu1 %v16536_v32  ;;  %10454 = vmatprep.subr.bf16.mxu0 %v16541_v4  ;;  %v16596_v4 = vld [vmem:[#allocation24 + $0x2e0] ss:$16 sps:$4 sm:$0xff]  }
 0xea6   : > { %10495 = vmatprep.subr.bf16.mxu1 %v16544_v50  ;;  %v16604_v50 = vld [vmem:[#allocation24 + $0x304] ss:$16 sps:$4 sm:$0xff]  }
 0xea8   : > { %10455 = vmatpush1.bf16.msra.mxu0 %v16539_v52  ;;  %v16599_v52 = vld [vmem:[#allocation24 + $0x100] ss:$16 sps:$4 sm:$0xff]  }
 0xea9   : > { %10496 = vmatpush1.bf16.msra.mxu1 %v16542_v51  ;;  %10456 = vmatprep.subr.bf16.mxu0 %v16547_v46  ;;  %v16602_v51 = vld [vmem:[#allocation24 + $0x300] ss:$16 sps:$4 sm:$0xff]   ;;  %v16607_v46 = vld [vmem:[#allocation24 + $0x124] ss:$16 sps:$4 sm:$0xff]  }
 0xeaa   : > { %10497 = vmatprep.subr.bf16.mxu1 %v16550_v17  ;;  %v16610_v17 = vld [vmem:[#allocation24 + $0x324] ss:$16 sps:$4 sm:$0xff]  }
 0xeac   : > { %10457 = vmatpush1.bf16.msra.mxu0 %v16545_v61  ;;  %v16608_v61 = vld [vmem:[#allocation24 + $0x320] ss:$16 sps:$4 sm:$0xff]  }
 0xead   : > { %10498 = vmatpush1.bf16.msra.mxu1 %v16548_v36  ;;  %11148 = vmatprep.subr.bf16.mxu0 %v16553_v12  ;;  %v16613_v36 = vld [vmem:[#allocation24 + $0x144] ss:$16 sps:$4 sm:$0xff]  }
 0xeae   : > { %11189 = vmatprep.subr.bf16.mxu1 %v16556_v44  ;;  %v16616_v12 = vld [vmem:[#allocation24 + $0x344] ss:$16 sps:$4 sm:$0xff]   ;;  %v16611_v44 = vld [vmem:[#allocation24 + $0x140] ss:$16 sps:$4 sm:$0xff]  }
 0xeaf   : > { %10459 = vmatmul.mubr.bf16.vlgmr.msra.gmra.mrb[20].mxu0 %v19885_v48  ;;  %v16574_v48 = vld [vmem:[#allocation24 + $0x264] ss:$16 sps:$4 sm:$0xff]  }
 0xeb0   : > { %10500 = vmatmul.mubr.bf16.vlgmr.msra.gmra.mrb[20].mxu1 %v19887_v16  ;;  %11149 = vmatpush1.bf16.msra.mxu0 %v16551_v56  ;;  %v16572_v16 = vld [vmem:[#allocation24 + $0x260] ss:$16 sps:$4 sm:$0xff]  }
 0xeb1   : > { %11190 = vmatpush1.bf16.msra.mxu1 %v16554_v27  ;;  %11150 = vmatprep.subr.bf16.mxu0 %v16559_v21  ;;  %v16614_v56 = vld [vmem:[#allocation24 + $0x340] ss:$16 sps:$4 sm:$0xff]   ;;  %v16619_v27 = vld [vmem:[#allocation24 + $0x164] ss:$16 sps:$4 sm:$0xff]  }
 0xeb2   : > { %11191 = vmatprep.subr.bf16.mxu1 %v16562_v10  ;;  %11180 = vmatprep.mubr.bf16.mxu0 %v19904_v8  ;;  %v16620_v21 = vld [vmem:[#allocation24 + $0x360] ss:$16 sps:$4 sm:$0xff]   ;;  %v16625_v10 = vld [vmem:[#allocation24 + $0x184] ss:$16 sps:$4 sm:$0xff]  }
 0xeb3   : > { %11221 = vmatprep.mubr.bf16.mxu1 %v19906_v45 }
 0xeb4   : > { %11151 = vmatpush1.bf16.msra.mxu0 %v16557_v43  ;;  %v16628_v43 = vld [vmem:[#allocation24 + $0x384] ss:$16 sps:$4 sm:$0xff]  }
 0xeb5   : > { %11192 = vmatpush1.bf16.msra.mxu1 %v16560_v19  ;;  %11152 = vmatprep.subr.bf16.mxu0 %v16565_v23  ;;  %v16623_v19 = vld [vmem:[#allocation24 + $0x180] ss:$16 sps:$4 sm:$0xff]  }
 0xeb6   : > { %11193 = vmatprep.subr.bf16.mxu1 %v16568_v3  ;;  %v16626_v23 = vld [vmem:[#allocation24 + $0x380] ss:$16 sps:$4 sm:$0xff]   ;;  %v16631_v3 = vld [vmem:[#allocation24 + $0x1a4] ss:$16 sps:$4 sm:$0xff]  }
 0xeb8   : > { %11153 = vmatpush1.bf16.msra.mxu0 %v16563_v41  ;;  %v16634_v41 = vld [vmem:[#allocation24 + $0x3a4] ss:$16 sps:$4 sm:$0xff]  }
 0xeb9   : > { %11194 = vmatpush1.bf16.msra.mxu1 %v16566_v7  ;;  %11154 = vmatprep.subr.bf16.mxu0 %v16571_v26  ;;  %v16629_v7 = vld [vmem:[#allocation24 + $0x1a0] ss:$16 sps:$4 sm:$0xff]  }
 0xeba   : > { %11195 = vmatprep.subr.bf16.mxu1 %v16574_v48  ;;  %v16632_v26 = vld [vmem:[#allocation24 + $0x3a0] ss:$16 sps:$4 sm:$0xff]   ;;  %v16637_v48 = vld [vmem:[#allocation24 + $0x1c4] ss:$16 sps:$4 sm:$0xff]  }
 0xebc   : > { %11155 = vmatpush1.bf16.msra.mxu0 %v16569_v34  ;;  %v16640_v34 = vld [vmem:[#allocation24 + $0x3c4] ss:$16 sps:$4 sm:$0xff]  }
 0xebd   : > { %11196 = vmatpush1.bf16.msra.mxu1 %v16572_v16  ;;  %11156 = vmatprep.subr.bf16.mxu0 %v16577_v40  ;;  %v16635_v16 = vld [vmem:[#allocation24 + $0x1c0] ss:$16 sps:$4 sm:$0xff]  }
 0xebe   : > { %11197 = vmatprep.subr.bf16.mxu1 %v16580_v58  ;;  %v16638_v40 = vld [vmem:[#allocation24 + $0x3c0] ss:$16 sps:$4 sm:$0xff]   ;;  %v16643_v58 = vld [vmem:[#allocation24 + $0x1e4] ss:$16 sps:$4 sm:$0xff]  }
 0xec0   : > { %11157 = vmatpush1.bf16.msra.mxu0 %v16575_v35  ;;  %v16646_v35 = vld [vmem:[#allocation24 + $0x3e4] ss:$16 sps:$4 sm:$0xff]  }
 0xec1   : > { %11198 = vmatpush1.bf16.msra.mxu1 %v16578_v6  ;;  %11158 = vmatprep.subr.bf16.mxu0 %v16583_v53  ;;  %v9402_v6 = vrot.slane %v19898_v20, %v18580_v11  ;;  %v9410_v53 = vrot.slane %v19898_v20, %v18585_v13  ;;  %v16658_v20 = vld [vmem:[#allocation24 + $0x22c] ss:$16 sps:$4 sm:$0xff]  }
 0xec2   : > { %11199 = vmatprep.subr.bf16.mxu1 %v16586_v38  ;;  %v9242_v62 = vpop.f32.mrb[8].mxu0  ;;  %v16641_v38 = vld [vmem:[#allocation24 + $0x1e0] ss:$16 sps:$4 sm:$0xff]  }
 0xec3   : > { %v9283_v28 = vpop.f32.mrb[8].mxu1  ;;  %v9243_v0 = vadd.f32 %v9242_v62, %v19877_v5  ;;  %v9244_v24 = vpop.f32.mrb[9].mxu0  ;;  %v16593_v5 = vld [vmem:[#allocation24 + $0xe0] ss:$16 sps:$4 sm:$0xff]   ;;  %v19924_v62 = vpack.c.bf16 %v9410_v53, %v9410_v53  ;;  %v16701_v53 = vld [vmem:[#allocation24 + $0x128] ss:$16 sps:$4 sm:$0xff]  }
 0xec4   : > { %v9285_v22 = vpop.f32.mrb[9].mxu1  ;;  %v9245_v30 = vadd.f32 %v9244_v24, %v19879_v63  ;;  %v9246_v59 = vpop.f32.mrb[10].mxu0  ;;  %11159 = vmatpush1.bf16.msra.mxu0 %v16581_v49  ;;  %v16601_v63 = vld [vmem:[#allocation24 + $0x104] ss:$16 sps:$4 sm:$0xff]   ;;  %v16644_v49 = vld [vmem:[#allocation24 + $0x3e0] ss:$16 sps:$4 sm:$0xff]  }
 0xec5   : > { %v9287_v39 = vpop.f32.mrb[10].mxu1  ;;  %11200 = vmatpush1.bf16.msra.mxu1 %v16584_v9  ;;  %v19914_v60 = vadd.f32 %v9283_v28, %v9243_v0  ;;  %v9247_v2 = vpop.f32.mrb[11].mxu0  ;;  %11160 = vmatprep.subr.bf16.mxu0 %v16589_v31  ;;  %v16649_v9 = vld [vmem:[#allocation24 + $0xc] ss:$16 sps:$4 sm:$0xff]   ;;  %v16647_v28 = vld [vmem:[#allocation24 + $0x8] ss:$16 sps:$4 sm:$0xff]  }
 0xec6   : > { %v9288_v42 = vpop.f32.mrb[11].mxu1  ;;  %11201 = vmatprep.subr.bf16.mxu1 %v16592_v57  ;;  %v19916_v32 = vadd.f32 %v9285_v22, %v9245_v30  ;;  %v16652_v31 = vld [vmem:[#allocation24 + $0x20c] ss:$16 sps:$4 sm:$0xff]   ;;  %v19922_v57 = vpack.c.bf16 %v9402_v6, %v9402_v6  ;;  %v16650_v0 = vld [vmem:[#allocation24 + $0x208] ss:$16 sps:$4 sm:$0xff]  }
 0xec7   : > { %v16655_v24 = vld [vmem:[#allocation24 + $0x2c] ss:$16 sps:$4 sm:$0xff]   ;;  %v16653_v22 = vld [vmem:[#allocation24 + $0x28] ss:$16 sps:$4 sm:$0xff]  }
 0xec8   : > { %11161 = vmatpush1.bf16.msra.mxu0 %v16587_v55  ;;  %v16656_v55 = vld [vmem:[#allocation24 + $0x228] ss:$16 sps:$4 sm:$0xff]   ;;  %v16664_v30 = vld [vmem:[#allocation24 + $0x24c] ss:$16 sps:$4 sm:$0xff]  }
 0xec9   : > { %11202 = vmatpush1.bf16.msra.mxu1 %v16590_v33  ;;  %11162 = vmatprep.subr.bf16.mxu0 %v16595_v37  ;;  %v16661_v33 = vld [vmem:[#allocation24 + $0x4c] ss:$16 sps:$4 sm:$0xff]   ;;  %v16659_v59 = vld [vmem:[#allocation24 + $0x48] ss:$16 sps:$4 sm:$0xff]  }
 0xeca   : > { %11203 = vmatprep.subr.bf16.mxu1 %v16598_v1  ;;  %v16662_v39 = vld [vmem:[#allocation24 + $0x248] ss:$16 sps:$4 sm:$0xff]   ;;  %v16667_v2 = vld [vmem:[#allocation24 + $0x6c] ss:$16 sps:$4 sm:$0xff]  }
 0xecb   : > { %v16670_v42 = vld [vmem:[#allocation24 + $0x26c] ss:$16 sps:$4 sm:$0xff]   ;;  %v16665_v37 = vld [vmem:[#allocation24 + $0x68] ss:$16 sps:$4 sm:$0xff]  }
 0xecc   : > { %11163 = vmatpush1.bf16.msra.mxu0 %v16593_v5  ;;  %v16668_v1 = vld [vmem:[#allocation24 + $0x268] ss:$16 sps:$4 sm:$0xff]   ;;  %v16673_v5 = vld [vmem:[#allocation24 + $0x8c] ss:$16 sps:$4 sm:$0xff]  }
 0xecd   : > { %11204 = vmatpush1.bf16.msra.mxu1 %v16596_v4  ;;  %11164 = vmatprep.subr.bf16.mxu0 %v16601_v63  ;;  %v16676_v4 = vld [vmem:[#allocation24 + $0x28c] ss:$16 sps:$4 sm:$0xff]  }
 0xece   : > { %11205 = vmatprep.subr.bf16.mxu1 %v16604_v50  ;;  %v16679_v63 = vld [vmem:[#allocation24 + $0xac] ss:$16 sps:$4 sm:$0xff]  }
 0xecf   : > { %v16682_v50 = vld [vmem:[#allocation24 + $0x2ac] ss:$16 sps:$4 sm:$0xff]  }
 0xed0   : > { %11165 = vmatpush1.bf16.msra.mxu0 %v16599_v52  ;;  %v16677_v52 = vld [vmem:[#allocation24 + $0xa8] ss:$16 sps:$4 sm:$0xff]   ;;  %v16706_v6 = vld [vmem:[#allocation24 + $0x32c] ss:$16 sps:$4 sm:$0xff]  }
 0xed1   : > { %11206 = vmatpush1.bf16.msra.mxu1 %v16602_v51  ;;  %11166 = vmatprep.subr.bf16.mxu0 %v16607_v46  ;;  %v16680_v51 = vld [vmem:[#allocation24 + $0x2a8] ss:$16 sps:$4 sm:$0xff]   ;;  %v16685_v46 = vld [vmem:[#allocation24 + $0xcc] ss:$16 sps:$4 sm:$0xff]  }
 0xed2   : > { %11207 = vmatprep.subr.bf16.mxu1 %v16610_v17  ;;  %v16688_v17 = vld [vmem:[#allocation24 + $0x2cc] ss:$16 sps:$4 sm:$0xff]  }
 0xed4   : > { %11167 = vmatpush1.bf16.msra.mxu0 %v16605_v47  ;;  %v19930_v47 = vld [vmem:[#allocation23] sm:$0xf] }
 0xed5   : > { %11208 = vmatpush1.bf16.msra.mxu1 %v16608_v61  ;;  %11168 = vmatprep.subr.bf16.mxu0 %v16613_v36 }
 0xed6   : > { %11209 = vmatprep.subr.bf16.mxu1 %v16616_v12 }
 0xed8   : > { %11169 = vmatpush1.bf16.msra.mxu0 %v16611_v44  ;;  %v9385_v44 = vrot.slane %v19930_v47, %v18585_v13 }
 0xed9   : > { %11210 = vmatpush1.bf16.msra.mxu1 %v16614_v56  ;;  %11170 = vmatprep.subr.bf16.mxu0 %v16619_v27 }
 0xeda   : > { %11211 = vmatprep.subr.bf16.mxu1 %v16622_v18 }
 0xedc   : > { %11171 = vmatpush1.bf16.msra.mxu0 %v16617_v25 }
 0xedd   : > { %11212 = vmatpush1.bf16.msra.mxu1 %v16620_v21  ;;  %11172 = vmatprep.subr.bf16.mxu0 %v16625_v10  ;;  %v16683_v10 = vld [vmem:[#allocation24 + $0xc8] ss:$16 sps:$4 sm:$0xff]  }
 0xede   : > { %11213 = vmatprep.subr.bf16.mxu1 %v16628_v43  ;;  %v16686_v43 = vld [vmem:[#allocation24 + $0x2c8] ss:$16 sps:$4 sm:$0xff]  }
 0xee0   : > { %11173 = vmatpush1.bf16.msra.mxu0 %v16623_v19 }
 0xee1   : > { %11214 = vmatpush1.bf16.msra.mxu1 %v16626_v23  ;;  %11174 = vmatprep.subr.bf16.mxu0 %v16631_v3 }
 0xee2   : > { %11215 = vmatprep.subr.bf16.mxu1 %v16634_v41  ;;  %v16691_v41 = vld [vmem:[#allocation24 + $0xec] ss:$16 sps:$4 sm:$0xff]  }
 0xee4   : > { %11175 = vmatpush1.bf16.msra.mxu0 %v16629_v7 }
 0xee5   : > { %11216 = vmatpush1.bf16.msra.mxu1 %v16632_v26  ;;  %11176 = vmatprep.subr.bf16.mxu0 %v16637_v48  ;;  %v16692_v48 = vld [vmem:[#allocation24 + $0x2e8] ss:$16 sps:$4 sm:$0xff]  }
 0xee6   : > { %11217 = vmatprep.subr.bf16.mxu1 %v16640_v34  ;;  %v16697_v34 = vld [vmem:[#allocation24 + $0x10c] ss:$16 sps:$4 sm:$0xff]  }
 0xee8   : > { %11177 = vmatpush1.bf16.msra.mxu0 %v16635_v16  ;;  %v16700_v16 = vld [vmem:[#allocation24 + $0x30c] ss:$16 sps:$4 sm:$0xff]  }
 0xee9   : > { %11218 = vmatpush1.bf16.msra.mxu1 %v16638_v40  ;;  %11178 = vmatprep.subr.bf16.mxu0 %v16643_v58  ;;  %v16695_v40 = vld [vmem:[#allocation24 + $0x108] ss:$16 sps:$4 sm:$0xff]  }
 0xeea   : > { %11219 = vmatprep.subr.bf16.mxu1 %v16646_v35  ;;  %v16698_v58 = vld [vmem:[#allocation24 + $0x308] ss:$16 sps:$4 sm:$0xff]   ;;  %v16703_v35 = vld [vmem:[#allocation24 + $0x12c] ss:$16 sps:$4 sm:$0xff]  }
 0xeec   : > { %11179 = vmatpush1.bf16.msra.mxu0 %v16641_v38  ;;  %v16704_v38 = vld [vmem:[#allocation24 + $0x328] ss:$16 sps:$4 sm:$0xff]  }
 0xeed   : > { %11220 = vmatpush1.bf16.msra.mxu1 %v16644_v49  ;;  %11230 = vmatprep.subr.bf16.mxu0 %v16649_v9  ;;  %v16709_v49 = vld [vmem:[#allocation24 + $0x14c] ss:$16 sps:$4 sm:$0xff]  }
 0xeee   : > { %11271 = vmatprep.subr.bf16.mxu1 %v16652_v31  ;;  %v16712_v9 = vld [vmem:[#allocation24 + $0x34c] ss:$16 sps:$4 sm:$0xff]   ;;  %v16707_v31 = vld [vmem:[#allocation24 + $0x148] ss:$16 sps:$4 sm:$0xff]  }
 0xeef   : > { %11181 = vmatmul.mubr.bf16.vlgmr.msra.gmra.mrb[24].mxu0 %v19922_v57 }
 0xef0   : > { %11222 = vmatmul.mubr.bf16.vlgmr.msra.gmra.mrb[24].mxu1 %v19924_v62  ;;  %11231 = vmatpush1.bf16.msra.mxu0 %v16647_v28  ;;  %v16710_v28 = vld [vmem:[#allocation24 + $0x348] ss:$16 sps:$4 sm:$0xff]  }
 0xef1   : > { %11272 = vmatpush1.bf16.msra.mxu1 %v16650_v0  ;;  %11232 = vmatprep.subr.bf16.mxu0 %v16655_v24  ;;  %v16715_v0 = vld [vmem:[#allocation24 + $0x16c] ss:$16 sps:$4 sm:$0xff]  }
 0xef2   : > { %11273 = vmatprep.subr.bf16.mxu1 %v16658_v20  ;;  %11262 = vmatprep.mubr.bf16.mxu0 %v19904_v8  ;;  %v16671_v8 = vld [vmem:[#allocation24 + $0x88] ss:$16 sps:$4 sm:$0xff]   ;;  %v16718_v24 = vld [vmem:[#allocation24 + $0x36c] ss:$16 sps:$4 sm:$0xff]  }
 0xef3   : > { %11303 = vmatprep.mubr.bf16.mxu1 %v19906_v45  ;;  %v16674_v45 = vld [vmem:[#allocation24 + $0x288] ss:$16 sps:$4 sm:$0xff]  }
 0xef4   : > { %11233 = vmatpush1.bf16.msra.mxu0 %v16653_v22  ;;  %v16713_v20 = vld [vmem:[#allocation24 + $0x168] ss:$16 sps:$4 sm:$0xff]  }
 0xef5   : > { %11274 = vmatpush1.bf16.msra.mxu1 %v16656_v55  ;;  %11234 = vmatprep.subr.bf16.mxu0 %v16661_v33  ;;  %v16716_v22 = vld [vmem:[#allocation24 + $0x368] ss:$16 sps:$4 sm:$0xff]   ;;  %v16721_v55 = vld [vmem:[#allocation24 + $0x18c] ss:$16 sps:$4 sm:$0xff]  }
 0xef6   : > { %11275 = vmatprep.subr.bf16.mxu1 %v16664_v30  ;;  %v16724_v33 = vld [vmem:[#allocation24 + $0x38c] ss:$16 sps:$4 sm:$0xff]   ;;  %v16719_v30 = vld [vmem:[#allocation24 + $0x188] ss:$16 sps:$4 sm:$0xff]  }
 0xef8   : > { %11235 = vmatpush1.bf16.msra.mxu0 %v16659_v59  ;;  %v16722_v59 = vld [vmem:[#allocation24 + $0x388] ss:$16 sps:$4 sm:$0xff]  }
 0xef9   : > { %11276 = vmatpush1.bf16.msra.mxu1 %v16662_v39  ;;  %11236 = vmatprep.subr.bf16.mxu0 %v16667_v2  ;;  %v16727_v39 = vld [vmem:[#allocation24 + $0x1ac] ss:$16 sps:$4 sm:$0xff]  }
 0xefa   : > { %11277 = vmatprep.subr.bf16.mxu1 %v16670_v42  ;;  %v16730_v2 = vld [vmem:[#allocation24 + $0x3ac] ss:$16 sps:$4 sm:$0xff]   ;;  %v16725_v42 = vld [vmem:[#allocation24 + $0x1a8] ss:$16 sps:$4 sm:$0xff]  }
 0xefc   : > { %11237 = vmatpush1.bf16.msra.mxu0 %v16665_v37  ;;  %v16728_v37 = vld [vmem:[#allocation24 + $0x3a8] ss:$16 sps:$4 sm:$0xff]  }
 0xefd   : > { %11278 = vmatpush1.bf16.msra.mxu1 %v16668_v1  ;;  %11238 = vmatprep.subr.bf16.mxu0 %v16673_v5  ;;  %v16733_v1 = vld [vmem:[#allocation24 + $0x1cc] ss:$16 sps:$4 sm:$0xff]  }
 0xefe   : > { %11279 = vmatprep.subr.bf16.mxu1 %v16676_v4  ;;  %v16736_v5 = vld [vmem:[#allocation24 + $0x3cc] ss:$16 sps:$4 sm:$0xff]   ;;  %v16731_v4 = vld [vmem:[#allocation24 + $0x1c8] ss:$16 sps:$4 sm:$0xff]  }
 0xf00   : > { %11239 = vmatpush1.bf16.msra.mxu0 %v16671_v8  ;;  %v16734_v8 = vld [vmem:[#allocation24 + $0x3c8] ss:$16 sps:$4 sm:$0xff]  }
 0xf01   : > { %11280 = vmatpush1.bf16.msra.mxu1 %v16674_v45  ;;  %11240 = vmatprep.subr.bf16.mxu0 %v16679_v63  ;;  %v16739_v45 = vld [vmem:[#allocation24 + $0x1ec] ss:$16 sps:$4 sm:$0xff]  }
 0xf02   : > { %11281 = vmatprep.subr.bf16.mxu1 %v16682_v50  ;;  %v9324_v61 = vpop.f32.mrb[12].mxu0  ;;  %v16742_v63 = vld [vmem:[#allocation24 + $0x3ec] ss:$16 sps:$4 sm:$0xff]   ;;  %v9381_v50 = vrot.slane %v19930_v47, %v18588_v14 }
 0xf03   : > { %v9365_v36 = vpop.f32.mrb[12].mxu1  ;;  %v9325_v12 = vadd.f32 %v9324_v61, %v19893_v54  ;;  %v9326_v56 = vpop.f32.mrb[13].mxu0  ;;  %v16694_v54 = vld [vmem:[#allocation24 + $0x2ec] ss:$16 sps:$4 sm:$0xff]   ;;  %v16748_v61 = vld [vmem:[#allocation24 + $0xa04] ss:$16 sps:$4 sm:$0xff]  }
 0xf04   : > { %v9367_v27 = vpop.f32.mrb[13].mxu1  ;;  %v9327_v18 = vadd.f32 %v9326_v56, %v19895_v29  ;;  %v9328_v25 = vpop.f32.mrb[14].mxu0  ;;  %11241 = vmatpush1.bf16.msra.mxu0 %v16677_v52  ;;  %v16689_v29 = vld [vmem:[#allocation24 + $0xe8] ss:$16 sps:$4 sm:$0xff]   ;;  %v9389_v52 = vrot.slane %v19930_v47, %v18591_v15  ;;  %v16746_v56 = vld [vmem:[#allocation24 + $0xa00] ss:$16 sps:$4 sm:$0xff]  }
 0xf05   : > { %v9369_v21 = vpop.f32.mrb[14].mxu1  ;;  %11282 = vmatpush1.bf16.msra.mxu1 %v16680_v51  ;;  %v9366_v19 = vadd.f32 %v9365_v36, %v9325_v12  ;;  %v9329_v23 = vpop.f32.mrb[15].mxu0  ;;  %11242 = vmatprep.subr.bf16.mxu0 %v16685_v46  ;;  %v16737_v51 = vld [vmem:[#allocation24 + $0x1e8] ss:$16 sps:$4 sm:$0xff]   ;;  %v9395_v36 = vadd.f32 %v9381_v50, %v19916_v32  ;;  %v16754_v25 = vld [vmem:[#allocation24 + $0xa24] ss:$16 sps:$4 sm:$0xff]  }
 0xf06   : > { %v9370_v3 = vpop.f32.mrb[15].mxu1  ;;  %11283 = vmatprep.subr.bf16.mxu1 %v16688_v17  ;;  %v19936_v7 = vadd.f32 %v9367_v27, %v9327_v18  ;;  %v16740_v46 = vld [vmem:[#allocation24 + $0x3e8] ss:$16 sps:$4 sm:$0xff]   ;;  %v16745_v17 = vld [vmem:[#allocation24 + $0x804] ss:$16 sps:$4 sm:$0xff]  }
 0xf07   : > { %v19938_v26 = vadd.f32 %v9385_v44, %v9366_v19  ;;  %v16743_v44 = vld [vmem:[#allocation24 + $0x800] ss:$16 sps:$4 sm:$0xff]   ;;  %v19946_v27 = vpack.c.bf16 %v9395_v36, %v9395_v36  ;;  %v16751_v18 = vld [vmem:[#allocation24 + $0x824] ss:$16 sps:$4 sm:$0xff]  }
 0xf08   : > { %11243 = vmatpush1.bf16.msra.mxu0 %v16683_v10  ;;  %v9397_v12 = vadd.f32 %v9389_v52, %v19936_v7  ;;  %v16749_v32 = vld [vmem:[#allocation24 + $0x820] ss:$16 sps:$4 sm:$0xff]   ;;  %v16760_v19 = vld [vmem:[#allocation24 + $0xa44] ss:$16 sps:$4 sm:$0xff]  }
 0xf09   : > { %11284 = vmatpush1.bf16.msra.mxu1 %v16686_v43  ;;  %11244 = vmatprep.subr.bf16.mxu0 %v16691_v41  ;;  %v16752_v10 = vld [vmem:[#allocation24 + $0xa20] ss:$16 sps:$4 sm:$0xff]   ;;  %v16757_v43 = vld [vmem:[#allocation24 + $0x844] ss:$16 sps:$4 sm:$0xff]  }
 0xf0a   : > { %11285 = vmatprep.subr.bf16.mxu1 %v16694_v54  ;;  %v19948_v21 = vpack.c.bf16 %v9397_v12, %v9397_v12  ;;  %v16755_v23 = vld [vmem:[#allocation24 + $0x840] ss:$16 sps:$4 sm:$0xff]   ;;  %v16769_v7 = vld [vmem:[#allocation24 + $0x884] ss:$16 sps:$4 sm:$0xff]  }
 0xf0b   : > { %v16758_v3 = vld [vmem:[#allocation24 + $0xa40] ss:$16 sps:$4 sm:$0xff]   ;;  %v16805_v52 = vld [vmem:[#allocation24 + $0x944] ss:$16 sps:$4 sm:$0xff]  }
 0xf0c   : > { %11245 = vmatpush1.bf16.msra.mxu0 %v16689_v29  ;;  %v16761_v41 = vld [vmem:[#allocation24 + $0x860] ss:$16 sps:$4 sm:$0xff]   ;;  %v16772_v29 = vld [vmem:[#allocation24 + $0xa84] ss:$16 sps:$4 sm:$0xff]  }
 0xf0d   : > { %11286 = vmatpush1.bf16.msra.mxu1 %v16692_v48  ;;  %11246 = vmatprep.subr.bf16.mxu0 %v16697_v34  ;;  %v16764_v54 = vld [vmem:[#allocation24 + $0xa60] ss:$16 sps:$4 sm:$0xff]   ;;  %v16814_v36 = vld [vmem:[#allocation24 + $0xb64] ss:$16 sps:$4 sm:$0xff]  }
 0xf0e   : > { %11287 = vmatprep.subr.bf16.mxu1 %v16700_v16  ;;  %v16767_v48 = vld [vmem:[#allocation24 + $0x880] ss:$16 sps:$4 sm:$0xff]   ;;  %v16775_v16 = vld [vmem:[#allocation24 + $0x8a4] ss:$16 sps:$4 sm:$0xff]  }
 0xf0f   : > { %v16770_v34 = vld [vmem:[#allocation24 + $0xa80] ss:$16 sps:$4 sm:$0xff]  }
 0xf10   : > { %11247 = vmatpush1.bf16.msra.mxu0 %v16695_v40  ;;  %v16778_v40 = vld [vmem:[#allocation24 + $0xaa4] ss:$16 sps:$4 sm:$0xff]   ;;  %v16800_v50 = vld [vmem:[#allocation24 + $0xb20] ss:$16 sps:$4 sm:$0xff]  }
 0xf11   : > { %11288 = vmatpush1.bf16.msra.mxu1 %v16698_v58  ;;  %11248 = vmatprep.subr.bf16.mxu0 %v16703_v35  ;;  %v16773_v58 = vld [vmem:[#allocation24 + $0x8a0] ss:$16 sps:$4 sm:$0xff]  }
 0xf12   : > { %11289 = vmatprep.subr.bf16.mxu1 %v16706_v6  ;;  %v16776_v35 = vld [vmem:[#allocation24 + $0xaa0] ss:$16 sps:$4 sm:$0xff]   ;;  %v16781_v6 = vld [vmem:[#allocation24 + $0x8c4] ss:$16 sps:$4 sm:$0xff]  }
 0xf13   : > { %v16809_v12 = vld [vmem:[#allocation24 + $0x960] ss:$16 sps:$4 sm:$0xff]  }
 0xf14   : > { %11249 = vmatpush1.bf16.msra.mxu0 %v16701_v53 }
 0xf15   : > { %11290 = vmatpush1.bf16.msra.mxu1 %v16704_v38  ;;  %11250 = vmatprep.subr.bf16.mxu0 %v16709_v49  ;;  %v16784_v49 = vld [vmem:[#allocation24 + $0xac4] ss:$16 sps:$4 sm:$0xff]  }
 0xf16   : > { %11291 = vmatprep.subr.bf16.mxu1 %v16712_v9 }
 0xf18   : > { %11251 = vmatpush1.bf16.msra.mxu0 %v16707_v31 }
 0xf19   : > { %11292 = vmatpush1.bf16.msra.mxu1 %v16710_v28  ;;  %11252 = vmatprep.subr.bf16.mxu0 %v16715_v0 }
 0xf1a   : > { %11293 = vmatprep.subr.bf16.mxu1 %v16718_v24 }
 0xf1c   : > { %11253 = vmatpush1.bf16.msra.mxu0 %v16713_v20 }
 0xf1d   : > { %11294 = vmatpush1.bf16.msra.mxu1 %v16716_v22  ;;  %11254 = vmatprep.subr.bf16.mxu0 %v16721_v55  ;;  %v16779_v22 = vld [vmem:[#allocation24 + $0x8c0] ss:$16 sps:$4 sm:$0xff]  }
 0xf1e   : > { %11295 = vmatprep.subr.bf16.mxu1 %v16724_v33 }
 0xf20   : > { %11255 = vmatpush1.bf16.msra.mxu0 %v16719_v30  ;;  %v16782_v30 = vld [vmem:[#allocation24 + $0xac0] ss:$16 sps:$4 sm:$0xff]  }
 0xf21   : > { %11296 = vmatpush1.bf16.msra.mxu1 %v16722_v59  ;;  %11256 = vmatprep.subr.bf16.mxu0 %v16727_v39  ;;  %v16787_v59 = vld [vmem:[#allocation24 + $0x8e4] ss:$16 sps:$4 sm:$0xff]  }
 0xf22   : > { %11297 = vmatprep.subr.bf16.mxu1 %v16730_v2  ;;  %v16790_v39 = vld [vmem:[#allocation24 + $0xae4] ss:$16 sps:$4 sm:$0xff]   ;;  %v16785_v2 = vld [vmem:[#allocation24 + $0x8e0] ss:$16 sps:$4 sm:$0xff]  }
 0xf24   : > { %11257 = vmatpush1.bf16.msra.mxu0 %v16725_v42  ;;  %v16788_v42 = vld [vmem:[#allocation24 + $0xae0] ss:$16 sps:$4 sm:$0xff]  }
 0xf25   : > { %11298 = vmatpush1.bf16.msra.mxu1 %v16728_v37  ;;  %11258 = vmatprep.subr.bf16.mxu0 %v16733_v1  ;;  %v16793_v37 = vld [vmem:[#allocation24 + $0x904] ss:$16 sps:$4 sm:$0xff]  }
 0xf26   : > { %11299 = vmatprep.subr.bf16.mxu1 %v16736_v5  ;;  %v16796_v1 = vld [vmem:[#allocation24 + $0xb04] ss:$16 sps:$4 sm:$0xff]   ;;  %v16791_v5 = vld [vmem:[#allocation24 + $0x900] ss:$16 sps:$4 sm:$0xff]  }
 0xf28   : > { %11259 = vmatpush1.bf16.msra.mxu0 %v16731_v4  ;;  %v16794_v4 = vld [vmem:[#allocation24 + $0xb00] ss:$16 sps:$4 sm:$0xff]  }
 0xf29   : > { %11300 = vmatpush1.bf16.msra.mxu1 %v16734_v8  ;;  %11260 = vmatprep.subr.bf16.mxu0 %v16739_v45  ;;  %v16799_v8 = vld [vmem:[#allocation24 + $0x924] ss:$16 sps:$4 sm:$0xff]  }
 0xf2a   : > { %11301 = vmatprep.subr.bf16.mxu1 %v16742_v63  ;;  %v16802_v45 = vld [vmem:[#allocation24 + $0xb24] ss:$16 sps:$4 sm:$0xff]   ;;  %v16797_v63 = vld [vmem:[#allocation24 + $0x920] ss:$16 sps:$4 sm:$0xff]  }
 0xf2c   : > { %11261 = vmatpush1.bf16.msra.mxu0 %v16737_v51  ;;  %v16808_v51 = vld [vmem:[#allocation24 + $0xb44] ss:$16 sps:$4 sm:$0xff]  }
 0xf2d   : > { %11302 = vmatpush1.bf16.msra.mxu1 %v16740_v46  ;;  %12084 = vmatprep.subr.bf16.mxu0 %v16745_v17  ;;  %v16803_v46 = vld [vmem:[#allocation24 + $0x940] ss:$16 sps:$4 sm:$0xff]  }
 0xf2e   : > { %12125 = vmatprep.subr.bf16.mxu1 %v16748_v61  ;;  %v16806_v17 = vld [vmem:[#allocation24 + $0xb40] ss:$16 sps:$4 sm:$0xff]   ;;  %v16811_v61 = vld [vmem:[#allocation24 + $0x964] ss:$16 sps:$4 sm:$0xff]  }
 0xf2f   : > { %11263 = vmatmul.mubr.bf16.vlgmr.msra.gmra.mrb[28].mxu0 %v19922_v57  ;;  %v16763_v57 = vld [vmem:[#allocation24 + $0x864] ss:$16 sps:$4 sm:$0xff]  }
 0xf30   : > { %11304 = vmatmul.mubr.bf16.vlgmr.msra.gmra.mrb[28].mxu1 %v19924_v62  ;;  %12085 = vmatpush1.bf16.msra.mxu0 %v16743_v44  ;;  %v16766_v62 = vld [vmem:[#allocation24 + $0xa64] ss:$16 sps:$4 sm:$0xff]   ;;  %v16812_v44 = vld [vmem:[#allocation24 + $0xb60] ss:$16 sps:$4 sm:$0xff]  }
 0xf31   : > { %12116 = vmatprep.mubr.bf16.mxu0 %v19946_v27  ;;  %12126 = vmatpush1.bf16.msra.mxu1 %v16746_v56  ;;  %v16817_v56 = vld [vmem:[#allocation24 + $0x984] ss:$16 sps:$4 sm:$0xff]  }
 0xf32   : > { %12157 = vmatprep.mubr.bf16.mxu1 %v19948_v21  ;;  %12086 = vmatprep.subr.bf16.mxu0 %v16751_v18  ;;  %v16820_v18 = vld [vmem:[#allocation24 + $0xb84] ss:$16 sps:$4 sm:$0xff]  }
 0xf33   : > { %12127 = vmatprep.subr.bf16.mxu1 %v16754_v25  ;;  %v16815_v25 = vld [vmem:[#allocation24 + $0x980] ss:$16 sps:$4 sm:$0xff]  }
 0xf34   : > { %12087 = vmatpush1.bf16.msra.mxu0 %v16749_v32  ;;  %v16818_v32 = vld [vmem:[#allocation24 + $0xb80] ss:$16 sps:$4 sm:$0xff]  }
 0xf35   : > { %12128 = vmatpush1.bf16.msra.mxu1 %v16752_v10  ;;  %12088 = vmatprep.subr.bf16.mxu0 %v16757_v43  ;;  %v16823_v10 = vld [vmem:[#allocation24 + $0x9a4] ss:$16 sps:$4 sm:$0xff]  }
 0xf36   : > { %12129 = vmatprep.subr.bf16.mxu1 %v16760_v19  ;;  %v16826_v43 = vld [vmem:[#allocation24 + $0xba4] ss:$16 sps:$4 sm:$0xff]   ;;  %v16821_v19 = vld [vmem:[#allocation24 + $0x9a0] ss:$16 sps:$4 sm:$0xff]  }
 0xf38   : > { %12089 = vmatpush1.bf16.msra.mxu0 %v16755_v23  ;;  %v16824_v23 = vld [vmem:[#allocation24 + $0xba0] ss:$16 sps:$4 sm:$0xff]  }
 0xf39   : > { %12130 = vmatpush1.bf16.msra.mxu1 %v16758_v3  ;;  %12090 = vmatprep.subr.bf16.mxu0 %v16763_v57  ;;  %v16829_v3 = vld [vmem:[#allocation24 + $0x9c4] ss:$16 sps:$4 sm:$0xff]  }
 0xf3a   : > { %12131 = vmatprep.subr.bf16.mxu1 %v16766_v62  ;;  %v16832_v57 = vld [vmem:[#allocation24 + $0xbc4] ss:$16 sps:$4 sm:$0xff]   ;;  %v16827_v62 = vld [vmem:[#allocation24 + $0x9c0] ss:$16 sps:$4 sm:$0xff]  }
 0xf3c   : > { %12091 = vmatpush1.bf16.msra.mxu0 %v16761_v41  ;;  %v9377_v41 = vrot.slane %v19930_v47, %v18580_v11  ;;  %v16842_v47 = vld [vmem:[#allocation24 + $0xa08] ss:$16 sps:$4 sm:$0xff]  }
 0xf3d   : > { %12132 = vmatpush1.bf16.msra.mxu1 %v16764_v54  ;;  %12092 = vmatprep.subr.bf16.mxu0 %v16769_v7  ;;  %v16830_v54 = vld [vmem:[#allocation24 + $0xbc0] ss:$16 sps:$4 sm:$0xff]   ;;  %v16835_v7 = vld [vmem:[#allocation24 + $0x9e4] ss:$16 sps:$4 sm:$0xff]  }
 0xf3e   : > { %12133 = vmatprep.subr.bf16.mxu1 %v16772_v29  ;;  %v16838_v29 = vld [vmem:[#allocation24 + $0xbe4] ss:$16 sps:$4 sm:$0xff]  }
 0xf40   : > { %12093 = vmatpush1.bf16.msra.mxu0 %v16767_v48  ;;  %v16833_v48 = vld [vmem:[#allocation24 + $0x9e0] ss:$16 sps:$4 sm:$0xff]  }
 0xf41   : > { %12134 = vmatpush1.bf16.msra.mxu1 %v16770_v34  ;;  %12094 = vmatprep.subr.bf16.mxu0 %v16775_v16  ;;  %v9394_v34 = vadd.f32 %v9377_v41, %v19914_v60  ;;  %v16836_v16 = vld [vmem:[#allocation24 + $0xbe0] ss:$16 sps:$4 sm:$0xff]   ;;  %v16850_v60 = vld [vmem:[#allocation24 + $0xa2c] ss:$16 sps:$4 sm:$0xff]   ;;  %v16896_v41 = vld [vmem:[#allocation24 + $0xb28] ss:$16 sps:$4 sm:$0xff]  }
 0xf42   : > { %v10378_v53 = vpop.f32.mrb[16].mxu0  ;;  %12135 = vmatprep.subr.bf16.mxu1 %v16778_v40  ;;  %v16841_v40 = vld [vmem:[#allocation24 + $0x80c] ss:$16 sps:$4 sm:$0xff]  }
 0xf43   : > { %v10419_v38 = vpop.f32.mrb[16].mxu1  ;;  %v10380_v31 = vpop.f32.mrb[17].mxu0 }
 0xf44   : > { %v19954_v9 = vadd.f32 %v10419_v38, %v10378_v53  ;;  %v10421_v28 = vpop.f32.mrb[17].mxu1  ;;  %v10382_v24 = vpop.f32.mrb[18].mxu0  ;;  %12095 = vmatpush1.bf16.msra.mxu0 %v16773_v58  ;;  %v16844_v58 = vld [vmem:[#allocation24 + $0xa0c] ss:$16 sps:$4 sm:$0xff]   ;;  %v19965_v53 = vpack.c.bf16 %v19938_v26, %v19938_v26  ;;  %v16851_v26 = vld [vmem:[#allocation24 + $0x848] ss:$16 sps:$4 sm:$0xff]  }
 0xf45   : > { %v19956_v0 = vadd.f32 %v10421_v28, %v10380_v31  ;;  %v10423_v20 = vpop.f32.mrb[18].mxu1  ;;  %12136 = vmatpush1.bf16.msra.mxu1 %v16776_v35  ;;  %v10383_v55 = vpop.f32.mrb[19].mxu0  ;;  %12096 = vmatprep.subr.bf16.mxu0 %v16781_v6  ;;  %v16839_v35 = vld [vmem:[#allocation24 + $0x808] ss:$16 sps:$4 sm:$0xff]   ;;  %v19961_v6 = vpack.c.bf16 %v9394_v34, %v9394_v34  ;;  %v16847_v38 = vld [vmem:[#allocation24 + $0x82c] ss:$16 sps:$4 sm:$0xff]  }
 0xf46   : > { %v10424_v33 = vpop.f32.mrb[19].mxu1  ;;  %12137 = vmatprep.subr.bf16.mxu1 %v16784_v49  ;;  %v16845_v49 = vld [vmem:[#allocation24 + $0x828] ss:$16 sps:$4 sm:$0xff]   ;;  %v16853_v28 = vld [vmem:[#allocation24 + $0x84c] ss:$16 sps:$4 sm:$0xff]  }
 0xf47   : > { %v16848_v31 = vld [vmem:[#allocation24 + $0xa28] ss:$16 sps:$4 sm:$0xff]   ;;  %v16856_v24 = vld [vmem:[#allocation24 + $0xa4c] ss:$16 sps:$4 sm:$0xff]  }
 0xf48   : > { %12097 = vmatpush1.bf16.msra.mxu0 %v16779_v22  ;;  %v16854_v20 = vld [vmem:[#allocation24 + $0xa48] ss:$16 sps:$4 sm:$0xff]   ;;  %v16859_v22 = vld [vmem:[#allocation24 + $0x86c] ss:$16 sps:$4 sm:$0xff]  }
 0xf49   : > { %12138 = vmatpush1.bf16.msra.mxu1 %v16782_v30  ;;  %12098 = vmatprep.subr.bf16.mxu0 %v16787_v59  ;;  %v16862_v55 = vld [vmem:[#allocation24 + $0xa6c] ss:$16 sps:$4 sm:$0xff]   ;;  %v16857_v33 = vld [vmem:[#allocation24 + $0x868] ss:$16 sps:$4 sm:$0xff]  }
 0xf4a   : > { %12139 = vmatprep.subr.bf16.mxu1 %v16790_v39  ;;  %v16865_v30 = vld [vmem:[#allocation24 + $0x88c] ss:$16 sps:$4 sm:$0xff]   ;;  %v16866_v39 = vld [vmem:[#allocation24 + $0xa88] ss:$16 sps:$4 sm:$0xff]  }
 0xf4b   : > { %v16868_v59 = vld [vmem:[#allocation24 + $0xa8c] ss:$16 sps:$4 sm:$0xff]  }
 0xf4c   : > { %12099 = vmatpush1.bf16.msra.mxu0 %v16785_v2  ;;  %v16871_v2 = vld [vmem:[#allocation24 + $0x8ac] ss:$16 sps:$4 sm:$0xff]  }
 0xf4d   : > { %12140 = vmatpush1.bf16.msra.mxu1 %v16788_v42  ;;  %12100 = vmatprep.subr.bf16.mxu0 %v16793_v37  ;;  %v16874_v42 = vld [vmem:[#allocation24 + $0xaac] ss:$16 sps:$4 sm:$0xff]   ;;  %v16869_v37 = vld [vmem:[#allocation24 + $0x8a8] ss:$16 sps:$4 sm:$0xff]  }
 0xf4e   : > { %12141 = vmatprep.subr.bf16.mxu1 %v16796_v1  ;;  %v16872_v1 = vld [vmem:[#allocation24 + $0xaa8] ss:$16 sps:$4 sm:$0xff]   ;;  %v16907_v34 = vld [vmem:[#allocation24 + $0x96c] ss:$16 sps:$4 sm:$0xff]  }
 0xf50   : > { %12101 = vmatpush1.bf16.msra.mxu0 %v16791_v5  ;;  %v16877_v5 = vld [vmem:[#allocation24 + $0x8cc] ss:$16 sps:$4 sm:$0xff]  }
 0xf51   : > { %12142 = vmatpush1.bf16.msra.mxu1 %v16794_v4  ;;  %12102 = vmatprep.subr.bf16.mxu0 %v16799_v8 }
 0xf52   : > { %12143 = vmatprep.subr.bf16.mxu1 %v16802_v45  ;;  %v16880_v45 = vld [vmem:[#allocation24 + $0xacc] ss:$16 sps:$4 sm:$0xff]  }
 0xf54   : > { %12103 = vmatpush1.bf16.msra.mxu0 %v16797_v63 }
 0xf55   : > { %12144 = vmatpush1.bf16.msra.mxu1 %v16800_v50  ;;  %12104 = vmatprep.subr.bf16.mxu0 %v16805_v52 }
 0xf56   : > { %12145 = vmatprep.subr.bf16.mxu1 %v16808_v51 }
 0xf58   : > { %12105 = vmatpush1.bf16.msra.mxu0 %v16803_v46 }
 0xf59   : > { %12146 = vmatpush1.bf16.msra.mxu1 %v16806_v17  ;;  %12106 = vmatprep.subr.bf16.mxu0 %v16811_v61  ;;  %v16875_v61 = vld [vmem:[#allocation24 + $0x8c8] ss:$16 sps:$4 sm:$0xff]  }
 0xf5a   : > { %12147 = vmatprep.subr.bf16.mxu1 %v16814_v36 }
 0xf5c   : > { %12107 = vmatpush1.bf16.msra.mxu0 %v16809_v12 }
 0xf5d   : > { %12148 = vmatpush1.bf16.msra.mxu1 %v16812_v44  ;;  %12108 = vmatprep.subr.bf16.mxu0 %v16817_v56  ;;  %v16878_v44 = vld [vmem:[#allocation24 + $0xac8] ss:$16 sps:$4 sm:$0xff]   ;;  %v16883_v56 = vld [vmem:[#allocation24 + $0x8ec] ss:$16 sps:$4 sm:$0xff]  }
 0xf5e   : > { %12149 = vmatprep.subr.bf16.mxu1 %v16820_v18  ;;  %v16886_v18 = vld [vmem:[#allocation24 + $0xaec] ss:$16 sps:$4 sm:$0xff]  }
 0xf60   : > { %12109 = vmatpush1.bf16.msra.mxu0 %v16815_v25  ;;  %v16881_v25 = vld [vmem:[#allocation24 + $0x8e8] ss:$16 sps:$4 sm:$0xff]  }
 0xf61   : > { %12150 = vmatpush1.bf16.msra.mxu1 %v16818_v32  ;;  %12110 = vmatprep.subr.bf16.mxu0 %v16823_v10  ;;  %v16884_v32 = vld [vmem:[#allocation24 + $0xae8] ss:$16 sps:$4 sm:$0xff]   ;;  %v16889_v10 = vld [vmem:[#allocation24 + $0x90c] ss:$16 sps:$4 sm:$0xff]  }
 0xf62   : > { %12151 = vmatprep.subr.bf16.mxu1 %v16826_v43  ;;  %v16892_v43 = vld [vmem:[#allocation24 + $0xb0c] ss:$16 sps:$4 sm:$0xff]  }
 0xf64   : > { %12111 = vmatpush1.bf16.msra.mxu0 %v16821_v19  ;;  %v16887_v19 = vld [vmem:[#allocation24 + $0x908] ss:$16 sps:$4 sm:$0xff]  }
 0xf65   : > { %12152 = vmatpush1.bf16.msra.mxu1 %v16824_v23  ;;  %12112 = vmatprep.subr.bf16.mxu0 %v16829_v3  ;;  %v16890_v23 = vld [vmem:[#allocation24 + $0xb08] ss:$16 sps:$4 sm:$0xff]   ;;  %v16895_v3 = vld [vmem:[#allocation24 + $0x92c] ss:$16 sps:$4 sm:$0xff]  }
 0xf66   : > { %12153 = vmatprep.subr.bf16.mxu1 %v16832_v57  ;;  %v16898_v57 = vld [vmem:[#allocation24 + $0xb2c] ss:$16 sps:$4 sm:$0xff]  }
 0xf68   : > { %12113 = vmatpush1.bf16.msra.mxu0 %v16827_v62  ;;  %v16893_v62 = vld [vmem:[#allocation24 + $0x928] ss:$16 sps:$4 sm:$0xff]  }
 0xf69   : > { %12154 = vmatpush1.bf16.msra.mxu1 %v16830_v54  ;;  %12114 = vmatprep.subr.bf16.mxu0 %v16835_v7  ;;  %v16901_v54 = vld [vmem:[#allocation24 + $0x94c] ss:$16 sps:$4 sm:$0xff]  }
 0xf6a   : > { %12155 = vmatprep.subr.bf16.mxu1 %v16838_v29  ;;  %v16904_v7 = vld [vmem:[#allocation24 + $0xb4c] ss:$16 sps:$4 sm:$0xff]   ;;  %v16899_v29 = vld [vmem:[#allocation24 + $0x948] ss:$16 sps:$4 sm:$0xff]  }
 0xf6c   : > { %12115 = vmatpush1.bf16.msra.mxu0 %v16833_v48  ;;  %v16902_v48 = vld [vmem:[#allocation24 + $0xb48] ss:$16 sps:$4 sm:$0xff]  }
 0xf6d   : > { %12156 = vmatpush1.bf16.msra.mxu1 %v16836_v16  ;;  %12166 = vmatprep.subr.bf16.mxu0 %v16841_v40  ;;  %v16910_v16 = vld [vmem:[#allocation24 + $0xb6c] ss:$16 sps:$4 sm:$0xff]   ;;  %v16905_v40 = vld [vmem:[#allocation24 + $0x968] ss:$16 sps:$4 sm:$0xff]  }
 0xf6e   : > { %12207 = vmatprep.subr.bf16.mxu1 %v16844_v58  ;;  %v16908_v58 = vld [vmem:[#allocation24 + $0xb68] ss:$16 sps:$4 sm:$0xff]  }
 0xf6f   : > { %12117 = vmatmul.mubr.bf16.vlgmr.msra.gmra.mrb[32].mxu0 %v19961_v6 }
 0xf70   : > { %12158 = vmatmul.mubr.bf16.vlgmr.msra.gmra.mrb[32].mxu1 %v19965_v53  ;;  %12167 = vmatpush1.bf16.msra.mxu0 %v16839_v35  ;;  %v16913_v35 = vld [vmem:[#allocation24 + $0x98c] ss:$16 sps:$4 sm:$0xff]  }
 0xf71   : > { %12198 = vmatprep.mubr.bf16.mxu0 %v19946_v27  ;;  %12208 = vmatpush1.bf16.msra.mxu1 %v16842_v47  ;;  %v16860_v27 = vld [vmem:[#allocation24 + $0xa68] ss:$16 sps:$4 sm:$0xff]   ;;  %v16916_v47 = vld [vmem:[#allocation24 + $0xb8c] ss:$16 sps:$4 sm:$0xff]  }
 0xf72   : > { %12239 = vmatprep.mubr.bf16.mxu1 %v19948_v21  ;;  %12168 = vmatprep.subr.bf16.mxu0 %v16847_v38  ;;  %v16863_v21 = vld [vmem:[#allocation24 + $0x888] ss:$16 sps:$4 sm:$0xff]  }
 0xf73   : > { %12209 = vmatprep.subr.bf16.mxu1 %v16850_v60  ;;  %v16911_v38 = vld [vmem:[#allocation24 + $0x988] ss:$16 sps:$4 sm:$0xff]  }
 0xf74   : > { %12169 = vmatpush1.bf16.msra.mxu0 %v16845_v49  ;;  %v16914_v60 = vld [vmem:[#allocation24 + $0xb88] ss:$16 sps:$4 sm:$0xff]   ;;  %v16919_v49 = vld [vmem:[#allocation24 + $0x9ac] ss:$16 sps:$4 sm:$0xff]  }
 0xf75   : > { %12210 = vmatpush1.bf16.msra.mxu1 %v16848_v31  ;;  %12170 = vmatprep.subr.bf16.mxu0 %v16853_v28  ;;  %v16922_v31 = vld [vmem:[#allocation24 + $0xbac] ss:$16 sps:$4 sm:$0xff]   ;;  %v16917_v28 = vld [vmem:[#allocation24 + $0x9a8] ss:$16 sps:$4 sm:$0xff]  }
 0xf76   : > { %12211 = vmatprep.subr.bf16.mxu1 %v16856_v24  ;;  %v16920_v24 = vld [vmem:[#allocation24 + $0xba8] ss:$16 sps:$4 sm:$0xff]  }
 0xf78   : > { %12171 = vmatpush1.bf16.msra.mxu0 %v16851_v26  ;;  %v16925_v26 = vld [vmem:[#allocation24 + $0x9cc] ss:$16 sps:$4 sm:$0xff]  }
 0xf79   : > { %12212 = vmatpush1.bf16.msra.mxu1 %v16854_v20  ;;  %12172 = vmatprep.subr.bf16.mxu0 %v16859_v22  ;;  %v16928_v20 = vld [vmem:[#allocation24 + $0xbcc] ss:$16 sps:$4 sm:$0xff]   ;;  %v16923_v22 = vld [vmem:[#allocation24 + $0x9c8] ss:$16 sps:$4 sm:$0xff]  }
 0xf7a   : > { %12213 = vmatprep.subr.bf16.mxu1 %v16862_v55  ;;  %v16926_v55 = vld [vmem:[#allocation24 + $0xbc8] ss:$16 sps:$4 sm:$0xff]  }
 0xf7c   : > { %12173 = vmatpush1.bf16.msra.mxu0 %v16857_v33  ;;  %v16931_v33 = vld [vmem:[#allocation24 + $0x9ec] ss:$16 sps:$4 sm:$0xff]  }
 0xf7d   : > { %12214 = vmatpush1.bf16.msra.mxu1 %v16860_v27  ;;  %12174 = vmatprep.subr.bf16.mxu0 %v16865_v30  ;;  %v16934_v27 = vld [vmem:[#allocation24 + $0xbec] ss:$16 sps:$4 sm:$0xff]   ;;  %v16929_v30 = vld [vmem:[#allocation24 + $0x9e8] ss:$16 sps:$4 sm:$0xff]  }
 0xf7e   : > { %12215 = vmatprep.subr.bf16.mxu1 %v16868_v59  ;;  %v16932_v59 = vld [vmem:[#allocation24 + $0xbe8] ss:$16 sps:$4 sm:$0xff]  }
 0xf80   : > { %12175 = vmatpush1.bf16.msra.mxu0 %v16863_v21 }
 0xf81   : > { %12216 = vmatpush1.bf16.msra.mxu1 %v16866_v39  ;;  %12176 = vmatprep.subr.bf16.mxu0 %v16871_v2 }
 0xf82   : > { %v10460_v4 = vpop.f32.mrb[20].mxu0  ;;  %12217 = vmatprep.subr.bf16.mxu1 %v16874_v42 }
 0xf83   : > { %v10501_v8 = vpop.f32.mrb[20].mxu1  ;;  %v10462_v50 = vpop.f32.mrb[21].mxu0 }
 0xf84   : > { %v19971_v63 = vadd.f32 %v10501_v8, %v10460_v4  ;;  %v10503_v52 = vpop.f32.mrb[21].mxu1  ;;  %v10464_v46 = vpop.f32.mrb[22].mxu0  ;;  %12177 = vmatpush1.bf16.msra.mxu0 %v16869_v37 }
 0xf85   : > { %v19973_v51 = vadd.f32 %v10503_v52, %v10462_v50  ;;  %v10505_v17 = vpop.f32.mrb[22].mxu1  ;;  %12218 = vmatpush1.bf16.msra.mxu1 %v16872_v1  ;;  %v10465_v36 = vpop.f32.mrb[23].mxu0  ;;  %12178 = vmatprep.subr.bf16.mxu0 %v16877_v5  ;;  %v16935_v46 = vld [vmem:[#allocation26 + $0x40] sm:$0xff]  }
 0xf86   : > { %v10506_v12 = vpop.f32.mrb[23].mxu1  ;;  %12219 = vmatprep.subr.bf16.mxu1 %v16880_v45  ;;  %v16938_v17 = vld [vmem:[#allocation26 + $0x8] sm:$0xff]   ;;  %v16942_v36 = vld [vmem:[#allocation26 + $0x18] sm:$0xff]  }
 0xf87   : > { %v16943_v12 = vld [vmem:[#allocation26 + $0x60] sm:$0xff]  }
 0xf88   : > { %12179 = vmatpush1.bf16.msra.mxu0 %v16875_v61  ;;  %v16940_v61 = vld [vmem:[#allocation26 + $0x10] sm:$0xff]  }
 0xf89   : > { %12220 = vmatpush1.bf16.msra.mxu1 %v16878_v44  ;;  %12180 = vmatprep.subr.bf16.mxu0 %v16883_v56  ;;  %v16944_v44 = vld [vmem:[#allocation26 + $0x20] sm:$0xff]   ;;  %v16945_v56 = vld [vmem:[#allocation26 + $0x68] sm:$0xff]  }
 0xf8a   : > { %12221 = vmatprep.subr.bf16.mxu1 %v16886_v18  ;;  %v16946_v18 = vld [vmem:[#allocation26 + $0x28] sm:$0xff]  }
 0xf8c   : > { %12181 = vmatpush1.bf16.msra.mxu0 %v16881_v25  ;;  %v16947_v25 = vld [vmem:[#allocation26 + $0x70] sm:$0xff]  }
 0xf8d   : > { %12222 = vmatpush1.bf16.msra.mxu1 %v16884_v32  ;;  %12182 = vmatprep.subr.bf16.mxu0 %v16889_v10  ;;  %v16948_v32 = vld [vmem:[#allocation26 + $0x30] sm:$0xff]   ;;  %v16949_v10 = vld [vmem:[#allocation26 + $0x78] sm:$0xff]  }
 0xf8e   : > { %12223 = vmatprep.subr.bf16.mxu1 %v16892_v43  ;;  %v16950_v43 = vld [vmem:[#allocation26 + $0x38] sm:$0xff]  }
 0xf90   : > { %12183 = vmatpush1.bf16.msra.mxu0 %v16887_v19 }
 0xf91   : > { %12224 = vmatpush1.bf16.msra.mxu1 %v16890_v23  ;;  %12184 = vmatprep.subr.bf16.mxu0 %v16895_v3 }
 0xf92   : > { %12225 = vmatprep.subr.bf16.mxu1 %v16898_v57 }
 0xf94   : > { %12185 = vmatpush1.bf16.msra.mxu0 %v16893_v62 }
 0xf95   : > { %12226 = vmatpush1.bf16.msra.mxu1 %v16896_v41  ;;  %12186 = vmatprep.subr.bf16.mxu0 %v16901_v54 }
 0xf96   : > { %12227 = vmatprep.subr.bf16.mxu1 %v16904_v7 }
 0xf98   : > { %12187 = vmatpush1.bf16.msra.mxu0 %v16899_v29 }
 0xf99   : > { %12228 = vmatpush1.bf16.msra.mxu1 %v16902_v48  ;;  %12188 = vmatprep.subr.bf16.mxu0 %v16907_v34 }
 0xf9a   : > { %12229 = vmatprep.subr.bf16.mxu1 %v16910_v16 }
 0xf9c   : > { %12189 = vmatpush1.bf16.msra.mxu0 %v16905_v40  ;;  %v16951_v40 = vld [vmem:[#allocation26 + $0xc0] sm:$0xff]  }
 0xf9d   : > { %12230 = vmatpush1.bf16.msra.mxu1 %v16908_v58  ;;  %12190 = vmatprep.subr.bf16.mxu0 %v16913_v35  ;;  %v16952_v58 = vld [vmem:[#allocation26 + $0x80] sm:$0xff]   ;;  %v16953_v35 = vld [vmem:[#allocation26 + $0xc8] sm:$0xff]  }
 0xf9e   : > { %12231 = vmatprep.subr.bf16.mxu1 %v16916_v47  ;;  %v16954_v47 = vld [vmem:[#allocation26 + $0x88] sm:$0xff]  }
 0xfa0   : > { %12191 = vmatpush1.bf16.msra.mxu0 %v16911_v38  ;;  %v16956_v38 = vld [vmem:[#allocation26 + $0x90] sm:$0xff]  }
 0xfa1   : > { %12232 = vmatpush1.bf16.msra.mxu1 %v16914_v60  ;;  %12192 = vmatprep.subr.bf16.mxu0 %v16919_v49  ;;  %v16958_v60 = vld [vmem:[#allocation26 + $0x98] sm:$0xff]   ;;  %v16959_v49 = vld [vmem:[#allocation26 + $0xe0] sm:$0xff]  }
 0xfa2   : > { %12233 = vmatprep.subr.bf16.mxu1 %v16922_v31  ;;  %v16960_v31 = vld [vmem:[#allocation26 + $0xa0] sm:$0xff]  }
 0xfa4   : > { %12193 = vmatpush1.bf16.msra.mxu0 %v16917_v28  ;;  %v16961_v28 = vld [vmem:[#allocation26 + $0xe8] sm:$0xff]  }
 0xfa5   : > { %12234 = vmatpush1.bf16.msra.mxu1 %v16920_v24  ;;  %12194 = vmatprep.subr.bf16.mxu0 %v16925_v26  ;;  %v16962_v24 = vld [vmem:[#allocation26 + $0xa8] sm:$0xff]   ;;  %v16963_v26 = vld [vmem:[#allocation26 + $0xf0] sm:$0xff]  }
 0xfa6   : > { %12235 = vmatprep.subr.bf16.mxu1 %v16928_v20  ;;  %v16964_v20 = vld [vmem:[#allocation26 + $0xb0] sm:$0xff]  }
 0xfa8   : > { %12195 = vmatpush1.bf16.msra.mxu0 %v16923_v22  ;;  %v16965_v22 = vld [vmem:[#allocation26 + $0xf8] sm:$0xff]  }
 0xfa9   : > { %12236 = vmatpush1.bf16.msra.mxu1 %v16926_v55  ;;  %12196 = vmatprep.subr.bf16.mxu0 %v16931_v33  ;;  %v16966_v55 = vld [vmem:[#allocation26 + $0xb8] sm:$0xff]  }
 0xfaa   : > { %12237 = vmatprep.subr.bf16.mxu1 %v16934_v27  ;;  %v12252_v33 = vld [vmem:[#allocation25] sm:$0xf] }
 0xfac   : > { %12197 = vmatpush1.bf16.msra.mxu0 %v16929_v30 }
 0xfad   : > { %12238 = vmatpush1.bf16.msra.mxu1 %v16932_v59  ;;  %14506 = vmatprep.subr.bf16.mxu0 %v16935_v46 }
 0xfae   : > { %14528 = vmatprep.subr.bf16.mxu1 %v16951_v40 }
 0xfaf   : > { %12199 = vmatmul.mubr.bf16.vlgmr.msra.gmra.mrb[36].mxu0 %v19961_v6  ;;  %v16936_v6 = vld [vmem:[#allocation26] sm:$0xff]  }
 0xfb0   : > { %12240 = vmatmul.mubr.bf16.vlgmr.msra.gmra.mrb[36].mxu1 %v19965_v53  ;;  %14507 = vmatpush3.bf16.msra.mxu0 %v16936_v6  ;;  %v16937_v53 = vld [vmem:[#allocation26 + $0x48] sm:$0xff]  }
 0xfb1   : > { %14508 = vmatprep.subr.bf16.mxu0 %v16937_v53  ;;  %14529 = vmatpush3.bf16.msra.mxu1 %v16952_v58  ;;  %v12269_v58 = vrot.slane %v12252_v33, %v18591_v15 }
 0xfb2   : > { %14530 = vmatprep.subr.bf16.mxu1 %v16953_v35 }
 0xfb4   : > { %14509 = vmatpush3.bf16.msra.mxu0 %v16938_v17 }
 0xfb5   : > { %14531 = vmatpush3.bf16.msra.mxu1 %v16954_v47 }
 0xfc2   : > { %v11182_v21 = vpop.f32.mrb[24].mxu0 }
 0xfc3   : > { %v11223_v39 = vpop.f32.mrb[24].mxu1  ;;  %v11183_v2 = vadd.f32 %v11182_v21, %v19954_v9  ;;  %v11184_v42 = vpop.f32.mrb[25].mxu0  ;;  %v16939_v9 = vld [vmem:[#allocation26 + $0x50] sm:$0xff]  }
 0xfc4   : > { %v11225_v37 = vpop.f32.mrb[25].mxu1  ;;  %v11185_v1 = vadd.f32 %v11184_v42, %v19956_v0  ;;  %v11186_v5 = vpop.f32.mrb[26].mxu0  ;;  %14510 = vmatprep.subr.bf16.mxu0 %v16939_v9  ;;  %v16941_v0 = vld [vmem:[#allocation26 + $0x58] sm:$0xff]  }
 0xfc5   : > { %v11227_v4 = vpop.f32.mrb[26].mxu1  ;;  %v19979_v8 = vadd.f32 %v11223_v39, %v11183_v2  ;;  %v11187_v45 = vpop.f32.mrb[27].mxu0  ;;  %14511 = vmatpush3.bf16.msra.mxu0 %v16940_v61  ;;  %v12257_v39 = vrot.slane %v12252_v33, %v18580_v11 }
 0xfc6   : > { %v11228_v50 = vpop.f32.mrb[27].mxu1  ;;  %v19981_v52 = vadd.f32 %v11225_v37, %v11185_v1  ;;  %14512 = vmatprep.subr.bf16.mxu0 %v16941_v0  ;;  %v12261_v1 = vrot.slane %v12252_v33, %v18588_v14 }
 0xfc9   : > { %14513 = vmatpush3.bf16.msra.mxu0 %v16942_v36 }
 0xfca   : > { %14514 = vmatprep.subr.bf16.mxu0 %v16943_v12 }
 0xfcd   : > { %14515 = vmatpush3.bf16.msra.mxu0 %v16944_v44 }
 0xfce   : > { %14516 = vmatprep.subr.bf16.mxu0 %v16945_v56 }
 0xfd1   : > { %14517 = vmatpush3.bf16.msra.mxu0 %v16946_v18 }
 0xfd2   : > { %14518 = vmatprep.subr.bf16.mxu0 %v16947_v25 }
 0xfd5   : > { %14519 = vmatpush3.bf16.msra.mxu0 %v16948_v32 }
 0xfd6   : > { %14520 = vmatprep.subr.bf16.mxu0 %v16949_v10 }
 0xfd9   : > { %14521 = vmatpush3.bf16.msra.mxu0 %v16950_v43 }
0x1002   : > { %v11264_v19 = vpop.f32.mrb[28].mxu0 }
0x1003   : > { %v11305_v23 = vpop.f32.mrb[28].mxu1  ;;  %v11265_v3 = vadd.f32 %v11264_v19, %v19971_v63  ;;  %v11266_v57 = vpop.f32.mrb[29].mxu0  ;;  %v16955_v63 = vld [vmem:[#allocation26 + $0xd0] sm:$0xff]  }
0x1004   : > { %v11307_v62 = vpop.f32.mrb[29].mxu1  ;;  %v11267_v41 = vadd.f32 %v11266_v57, %v19973_v51  ;;  %v11268_v54 = vpop.f32.mrb[30].mxu0  ;;  %14532 = vmatprep.subr.bf16.mxu1 %v16955_v63  ;;  %v16957_v51 = vld [vmem:[#allocation26 + $0xd8] sm:$0xff]  }
0x1005   : > { %v11309_v7 = vpop.f32.mrb[30].mxu1  ;;  %v19985_v29 = vadd.f32 %v11305_v23, %v11265_v3  ;;  %v11269_v48 = vpop.f32.mrb[31].mxu0  ;;  %14533 = vmatpush3.bf16.msra.mxu1 %v16956_v38 }
0x1006   : > { %v11310_v34 = vpop.f32.mrb[31].mxu1  ;;  %v19987_v16 = vadd.f32 %v11307_v62, %v11267_v41  ;;  %14534 = vmatprep.subr.bf16.mxu1 %v16957_v51  ;;  %v12265_v7 = vrot.slane %v12252_v33, %v18585_v13 }
0x1009   : > { %14535 = vmatpush3.bf16.msra.mxu1 %v16958_v60 }
0x100a   : > { %14536 = vmatprep.subr.bf16.mxu1 %v16959_v49 }
0x100d   : > { %14537 = vmatpush3.bf16.msra.mxu1 %v16960_v31 }
0x100e   : > { %14538 = vmatprep.subr.bf16.mxu1 %v16961_v28 }
0x1011   : > { %14539 = vmatpush3.bf16.msra.mxu1 %v16962_v24 }
0x1012   : > { %14540 = vmatprep.subr.bf16.mxu1 %v16963_v26 }
0x1015   : > { %14541 = vmatpush3.bf16.msra.mxu1 %v16964_v20 }
0x1016   : > { %14542 = vmatprep.subr.bf16.mxu1 %v16965_v22 }
0x1019   : > { %14543 = vmatpush3.bf16.msra.mxu1 %v16966_v55 }
0x1042   : > { %v12118_v27 = vpop.f32.mrb[32].mxu0 }
0x1043   : > { %v12159_v30 = vpop.f32.mrb[32].mxu1  ;;  %v12120_v59 = vpop.f32.mrb[33].mxu0 }
0x1044   : > { %v12160_v21 = vadd.f32 %v12159_v30, %v12118_v27  ;;  %v12161_v2 = vpop.f32.mrb[33].mxu1  ;;  %v12122_v42 = vpop.f32.mrb[34].mxu0 }
0x1045   : > { %v12162_v37 = vadd.f32 %v12161_v2, %v12120_v59  ;;  %v12163_v5 = vpop.f32.mrb[34].mxu1  ;;  %v12123_v4 = vpop.f32.mrb[35].mxu0 }
0x1046   : > { %v12248_v45 = vadd.f32 %v12160_v21, %v19979_v8  ;;  %v12164_v50 = vpop.f32.mrb[35].mxu1 }
0x1047   : > { %v12249_v46 = vadd.f32 %v12162_v37, %v19981_v52 }
0x1048   : > { %v12274_v6 = vadd.f32 %v12257_v39, %v12248_v45 }
0x1049   : > { %v12275_v53 = vadd.f32 %v12261_v1, %v12249_v46  ;;  %v12382_v46 = vld [vmem:[#allocation28] sm:$0x1] }
0x104a   : > { %v12282_v17 = vmul.f32 0.044715, %v12274_v6  ;;  %v12278_v8 = vmul.f32 0.5, %v12274_v6 }
0x104b   : > { %v12283_v9 = vmul.f32 0.044715, %v12275_v53  ;;  %v12279_v10 = vmul.f32 0.5, %v12275_v53 }
0x104c   : > { %v12286_v61 = vmul.f32 %v12282_v17, %v12274_v6 }
0x104d   : > { %v12287_v0 = vmul.f32 %v12283_v9, %v12275_v53 }
0x104e   : > { %v12290_v36 = vmul.f32 %v12286_v61, %v12274_v6 }
0x104f   : > { %v12291_v11 = vmul.f32 %v12287_v0, %v12275_v53 }
0x1050   : > { %v12294_v12 = vadd.f32 %v12290_v36, %v12274_v6 }
0x1051   : > { %v12295_v44 = vadd.f32 %v12291_v11, %v12275_v53 }
0x1052   : > { %v12298_v56 = vmul.f32 0.7978846, %v12294_v12 }
0x1053   : > { %v12299_v18 = vmul.f32 0.7978846, %v12295_v44 }
0x1054   : > { %16967 = vtanh.f32 %v12298_v56 }
0x1055   : > { %16969 = vtanh.f32 %v12299_v18 }
0x105e   : > { %v16968_v14 = vpop.eup %16967 }
0x105f   : > { %v16970_v25 = vpop.eup %16969  ;;  %v12306_v32 = vadd.f32 1.0, %v16968_v14 }
0x1060   : > { %v12307_v52 = vadd.f32 1.0, %v16970_v25 }
0x1061   : > { %v12310_v43 = vmul.f32 %v12306_v32, %v12278_v8 }
0x1062   : > { %v12311_v19 = vmul.f32 %v12307_v52, %v12279_v10 }
0x1063   : > { %v12314_v3 = vpack.c.bf16 %v12310_v43, %v12310_v43 }
0x1064   : > { %v12315_v23 = vpack.c.bf16 %v12311_v19, %v12311_v19 }
0x1066   : > { %12607 = vmatprep.mubr.bf16.mxu0 %v12315_v23 }
0x1067   : > { %12608 = vmatmul.mubr.bf16.vlgmr.msra.gmra.mrb[40].mxu0 %v12314_v3 }
0x1082   : > { %v12200_v57 = vpop.f32.mrb[36].mxu0 }
0x1083   : > { %v12241_v62 = vpop.f32.mrb[36].mxu1  ;;  %v12202_v41 = vpop.f32.mrb[37].mxu0 }
0x1084   : > { %v12242_v54 = vadd.f32 %v12241_v62, %v12200_v57  ;;  %v12243_v48 = vpop.f32.mrb[37].mxu1  ;;  %v12204_v34 = vpop.f32.mrb[38].mxu0 }
0x1085   : > { %v12244_v40 = vadd.f32 %v12243_v48, %v12202_v41  ;;  %v12245_v35 = vpop.f32.mrb[38].mxu1  ;;  %v12205_v47 = vpop.f32.mrb[39].mxu0 }
0x1086   : > { %v12250_v63 = vadd.f32 %v12242_v54, %v19985_v29  ;;  %v12246_v38 = vpop.f32.mrb[39].mxu1 }
0x1087   : > { %v12251_v51 = vadd.f32 %v12244_v40, %v19987_v16 }
0x1088   : > { %v12276_v60 = vadd.f32 %v12265_v7, %v12250_v63 }
0x1089   : > { %v12277_v49 = vadd.f32 %v12269_v58, %v12251_v51 }
0x108a   : > { %v12284_v31 = vmul.f32 0.044715, %v12276_v60  ;;  %v12280_v29 = vmul.f32 0.5, %v12276_v60 }
0x108b   : > { %v12285_v28 = vmul.f32 0.044715, %v12277_v49  ;;  %v12281_v21 = vmul.f32 0.5, %v12277_v49 }
0x108c   : > { %v12288_v24 = vmul.f32 %v12284_v31, %v12276_v60 }
0x108d   : > { %v12289_v26 = vmul.f32 %v12285_v28, %v12277_v49 }
0x108e   : > { %v12292_v20 = vmul.f32 %v12288_v24, %v12276_v60 }
0x108f   : > { %v12293_v13 = vmul.f32 %v12289_v26, %v12277_v49 }
0x1090   : > { %v12296_v22 = vadd.f32 %v12292_v20, %v12276_v60 }
0x1091   : > { %v12297_v55 = vadd.f32 %v12293_v13, %v12277_v49 }
0x1092   : > { %v12300_v27 = vmul.f32 0.7978846, %v12296_v22 }
0x1093   : > { %v12301_v30 = vmul.f32 0.7978846, %v12297_v55 }
0x1094   : > { %16971 = vtanh.f32 %v12300_v27 }
0x1095   : > { %16973 = vtanh.f32 %v12301_v30 }
0x109e   : > { %v16972_v15 = vpop.eup %16971 }
0x109f   : > { %v16974_v33 = vpop.eup %16973  ;;  %v12308_v59 = vadd.f32 1.0, %v16972_v15 }
0x10a0   : > { %v12309_v16 = vadd.f32 1.0, %v16974_v33 }
0x10a1   : > { %v12312_v39 = vmul.f32 %v12308_v59, %v12280_v29 }
0x10a2   : > { %v12313_v2 = vmul.f32 %v12309_v16, %v12281_v21 }
0x10a3   : > { %v12316_v37 = vpack.c.bf16 %v12312_v39, %v12312_v39 }
0x10a4   : > { %v12317_v42 = vpack.c.bf16 %v12313_v2, %v12313_v2 }
0x10a6   : > { %12647 = vmatprep.mubr.bf16.mxu1 %v12317_v42 }
0x10a7   : > { %12648 = vmatmul.mubr.bf16.vlgmr.msra.gmra.mrb[40].mxu1 %v12316_v37 }
0x113a   : > { %v14522_v1 = vpop.f32.mrb[40].mxu0 }
0x113b   : > { %v14523_v5 = vpop.f32.mrb[41].mxu0 }
0x113c   : > { %v14524_v4 = vadd.f32 %v14523_v5, %v14522_v1  ;;  %v14525_v45 = vpop.f32.mrb[42].mxu0 }
0x113d   : > { %v14526_v50 = vpop.f32.mrb[43].mxu0 }
0x113e   : > { %v12610_v17 = vadd.f32 %v14524_v4, %v12382_v46 }
0x117a   : > { %v14544_v6 = vpop.f32.mrb[40].mxu1 }
0x117b   : > { %v14545_v53 = vpop.f32.mrb[41].mxu1 }
0x117c   : > { %v14546_v9 = vadd.f32 %v14545_v53, %v14544_v6  ;;  %v14547_v61 = vpop.f32.mrb[42].mxu1 }
0x117d   : > { %v14548_v0 = vpop.f32.mrb[43].mxu1 }
0x117e   : > { %v12650_v36 = vadd.f32 %v14546_v9, %v12610_v17 }
0x1180   : > { %12655 = vst [vmem:[#allocation29] sm:$0x1] %v12650_v36 }
0x1181 PF: > { %s20211_s29 = sld [smem:[#allocation47_spill]]  ;;  %s17647_s10 = smov [#allocation29]  }
0x1182   : > { %s12675_s26 = sshll.u32 %s17647_s10, 4  ;;  %s12676_s26 = int_to_ptr.vmem [resolvable:$true] %s12675_s26 }
0x1183   : > { %s17500_s1 = scalar_lea.vmem %s12676_s26, 16  ;;  %s17506_s12 = scalar_lea.vmem %s12676_s26, 32 }
0x1184   : > { %p17501_p12 = scmp.ne.s32.totalorder %s12676_s26, %s17500_s1  ;;  %p17507_p9 = scmp.lt.s32.totalorder %s12676_s26, %s12676_s26 }
0x1185   : > { %p17508_p4 = scmp.lt.s32.totalorder %s17506_s12, %s17500_s1 }
0x1187   : > { %p14853_p13 = scmp.eq.s32.totalorder %s20211_s29, 1  ;;  %p17509_p0 = por %p17508_p4, %p17507_p9 }
0x1189   : > { %p17502_p2 = pnand %p17501_p12, %p14853_p13 }
0x118b   : > { %p17503_p7 = pneg %p17502_p2 }
0x118d   : > { %p17510_p3 = pnand %p17509_p0, %p17503_p7 }
0x118f   : > { %17513 = shalt.err (!%p17510_p3)
}
0x1190   : > { %s20212_s17 = sld [smem:[#allocation71_spill]] }
0x1196   : > { %s17514_s5 = scalar_lea.hbm %s20212_s17, 16 }
0x1197   : > { %p17515_p6 = scmp.ne.s32.totalorder %s20212_s17, %s17514_s5  ;;  %p17520_p10 = scmp.lt.u32.totalorder %s17514_s5, %s20212_s17 }
0x1199   : > { %p17516_p11 = pnand %p17515_p6, %p14853_p13 }
0x119b   : > { %p17517_p8 = pneg %p17516_p11 }
0x119d   : > { %p17522_p5 = pnand %p17520_p10, %p17517_p8 }
0x119f   : > { %17525 = shalt.err (!%p17522_p5)
}
0x11a0   : > { %14777 = dma.vmem_to_hbm [thread:$0]  (%p14853_p13), %s12676_s26, 16, %s20212_s17, [#allocation5]  }
0x11a1   : > { %17599 = dma.done.wait (%p14853_p13), [#allocation5], 16  }
0x11a2   : > { %17601 = vsyncadd (%p14853_p13), [#allocation5], 4294967280 }
0x11a3 PF: > { %s20213_s27 = sld [smem:[#allocation49_spill]]  ;;  %s20214_s2 = sld [smem:[#allocation45_spill]] }
0x11a4   : > { %s20215_s25 = sld [smem:[#allocation46_spill]]  ;;  %s20216_s26 = sld [smem:[#allocation50_spill]] }
0x11a9   : > { %p47_p1 = scmp.ge.s32.totalorder %s20213_s27, 4  }
0x11ab   :  { %49 = sbr.rel (!%p47_p1) target bundleno = 34 (0x22), region = 307 }
0x11b2   :  { %12700 = vsyncpa [#allocation4], 1 }
0x11b3   :  { %12702 = vsyncpa [#allocation4 + $0x1], 1 }
0x11b4   :  { %12703 = vsyncpa [#allocation7], 1 }
0x11b5   :  { %12705 = vsyncpa [#allocation7 + $0x1], 1 }
0x11b6   :  { %12706 = vsyncpa [#allocation10], 1 }
0x11b7   :  { %12708 = vsyncpa [#allocation10 + $0x1], 1 }
0x11b8   :  { %12709 = vsyncpa [#allocation13], 1 }
0x11b9   :  { %12711 = vsyncpa [#allocation13 + $0x1], 1 }
0x11ba   :  { %12712 = vsyncpa [#allocation16], 1 }
0x11bb   :  { %12714 = vsyncpa [#allocation16 + $0x1], 1 }
0x11bc   :  { %12715 = vsyncpa [#allocation19], 1 }
0x11bd   :  { %12716 = vsyncpa [#allocation27], 1 }
0x11be   :  { %12717 = vsyncpa [#allocation5], 1 }
0x11bf   :  { %12719 = vsyncpa [#allocation5 + $0x1], 1 }

</bundles_post_ra>
